<compile_context>
chip_gen: v6e
topology: v6e:2x2x1
jax: 0.10.0
libtpu: 0.0.40
codegen_flags: <defaults>
</compile_context>

<pallas_src>
import math

import jax
import jax.numpy as jnp
from jax.experimental import pallas as pl
from jax.experimental.pallas import tpu as pltpu

NEG_SLOPE = 0.2   # F.leaky_relu(x, 0.2)
DROP_P = 0.3      # F.dropout(x, 0.3)


def _leaky_relu(x):
    return jnp.where(x > 0, x, NEG_SLOPE * x)


def _discriminator_kernel(x_ref,
                          w1_ref, b1_ref, m1_ref,
                          w2_ref, b2_ref, m2_ref,
                          w3_ref, b3_ref, m3_ref,
                          w4_ref, b4_ref,
                          o_ref):
    """Fused fc1 -> lrelu -> drop -> fc2 -> lrelu -> drop -> fc3 -> lrelu -> drop -> fc4 -> sigmoid.

    x_ref is a (TB, in_dim) f32 batch tile (cast to bf16 here so the MXU sees bf16 inputs);
    w1/w2/w3 are bf16 (in, out) weights; biases are f32 (1, out); m*_ref are pre-scaled
    bf16 inverted-dropout keep-masks for this tile; w4_ref is a (1, h3) f32 row used in a
    VPU/XLU reduction instead of an N=1 MXU matmul.
    """
    x = x_ref[...].astype(jnp.bfloat16)

    h = jnp.dot(x, w1_ref[...], preferred_element_type=jnp.float32) + b1_ref[...]
    h = _leaky_relu(h) * m1_ref[...].astype(jnp.float32)

    h = jnp.dot(h.astype(jnp.bfloat16), w2_ref[...],
                preferred_element_type=jnp.float32) + b2_ref[...]
    h = _leaky_relu(h) * m2_ref[...].astype(jnp.float32)

    h = jnp.dot(h.astype(jnp.bfloat16), w3_ref[...],
                preferred_element_type=jnp.float32) + b3_ref[...]
    h = _leaky_relu(h) * m3_ref[...].astype(jnp.float32)

    # fc4 has a single output column: do it as an elementwise multiply + cross-lane
    # reduction (VPU/XLU) so the MXU epilogue and a 1-lane-wide matmul are avoided.
    logits = jnp.sum(h * w4_ref[...], axis=-1, keepdims=True) + b4_ref[...]
    o_ref[...] = jax.nn.sigmoid(logits).astype(o_ref.dtype)


def _pick_batch_tile(B, batch_tile):
    """Pick a batch tile that never requires padding (no wrapper-side jnp.pad pass)."""
    if B <= batch_tile:
        return B
    # Largest multiple-of-8 divisor of B that fits the requested tile size.
    for tb in range(batch_tile, 7, -1):
        if B % tb == 0 and tb % 8 == 0:
            return tb
    # No suitable divisor: fall back to one full-batch tile (still no padding).
    return B


def discriminator_forward(img, params, masks, *, batch_tile=256):
    """img: (B, C, H, W) float32.

    params: (w1, b1, w2, b2, w3, b3, w4, b4) with weights already transposed to (in, out)
            and biases shaped (1, out).
    masks:  (m1, m2, m3) pre-scaled inverted-dropout keep-masks (values 0 or 1/(1-p)),
            shapes (B, h1), (B, h2), (B, h3).
    Returns sigmoid logits of shape (B, 1), float32.
    """
    B = img.shape[0]
    in_dim = math.prod(img.shape[1:])
    x = img.reshape(B, in_dim)                      # img.view(B, -1); stays f32, cast in-kernel

    w1, b1, w2, b2, w3, b3, w4, b4 = params
    m1, m2, m3 = masks
    h1, h2, h3 = w1.shape[1], w2.shape[1], w3.shape[1]

    # bf16 MXU inputs; f32 accumulation happens inside the kernel. Biases stay f32.
    w1 = w1.astype(jnp.bfloat16)
    w2 = w2.astype(jnp.bfloat16)
    w3 = w3.astype(jnp.bfloat16)
    w4 = w4.reshape(1, h3).astype(jnp.float32)      # used in a VPU reduction, keep f32
    b1 = b1.astype(jnp.float32)
    b2 = b2.astype(jnp.float32)
    b3 = b3.astype(jnp.float32)
    b4 = b4.reshape(1, 1).astype(jnp.float32)
    # Halve mask bytes streamed from HBM.
    m1 = m1.astype(jnp.bfloat16)
    m2 = m2.astype(jnp.bfloat16)
    m3 = m3.astype(jnp.bfloat16)

    tb = _pick_batch_tile(B, batch_tile)
    n_tiles = B // tb

    def _run(single_buffer_weights):
        def tile_spec(cols):                        # streams with the batch grid axis
            return pl.BlockSpec((tb, cols), lambda i: (i, 0))

        def const_spec(shape):                      # VMEM-resident across all grid steps
            if single_buffer_weights:
                # Constant index_map never re-DMAs; single-buffer to halve resident VMEM.
                return pl.BlockSpec(shape, lambda i: (0, 0), pipeline_mode=pl.Buffered(1))
            return pl.BlockSpec(shape, lambda i: (0, 0))

        return pl.pallas_call(
            _discriminator_kernel,
            out_shape=jax.ShapeDtypeStruct((B, 1), jnp.float32),
            grid=(n_tiles,),
            in_specs=[
                tile_spec(in_dim),
                const_spec(w1.shape), const_spec(b1.shape), tile_spec(h1),
                const_spec(w2.shape), const_spec(b2.shape), tile_spec(h2),
                const_spec(w3.shape), const_spec(b3.shape), tile_spec(h3),
                const_spec(w4.shape), const_spec(b4.shape),
            ],
            out_specs=pl.BlockSpec((tb, 1), lambda i: (i, 0)),
            compiler_params=pltpu.CompilerParams(
                dimension_semantics=("parallel",),  # shard batch tiles across TCs
                vmem_limit_bytes=32 * 1024 * 1024,  # explicit budget; resident set ~10 MiB
            ),
        )(x, w1, b1, m1, w2, b2, m2, w3, b3, m3, w4, b4)

    try:
        return _run(True)
    except Exception:
        # Fallback if this jax build rejects pl.Buffered(1) for constant blocks.
        return _run(False)


if __name__ == "__main__":
    key = jax.random.PRNGKey(0)
    keys = jax.random.split(key, 12)

    # Small shapes consistent with the module: img_shape=(4, 16, 16) -> in_dim=1024, hidden_dim=1024.
    B, C, H, W = 2, 4, 16, 16
    in_dim = C * H * W
    hidden = 1024
    h1, h2, h3 = hidden, hidden // 2, hidden // 4

    img = jax.random.normal(keys[0], (B, C, H, W), dtype=jnp.float32)

    def linear_params(kw, kb, fan_in, fan_out):
        # nn.Linear default init: U(-1/sqrt(fan_in), 1/sqrt(fan_in)); weight stored as (in, out).
        bound = 1.0 / math.sqrt(fan_in)
        w = jax.random.uniform(kw, (fan_in, fan_out), jnp.float32, -bound, bound)
        b = jax.random.uniform(kb, (1, fan_out), jnp.float32, -bound, bound)
        return w, b

    w1, b1 = linear_params(keys[1], keys[2], in_dim, h1)
    w2, b2 = linear_params(keys[3], keys[4], h1, h2)
    w3, b3 = linear_params(keys[5], keys[6], h2, h3)
    w4, b4 = linear_params(keys[7], keys[8], h3, 1)

    # F.dropout(p=0.3, training=True): keep with prob 0.7, scale kept units by 1/0.7.
    # Masks are created pre-scaled and stored in bf16 (what the kernel streams).
    keep = 1.0 - DROP_P

    def make_mask(k, shape):
        return jnp.where(jax.random.bernoulli(k, keep, shape), 1.0 / keep, 0.0).astype(jnp.bfloat16)

    m1 = make_mask(keys[9], (B, h1))
    m2 = make_mask(keys[10], (B, h2))
    m3 = make_mask(keys[11], (B, h3))

    params = (w1, b1, w2, b2, w3, b3, w4, b4)
    masks = (m1, m2, m3)

    out = discriminator_forward(img, params, masks)
    out = jax.block_until_ready(out)

    # Pure-JAX f32 reference with the same (bf16-quantized) dropout masks.
    xf = img.reshape(B, -1)
    m1f, m2f, m3f = (m.astype(jnp.float32) for m in (m1, m2, m3))

    def lrelu(v):
        return jnp.where(v > 0, v, NEG_SLOPE * v)

    r = lrelu(xf @ w1 + b1) * m1f
    r = lrelu(r @ w2 + b2) * m2f
    r = lrelu(r @ w3 + b3) * m3f
    ref = jax.nn.sigmoid(r @ w4 + b4)

    assert out.shape == (B, 1)
    # bf16 MXU inputs diverge slightly from the f32 reference; tolerance loosened accordingly.
    assert jnp.allclose(out, ref, atol=3e-2, rtol=3e-2), float(jnp.max(jnp.abs(out - ref)))

    print("KERNEL_OK")
</pallas_src>

<mosaic_0001>
module attributes {stable_mosaic.version = 11 : i64} {
  func.func @_discriminator_kernel(%arg0: i32, %arg1: memref<2x1024xf32, #tpu.memory_space<vmem>>, %arg2: memref<1024x1024xbf16, #tpu.memory_space<vmem>>, %arg3: memref<1x1024xf32, #tpu.memory_space<vmem>>, %arg4: memref<2x1024xbf16, #tpu.memory_space<vmem>>, %arg5: memref<1024x512xbf16, #tpu.memory_space<vmem>>, %arg6: memref<1x512xf32, #tpu.memory_space<vmem>>, %arg7: memref<2x512xbf16, #tpu.memory_space<vmem>>, %arg8: memref<512x256xbf16, #tpu.memory_space<vmem>>, %arg9: memref<1x256xf32, #tpu.memory_space<vmem>>, %arg10: memref<2x256xbf16, #tpu.memory_space<vmem>>, %arg11: memref<1x256xf32, #tpu.memory_space<vmem>>, %arg12: memref<1x1xf32, #tpu.memory_space<vmem>>, %arg13: memref<2x1xf32, #tpu.memory_space<vmem>>) attributes {dimension_semantics = [#tpu.dimension_semantics<parallel>], iteration_bounds = array<i64: 1>, scalar_prefetch = 0 : i64, scratch_operands = 0 : i64, tpu.core_type = #tpu.core_type<tc>, window_params = [{transform_indices = @transform_0, window_bounds = array<i64: 2, 1024>}, {pipeline_mode = #tpu.pipeline_mode<synchronous>, transform_indices = @transform_1, window_bounds = array<i64: 1024, 1024>}, {pipeline_mode = #tpu.pipeline_mode<synchronous>, transform_indices = @transform_2, window_bounds = array<i64: 1, 1024>}, {transform_indices = @transform_3, window_bounds = array<i64: 2, 1024>}, {pipeline_mode = #tpu.pipeline_mode<synchronous>, transform_indices = @transform_4, window_bounds = array<i64: 1024, 512>}, {pipeline_mode = #tpu.pipeline_mode<synchronous>, transform_indices = @transform_5, window_bounds = array<i64: 1, 512>}, {transform_indices = @transform_6, window_bounds = array<i64: 2, 512>}, {pipeline_mode = #tpu.pipeline_mode<synchronous>, transform_indices = @transform_7, window_bounds = array<i64: 512, 256>}, {pipeline_mode = #tpu.pipeline_mode<synchronous>, transform_indices = @transform_8, window_bounds = array<i64: 1, 256>}, {transform_indices = @transform_9, window_bounds = array<i64: 2, 256>}, {pipeline_mode = #tpu.pipeline_mode<synchronous>, transform_indices = @transform_10, window_bounds = array<i64: 1, 256>}, {pipeline_mode = #tpu.pipeline_mode<synchronous>, transform_indices = @transform_11, window_bounds = array<i64: 1, 1>}, {transform_indices = @transform_12, window_bounds = array<i64: 2, 1>}]} {
    %c0 = arith.constant 0 : index
    %c0_0 = arith.constant 0 : index
    %0 = vector.load %arg1[%c0, %c0_0] : memref<2x1024xf32, #tpu.memory_space<vmem>>, vector<2x1024xf32>
    %1 = arith.truncf %0 : vector<2x1024xf32> to vector<2x1024xbf16>
    %c0_1 = arith.constant 0 : index
    %c0_2 = arith.constant 0 : index
    %2 = vector.load %arg2[%c0_1, %c0_2] : memref<1024x1024xbf16, #tpu.memory_space<vmem>>, vector<1024x1024xbf16>
    %cst = arith.constant dense<0.000000e+00> : vector<2x1024xf32>
    %3 = tpu.matmul %1, %2, %cst {dimension_numbers = #tpu.dot_dimension_numbers<[1], [0], [0], [1], [0, 0, 1, 1], [], []>} : vector<2x1024xbf16>, vector<1024x1024xbf16>, vector<2x1024xf32> -> vector<2x1024xf32>
    %c0_3 = arith.constant 0 : index
    %c0_4 = arith.constant 0 : index
    %4 = vector.load %arg3[%c0_3, %c0_4] : memref<1x1024xf32, #tpu.memory_space<vmem>>, vector<1x1024xf32>
    %5 = vector.broadcast %4 : vector<1x1024xf32> to vector<2x1024xf32>
    %6 = arith.addf %3, %5 : vector<2x1024xf32>
    %cst_5 = arith.constant 0.000000e+00 : f32
    %7 = vector.broadcast %cst_5 : f32 to vector<2x1024xf32>
    %8 = arith.cmpf ogt, %6, %7 : vector<2x1024xf32>
    %cst_6 = arith.constant 2.000000e-01 : f32
    %9 = vector.broadcast %cst_6 : f32 to vector<2x1024xf32>
    %10 = arith.mulf %9, %6 : vector<2x1024xf32>
    %11 = arith.select %8, %6, %10 : vector<2x1024xi1>, vector<2x1024xf32>
    %c0_7 = arith.constant 0 : index
    %c0_8 = arith.constant 0 : index
    %12 = vector.load %arg4[%c0_7, %c0_8] : memref<2x1024xbf16, #tpu.memory_space<vmem>>, vector<2x1024xbf16>
    %13 = arith.extf %12 : vector<2x1024xbf16> to vector<2x1024xf32>
    %14 = arith.mulf %11, %13 : vector<2x1024xf32>
    %15 = arith.truncf %14 : vector<2x1024xf32> to vector<2x1024xbf16>
    %c0_9 = arith.constant 0 : index
    %c0_10 = arith.constant 0 : index
    %16 = vector.load %arg5[%c0_9, %c0_10] : memref<1024x512xbf16, #tpu.memory_space<vmem>>, vector<1024x512xbf16>
    %cst_11 = arith.constant dense<0.000000e+00> : vector<2x512xf32>
    %17 = tpu.matmul %15, %16, %cst_11 {dimension_numbers = #tpu.dot_dimension_numbers<[1], [0], [0], [1], [0, 0, 1, 1], [], []>} : vector<2x1024xbf16>, vector<1024x512xbf16>, vector<2x512xf32> -> vector<2x512xf32>
    %c0_12 = arith.constant 0 : index
    %c0_13 = arith.constant 0 : index
    %18 = vector.load %arg6[%c0_12, %c0_13] : memref<1x512xf32, #tpu.memory_space<vmem>>, vector<1x512xf32>
    %19 = vector.broadcast %18 : vector<1x512xf32> to vector<2x512xf32>
    %20 = arith.addf %17, %19 : vector<2x512xf32>
    %cst_14 = arith.constant 0.000000e+00 : f32
    %21 = vector.broadcast %cst_14 : f32 to vector<2x512xf32>
    %22 = arith.cmpf ogt, %20, %21 : vector<2x512xf32>
    %cst_15 = arith.constant 2.000000e-01 : f32
    %23 = vector.broadcast %cst_15 : f32 to vector<2x512xf32>
    %24 = arith.mulf %23, %20 : vector<2x512xf32>
    %25 = arith.select %22, %20, %24 : vector<2x512xi1>, vector<2x512xf32>
    %c0_16 = arith.constant 0 : index
    %c0_17 = arith.constant 0 : index
    %26 = vector.load %arg7[%c0_16, %c0_17] : memref<2x512xbf16, #tpu.memory_space<vmem>>, vector<2x512xbf16>
    %27 = arith.extf %26 : vector<2x512xbf16> to vector<2x512xf32>
    %28 = arith.mulf %25, %27 : vector<2x512xf32>
    %29 = arith.truncf %28 : vector<2x512xf32> to vector<2x512xbf16>
    %c0_18 = arith.constant 0 : index
    %c0_19 = arith.constant 0 : index
    %30 = vector.load %arg8[%c0_18, %c0_19] : memref<512x256xbf16, #tpu.memory_space<vmem>>, vector<512x256xbf16>
    %cst_20 = arith.constant dense<0.000000e+00> : vector<2x256xf32>
    %31 = tpu.matmul %29, %30, %cst_20 {dimension_numbers = #tpu.dot_dimension_numbers<[1], [0], [0], [1], [0, 0, 1, 1], [], []>} : vector<2x512xbf16>, vector<512x256xbf16>, vector<2x256xf32> -> vector<2x256xf32>
    %c0_21 = arith.constant 0 : index
    %c0_22 = arith.constant 0 : index
    %32 = vector.load %arg9[%c0_21, %c0_22] : memref<1x256xf32, #tpu.memory_space<vmem>>, vector<1x256xf32>
    %33 = vector.broadcast %32 : vector<1x256xf32> to vector<2x256xf32>
    %34 = arith.addf %31, %33 : vector<2x256xf32>
    %cst_23 = arith.constant 0.000000e+00 : f32
    %35 = vector.broadcast %cst_23 : f32 to vector<2x256xf32>
    %36 = arith.cmpf ogt, %34, %35 : vector<2x256xf32>
    %cst_24 = arith.constant 2.000000e-01 : f32
    %37 = vector.broadcast %cst_24 : f32 to vector<2x256xf32>
    %38 = arith.mulf %37, %34 : vector<2x256xf32>
    %39 = arith.select %36, %34, %38 : vector<2x256xi1>, vector<2x256xf32>
    %c0_25 = arith.constant 0 : index
    %c0_26 = arith.constant 0 : index
    %40 = vector.load %arg10[%c0_25, %c0_26] : memref<2x256xbf16, #tpu.memory_space<vmem>>, vector<2x256xbf16>
    %41 = arith.extf %40 : vector<2x256xbf16> to vector<2x256xf32>
    %42 = arith.mulf %39, %41 : vector<2x256xf32>
    %c0_27 = arith.constant 0 : index
    %c0_28 = arith.constant 0 : index
    %43 = vector.load %arg11[%c0_27, %c0_28] : memref<1x256xf32, #tpu.memory_space<vmem>>, vector<1x256xf32>
    %44 = vector.broadcast %43 : vector<1x256xf32> to vector<2x256xf32>
    %45 = arith.mulf %42, %44 : vector<2x256xf32>
    %cst_29 = arith.constant dense<0.000000e+00> : vector<2xf32>
    %46 = vector.multi_reduction <add>, %45, %cst_29 [1] : vector<2x256xf32> to vector<2xf32>
    %47 = vector.shape_cast %46 : vector<2xf32> to vector<2x1xf32>
    %c0_30 = arith.constant 0 : index
    %c0_31 = arith.constant 0 : index
    %48 = vector.load %arg12[%c0_30, %c0_31] : memref<1x1xf32, #tpu.memory_space<vmem>>, vector<1x1xf32>
    %49 = vector.broadcast %48 : vector<1x1xf32> to vector<2x1xf32>
    %50 = arith.addf %47, %49 : vector<2x1xf32>
    %51 = arith.negf %50 : vector<2x1xf32>
    %52 = math.exp %51 : vector<2x1xf32>
    %cst_32 = arith.constant 1.000000e+00 : f32
    %53 = vector.broadcast %cst_32 : f32 to vector<2x1xf32>
    %54 = arith.addf %53, %52 : vector<2x1xf32>
    %55 = arith.divf %53, %54 : vector<2x1xf32>
    %c0_33 = arith.constant 0 : index
    %c0_34 = arith.constant 0 : index
    %56 = vector.load %arg13[%c0_33, %c0_34] : memref<2x1xf32, #tpu.memory_space<vmem>>, vector<2x1xf32>
    tpu.vector_store %arg13[%c0_33, %c0_34], %55 {strides = array<i32>} : memref<2x1xf32, #tpu.memory_space<vmem>>, vector<2x1xf32>,
    return
  }
  func.func @transform_0(%arg0: i32) -> (i32, i32) {
    %c0_i32 = arith.constant 0 : i32
    %c0_i32_0 = arith.constant 0 : i32
    return %arg0, %c0_i32 : i32, i32
  }
  func.func @transform_1(%arg0: i32) -> (i32, i32) {
    %c0_i32 = arith.constant 0 : i32
    %c0_i32_0 = arith.constant 0 : i32
    %c0_i32_1 = arith.constant 0 : i32
    return %c0_i32, %c0_i32_0 : i32, i32
  }
  func.func @transform_2(%arg0: i32) -> (i32, i32) {
    %c0_i32 = arith.constant 0 : i32
    %c0_i32_0 = arith.constant 0 : i32
    %c0_i32_1 = arith.constant 0 : i32
    return %c0_i32, %c0_i32_0 : i32, i32
  }
  func.func @transform_3(%arg0: i32) -> (i32, i32) {
    %c0_i32 = arith.constant 0 : i32
    %c0_i32_0 = arith.constant 0 : i32
    return %arg0, %c0_i32 : i32, i32
  }
  func.func @transform_4(%arg0: i32) -> (i32, i32) {
    %c0_i32 = arith.constant 0 : i32
    %c0_i32_0 = arith.constant 0 : i32
    %c0_i32_1 = arith.constant 0 : i32
    return %c0_i32, %c0_i32_0 : i32, i32
  }
  func.func @transform_5(%arg0: i32) -> (i32, i32) {
    %c0_i32 = arith.constant 0 : i32
    %c0_i32_0 = arith.constant 0 : i32
    %c0_i32_1 = arith.constant 0 : i32
    return %c0_i32, %c0_i32_0 : i32, i32
  }
  func.func @transform_6(%arg0: i32) -> (i32, i32) {
    %c0_i32 = arith.constant 0 : i32
    %c0_i32_0 = arith.constant 0 : i32
    return %arg0, %c0_i32 : i32, i32
  }
  func.func @transform_7(%arg0: i32) -> (i32, i32) {
    %c0_i32 = arith.constant 0 : i32
    %c0_i32_0 = arith.constant 0 : i32
    %c0_i32_1 = arith.constant 0 : i32
    return %c0_i32, %c0_i32_0 : i32, i32
  }
  func.func @transform_8(%arg0: i32) -> (i32, i32) {
    %c0_i32 = arith.constant 0 : i32
    %c0_i32_0 = arith.constant 0 : i32
    %c0_i32_1 = arith.constant 0 : i32
    return %c0_i32, %c0_i32_0 : i32, i32
  }
  func.func @transform_9(%arg0: i32) -> (i32, i32) {
    %c0_i32 = arith.constant 0 : i32
    %c0_i32_0 = arith.constant 0 : i32
    return %arg0, %c0_i32 : i32, i32
  }
  func.func @transform_10(%arg0: i32) -> (i32, i32) {
    %c0_i32 = arith.constant 0 : i32
    %c0_i32_0 = arith.constant 0 : i32
    %c0_i32_1 = arith.constant 0 : i32
    return %c0_i32, %c0_i32_0 : i32, i32
  }
  func.func @transform_11(%arg0: i32) -> (i32, i32) {
    %c0_i32 = arith.constant 0 : i32
    %c0_i32_0 = arith.constant 0 : i32
    %c0_i32_1 = arith.constant 0 : i32
    return %c0_i32, %c0_i32_0 : i32, i32
  }
  func.func @transform_12(%arg0: i32) -> (i32, i32) {
    %c0_i32 = arith.constant 0 : i32
    %c0_i32_0 = arith.constant 0 : i32
    return %arg0, %c0_i32 : i32, i32
  }
}

module attributes {stable_mosaic.version = 11 : i64} {
  func.func @_discriminator_kernel(%arg0: i32, %arg1: memref<2x1024xf32, #tpu.memory_space<vmem>>, %arg2: memref<1024x1024xbf16, #tpu.memory_space<vmem>>, %arg3: memref<1x1024xf32, #tpu.memory_space<vmem>>, %arg4: memref<2x1024xbf16, #tpu.memory_space<vmem>>, %arg5: memref<1024x512xbf16, #tpu.memory_space<vmem>>, %arg6: memref<1x512xf32, #tpu.memory_space<vmem>>, %arg7: memref<2x512xbf16, #tpu.memory_space<vmem>>, %arg8: memref<512x256xbf16, #tpu.memory_space<vmem>>, %arg9: memref<1x256xf32, #tpu.memory_space<vmem>>, %arg10: memref<2x256xbf16, #tpu.memory_space<vmem>>, %arg11: memref<1x256xf32, #tpu.memory_space<vmem>>, %arg12: memref<1x1xf32, #tpu.memory_space<vmem>>, %arg13: memref<2x1xf32, #tpu.memory_space<vmem>>) attributes {dimension_semantics = [#tpu.dimension_semantics<parallel>], iteration_bounds = array<i64: 1>, scalar_prefetch = 0 : i64, scratch_operands = 0 : i64, tpu.core_type = #tpu.core_type<tc>, window_params = [{transform_indices = @transform_0, window_bounds = array<i64: 2, 1024>}, {pipeline_mode = #tpu.pipeline_mode<synchronous>, transform_indices = @transform_1, window_bounds = array<i64: 1024, 1024>}, {pipeline_mode = #tpu.pipeline_mode<synchronous>, transform_indices = @transform_2, window_bounds = array<i64: 1, 1024>}, {transform_indices = @transform_3, window_bounds = array<i64: 2, 1024>}, {pipeline_mode = #tpu.pipeline_mode<synchronous>, transform_indices = @transform_4, window_bounds = array<i64: 1024, 512>}, {pipeline_mode = #tpu.pipeline_mode<synchronous>, transform_indices = @transform_5, window_bounds = array<i64: 1, 512>}, {transform_indices = @transform_6, window_bounds = array<i64: 2, 512>}, {pipeline_mode = #tpu.pipeline_mode<synchronous>, transform_indices = @transform_7, window_bounds = array<i64: 512, 256>}, {pipeline_mode = #tpu.pipeline_mode<synchronous>, transform_indices = @transform_8, window_bounds = array<i64: 1, 256>}, {transform_indices = @transform_9, window_bounds = array<i64: 2, 256>}, {pipeline_mode = #tpu.pipeline_mode<synchronous>, transform_indices = @transform_10, window_bounds = array<i64: 1, 256>}, {pipeline_mode = #tpu.pipeline_mode<synchronous>, transform_indices = @transform_11, window_bounds = array<i64: 1, 1>}, {transform_indices = @transform_12, window_bounds = array<i64: 2, 1>}]} {
    %c0 = arith.constant 0 : index
    %c0_0 = arith.constant 0 : index
    %0 = vector.load %arg1[%c0, %c0_0] : memref<2x1024xf32, #tpu.memory_space<vmem>>, vector<2x1024xf32>
    %1 = arith.truncf %0 : vector<2x1024xf32> to vector<2x1024xbf16>
    %c0_1 = arith.constant 0 : index
    %c0_2 = arith.constant 0 : index
    %2 = vector.load %arg2[%c0_1, %c0_2] : memref<1024x1024xbf16, #tpu.memory_space<vmem>>, vector<1024x1024xbf16>
    %cst = arith.constant dense<0.000000e+00> : vector<2x1024xf32>
    %3 = tpu.matmul %1, %2, %cst {dimension_numbers = #tpu.dot_dimension_numbers<[1], [0], [0], [1], [0, 0, 1, 1], [], []>} : vector<2x1024xbf16>, vector<1024x1024xbf16>, vector<2x1024xf32> -> vector<2x1024xf32>
    %c0_3 = arith.constant 0 : index
    %c0_4 = arith.constant 0 : index
    %4 = vector.load %arg3[%c0_3, %c0_4] : memref<1x1024xf32, #tpu.memory_space<vmem>>, vector<1x1024xf32>
    %5 = vector.broadcast %4 : vector<1x1024xf32> to vector<2x1024xf32>
    %6 = arith.addf %3, %5 : vector<2x1024xf32>
    %cst_5 = arith.constant 0.000000e+00 : f32
    %7 = vector.broadcast %cst_5 : f32 to vector<2x1024xf32>
    %8 = arith.cmpf ogt, %6, %7 : vector<2x1024xf32>
    %cst_6 = arith.constant 2.000000e-01 : f32
    %9 = vector.broadcast %cst_6 : f32 to vector<2x1024xf32>
    %10 = arith.mulf %9, %6 : vector<2x1024xf32>
    %11 = arith.select %8, %6, %10 : vector<2x1024xi1>, vector<2x1024xf32>
    %c0_7 = arith.constant 0 : index
    %c0_8 = arith.constant 0 : index
    %12 = vector.load %arg4[%c0_7, %c0_8] : memref<2x1024xbf16, #tpu.memory_space<vmem>>, vector<2x1024xbf16>
    %13 = arith.extf %12 : vector<2x1024xbf16> to vector<2x1024xf32>
    %14 = arith.mulf %11, %13 : vector<2x1024xf32>
    %15 = arith.truncf %14 : vector<2x1024xf32> to vector<2x1024xbf16>
    %c0_9 = arith.constant 0 : index
    %c0_10 = arith.constant 0 : index
    %16 = vector.load %arg5[%c0_9, %c0_10] : memref<1024x512xbf16, #tpu.memory_space<vmem>>, vector<1024x512xbf16>
    %cst_11 = arith.constant dense<0.000000e+00> : vector<2x512xf32>
    %17 = tpu.matmul %15, %16, %cst_11 {dimension_numbers = #tpu.dot_dimension_numbers<[1], [0], [0], [1], [0, 0, 1, 1], [], []>} : vector<2x1024xbf16>, vector<1024x512xbf16>, vector<2x512xf32> -> vector<2x512xf32>
    %c0_12 = arith.constant 0 : index
    %c0_13 = arith.constant 0 : index
    %18 = vector.load %arg6[%c0_12, %c0_13] : memref<1x512xf32, #tpu.memory_space<vmem>>, vector<1x512xf32>
    %19 = vector.broadcast %18 : vector<1x512xf32> to vector<2x512xf32>
    %20 = arith.addf %17, %19 : vector<2x512xf32>
    %cst_14 = arith.constant 0.000000e+00 : f32
    %21 = vector.broadcast %cst_14 : f32 to vector<2x512xf32>
    %22 = arith.cmpf ogt, %20, %21 : vector<2x512xf32>
    %cst_15 = arith.constant 2.000000e-01 : f32
    %23 = vector.broadcast %cst_15 : f32 to vector<2x512xf32>
    %24 = arith.mulf %23, %20 : vector<2x512xf32>
    %25 = arith.select %22, %20, %24 : vector<2x512xi1>, vector<2x512xf32>
    %c0_16 = arith.constant 0 : index
    %c0_17 = arith.constant 0 : index
    %26 = vector.load %arg7[%c0_16, %c0_17] : memref<2x512xbf16, #tpu.memory_space<vmem>>, vector<2x512xbf16>
    %27 = arith.extf %26 : vector<2x512xbf16> to vector<2x512xf32>
    %28 = arith.mulf %25, %27 : vector<2x512xf32>
    %29 = arith.truncf %28 : vector<2x512xf32> to vector<2x512xbf16>
    %c0_18 = arith.constant 0 : index
    %c0_19 = arith.constant 0 : index
    %30 = vector.load %arg8[%c0_18, %c0_19] : memref<512x256xbf16, #tpu.memory_space<vmem>>, vector<512x256xbf16>
    %cst_20 = arith.constant dense<0.000000e+00> : vector<2x256xf32>
    %31 = tpu.matmul %29, %30, %cst_20 {dimension_numbers = #tpu.dot_dimension_numbers<[1], [0], [0], [1], [0, 0, 1, 1], [], []>} : vector<2x512xbf16>, vector<512x256xbf16>, vector<2x256xf32> -> vector<2x256xf32>
    %c0_21 = arith.constant 0 : index
    %c0_22 = arith.constant 0 : index
    %32 = vector.load %arg9[%c0_21, %c0_22] : memref<1x256xf32, #tpu.memory_space<vmem>>, vector<1x256xf32>
    %33 = vector.broadcast %32 : vector<1x256xf32> to vector<2x256xf32>
    %34 = arith.addf %31, %33 : vector<2x256xf32>
    %cst_23 = arith.constant 0.000000e+00 : f32
    %35 = vector.broadcast %cst_23 : f32 to vector<2x256xf32>
    %36 = arith.cmpf ogt, %34, %35 : vector<2x256xf32>
    %cst_24 = arith.constant 2.000000e-01 : f32
    %37 = vector.broadcast %cst_24 : f32 to vector<2x256xf32>
    %38 = arith.mulf %37, %34 : vector<2x256xf32>
    %39 = arith.select %36, %34, %38 : vector<2x256xi1>, vector<2x256xf32>
    %c0_25 = arith.constant 0 : index
    %c0_26 = arith.constant 0 : index
    %40 = vector.load %arg10[%c0_25, %c0_26] : memref<2x256xbf16, #tpu.memory_space<vmem>>, vector<2x256xbf16>
    %41 = arith.extf %40 : vector<2x256xbf16> to vector<2x256xf32>
    %42 = arith.mulf %39, %41 : vector<2x256xf32>
    %c0_27 = arith.constant 0 : index
    %c0_28 = arith.constant 0 : index
    %43 = vector.load %arg11[%c0_27, %c0_28] : memref<1x256xf32, #tpu.memory_space<vmem>>, vector<1x256xf32>
    %44 = vector.broadcast %43 : vector<1x256xf32> to vector<2x256xf32>
    %45 = arith.mulf %42, %44 : vector<2x256xf32>
    %cst_29 = arith.constant dense<0.000000e+00> : vector<2xf32>
    %46 = vector.multi_reduction <add>, %45, %cst_29 [1] : vector<2x256xf32> to vector<2xf32>
    %47 = vector.shape_cast %46 : vector<2xf32> to vector<2x1xf32>
    %c0_30 = arith.constant 0 : index
    %c0_31 = arith.constant 0 : index
    %48 = vector.load %arg12[%c0_30, %c0_31] : memref<1x1xf32, #tpu.memory_space<vmem>>, vector<1x1xf32>
    %49 = vector.broadcast %48 : vector<1x1xf32> to vector<2x1xf32>
    %50 = arith.addf %47, %49 : vector<2x1xf32>
    %51 = arith.negf %50 : vector<2x1xf32>
    %52 = math.exp %51 : vector<2x1xf32>
    %cst_32 = arith.constant 1.000000e+00 : f32
    %53 = vector.broadcast %cst_32 : f32 to vector<2x1xf32>
    %54 = arith.addf %53, %52 : vector<2x1xf32>
    %55 = arith.divf %53, %54 : vector<2x1xf32>
    %c0_33 = arith.constant 0 : index
    %c0_34 = arith.constant 0 : index
    %56 = vector.load %arg13[%c0_33, %c0_34] : memref<2x1xf32, #tpu.memory_space<vmem>>, vector<2x1xf32>
    tpu.vector_store %arg13[%c0_33, %c0_34], %55 {strides = array<i32>} : memref<2x1xf32, #tpu.memory_space<vmem>>, vector<2x1xf32>,
    return
  }
  func.func @transform_0(%arg0: i32) -> (i32, i32) {
    %c0_i32 = arith.constant 0 : i32
    %c0_i32_0 = arith.constant 0 : i32
    return %arg0, %c0_i32 : i32, i32
  }
  func.func @transform_1(%arg0: i32) -> (i32, i32) {
    %c0_i32 = arith.constant 0 : i32
    %c0_i32_0 = arith.constant 0 : i32
    %c0_i32_1 = arith.constant 0 : i32
    return %c0_i32, %c0_i32_0 : i32, i32
  }
  func.func @transform_2(%arg0: i32) -> (i32, i32) {
    %c0_i32 = arith.constant 0 : i32
    %c0_i32_0 = arith.constant 0 : i32
    %c0_i32_1 = arith.constant 0 : i32
    return %c0_i32, %c0_i32_0 : i32, i32
  }
  func.func @transform_3(%arg0: i32) -> (i32, i32) {
    %c0_i32 = arith.constant 0 : i32
    %c0_i32_0 = arith.constant 0 : i32
    return %arg0, %c0_i32 : i32, i32
  }
  func.func @transform_4(%arg0: i32) -> (i32, i32) {
    %c0_i32 = arith.constant 0 : i32
    %c0_i32_0 = arith.constant 0 : i32
    %c0_i32_1 = arith.constant 0 : i32
    return %c0_i32, %c0_i32_0 : i32, i32
  }
  func.func @transform_5(%arg0: i32) -> (i32, i32) {
    %c0_i32 = arith.constant 0 : i32
    %c0_i32_0 = arith.constant 0 : i32
    %c0_i32_1 = arith.constant 0 : i32
    return %c0_i32, %c0_i32_0 : i32, i32
  }
  func.func @transform_6(%arg0: i32) -> (i32, i32) {
    %c0_i32 = arith.constant 0 : i32
    %c0_i32_0 = arith.constant 0 : i32
    return %arg0, %c0_i32 : i32, i32
  }
  func.func @transform_7(%arg0: i32) -> (i32, i32) {
    %c0_i32 = arith.constant 0 : i32
    %c0_i32_0 = arith.constant 0 : i32
    %c0_i32_1 = arith.constant 0 : i32
    return %c0_i32, %c0_i32_0 : i32, i32
  }
  func.func @transform_8(%arg0: i32) -> (i32, i32) {
    %c0_i32 = arith.constant 0 : i32
    %c0_i32_0 = arith.constant 0 : i32
    %c0_i32_1 = arith.constant 0 : i32
    return %c0_i32, %c0_i32_0 : i32, i32
  }
  func.func @transform_9(%arg0: i32) -> (i32, i32) {
    %c0_i32 = arith.constant 0 : i32
    %c0_i32_0 = arith.constant 0 : i32
    return %arg0, %c0_i32 : i32, i32
  }
  func.func @transform_10(%arg0: i32) -> (i32, i32) {
    %c0_i32 = arith.constant 0 : i32
    %c0_i32_0 = arith.constant 0 : i32
    %c0_i32_1 = arith.constant 0 : i32
    return %c0_i32, %c0_i32_0 : i32, i32
  }
  func.func @transform_11(%arg0: i32) -> (i32, i32) {
    %c0_i32 = arith.constant 0 : i32
    %c0_i32_0 = arith.constant 0 : i32
    %c0_i32_1 = arith.constant 0 : i32
    return %c0_i32, %c0_i32_0 : i32, i32
  }
  func.func @transform_12(%arg0: i32) -> (i32, i32) {
    %c0_i32 = arith.constant 0 : i32
    %c0_i32_0 = arith.constant 0 : i32
    return %arg0, %c0_i32 : i32, i32
  }
}

</mosaic_0001>

<bundles_post_ra>
// kernel: tpu_custom_call.1
= control target key start
LH: loop header
LB: loop body
LE: loop exit
PB: predicated region body
PF: predicated region fallthrough
CT: control target
= control target key end

     0   :  { %s8517_s0 = inlined_call_operand.hbm [shape: f32[2,1024], index: 0, kind: input, shape index: {}]   ;;  %s8518_s1 = inlined_call_operand.hbm [shape: bf16[1024,1024], index: 1, kind: input, shape index: {}]   ;;  %s8519_s2 = inlined_call_operand.hbm [shape: f32[1,1024], index: 2, kind: input, shape index: {}]   ;;  %s8520_s3 = inlined_call_operand.hbm [shape: bf16[2,1024], index: 3, kind: input, shape index: {}]   ;;  %s8521_s4 = inlined_call_operand.hbm [shape: bf16[1024,512], index: 4, kind: input, shape index: {}]   ;;  %s8522_s5 = inlined_call_operand.hbm [shape: f32[1,512], index: 5, kind: input, shape index: {}]   ;;  %s8523_s6 = inlined_call_operand.hbm [shape: bf16[2,512], index: 6, kind: input, shape index: {}]   ;;  %s8524_s7 = inlined_call_operand.hbm [shape: bf16[512,256], index: 7, kind: input, shape index: {}]   ;;  %s8525_s8 = inlined_call_operand.hbm [shape: f32[1,256], index: 8, kind: input, shape index: {}]   ;;  %s8526_s9 = inlined_call_operand.hbm [shape: bf16[2,256], index: 9, kind: input, shape index: {}]   ;;  %s8527_s10 = inlined_call_operand.hbm [shape: f32[1,256], index: 10, kind: input, shape index: {}]   ;;  %s8528_s11 = inlined_call_operand.<no memory space> [shape: f32[1,1], index: 11, kind: input, shape index: {}]   ;;  %s8529_s12 = inlined_call_operand.vmem [shape: f32[2,1], index: 12, kind: output, shape index: {}]  }
   0x1   :  { %v17_v0 = vstv %s8528_s11 }
   0x2   :  { %18 = vst [vmem:[#allocation2] sm:$0x1] %v17_v0 }
   0x3   :  { %19 = vsyncpa [#allocation4], 0 }
   0x4   :  { %20 = vsyncpa [#allocation6], 0 }
   0x5   :  { %21 = vsyncpa [#allocation9], 0 }
   0x6   :  { %22 = vsyncpa [#allocation12], 0 }
   0x7   :  { %23 = vsyncpa [#allocation15], 0 }
   0x8   :  { %24 = vsyncpa [#allocation18], 0  ;;  %s8134_s23 = smov [#allocation5]  }
   0x9   :  { %s40_s24 = sshll.u32 %s8134_s23, 4  ;;  %s41_s24 = int_to_ptr.vmem [resolvable:$true] %s40_s24 }
   0xa   :  { %s7910_s25 = scalar_lea.vmem %s41_s24, 65536  ;;  %p7915_p1 = scmp.lt.s32.totalorder %s41_s24, %s41_s24 }
   0xb   :  { %p7911_p0 = scmp.ne.s32.totalorder %s41_s24, %s7910_s25  ;;  %p7916_p2 = scmp.lt.s32.totalorder %s7910_s25, %s7910_s25 }
   0xd   :  { %p7917_p3 = por %p7916_p2, %p7915_p1 }
   0xf   :  { %p7918_p4 = pnand %p7917_p3, %p7911_p0 }
  0x11   :  { %7921 = shalt.err (!%p7918_p4)
}
  0x12   :  { %s8135_s26 = smov 512   ;;  %s8136_s27 = smov 32  }
  0x13   :  { %46 = dma.hbm_to_vmem [thread:$0]  %s8518_s1, 65536, %s41_s24, [#allocation6], %s8135_s26, %s8135_s26, %s8136_s27  }
  0x14   :  { %s8137_s29 = smov [#allocation8]   ;;  %s8138_s13 = smov [#allocation11]  }
  0x15   :  { %s63_s30 = sshll.u32 %s8137_s29, 4  ;;  %s85_s14 = sshll.u32 %s8138_s13, 4  ;;  %s64_s30 = int_to_ptr.vmem [resolvable:$true] %s63_s30  ;;  %s86_s14 = int_to_ptr.vmem [resolvable:$true] %s85_s14 }
  0x16   :  { %s7930_s15 = scalar_lea.vmem %s64_s30, 128  ;;  %p7935_p6 = scmp.lt.s32.totalorder %s64_s30, %s64_s30 }
  0x17   :  { %p7931_p5 = scmp.ne.s32.totalorder %s64_s30, %s7930_s15  ;;  %p7936_p7 = scmp.lt.s32.totalorder %s7930_s15, %s7930_s15 }
  0x19   :  { %p7937_p8 = por %p7936_p7, %p7935_p6 }
  0x1b   :  { %p7938_p9 = pnand %p7937_p8, %p7931_p5 }
  0x1d   :  { %7941 = shalt.err (!%p7938_p9)
}
  0x1e   :  { %66 = dma.hbm_to_vmem [thread:$0]  %s8520_s3, 128, %s64_s30, [#allocation9]  }
  0x1f   :  { %s7950_s18 = scalar_lea.vmem %s86_s14, 64  ;;  %p7955_p11 = scmp.lt.s32.totalorder %s86_s14, %s86_s14 }
  0x20   :  { %p7951_p10 = scmp.ne.s32.totalorder %s86_s14, %s7950_s18  ;;  %p7956_p12 = scmp.lt.s32.totalorder %s7950_s18, %s7950_s18 }
  0x22   :  { %p7957_p13 = por %p7956_p12, %p7955_p11 }
  0x24   :  { %p7958_p0 = pnand %p7957_p13, %p7951_p10 }
  0x26   :  { %7961 = shalt.err (!%p7958_p0)
}
  0x27   :  { %88 = dma.hbm_to_vmem [thread:$0]  %s8522_s5, 64, %s86_s14, [#allocation12]  }
  0x28   :  { %s8139_s20 = smov [#allocation14]  }
  0x29   :  { %s104_s21 = sshll.u32 %s8139_s20, 4  ;;  %s105_s21 = int_to_ptr.vmem [resolvable:$true] %s104_s21 }
  0x2a   :  { %s7970_s22 = scalar_lea.vmem %s105_s21, 8192  ;;  %p7975_p2 = scmp.lt.s32.totalorder %s105_s21, %s105_s21 }
  0x2b   :  { %p7971_p1 = scmp.ne.s32.totalorder %s105_s21, %s7970_s22  ;;  %p7976_p3 = scmp.lt.s32.totalorder %s7970_s22, %s7970_s22 }
  0x2d   :  { %p7977_p4 = por %p7976_p3, %p7975_p2 }
  0x2f   :  { %p7978_p5 = pnand %p7977_p4, %p7971_p1 }
  0x31   :  { %7981 = shalt.err (!%p7978_p5)
}
  0x32   :  { %s8140_s3 = smov 128   ;;  %s8141_s23 = smov 8  }
  0x33   :  { %110 = dma.hbm_to_vmem [thread:$0]  %s8524_s7, 8192, %s105_s21, [#allocation15], %s8140_s3, %s8140_s3, %s8141_s23  }
  0x34   :  { %s8142_s26 = smov [#allocation17]   ;;  %s8143_s11 = smov [#allocation3]  }
  0x35   :  { %s127_s27 = sshll.u32 %s8142_s26, 4  ;;  %s31_s5 = sshll.u32 %s8143_s11, 4  ;;  %s128_s27 = int_to_ptr.vmem [resolvable:$true] %s127_s27  ;;  %s32_s5 = int_to_ptr.vmem [resolvable:$true] %s31_s5 }
  0x36   :  { %s7990_s28 = scalar_lea.vmem %s128_s27, 32  ;;  %p7995_p7 = scmp.lt.s32.totalorder %s128_s27, %s128_s27 }
  0x37   :  { %p7991_p6 = scmp.ne.s32.totalorder %s128_s27, %s7990_s28  ;;  %p7996_p8 = scmp.lt.s32.totalorder %s7990_s28, %s7990_s28 }
  0x39   :  { %p7997_p9 = por %p7996_p8, %p7995_p7 }
  0x3b   :  { %p7998_p10 = pnand %p7997_p9, %p7991_p6 }
  0x3d   :  { %8001 = shalt.err (!%p7998_p10)
}
  0x3e   :  { %130 = dma.hbm_to_vmem [thread:$0]  %s8526_s9, 32, %s128_s27, [#allocation18]  }
  0x3f   :  { %s8010_s13 = scalar_lea.vmem %s32_s5, 256  ;;  %p8015_p12 = scmp.lt.s32.totalorder %s32_s5, %s32_s5 }
  0x40   :  { %p8011_p11 = scmp.ne.s32.totalorder %s32_s5, %s8010_s13  ;;  %p8016_p13 = scmp.lt.s32.totalorder %s8010_s13, %s8010_s13 }
  0x42   :  { %p8017_p0 = por %p8016_p13, %p8015_p12 }
  0x44   :  { %p8018_p1 = pnand %p8017_p0, %p8011_p11 }
  0x46   :  { %8021 = shalt.err (!%p8018_p1)
}
  0x47   :  { %34 = dma.hbm_to_vmem [thread:$0]  %s8517_s0, 256, %s32_s5, [#allocation4]  }
  0x48   :  { %s8144_s15 = smov [#allocation7]   ;;  %s8145_s17 = smov [#allocation10]  }
  0x49   :  { %s53_s16 = sshll.u32 %s8144_s15, 4  ;;  %s72_s18 = sshll.u32 %s8145_s17, 4  ;;  %s54_s16 = int_to_ptr.vmem [resolvable:$true] %s53_s16  ;;  %s73_s18 = int_to_ptr.vmem [resolvable:$true] %s72_s18 }
  0x4a   :  { %s8030_s1 = scalar_lea.vmem %s54_s16, 128  ;;  %p8035_p3 = scmp.lt.s32.totalorder %s54_s16, %s54_s16 }
  0x4b   :  { %p8031_p2 = scmp.ne.s32.totalorder %s54_s16, %s8030_s1  ;;  %p8036_p4 = scmp.lt.s32.totalorder %s8030_s1, %s8030_s1 }
  0x4d   :  { %p8037_p5 = por %p8036_p4, %p8035_p3 }
  0x4f   :  { %p8038_p6 = pnand %p8037_p5, %p8031_p2 }
  0x51   :  { %8041 = shalt.err (!%p8038_p6)
}
  0x52   :  { %56 = dma.hbm_to_vmem [thread:$0]  %s8519_s2, 128, %s54_s16, [#allocation6]  }
  0x53   :  { %s8050_s20 = scalar_lea.vmem %s73_s18, 32768  ;;  %p8055_p8 = scmp.lt.s32.totalorder %s73_s18, %s73_s18 }
  0x54   :  { %p8051_p7 = scmp.ne.s32.totalorder %s73_s18, %s8050_s20  ;;  %p8056_p9 = scmp.lt.s32.totalorder %s8050_s20, %s8050_s20 }
  0x56   :  { %p8057_p10 = por %p8056_p9, %p8055_p8 }
  0x58   :  { %p8058_p11 = pnand %p8057_p10, %p8051_p7 }
  0x5a   :  { %8061 = shalt.err (!%p8058_p11)
}
  0x5b   :  { %s8146_s0 = smov 256   ;;  %s8147_s21 = smov 16  }
  0x5c   :  { %78 = dma.hbm_to_vmem [thread:$0]  %s8521_s4, 32768, %s73_s18, [#allocation9], %s8146_s0, %s8146_s0, %s8147_s21  }
  0x5d   :  { %s8148_s23 = smov [#allocation13]   ;;  %s8149_s25 = smov [#allocation16]  }
  0x5e   :  { %s95_s24 = sshll.u32 %s8148_s23, 4  ;;  %s117_s26 = sshll.u32 %s8149_s25, 4  ;;  %s96_s24 = int_to_ptr.vmem [resolvable:$true] %s95_s24  ;;  %s118_s26 = int_to_ptr.vmem [resolvable:$true] %s117_s26 }
  0x5f   :  { %s8070_s2 = scalar_lea.vmem %s96_s24, 64  ;;  %p8075_p13 = scmp.lt.s32.totalorder %s96_s24, %s96_s24 }
  0x60   :  { %p8071_p12 = scmp.ne.s32.totalorder %s96_s24, %s8070_s2  ;;  %p8076_p0 = scmp.lt.s32.totalorder %s8070_s2, %s8070_s2 }
  0x62   :  { %p8077_p1 = por %p8076_p0, %p8075_p13 }
  0x64   :  { %p8078_p2 = pnand %p8077_p1, %p8071_p12 }
  0x66   :  { %8081 = shalt.err (!%p8078_p2)
}
  0x67   :  { %98 = dma.hbm_to_vmem [thread:$0]  %s8523_s6, 64, %s96_s24, [#allocation12]  }
  0x68   :  { %s8090_s5 = scalar_lea.vmem %s118_s26, 32  ;;  %p8095_p4 = scmp.lt.s32.totalorder %s118_s26, %s118_s26 }
  0x69   :  { %p8091_p3 = scmp.ne.s32.totalorder %s118_s26, %s8090_s5  ;;  %p8096_p5 = scmp.lt.s32.totalorder %s8090_s5, %s8090_s5 }
  0x6b   :  { %p8097_p6 = por %p8096_p5, %p8095_p4 }
  0x6d   :  { %p8098_p7 = pnand %p8097_p6, %p8091_p3 }
  0x6f   :  { %8101 = shalt.err (!%p8098_p7)
}
  0x70   :  { %120 = dma.hbm_to_vmem [thread:$0]  %s8525_s8, 32, %s118_s26, [#allocation15]  }
  0x71   :  { %s8150_s29 = smov [#allocation19]  }
  0x72   :  { %s137_s30 = sshll.u32 %s8150_s29, 4  ;;  %s138_s30 = int_to_ptr.vmem [resolvable:$true] %s137_s30 }
  0x73   :  { %s8110_s13 = scalar_lea.vmem %s138_s30, 32  ;;  %p8115_p9 = scmp.lt.s32.totalorder %s138_s30, %s138_s30 }
  0x74   :  { %p8111_p8 = scmp.ne.s32.totalorder %s138_s30, %s8110_s13  ;;  %p8116_p10 = scmp.lt.s32.totalorder %s8110_s13, %s8110_s13 }
  0x76   :  { %p8117_p11 = por %p8116_p10, %p8115_p9 }
  0x78   :  { %p8118_p12 = pnand %p8117_p11, %p8111_p8 }
  0x7a   :  { %8121 = shalt.err (!%p8118_p12)
}
  0x7b   :  { %140 = dma.hbm_to_vmem [thread:$0]  %s8527_s10, 32, %s138_s30, [#allocation18]  }
  0x7c   :  { %8122 = dma.done.wait [#allocation4], 256  }
  0x7d   :  { %8123 = vsyncadd [#allocation4], 4294967040 }
  0x7e   :  { %8124 = dma.done.wait [#allocation6], 65664  }
  0x7f   :  { %8125 = vsyncadd [#allocation6], 4294901632 }
  0x80   :  { %8126 = dma.done.wait [#allocation9], 32896  }
  0x81   :  { %8127 = vsyncadd [#allocation9], 4294934400 }
  0x82   :  { %8128 = dma.done.wait [#allocation12], 128  }
  0x83   :  { %8129 = vsyncadd [#allocation12], 4294967168 }
  0x84   :  { %8130 = dma.done.wait [#allocation15], 8224  }
  0x85   :  { %8131 = vsyncadd [#allocation15], 4294959072 }
  0x86   :  { %8132 = dma.done.wait [#allocation18], 64  }
  0x87   :  { %8133 = vsyncadd [#allocation18], 4294967232  ;;  %v286_v1 = vld [vmem:[#allocation5 + $0x1c0] sm:$0xff]  ;;  %v8151_v33 = vmov 1983009808   ;;  %v184_v35 = vlaneseq  ;;  %v176_v60 = vld [vmem:[#allocation3] sm:$0xff] }
  0x88   :  { %v290_v2 = vld [vmem:[#allocation5 + $0x1e0] sm:$0xff]  ;;  %v182_v34 = vunpack.c.l.s4 %v8151_v33  ;;  %vm6530_vm14 = vcmask 1041408   ;;  %vm6550_vm15 = vcmask 1024  }
  0x89   :  { %v414_v3 = vld [vmem:[#allocation5 + $0x5c0] sm:$0xff]  ;;  %v6619_v4 = vcombine.high %v286_v1, %v290_v2  ;;  %v6618_v6 = vcombine.low %v286_v1, %v290_v2  ;;  %v8253_v45 = vshrl.u32 %v184_v35, 7  ;;  %v180_v1 = vcombine.high %v176_v60, %v176_v60 }
  0x8a   :  { %v418_v5 = vld [vmem:[#allocation5 + $0x5e0] sm:$0xff]  ;;  %v183_v44 = vunpack.c.0.s8 %v182_v34 }
  0x8b   :  { %v278_v7 = vld [vmem:[#allocation5 + $0x180] sm:$0xff]  ;;  %v6747_v9 = vcombine.high %v414_v3, %v418_v5  ;;  %v6746_v10 = vcombine.low %v414_v3, %v418_v5  ;;  %3344 = vmatprep.subr.bf16.mxu0 %v6619_v4 }
  0x8c   :  { %v282_v8 = vld [vmem:[#allocation5 + $0x1a0] sm:$0xff]  ;;  %3345 = vmatpush1.bf16.msra.mxu0 %v6618_v6  ;;  %v8256_v54 = vsub.s32 %v183_v44, %v8253_v45 }
  0x8d   :  { %v6611_v11 = vcombine.high %v278_v7, %v282_v8  ;;  %v406_v12 = vld [vmem:[#allocation5 + $0x580] sm:$0xff]  ;;  %3385 = vmatprep.subr.bf16.mxu1 %v6747_v9  ;;  %v6610_v19 = vcombine.low %v278_v7, %v282_v8 }
  0x8e   :  { %v410_v13 = vld [vmem:[#allocation5 + $0x5a0] sm:$0xff]  ;;  %3386 = vmatpush1.bf16.msra.mxu1 %v6746_v10  ;;  %v8259_v0 = vrot.slane %v176_v60, %v8256_v54  ;;  %v8264_v6 = vrot.slane %v180_v1, %v8256_v54 }
  0x8f   :  { %v270_v14 = vld [vmem:[#allocation5 + $0x140] sm:$0xff]  ;;  %v6739_v15 = vcombine.high %v406_v12, %v410_v13  ;;  %3346 = vmatprep.subr.bf16.mxu0 %v6611_v11  ;;  %v6738_v20 = vcombine.low %v406_v12, %v410_v13 }
  0x90   :  { %v274_v16 = vld [vmem:[#allocation5 + $0x160] sm:$0xff]  ;;  %3347 = vmatpush1.bf16.msra.mxu0 %v6610_v19  ;;  %v195_v5 = vcombine.high %v8259_v0, %v8259_v0  ;;  %v196_v13 = vcombine.high %v8264_v6, %v8264_v6 }
  0x91   :  { %v398_v17 = vld [vmem:[#allocation5 + $0x540] sm:$0xff]  ;;  %v6603_v21 = vcombine.high %v270_v14, %v274_v16  ;;  %3387 = vmatprep.subr.bf16.mxu1 %v6739_v15  ;;  %v6602_v27 = vcombine.low %v270_v14, %v274_v16 }
  0x92   :  { %v402_v18 = vld [vmem:[#allocation5 + $0x560] sm:$0xff]  ;;  %3388 = vmatpush1.bf16.msra.mxu1 %v6738_v20  ;;  %v8266_v12 = vpack.c.bf16 %v195_v5, %v195_v5  ;;  %v177_v5 = vld [vmem:[#allocation3 + $0x8] sm:$0xff] }
  0x93   :  { %v6731_v22 = vcombine.high %v398_v17, %v402_v18  ;;  %v262_v23 = vld [vmem:[#allocation5 + $0x100] sm:$0xff]  ;;  %3348 = vmatprep.subr.bf16.mxu0 %v6603_v21  ;;  %v6730_v28 = vcombine.low %v398_v17, %v402_v18  ;;  %v8271_v17 = vpack.c.bf16 %v196_v13, %v196_v13 }
  0x94   :  { %v266_v24 = vld [vmem:[#allocation5 + $0x120] sm:$0xff]  ;;  %3349 = vmatpush1.bf16.msra.mxu0 %v6602_v27  ;;  %3376 = vmatprep.mubr.bf16.mxu0 %v8266_v12 }
  0x95   :  { %v390_v25 = vld [vmem:[#allocation5 + $0x500] sm:$0xff]  ;;  %v6595_v29 = vcombine.high %v262_v23, %v266_v24  ;;  %3389 = vmatprep.subr.bf16.mxu1 %v6731_v22  ;;  %v6594_v38 = vcombine.low %v262_v23, %v266_v24  ;;  %3417 = vmatprep.mubr.bf16.mxu1 %v8271_v17 }
  0x96   :  { %v394_v26 = vld [vmem:[#allocation5 + $0x520] sm:$0xff]  ;;  %3390 = vmatpush1.bf16.msra.mxu1 %v6730_v28 }
  0x97   :  { %v6723_v30 = vcombine.high %v390_v25, %v394_v26  ;;  %v254_v31 = vld [vmem:[#allocation5 + $0xc0] sm:$0xff]  ;;  %3350 = vmatprep.subr.bf16.mxu0 %v6595_v29  ;;  %v6722_v39 = vcombine.low %v390_v25, %v394_v26 }
  0x98   :  { %v258_v32 = vld [vmem:[#allocation5 + $0xe0] sm:$0xff]  ;;  %3351 = vmatpush1.bf16.msra.mxu0 %v6594_v38 }
  0x99   :  { %v382_v36 = vld [vmem:[#allocation5 + $0x4c0] sm:$0xff]  ;;  %v6587_v40 = vcombine.high %v254_v31, %v258_v32  ;;  %3391 = vmatprep.subr.bf16.mxu1 %v6723_v30  ;;  %v6586_v48 = vcombine.low %v254_v31, %v258_v32 }
  0x9a   :  { %v386_v37 = vld [vmem:[#allocation5 + $0x4e0] sm:$0xff]  ;;  %3392 = vmatpush1.bf16.msra.mxu1 %v6722_v39 }
  0x9b   :  { %v6715_v41 = vcombine.high %v382_v36, %v386_v37  ;;  %v246_v42 = vld [vmem:[#allocation5 + $0x80] sm:$0xff]  ;;  %3352 = vmatprep.subr.bf16.mxu0 %v6587_v40  ;;  %v6714_v49 = vcombine.low %v382_v36, %v386_v37 }
  0x9c   :  { %v250_v43 = vld [vmem:[#allocation5 + $0xa0] sm:$0xff]  ;;  %3353 = vmatpush1.bf16.msra.mxu0 %v6586_v48 }
  0x9d   :  { %v374_v46 = vld [vmem:[#allocation5 + $0x480] sm:$0xff]  ;;  %v6579_v50 = vcombine.high %v246_v42, %v250_v43  ;;  %3393 = vmatprep.subr.bf16.mxu1 %v6715_v41  ;;  %v6578_v57 = vcombine.low %v246_v42, %v250_v43 }
  0x9e   :  { %v378_v47 = vld [vmem:[#allocation5 + $0x4a0] sm:$0xff]  ;;  %3394 = vmatpush1.bf16.msra.mxu1 %v6714_v49 }
  0x9f   :  { %v6707_v51 = vcombine.high %v374_v46, %v378_v47  ;;  %v238_v52 = vld [vmem:[#allocation5 + $0x40] sm:$0xff]  ;;  %3354 = vmatprep.subr.bf16.mxu0 %v6579_v50  ;;  %v6706_v58 = vcombine.low %v374_v46, %v378_v47 }
  0xa0   :  { %v242_v53 = vld [vmem:[#allocation5 + $0x60] sm:$0xff]  ;;  %3355 = vmatpush1.bf16.msra.mxu0 %v6578_v57 }
  0xa1   :  { %v366_v55 = vld [vmem:[#allocation5 + $0x440] sm:$0xff]  ;;  %v6571_v59 = vcombine.high %v238_v52, %v242_v53  ;;  %3395 = vmatprep.subr.bf16.mxu1 %v6707_v51  ;;  %v6570_v4 = vcombine.low %v238_v52, %v242_v53 }
  0xa2   :  { %v370_v56 = vld [vmem:[#allocation5 + $0x460] sm:$0xff]  ;;  %3396 = vmatpush1.bf16.msra.mxu1 %v6706_v58 }
  0xa3   :  { %v6699_v61 = vcombine.high %v366_v55, %v370_v56  ;;  %v230_v62 = vld [vmem:[#allocation5] sm:$0xff]  ;;  %3356 = vmatprep.subr.bf16.mxu0 %v6571_v59  ;;  %v6698_v7 = vcombine.low %v366_v55, %v370_v56 }
  0xa4   :  { %v234_v63 = vld [vmem:[#allocation5 + $0x20] sm:$0xff]  ;;  %3357 = vmatpush1.bf16.msra.mxu0 %v6570_v4 }
  0xa5   :  { %v358_v2 = vld [vmem:[#allocation5 + $0x400] sm:$0xff]  ;;  %v6563_v8 = vcombine.high %v230_v62, %v234_v63  ;;  %3397 = vmatprep.subr.bf16.mxu1 %v6699_v61  ;;  %v6562_v16 = vcombine.low %v230_v62, %v234_v63 }
  0xa6   :  { %v362_v3 = vld [vmem:[#allocation5 + $0x420] sm:$0xff]  ;;  %3398 = vmatpush1.bf16.msra.mxu1 %v6698_v7 }
  0xa7   :  { %v6691_v9 = vcombine.high %v358_v2, %v362_v3  ;;  %v350_v10 = vld [vmem:[#allocation5 + $0x3c0] sm:$0xff]  ;;  %3358 = vmatprep.subr.bf16.mxu0 %v6563_v8  ;;  %v6690_v18 = vcombine.low %v358_v2, %v362_v3 }
  0xa8   :  { %v354_v11 = vld [vmem:[#allocation5 + $0x3e0] sm:$0xff]  ;;  %3359 = vmatpush1.bf16.msra.mxu0 %v6562_v16 }
  0xa9   :  { %v478_v14 = vld [vmem:[#allocation5 + $0x7c0] sm:$0xff]  ;;  %v6683_v19 = vcombine.high %v350_v10, %v354_v11  ;;  %3399 = vmatprep.subr.bf16.mxu1 %v6691_v9  ;;  %v6682_v25 = vcombine.low %v350_v10, %v354_v11 }
  0xaa   :  { %v482_v15 = vld [vmem:[#allocation5 + $0x7e0] sm:$0xff]  ;;  %3400 = vmatpush1.bf16.msra.mxu1 %v6690_v18 }
  0xab   :  { %v6811_v20 = vcombine.high %v478_v14, %v482_v15  ;;  %v342_v21 = vld [vmem:[#allocation5 + $0x380] sm:$0xff]  ;;  %3360 = vmatprep.subr.bf16.mxu0 %v6683_v19  ;;  %v6810_v26 = vcombine.low %v478_v14, %v482_v15  ;;  %v197_v15 = vcombine.high %v177_v5, %v177_v5 }
  0xac   :  { %v346_v22 = vld [vmem:[#allocation5 + $0x3a0] sm:$0xff]  ;;  %3361 = vmatpush2.bf16.msra.mxu0 %v6682_v25 }
  0xad   :  { %v470_v23 = vld [vmem:[#allocation5 + $0x780] sm:$0xff]  ;;  %v6675_v27 = vcombine.high %v342_v21, %v346_v22  ;;  %3401 = vmatprep.subr.bf16.mxu1 %v6811_v20  ;;  %v6674_v33 = vcombine.low %v342_v21, %v346_v22 }
  0xae   :  { %v474_v24 = vld [vmem:[#allocation5 + $0x7a0] sm:$0xff]  ;;  %3402 = vmatpush2.bf16.msra.mxu1 %v6810_v26  ;;  %v8278_v26 = vrot.slane %v197_v15, %v8256_v54 }
  0xaf   :  { %v6803_v28 = vcombine.high %v470_v23, %v474_v24  ;;  %v334_v29 = vld [vmem:[#allocation5 + $0x340] sm:$0xff]  ;;  %3362 = vmatprep.subr.bf16.mxu0 %v6675_v27  ;;  %v6802_v34 = vcombine.low %v470_v23, %v474_v24  ;;  %v8275_v23 = vrot.slane %v177_v5, %v8256_v54 }
  0xb0   :  { %v338_v30 = vld [vmem:[#allocation5 + $0x360] sm:$0xff]  ;;  %3363 = vmatpush2.bf16.msra.mxu0 %v6674_v33 }
  0xb1   :  { %v462_v31 = vld [vmem:[#allocation5 + $0x740] sm:$0xff]  ;;  %v6667_v35 = vcombine.high %v334_v29, %v338_v30  ;;  %3403 = vmatprep.subr.bf16.mxu1 %v6803_v28  ;;  %v6666_v41 = vcombine.low %v334_v29, %v338_v30  ;;  %v212_v33 = vcombine.high %v8275_v23, %v8275_v23 }
  0xb2   :  { %v466_v32 = vld [vmem:[#allocation5 + $0x760] sm:$0xff]  ;;  %3404 = vmatpush2.bf16.msra.mxu1 %v6802_v34  ;;  %v8284_v34 = vpack.c.bf16 %v8259_v0, %v8259_v0 }
  0xb3   :  { %v6795_v36 = vcombine.high %v462_v31, %v466_v32  ;;  %v326_v37 = vld [vmem:[#allocation5 + $0x300] sm:$0xff]  ;;  %3364 = vmatprep.subr.bf16.mxu0 %v6667_v35  ;;  %v6794_v42 = vcombine.low %v462_v31, %v466_v32 }
  0xb4   :  { %v330_v38 = vld [vmem:[#allocation5 + $0x320] sm:$0xff]  ;;  %3365 = vmatpush2.bf16.msra.mxu0 %v6666_v41 }
  0xb5   :  { %v454_v39 = vld [vmem:[#allocation5 + $0x700] sm:$0xff]  ;;  %v6659_v43 = vcombine.high %v326_v37, %v330_v38  ;;  %3405 = vmatprep.subr.bf16.mxu1 %v6795_v36  ;;  %v6658_v50 = vcombine.low %v326_v37, %v330_v38  ;;  %v213_v37 = vcombine.high %v8278_v26, %v8278_v26  ;;  %v8290_v38 = vpack.c.bf16 %v8264_v6, %v8264_v6 }
  0xb6   :  { %v458_v40 = vld [vmem:[#allocation5 + $0x720] sm:$0xff]  ;;  %3406 = vmatpush2.bf16.msra.mxu1 %v6794_v42 }
  0xb7   :  { %v6787_v44 = vcombine.high %v454_v39, %v458_v40  ;;  %v318_v46 = vld [vmem:[#allocation5 + $0x2c0] sm:$0xff]  ;;  %3366 = vmatprep.subr.bf16.mxu0 %v6659_v43  ;;  %v6786_v51 = vcombine.low %v454_v39, %v458_v40 }
  0xb8   :  { %v322_v47 = vld [vmem:[#allocation5 + $0x2e0] sm:$0xff]  ;;  %3367 = vmatpush2.bf16.msra.mxu0 %v6658_v50 }
  0xb9   :  { %v446_v48 = vld [vmem:[#allocation5 + $0x6c0] sm:$0xff]  ;;  %v6651_v52 = vcombine.high %v318_v46, %v322_v47  ;;  %3407 = vmatprep.subr.bf16.mxu1 %v6787_v44  ;;  %v6650_v59 = vcombine.low %v318_v46, %v322_v47  ;;  %v8292_v47 = vpack.c.bf16 %v212_v33, %v212_v33 }
  0xba   :  { %v450_v49 = vld [vmem:[#allocation5 + $0x6e0] sm:$0xff]  ;;  %3408 = vmatpush2.bf16.msra.mxu1 %v6786_v51 }
  0xbb   :  { %v6779_v53 = vcombine.high %v446_v48, %v450_v49  ;;  %v310_v55 = vld [vmem:[#allocation5 + $0x280] sm:$0xff]  ;;  %3368 = vmatprep.subr.bf16.mxu0 %v6651_v52  ;;  %v6778_v60 = vcombine.low %v446_v48, %v450_v49  ;;  %v8295_v48 = vpack.c.bf16 %v213_v37, %v213_v37 }
  0xbc   :  { %v314_v56 = vld [vmem:[#allocation5 + $0x2a0] sm:$0xff]  ;;  %3369 = vmatpush2.bf16.msra.mxu0 %v6650_v59 }
  0xbd   :  { %v438_v57 = vld [vmem:[#allocation5 + $0x680] sm:$0xff]  ;;  %v6643_v61 = vcombine.high %v310_v55, %v314_v56  ;;  %3409 = vmatprep.subr.bf16.mxu1 %v6779_v53  ;;  %v6642_v4 = vcombine.low %v310_v55, %v314_v56 }
  0xbe   :  { %v442_v58 = vld [vmem:[#allocation5 + $0x6a0] sm:$0xff]  ;;  %3410 = vmatpush2.bf16.msra.mxu1 %v6778_v60 }
  0xbf   :  { %v6771_v62 = vcombine.high %v438_v57, %v442_v58  ;;  %v302_v63 = vld [vmem:[#allocation5 + $0x240] sm:$0xff]  ;;  %3370 = vmatprep.subr.bf16.mxu0 %v6643_v61  ;;  %v6770_v7 = vcombine.low %v438_v57, %v442_v58 }
  0xc0   :  { %v306_v1 = vld [vmem:[#allocation5 + $0x260] sm:$0xff]  ;;  %3371 = vmatpush2.bf16.msra.mxu0 %v6642_v4 }
  0xc1   :  { %v430_v2 = vld [vmem:[#allocation5 + $0x640] sm:$0xff]  ;;  %v6635_v8 = vcombine.high %v302_v63, %v306_v1  ;;  %3411 = vmatprep.subr.bf16.mxu1 %v6771_v62  ;;  %v6634_v16 = vcombine.low %v302_v63, %v306_v1 }
  0xc2   :  { %v434_v3 = vld [vmem:[#allocation5 + $0x660] sm:$0xff]  ;;  %3412 = vmatpush2.bf16.msra.mxu1 %v6770_v7 }
  0xc3   :  { %v6763_v9 = vcombine.high %v430_v2, %v434_v3  ;;  %v294_v10 = vld [vmem:[#allocation5 + $0x200] sm:$0xff]  ;;  %3372 = vmatprep.subr.bf16.mxu0 %v6635_v8  ;;  %v6762_v18 = vcombine.low %v430_v2, %v434_v3 }
  0xc4   :  { %v298_v11 = vld [vmem:[#allocation5 + $0x220] sm:$0xff]  ;;  %3373 = vmatpush2.bf16.msra.mxu0 %v6634_v16 }
  0xc5   :  { %v422_v13 = vld [vmem:[#allocation5 + $0x600] sm:$0xff]  ;;  %v6627_v19 = vcombine.high %v294_v10, %v298_v11  ;;  %3413 = vmatprep.subr.bf16.mxu1 %v6763_v9  ;;  %v6626_v27 = vcombine.low %v294_v10, %v298_v11 }
  0xc6   :  { %v426_v14 = vld [vmem:[#allocation5 + $0x620] sm:$0xff]  ;;  %3414 = vmatpush2.bf16.msra.mxu1 %v6762_v18 }
  0xc7   :  { %v6755_v20 = vcombine.high %v422_v13, %v426_v14  ;;  %v542_v21 = vld [vmem:[#allocation5 + $0x9c0] sm:$0xff]  ;;  %3374 = vmatprep.subr.bf16.mxu0 %v6627_v19  ;;  %v6754_v28 = vcombine.low %v422_v13, %v426_v14 }
  0xc8   :  { %v546_v22 = vld [vmem:[#allocation5 + $0x9e0] sm:$0xff]  ;;  %3375 = vmatpush2.bf16.msra.mxu0 %v6626_v27 }
  0xc9   :  { %v670_v24 = vld [vmem:[#allocation5 + $0xdc0] sm:$0xff]  ;;  %v6875_v29 = vcombine.high %v542_v21, %v546_v22  ;;  %3415 = vmatprep.subr.bf16.mxu1 %v6755_v20  ;;  %v6874_v39 = vcombine.low %v542_v21, %v546_v22 }
  0xca   :  { %v674_v25 = vld [vmem:[#allocation5 + $0xde0] sm:$0xff]  ;;  %3416 = vmatpush2.bf16.msra.mxu1 %v6754_v28 }
  0xcb   :  { %v7003_v30 = vcombine.high %v670_v24, %v674_v25  ;;  %v534_v31 = vld [vmem:[#allocation5 + $0x980] sm:$0xff]  ;;  %3426 = vmatprep.subr.bf16.mxu0 %v6875_v29  ;;  %v7002_v40 = vcombine.low %v670_v24, %v674_v25  ;;  %3377 = vmatmul.mubr.bf16.vlgmr.msra.gmra.mxu0 %v8284_v34 }
  0xcc   :  { %v538_v32 = vld [vmem:[#allocation5 + $0x9a0] sm:$0xff]  ;;  %3427 = vmatpush1.bf16.msra.mxu0 %v6874_v39  ;;  %3458 = vmatprep.mubr.bf16.mxu0 %v8292_v47 }
  0xcd   :  { %v662_v35 = vld [vmem:[#allocation5 + $0xd80] sm:$0xff]  ;;  %v6867_v41 = vcombine.high %v534_v31, %v538_v32  ;;  %3467 = vmatprep.subr.bf16.mxu1 %v7003_v30  ;;  %3418 = vmatmul.mubr.bf16.vlgmr.msra.gmra.mxu1 %v8290_v38  ;;  %v6866_v6 = vcombine.low %v534_v31, %v538_v32 }
  0xce   :  { %v666_v36 = vld [vmem:[#allocation5 + $0xda0] sm:$0xff]  ;;  %3468 = vmatpush1.bf16.msra.mxu1 %v7002_v40  ;;  %3499 = vmatprep.mubr.bf16.mxu1 %v8295_v48 }
  0xcf   :  { %v526_v42 = vld [vmem:[#allocation5 + $0x940] sm:$0xff]  ;;  %v6995_v0 = vcombine.high %v662_v35, %v666_v36  ;;  %3428 = vmatprep.subr.bf16.mxu0 %v6867_v41  ;;  %v6994_v49 = vcombine.low %v662_v35, %v666_v36 }
  0xd0   :  { %v530_v43 = vld [vmem:[#allocation5 + $0x960] sm:$0xff]  ;;  %3429 = vmatpush1.bf16.msra.mxu0 %v6866_v6 }
  0xd1   :  { %v654_v44 = vld [vmem:[#allocation5 + $0xd40] sm:$0xff]  ;;  %v6859_v50 = vcombine.high %v526_v42, %v530_v43  ;;  %3469 = vmatprep.subr.bf16.mxu1 %v6995_v0  ;;  %v6858_v57 = vcombine.low %v526_v42, %v530_v43 }
  0xd2   :  { %v658_v46 = vld [vmem:[#allocation5 + $0xd60] sm:$0xff]  ;;  %3470 = vmatpush1.bf16.msra.mxu1 %v6994_v49 }
  0xd3   :  { %v518_v51 = vld [vmem:[#allocation5 + $0x900] sm:$0xff]  ;;  %v6987_v55 = vcombine.high %v654_v44, %v658_v46  ;;  %3430 = vmatprep.subr.bf16.mxu0 %v6859_v50  ;;  %v6986_v58 = vcombine.low %v654_v44, %v658_v46 }
  0xd4   :  { %v522_v52 = vld [vmem:[#allocation5 + $0x920] sm:$0xff]  ;;  %3431 = vmatpush1.bf16.msra.mxu0 %v6858_v57 }
  0xd5   :  { %v646_v53 = vld [vmem:[#allocation5 + $0xd00] sm:$0xff]  ;;  %v6851_v59 = vcombine.high %v518_v51, %v522_v52  ;;  %3471 = vmatprep.subr.bf16.mxu1 %v6987_v55  ;;  %v6850_v2 = vcombine.low %v518_v51, %v522_v52 }
  0xd6   :  { %v650_v56 = vld [vmem:[#allocation5 + $0xd20] sm:$0xff]  ;;  %3472 = vmatpush1.bf16.msra.mxu1 %v6986_v58 }
  0xd7   :  { %v510_v60 = vld [vmem:[#allocation5 + $0x8c0] sm:$0xff]  ;;  %v6979_v63 = vcombine.high %v646_v53, %v650_v56  ;;  %3432 = vmatprep.subr.bf16.mxu0 %v6851_v59  ;;  %v6978_v3 = vcombine.low %v646_v53, %v650_v56 }
  0xd8   :  { %v514_v61 = vld [vmem:[#allocation5 + $0x8e0] sm:$0xff]  ;;  %3433 = vmatpush1.bf16.msra.mxu0 %v6850_v2 }
  0xd9   :  { %v638_v62 = vld [vmem:[#allocation5 + $0xcc0] sm:$0xff]  ;;  %v6843_v4 = vcombine.high %v510_v60, %v514_v61  ;;  %3473 = vmatprep.subr.bf16.mxu1 %v6979_v63  ;;  %v6842_v11 = vcombine.low %v510_v60, %v514_v61 }
  0xda   :  { %v642_v1 = vld [vmem:[#allocation5 + $0xce0] sm:$0xff]  ;;  %3474 = vmatpush1.bf16.msra.mxu1 %v6978_v3 }
  0xdb   :  { %v502_v5 = vld [vmem:[#allocation5 + $0x880] sm:$0xff]  ;;  %v6971_v9 = vcombine.high %v638_v62, %v642_v1  ;;  %3434 = vmatprep.subr.bf16.mxu0 %v6843_v4  ;;  %v6970_v13 = vcombine.low %v638_v62, %v642_v1 }
  0xdc   :  { %v506_v7 = vld [vmem:[#allocation5 + $0x8a0] sm:$0xff]  ;;  %3435 = vmatpush1.bf16.msra.mxu0 %v6842_v11 }
  0xdd   :  { %v630_v8 = vld [vmem:[#allocation5 + $0xc80] sm:$0xff]  ;;  %v6835_v14 = vcombine.high %v502_v5, %v506_v7  ;;  %3475 = vmatprep.subr.bf16.mxu1 %v6971_v9  ;;  %v6834_v21 = vcombine.low %v502_v5, %v506_v7 }
  0xde   :  { %v634_v10 = vld [vmem:[#allocation5 + $0xca0] sm:$0xff]  ;;  %3476 = vmatpush1.bf16.msra.mxu1 %v6970_v13 }
  0xdf   :  { %v494_v15 = vld [vmem:[#allocation5 + $0x840] sm:$0xff]  ;;  %v6963_v19 = vcombine.high %v630_v8, %v634_v10  ;;  %3436 = vmatprep.subr.bf16.mxu0 %v6835_v14  ;;  %v6962_v22 = vcombine.low %v630_v8, %v634_v10 }
  0xe0   :  { %v498_v16 = vld [vmem:[#allocation5 + $0x860] sm:$0xff]  ;;  %3437 = vmatpush1.bf16.msra.mxu0 %v6834_v21 }
  0xe1   :  { %v622_v18 = vld [vmem:[#allocation5 + $0xc40] sm:$0xff]  ;;  %v6827_v24 = vcombine.high %v494_v15, %v498_v16  ;;  %3477 = vmatprep.subr.bf16.mxu1 %v6963_v19  ;;  %v6826_v31 = vcombine.low %v494_v15, %v498_v16 }
  0xe2   :  { %v626_v20 = vld [vmem:[#allocation5 + $0xc60] sm:$0xff]  ;;  %3478 = vmatpush1.bf16.msra.mxu1 %v6962_v22 }
  0xe3   :  { %v486_v25 = vld [vmem:[#allocation5 + $0x800] sm:$0xff]  ;;  %v6955_v29 = vcombine.high %v622_v18, %v626_v20  ;;  %3438 = vmatprep.subr.bf16.mxu0 %v6827_v24  ;;  %v6954_v32 = vcombine.low %v622_v18, %v626_v20 }
  0xe4   :  { %v490_v27 = vld [vmem:[#allocation5 + $0x820] sm:$0xff]  ;;  %3439 = vmatpush1.bf16.msra.mxu0 %v6826_v31 }
  0xe5   :  { %v614_v28 = vld [vmem:[#allocation5 + $0xc00] sm:$0xff]  ;;  %v6819_v33 = vcombine.high %v486_v25, %v490_v27  ;;  %3479 = vmatprep.subr.bf16.mxu1 %v6955_v29  ;;  %v6818_v41 = vcombine.low %v486_v25, %v490_v27 }
  0xe6   :  { %v618_v30 = vld [vmem:[#allocation5 + $0xc20] sm:$0xff]  ;;  %3480 = vmatpush1.bf16.msra.mxu1 %v6954_v32 }
  0xe7   :  { %v606_v35 = vld [vmem:[#allocation5 + $0xbc0] sm:$0xff]  ;;  %v6947_v39 = vcombine.high %v614_v28, %v618_v30  ;;  %3440 = vmatprep.subr.bf16.mxu0 %v6819_v33  ;;  %v6946_v42 = vcombine.low %v614_v28, %v618_v30 }
  0xe8   :  { %v610_v36 = vld [vmem:[#allocation5 + $0xbe0] sm:$0xff]  ;;  %3441 = vmatpush1.bf16.msra.mxu0 %v6818_v41 }
  0xe9   :  { %v734_v37 = vld [vmem:[#allocation5 + $0xfc0] sm:$0xff]  ;;  %v6939_v43 = vcombine.high %v606_v35, %v610_v36  ;;  %3481 = vmatprep.subr.bf16.mxu1 %v6947_v39  ;;  %v6938_v50 = vcombine.low %v606_v35, %v610_v36 }
  0xea   :  { %v738_v40 = vld [vmem:[#allocation5 + $0xfe0] sm:$0xff]  ;;  %3482 = vmatpush1.bf16.msra.mxu1 %v6946_v42 }
  0xeb   :  { %v598_v44 = vld [vmem:[#allocation5 + $0xb80] sm:$0xff]  ;;  %v7067_v6 = vcombine.high %v734_v37, %v738_v40  ;;  %3442 = vmatprep.subr.bf16.mxu0 %v6939_v43  ;;  %v7066_v51 = vcombine.low %v734_v37, %v738_v40 }
  0xec   :  { %v602_v0 = vld [vmem:[#allocation5 + $0xba0] sm:$0xff]  ;;  %3443 = vmatpush2.bf16.msra.mxu0 %v6938_v50 }
  0xed   :  { %v726_v46 = vld [vmem:[#allocation5 + $0xf80] sm:$0xff]  ;;  %v6931_v52 = vcombine.high %v598_v44, %v602_v0  ;;  %3483 = vmatprep.subr.bf16.mxu1 %v7067_v6  ;;  %v6930_v59 = vcombine.low %v598_v44, %v602_v0  ;;  %v291_v6 = vld [vmem:[#allocation5 + $0x1e8] sm:$0xff] }
  0xee   :  { %v730_v49 = vld [vmem:[#allocation5 + $0xfa0] sm:$0xff]  ;;  %3484 = vmatpush2.bf16.msra.mxu1 %v7066_v51  ;;  %v419_v51 = vld [vmem:[#allocation5 + $0x5e8] sm:$0xff] }
  0xef   :  { %v590_v53 = vld [vmem:[#allocation5 + $0xb40] sm:$0xff]  ;;  %v7059_v57 = vcombine.high %v726_v46, %v730_v49  ;;  %3444 = vmatprep.subr.bf16.mxu0 %v6931_v52  ;;  %v7058_v60 = vcombine.low %v726_v46, %v730_v49  ;;  %v287_v46 = vld [vmem:[#allocation5 + $0x1c8] sm:$0xff] }
  0xf0   :  { %v594_v55 = vld [vmem:[#allocation5 + $0xb60] sm:$0xff]  ;;  %3445 = vmatpush2.bf16.msra.mxu0 %v6930_v59  ;;  %v415_v49 = vld [vmem:[#allocation5 + $0x5c8] sm:$0xff] }
  0xf1   :  { %v718_v56 = vld [vmem:[#allocation5 + $0xf40] sm:$0xff]  ;;  %v6923_v61 = vcombine.high %v590_v53, %v594_v55  ;;  %3485 = vmatprep.subr.bf16.mxu1 %v7059_v57  ;;  %v6922_v4 = vcombine.low %v590_v53, %v594_v55  ;;  %v6621_v55 = vcombine.high %v287_v46, %v291_v6  ;;  %v283_v57 = vld [vmem:[#allocation5 + $0x1a8] sm:$0xff]  ;;  %v6749_v59 = vcombine.high %v415_v49, %v419_v51 }
  0xf2   :  { %v722_v58 = vld [vmem:[#allocation5 + $0xf60] sm:$0xff]  ;;  %3486 = vmatpush2.bf16.msra.mxu1 %v7058_v60  ;;  %v411_v60 = vld [vmem:[#allocation5 + $0x5a8] sm:$0xff] }
  0xf3   :  { %v582_v62 = vld [vmem:[#allocation5 + $0xb00] sm:$0xff]  ;;  %v7051_v2 = vcombine.high %v718_v56, %v722_v58  ;;  %3446 = vmatprep.subr.bf16.mxu0 %v6923_v61  ;;  %v7050_v5 = vcombine.low %v718_v56, %v722_v58  ;;  %v279_v56 = vld [vmem:[#allocation5 + $0x188] sm:$0xff]  ;;  %v8302_v61 = vpack.c.bf16 %v8275_v23, %v8275_v23 }
  0xf4   :  { %v586_v63 = vld [vmem:[#allocation5 + $0xb20] sm:$0xff]  ;;  %3447 = vmatpush2.bf16.msra.mxu0 %v6922_v4  ;;  %v407_v58 = vld [vmem:[#allocation5 + $0x588] sm:$0xff]  ;;  %v6612_v23 = vcombine.low %v279_v56, %v283_v57 }
  0xf5   :  { %v710_v1 = vld [vmem:[#allocation5 + $0xf00] sm:$0xff]  ;;  %v6915_v7 = vcombine.high %v582_v62, %v586_v63  ;;  %3487 = vmatprep.subr.bf16.mxu1 %v7051_v2  ;;  %v6914_v14 = vcombine.low %v582_v62, %v586_v63  ;;  %v8306_v62 = vpack.c.bf16 %v8278_v26, %v8278_v26  ;;  %v6620_v63 = vcombine.low %v287_v46, %v291_v6  ;;  %v275_v4 = vld [vmem:[#allocation5 + $0x168] sm:$0xff] }
  0xf6   :  { %v714_v3 = vld [vmem:[#allocation5 + $0xf20] sm:$0xff]  ;;  %3488 = vmatpush2.bf16.msra.mxu1 %v7050_v5  ;;  %v6613_v2 = vcombine.high %v279_v56, %v283_v57  ;;  %v6741_v5 = vcombine.high %v407_v58, %v411_v60  ;;  %v6740_v26 = vcombine.low %v407_v58, %v411_v60  ;;  %v351_v58 = vld [vmem:[#allocation5 + $0x3c8] sm:$0xff] }
  0xf7   :  { %v574_v8 = vld [vmem:[#allocation5 + $0xac0] sm:$0xff]  ;;  %v7043_v11 = vcombine.high %v710_v1, %v714_v3  ;;  %3448 = vmatprep.subr.bf16.mxu0 %v6915_v7  ;;  %v7042_v15 = vcombine.low %v710_v1, %v714_v3  ;;  %v6748_v1 = vcombine.low %v415_v49, %v419_v51  ;;  %v271_v3 = vld [vmem:[#allocation5 + $0x148] sm:$0xff] }
  0xf8   :  { %v578_v9 = vld [vmem:[#allocation5 + $0xae0] sm:$0xff]  ;;  %3449 = vmatpush2.bf16.msra.mxu0 %v6914_v14  ;;  %v399_v7 = vld [vmem:[#allocation5 + $0x548] sm:$0xff] }
  0xf9   :  { %v702_v10 = vld [vmem:[#allocation5 + $0xec0] sm:$0xff]  ;;  %v6907_v16 = vcombine.high %v574_v8, %v578_v9  ;;  %3489 = vmatprep.subr.bf16.mxu1 %v7043_v11  ;;  %v6906_v24 = vcombine.low %v574_v8, %v578_v9  ;;  %v403_v8 = vld [vmem:[#allocation5 + $0x568] sm:$0xff]  ;;  %v6605_v9 = vcombine.high %v271_v3, %v275_v4 }
  0xfa   :  { %v706_v13 = vld [vmem:[#allocation5 + $0xee0] sm:$0xff]  ;;  %3490 = vmatpush2.bf16.msra.mxu1 %v7042_v15  ;;  %v267_v11 = vld [vmem:[#allocation5 + $0x128] sm:$0xff]  ;;  %v6733_v14 = vcombine.high %v399_v7, %v403_v8 }
  0xfb   :  { %v566_v18 = vld [vmem:[#allocation5 + $0xa80] sm:$0xff]  ;;  %v7035_v21 = vcombine.high %v702_v10, %v706_v13  ;;  %3450 = vmatprep.subr.bf16.mxu0 %v6907_v16  ;;  %v7034_v25 = vcombine.low %v702_v10, %v706_v13  ;;  %v263_v10 = vld [vmem:[#allocation5 + $0x108] sm:$0xff]  ;;  %v6604_v16 = vcombine.low %v271_v3, %v275_v4 }
  0xfc   :  { %v570_v19 = vld [vmem:[#allocation5 + $0xaa0] sm:$0xff]  ;;  %3451 = vmatpush2.bf16.msra.mxu0 %v6906_v24  ;;  %v391_v13 = vld [vmem:[#allocation5 + $0x508] sm:$0xff] }
  0xfd   :  { %v694_v20 = vld [vmem:[#allocation5 + $0xe80] sm:$0xff]  ;;  %v6899_v27 = vcombine.high %v566_v18, %v570_v19  ;;  %3491 = vmatprep.subr.bf16.mxu1 %v7035_v21  ;;  %v6898_v33 = vcombine.low %v566_v18, %v570_v19  ;;  %v395_v15 = vld [vmem:[#allocation5 + $0x528] sm:$0xff]  ;;  %v6732_v18 = vcombine.low %v399_v7, %v403_v8  ;;  %v6597_v19 = vcombine.high %v263_v10, %v267_v11 }
  0xfe   :  { %v698_v22 = vld [vmem:[#allocation5 + $0xea0] sm:$0xff]  ;;  %3492 = vmatpush2.bf16.msra.mxu1 %v7034_v25  ;;  %v259_v21 = vld [vmem:[#allocation5 + $0xe8] sm:$0xff]  ;;  %v6725_v24 = vcombine.high %v391_v13, %v395_v15 }
  0xff   :  { %v558_v28 = vld [vmem:[#allocation5 + $0xa40] sm:$0xff]  ;;  %v7027_v31 = vcombine.high %v694_v20, %v698_v22  ;;  %3452 = vmatprep.subr.bf16.mxu0 %v6899_v27  ;;  %v7026_v35 = vcombine.low %v694_v20, %v698_v22  ;;  %v255_v20 = vld [vmem:[#allocation5 + $0xc8] sm:$0xff]  ;;  %v6596_v27 = vcombine.low %v263_v10, %v267_v11 }
 0x100   :  { %v562_v29 = vld [vmem:[#allocation5 + $0xa60] sm:$0xff]  ;;  %3453 = vmatpush2.bf16.msra.mxu0 %v6898_v33  ;;  %v383_v22 = vld [vmem:[#allocation5 + $0x4c8] sm:$0xff] }
 0x101   :  { %v686_v30 = vld [vmem:[#allocation5 + $0xe40] sm:$0xff]  ;;  %v6891_v36 = vcombine.high %v558_v28, %v562_v29  ;;  %3493 = vmatprep.subr.bf16.mxu1 %v7027_v31  ;;  %v6890_v43 = vcombine.low %v558_v28, %v562_v29  ;;  %v387_v25 = vld [vmem:[#allocation5 + $0x4e8] sm:$0xff]  ;;  %v6724_v28 = vcombine.low %v391_v13, %v395_v15  ;;  %v6589_v29 = vcombine.high %v255_v20, %v259_v21 }
 0x102   :  { %v690_v32 = vld [vmem:[#allocation5 + $0xe60] sm:$0xff]  ;;  %3494 = vmatpush2.bf16.msra.mxu1 %v7026_v35  ;;  %v251_v31 = vld [vmem:[#allocation5 + $0xa8] sm:$0xff]  ;;  %v6717_v33 = vcombine.high %v383_v22, %v387_v25 }
 0x103   :  { %v550_v37 = vld [vmem:[#allocation5 + $0xa00] sm:$0xff]  ;;  %v7019_v41 = vcombine.high %v686_v30, %v690_v32  ;;  %3454 = vmatprep.subr.bf16.mxu0 %v6891_v36  ;;  %v7018_v44 = vcombine.low %v686_v30, %v690_v32  ;;  %v247_v30 = vld [vmem:[#allocation5 + $0x88] sm:$0xff]  ;;  %v6588_v36 = vcombine.low %v255_v20, %v259_v21 }
 0x104   :  { %v554_v39 = vld [vmem:[#allocation5 + $0xa20] sm:$0xff]  ;;  %3455 = vmatpush2.bf16.msra.mxu0 %v6890_v43  ;;  %v375_v32 = vld [vmem:[#allocation5 + $0x488] sm:$0xff] }
 0x105   :  { %v678_v40 = vld [vmem:[#allocation5 + $0xe00] sm:$0xff]  ;;  %v6883_v0 = vcombine.high %v550_v37, %v554_v39  ;;  %3495 = vmatprep.subr.bf16.mxu1 %v7019_v41  ;;  %v6882_v52 = vcombine.low %v550_v37, %v554_v39  ;;  %v379_v35 = vld [vmem:[#allocation5 + $0x4a8] sm:$0xff]  ;;  %v6716_v37 = vcombine.low %v383_v22, %v387_v25  ;;  %v6581_v39 = vcombine.high %v247_v30, %v251_v31 }
 0x106   :  { %v682_v42 = vld [vmem:[#allocation5 + $0xe20] sm:$0xff]  ;;  %3496 = vmatpush2.bf16.msra.mxu1 %v7018_v44  ;;  %v243_v41 = vld [vmem:[#allocation5 + $0x68] sm:$0xff]  ;;  %v6709_v43 = vcombine.high %v375_v32, %v379_v35  ;;  %v6708_v46 = vcombine.low %v375_v32, %v379_v35 }
 0x107   :  { %v7011_v50 = vcombine.high %v678_v40, %v682_v42  ;;  %3456 = vmatprep.subr.bf16.mxu0 %v6883_v0  ;;  %v7010_v53 = vcombine.low %v678_v40, %v682_v42  ;;  %v239_v40 = vld [vmem:[#allocation5 + $0x48] sm:$0xff]  ;;  %v6580_v0 = vcombine.low %v247_v30, %v251_v31 }
 0x108   :  { %3457 = vmatpush2.bf16.msra.mxu0 %v6882_v52  ;;  %v367_v42 = vld [vmem:[#allocation5 + $0x448] sm:$0xff]  ;;  %v6573_v6 = vcombine.high %v239_v40, %v243_v41 }
 0x109   :  { %3497 = vmatprep.subr.bf16.mxu1 %v7011_v50  ;;  %3508 = vmatprep.subr.bf16.mxu0 %v6621_v55  ;;  %v371_v44 = vld [vmem:[#allocation5 + $0x468] sm:$0xff]  ;;  %v6572_v55 = vcombine.low %v239_v40, %v243_v41 }
 0x10a   :  { %3498 = vmatpush2.bf16.msra.mxu1 %v7010_v53  ;;  %v231_v49 = vld [vmem:[#allocation5 + $0x8] sm:$0xff]  ;;  %v6701_v52 = vcombine.high %v367_v42, %v371_v44  ;;  %v6700_v56 = vcombine.low %v367_v42, %v371_v44 }
 0x10b   :  { %3549 = vmatprep.subr.bf16.mxu1 %v6749_v59  ;;  %3459 = vmatmul.mubr.bf16.vlgmr.msra.gmra.mxu0 %v8302_v61  ;;  %v235_v50 = vld [vmem:[#allocation5 + $0x28] sm:$0xff] }
 0x10c   :  { %3509 = vmatpush1.bf16.msra.mxu0 %v6620_v63  ;;  %3540 = vmatprep.mubr.bf16.mxu0 %v8266_v12  ;;  %v359_v51 = vld [vmem:[#allocation5 + $0x408] sm:$0xff]  ;;  %v6565_v57 = vcombine.high %v231_v49, %v235_v50 }
 0x10d   :  { %3500 = vmatmul.mubr.bf16.vlgmr.msra.gmra.mxu1 %v8306_v62  ;;  %3510 = vmatprep.subr.bf16.mxu0 %v6613_v2  ;;  %v363_v53 = vld [vmem:[#allocation5 + $0x428] sm:$0xff]  ;;  %v6564_v2 = vcombine.low %v231_v49, %v235_v50 }
 0x10e   :  { %3550 = vmatpush1.bf16.msra.mxu1 %v6748_v1  ;;  %3581 = vmatprep.mubr.bf16.mxu1 %v8271_v17  ;;  %v355_v59 = vld [vmem:[#allocation5 + $0x3e8] sm:$0xff]  ;;  %v6693_v63 = vcombine.high %v359_v51, %v363_v53  ;;  %v6692_v3 = vcombine.low %v359_v51, %v363_v53 }
 0x10f   :  { %3551 = vmatprep.subr.bf16.mxu1 %v6741_v5  ;;  %v479_v60 = vld [vmem:[#allocation5 + $0x7c8] sm:$0xff]  ;;  %v6685_v4 = vcombine.high %v351_v58, %v355_v59 }
 0x110   :  { %3511 = vmatpush1.bf16.msra.mxu0 %v6612_v23  ;;  %v483_v1 = vld [vmem:[#allocation5 + $0x7e8] sm:$0xff] }
 0x111   :  { %3512 = vmatprep.subr.bf16.mxu0 %v6605_v9  ;;  %v343_v5 = vld [vmem:[#allocation5 + $0x388] sm:$0xff]  ;;  %v6813_v23 = vcombine.high %v479_v60, %v483_v1  ;;  %v6684_v9 = vcombine.low %v351_v58, %v355_v59  ;;  %v6812_v10 = vcombine.low %v479_v60, %v483_v1 }
 0x112   :  { %3552 = vmatpush1.bf16.msra.mxu1 %v6740_v26  ;;  %v347_v7 = vld [vmem:[#allocation5 + $0x3a8] sm:$0xff] }
 0x113   :  { %3553 = vmatprep.subr.bf16.mxu1 %v6733_v14  ;;  %v471_v8 = vld [vmem:[#allocation5 + $0x788] sm:$0xff]  ;;  %v6677_v11 = vcombine.high %v343_v5, %v347_v7 }
 0x114   :  { %3513 = vmatpush1.bf16.msra.mxu0 %v6604_v16  ;;  %v475_v26 = vld [vmem:[#allocation5 + $0x7a8] sm:$0xff] }
 0x115   :  { %3514 = vmatprep.subr.bf16.mxu0 %v6597_v19  ;;  %v335_v13 = vld [vmem:[#allocation5 + $0x348] sm:$0xff]  ;;  %v6805_v16 = vcombine.high %v471_v8, %v475_v26  ;;  %v6676_v19 = vcombine.low %v343_v5, %v347_v7  ;;  %v6804_v20 = vcombine.low %v471_v8, %v475_v26 }
 0x116   :  { %3554 = vmatpush1.bf16.msra.mxu1 %v6732_v18  ;;  %v339_v14 = vld [vmem:[#allocation5 + $0x368] sm:$0xff] }
 0x117   :  { %3555 = vmatprep.subr.bf16.mxu1 %v6725_v24  ;;  %v463_v15 = vld [vmem:[#allocation5 + $0x748] sm:$0xff]  ;;  %v6669_v21 = vcombine.high %v335_v13, %v339_v14 }
 0x118   :  { %3515 = vmatpush1.bf16.msra.mxu0 %v6596_v27  ;;  %v467_v18 = vld [vmem:[#allocation5 + $0x768] sm:$0xff] }
 0x119   :  { %3516 = vmatprep.subr.bf16.mxu0 %v6589_v29  ;;  %v327_v22 = vld [vmem:[#allocation5 + $0x308] sm:$0xff]  ;;  %v6797_v27 = vcombine.high %v463_v15, %v467_v18  ;;  %v6668_v29 = vcombine.low %v335_v13, %v339_v14  ;;  %v6796_v30 = vcombine.low %v463_v15, %v467_v18 }
 0x11a   :  { %3556 = vmatpush1.bf16.msra.mxu1 %v6724_v28  ;;  %v331_v24 = vld [vmem:[#allocation5 + $0x328] sm:$0xff] }
 0x11b   :  { %3557 = vmatprep.subr.bf16.mxu1 %v6717_v33  ;;  %v455_v25 = vld [vmem:[#allocation5 + $0x708] sm:$0xff]  ;;  %v6661_v31 = vcombine.high %v327_v22, %v331_v24 }
 0x11c   :  { %3517 = vmatpush1.bf16.msra.mxu0 %v6588_v36  ;;  %v459_v28 = vld [vmem:[#allocation5 + $0x728] sm:$0xff] }
 0x11d   :  { %3518 = vmatprep.subr.bf16.mxu0 %v6581_v39  ;;  %v319_v32 = vld [vmem:[#allocation5 + $0x2c8] sm:$0xff]  ;;  %v6789_v36 = vcombine.high %v455_v25, %v459_v28  ;;  %v6660_v39 = vcombine.low %v327_v22, %v331_v24  ;;  %v6788_v40 = vcombine.low %v455_v25, %v459_v28 }
 0x11e   :  { %3558 = vmatpush1.bf16.msra.mxu1 %v6716_v37  ;;  %v323_v33 = vld [vmem:[#allocation5 + $0x2e8] sm:$0xff] }
 0x11f   :  { %3559 = vmatprep.subr.bf16.mxu1 %v6709_v43  ;;  %v447_v35 = vld [vmem:[#allocation5 + $0x6c8] sm:$0xff]  ;;  %v6653_v41 = vcombine.high %v319_v32, %v323_v33 }
 0x120   :  { %3519 = vmatpush1.bf16.msra.mxu0 %v6580_v0  ;;  %v451_v37 = vld [vmem:[#allocation5 + $0x6e8] sm:$0xff] }
 0x121   :  { %3520 = vmatprep.subr.bf16.mxu0 %v6573_v6  ;;  %v311_v42 = vld [vmem:[#allocation5 + $0x288] sm:$0xff]  ;;  %v6781_v0 = vcombine.high %v447_v35, %v451_v37  ;;  %v6652_v6 = vcombine.low %v319_v32, %v323_v33  ;;  %v6780_v49 = vcombine.low %v447_v35, %v451_v37 }
 0x122   :  { %3560 = vmatpush1.bf16.msra.mxu1 %v6708_v46  ;;  %v315_v43 = vld [vmem:[#allocation5 + $0x2a8] sm:$0xff] }
 0x123   :  { %3561 = vmatprep.subr.bf16.mxu1 %v6701_v52  ;;  %v439_v44 = vld [vmem:[#allocation5 + $0x688] sm:$0xff]  ;;  %v6645_v50 = vcombine.high %v311_v42, %v315_v43 }
 0x124   :  { %3521 = vmatpush1.bf16.msra.mxu0 %v6572_v55  ;;  %v443_v46 = vld [vmem:[#allocation5 + $0x6a8] sm:$0xff] }
 0x125   :  { %3522 = vmatprep.subr.bf16.mxu0 %v6565_v57  ;;  %v303_v51 = vld [vmem:[#allocation5 + $0x248] sm:$0xff]  ;;  %v6773_v55 = vcombine.high %v439_v44, %v443_v46  ;;  %v6644_v57 = vcombine.low %v311_v42, %v315_v43  ;;  %v6772_v58 = vcombine.low %v439_v44, %v443_v46 }
 0x126   :  { %3562 = vmatpush1.bf16.msra.mxu1 %v6700_v56  ;;  %v307_v52 = vld [vmem:[#allocation5 + $0x268] sm:$0xff] }
 0x127   :  { %3563 = vmatprep.subr.bf16.mxu1 %v6693_v63  ;;  %v431_v53 = vld [vmem:[#allocation5 + $0x648] sm:$0xff]  ;;  %v6637_v59 = vcombine.high %v303_v51, %v307_v52 }
 0x128   :  { %3523 = vmatpush1.bf16.msra.mxu0 %v6564_v2  ;;  %v435_v56 = vld [vmem:[#allocation5 + $0x668] sm:$0xff] }
 0x129   :  { %3524 = vmatprep.subr.bf16.mxu0 %v6685_v4  ;;  %v295_v60 = vld [vmem:[#allocation5 + $0x208] sm:$0xff]  ;;  %v6765_v2 = vcombine.high %v431_v53, %v435_v56  ;;  %v6636_v4 = vcombine.low %v303_v51, %v307_v52  ;;  %v6764_v5 = vcombine.low %v431_v53, %v435_v56 }
 0x12a   :  { %3564 = vmatpush1.bf16.msra.mxu1 %v6692_v3  ;;  %v299_v63 = vld [vmem:[#allocation5 + $0x228] sm:$0xff] }
 0x12b   :  { %3565 = vmatprep.subr.bf16.mxu1 %v6813_v23  ;;  %v423_v1 = vld [vmem:[#allocation5 + $0x608] sm:$0xff]  ;;  %v6629_v7 = vcombine.high %v295_v60, %v299_v63 }
 0x12c   :  { %3525 = vmatpush2.bf16.msra.mxu0 %v6684_v9  ;;  %v427_v3 = vld [vmem:[#allocation5 + $0x628] sm:$0xff] }
 0x12d   :  { %3526 = vmatprep.subr.bf16.mxu0 %v6677_v11  ;;  %v543_v8 = vld [vmem:[#allocation5 + $0x9c8] sm:$0xff]  ;;  %v6757_v9 = vcombine.high %v423_v1, %v427_v3  ;;  %v6628_v11 = vcombine.low %v295_v60, %v299_v63  ;;  %v6756_v13 = vcombine.low %v423_v1, %v427_v3 }
 0x12e   :  { %3566 = vmatpush2.bf16.msra.mxu1 %v6812_v10  ;;  %v547_v23 = vld [vmem:[#allocation5 + $0x9e8] sm:$0xff] }
 0x12f   :  { %3567 = vmatprep.subr.bf16.mxu1 %v6805_v16  ;;  %v671_v26 = vld [vmem:[#allocation5 + $0xdc8] sm:$0xff]  ;;  %v6877_v14 = vcombine.high %v543_v8, %v547_v23 }
 0x130   :  { %3527 = vmatpush2.bf16.msra.mxu0 %v6676_v19  ;;  %v675_v10 = vld [vmem:[#allocation5 + $0xde8] sm:$0xff] }
 0x131   :  { %3528 = vmatprep.subr.bf16.mxu0 %v6669_v21  ;;  %v535_v15 = vld [vmem:[#allocation5 + $0x988] sm:$0xff]  ;;  %v7005_v19 = vcombine.high %v671_v26, %v675_v10  ;;  %v6876_v21 = vcombine.low %v543_v8, %v547_v23  ;;  %v7004_v22 = vcombine.low %v671_v26, %v675_v10 }
 0x132   :  { %3568 = vmatpush2.bf16.msra.mxu1 %v6804_v20  ;;  %v539_v16 = vld [vmem:[#allocation5 + $0x9a8] sm:$0xff] }
 0x133   :  { %3569 = vmatprep.subr.bf16.mxu1 %v6797_v27  ;;  %v663_v18 = vld [vmem:[#allocation5 + $0xd88] sm:$0xff]  ;;  %v6869_v24 = vcombine.high %v535_v15, %v539_v16 }
 0x134   :  { %3529 = vmatpush2.bf16.msra.mxu0 %v6668_v29  ;;  %v667_v20 = vld [vmem:[#allocation5 + $0xda8] sm:$0xff] }
 0x135   :  { %3530 = vmatprep.subr.bf16.mxu0 %v6661_v31  ;;  %v527_v25 = vld [vmem:[#allocation5 + $0x948] sm:$0xff]  ;;  %v6997_v29 = vcombine.high %v663_v18, %v667_v20  ;;  %v6868_v31 = vcombine.low %v535_v15, %v539_v16  ;;  %v6996_v32 = vcombine.low %v663_v18, %v667_v20 }
 0x136   :  { %3570 = vmatpush2.bf16.msra.mxu1 %v6796_v30  ;;  %v531_v27 = vld [vmem:[#allocation5 + $0x968] sm:$0xff] }
 0x137   :  { %3571 = vmatprep.subr.bf16.mxu1 %v6789_v36  ;;  %v655_v28 = vld [vmem:[#allocation5 + $0xd48] sm:$0xff]  ;;  %v6861_v33 = vcombine.high %v527_v25, %v531_v27 }
 0x138   :  { %3531 = vmatpush2.bf16.msra.mxu0 %v6660_v39  ;;  %v659_v30 = vld [vmem:[#allocation5 + $0xd68] sm:$0xff] }
 0x139   :  { %3532 = vmatprep.subr.bf16.mxu0 %v6653_v41  ;;  %v519_v35 = vld [vmem:[#allocation5 + $0x908] sm:$0xff]  ;;  %v6989_v37 = vcombine.high %v655_v28, %v659_v30  ;;  %v6860_v41 = vcombine.low %v527_v25, %v531_v27  ;;  %v6988_v42 = vcombine.low %v655_v28, %v659_v30 }
 0x13a   :  { %3572 = vmatpush2.bf16.msra.mxu1 %v6788_v40  ;;  %v523_v36 = vld [vmem:[#allocation5 + $0x928] sm:$0xff] }
 0x13b   :  { %3573 = vmatprep.subr.bf16.mxu1 %v6781_v0  ;;  %v647_v39 = vld [vmem:[#allocation5 + $0xd08] sm:$0xff]  ;;  %v6853_v43 = vcombine.high %v519_v35, %v523_v36 }
 0x13c   :  { %3533 = vmatpush2.bf16.msra.mxu0 %v6652_v6  ;;  %v651_v40 = vld [vmem:[#allocation5 + $0xd28] sm:$0xff] }
 0x13d   :  { %3534 = vmatprep.subr.bf16.mxu0 %v6645_v50  ;;  %v511_v44 = vld [vmem:[#allocation5 + $0x8c8] sm:$0xff]  ;;  %v6981_v6 = vcombine.high %v647_v39, %v651_v40  ;;  %v6852_v50 = vcombine.low %v519_v35, %v523_v36  ;;  %v6980_v51 = vcombine.low %v647_v39, %v651_v40 }
 0x13e   :  { %3574 = vmatpush2.bf16.msra.mxu1 %v6780_v49  ;;  %v515_v0 = vld [vmem:[#allocation5 + $0x8e8] sm:$0xff] }
 0x13f   :  { %3575 = vmatprep.subr.bf16.mxu1 %v6773_v55  ;;  %v639_v46 = vld [vmem:[#allocation5 + $0xcc8] sm:$0xff]  ;;  %v6845_v52 = vcombine.high %v511_v44, %v515_v0 }
 0x140   :  { %3535 = vmatpush2.bf16.msra.mxu0 %v6644_v57  ;;  %v643_v49 = vld [vmem:[#allocation5 + $0xce8] sm:$0xff] }
 0x141   :  { %3536 = vmatprep.subr.bf16.mxu0 %v6637_v59  ;;  %v503_v53 = vld [vmem:[#allocation5 + $0x888] sm:$0xff]  ;;  %v6973_v57 = vcombine.high %v639_v46, %v643_v49  ;;  %v6844_v59 = vcombine.low %v511_v44, %v515_v0  ;;  %v6972_v60 = vcombine.low %v639_v46, %v643_v49 }
 0x142   :  { %3576 = vmatpush2.bf16.msra.mxu1 %v6772_v58  ;;  %v507_v55 = vld [vmem:[#allocation5 + $0x8a8] sm:$0xff] }
 0x143   :  { %3577 = vmatprep.subr.bf16.mxu1 %v6765_v2  ;;  %v631_v56 = vld [vmem:[#allocation5 + $0xc88] sm:$0xff]  ;;  %v6837_v63 = vcombine.high %v503_v53, %v507_v55 }
 0x144   :  { %3537 = vmatpush2.bf16.msra.mxu0 %v6636_v4  ;;  %v635_v58 = vld [vmem:[#allocation5 + $0xca8] sm:$0xff] }
 0x145   :  { %3538 = vmatprep.subr.bf16.mxu0 %v6629_v7  ;;  %v495_v1 = vld [vmem:[#allocation5 + $0x848] sm:$0xff]  ;;  %v6965_v4 = vcombine.high %v631_v56, %v635_v58  ;;  %v6836_v7 = vcombine.low %v503_v53, %v507_v55  ;;  %v6964_v8 = vcombine.low %v631_v56, %v635_v58 }
 0x146   :  { %3578 = vmatpush2.bf16.msra.mxu1 %v6764_v5  ;;  %v499_v2 = vld [vmem:[#allocation5 + $0x868] sm:$0xff] }
 0x147   :  { %3579 = vmatprep.subr.bf16.mxu1 %v6757_v9  ;;  %v623_v3 = vld [vmem:[#allocation5 + $0xc48] sm:$0xff]  ;;  %v6829_v23 = vcombine.high %v495_v1, %v499_v2 }
 0x148   :  { %3539 = vmatpush2.bf16.msra.mxu0 %v6628_v11  ;;  %v627_v5 = vld [vmem:[#allocation5 + $0xc68] sm:$0xff] }
 0x149   :  { %3590 = vmatprep.subr.bf16.mxu0 %v6877_v14  ;;  %v487_v26 = vld [vmem:[#allocation5 + $0x808] sm:$0xff]  ;;  %v6957_v11 = vcombine.high %v623_v3, %v627_v5  ;;  %v6828_v14 = vcombine.low %v495_v1, %v499_v2  ;;  %v6956_v15 = vcombine.low %v623_v3, %v627_v5 }
 0x14a   :  { %3580 = vmatpush2.bf16.msra.mxu1 %v6756_v13  ;;  %v491_v9 = vld [vmem:[#allocation5 + $0x828] sm:$0xff] }
 0x14b   :  { %3631 = vmatprep.subr.bf16.mxu1 %v7005_v19  ;;  %3541 = vmatmul.mubr.bf16.vlgmr.msra.gmra.mxu0 %v8284_v34  ;;  %v615_v10 = vld [vmem:[#allocation5 + $0xc08] sm:$0xff]  ;;  %v6821_v16 = vcombine.high %v487_v26, %v491_v9 }
 0x14c   :  { %3591 = vmatpush1.bf16.msra.mxu0 %v6876_v21  ;;  %3622 = vmatprep.mubr.bf16.mxu0 %v8292_v47  ;;  %v619_v13 = vld [vmem:[#allocation5 + $0xc28] sm:$0xff] }
 0x14d   :  { %3582 = vmatmul.mubr.bf16.vlgmr.msra.gmra.mxu1 %v8290_v38  ;;  %3592 = vmatprep.subr.bf16.mxu0 %v6869_v24  ;;  %v607_v18 = vld [vmem:[#allocation5 + $0xbc8] sm:$0xff]  ;;  %v6949_v21 = vcombine.high %v615_v10, %v619_v13  ;;  %v6820_v24 = vcombine.low %v487_v26, %v491_v9  ;;  %v6948_v25 = vcombine.low %v615_v10, %v619_v13 }
 0x14e   :  { %3632 = vmatpush1.bf16.msra.mxu1 %v7004_v22  ;;  %3663 = vmatprep.mubr.bf16.mxu1 %v8295_v48  ;;  %v611_v19 = vld [vmem:[#allocation5 + $0xbe8] sm:$0xff] }
 0x14f   :  { %3633 = vmatprep.subr.bf16.mxu1 %v6997_v29  ;;  %v735_v20 = vld [vmem:[#allocation5 + $0xfc8] sm:$0xff]  ;;  %v6941_v27 = vcombine.high %v607_v18, %v611_v19 }
 0x150   :  { %3593 = vmatpush1.bf16.msra.mxu0 %v6868_v31  ;;  %v739_v22 = vld [vmem:[#allocation5 + $0xfe8] sm:$0xff] }
 0x151   :  { %3594 = vmatprep.subr.bf16.mxu0 %v6861_v33  ;;  %v599_v28 = vld [vmem:[#allocation5 + $0xb88] sm:$0xff]  ;;  %v7069_v31 = vcombine.high %v735_v20, %v739_v22  ;;  %v6940_v33 = vcombine.low %v607_v18, %v611_v19  ;;  %v7068_v35 = vcombine.low %v735_v20, %v739_v22 }
 0x152   :  { %3634 = vmatpush1.bf16.msra.mxu1 %v6996_v32  ;;  %v603_v29 = vld [vmem:[#allocation5 + $0xba8] sm:$0xff] }
 0x153   :  { %3635 = vmatprep.subr.bf16.mxu1 %v6989_v37  ;;  %v727_v30 = vld [vmem:[#allocation5 + $0xf88] sm:$0xff]  ;;  %v6933_v36 = vcombine.high %v599_v28, %v603_v29 }
 0x154   :  { %3595 = vmatpush1.bf16.msra.mxu0 %v6860_v41  ;;  %v731_v32 = vld [vmem:[#allocation5 + $0xfa8] sm:$0xff] }
 0x155   :  { %3596 = vmatprep.subr.bf16.mxu0 %v6853_v43  ;;  %v7061_v37 = vcombine.high %v727_v30, %v731_v32  ;;  %v591_v39 = vld [vmem:[#allocation5 + $0xb48] sm:$0xff]  ;;  %v6932_v43 = vcombine.low %v599_v28, %v603_v29  ;;  %v7060_v44 = vcombine.low %v727_v30, %v731_v32  ;;  %v292_v32 = vld [vmem:[#allocation5 + $0x1f0] sm:$0xff] }
 0x156   :  { %3636 = vmatpush1.bf16.msra.mxu1 %v6988_v42  ;;  %v595_v40 = vld [vmem:[#allocation5 + $0xb68] sm:$0xff] }
 0x157   :  { %3637 = vmatprep.subr.bf16.mxu1 %v6981_v6  ;;  %v719_v41 = vld [vmem:[#allocation5 + $0xf48] sm:$0xff]  ;;  %v6925_v0 = vcombine.high %v591_v39, %v595_v40 }
 0x158   :  { %3597 = vmatpush1.bf16.msra.mxu0 %v6852_v50  ;;  %v723_v42 = vld [vmem:[#allocation5 + $0xf68] sm:$0xff] }
 0x159   :  { %3598 = vmatprep.subr.bf16.mxu0 %v6845_v52  ;;  %v7053_v46 = vcombine.high %v719_v41, %v723_v42  ;;  %v583_v6 = vld [vmem:[#allocation5 + $0xb08] sm:$0xff]  ;;  %v6924_v52 = vcombine.low %v591_v39, %v595_v40  ;;  %v7052_v53 = vcombine.low %v719_v41, %v723_v42  ;;  %v8319_v40 = vld [vmem:[#allocation7] sm:$0xff] }
 0x15a   :  { %3638 = vmatpush1.bf16.msra.mxu1 %v6980_v51  ;;  %v587_v49 = vld [vmem:[#allocation5 + $0xb28] sm:$0xff] }
 0x15b   :  { %3639 = vmatprep.subr.bf16.mxu1 %v6973_v57  ;;  %v711_v50 = vld [vmem:[#allocation5 + $0xf08] sm:$0xff]  ;;  %v6917_v55 = vcombine.high %v583_v6, %v587_v49 }
 0x15c   :  { %3599 = vmatpush1.bf16.msra.mxu0 %v6844_v59  ;;  %v715_v51 = vld [vmem:[#allocation5 + $0xf28] sm:$0xff] }
 0x15d   :  { %3600 = vmatprep.subr.bf16.mxu0 %v6837_v63  ;;  %v7045_v56 = vcombine.high %v711_v50, %v715_v51  ;;  %v575_v57 = vld [vmem:[#allocation5 + $0xac8] sm:$0xff]  ;;  %v6916_v63 = vcombine.low %v583_v6, %v587_v49  ;;  %v7044_v1 = vcombine.low %v711_v50, %v715_v51  ;;  %v412_v6 = vld [vmem:[#allocation5 + $0x5b0] sm:$0xff] }
 0x15e   :  { %3640 = vmatpush1.bf16.msra.mxu1 %v6972_v60  ;;  %v579_v58 = vld [vmem:[#allocation5 + $0xae8] sm:$0xff] }
 0x15f   :  { %3641 = vmatprep.subr.bf16.mxu1 %v6965_v4  ;;  %v703_v59 = vld [vmem:[#allocation5 + $0xec8] sm:$0xff]  ;;  %v6909_v2 = vcombine.high %v575_v57, %v579_v58 }
 0x160   :  { %3601 = vmatpush1.bf16.msra.mxu0 %v6836_v7  ;;  %v707_v60 = vld [vmem:[#allocation5 + $0xee8] sm:$0xff] }
 0x161   :  { %3602 = vmatprep.subr.bf16.mxu0 %v6829_v23  ;;  %v7037_v3 = vcombine.high %v703_v59, %v707_v60  ;;  %v567_v4 = vld [vmem:[#allocation5 + $0xa88] sm:$0xff]  ;;  %v6908_v23 = vcombine.low %v575_v57, %v579_v58  ;;  %v7036_v26 = vcombine.low %v703_v59, %v707_v60  ;;  %v276_v57 = vld [vmem:[#allocation5 + $0x170] sm:$0xff] }
 0x162   :  { %3642 = vmatpush1.bf16.msra.mxu1 %v6964_v8  ;;  %v571_v5 = vld [vmem:[#allocation5 + $0xaa8] sm:$0xff]  ;;  %v400_v59 = vld [vmem:[#allocation5 + $0x550] sm:$0xff] }
 0x163   :  { %3643 = vmatprep.subr.bf16.mxu1 %v6957_v11  ;;  %v695_v7 = vld [vmem:[#allocation5 + $0xe88] sm:$0xff]  ;;  %v6901_v9 = vcombine.high %v567_v4, %v571_v5  ;;  %v404_v60 = vld [vmem:[#allocation5 + $0x570] sm:$0xff] }
 0x164   :  { %3603 = vmatpush1.bf16.msra.mxu0 %v6828_v14  ;;  %v699_v8 = vld [vmem:[#allocation5 + $0xea8] sm:$0xff] }
 0x165   :  { %3604 = vmatprep.subr.bf16.mxu0 %v6821_v16  ;;  %v7029_v10 = vcombine.high %v695_v7, %v699_v8  ;;  %v559_v11 = vld [vmem:[#allocation5 + $0xa48] sm:$0xff]  ;;  %v6900_v16 = vcombine.low %v567_v4, %v571_v5  ;;  %v7028_v18 = vcombine.low %v695_v7, %v699_v8 }
 0x166   :  { %3644 = vmatpush1.bf16.msra.mxu1 %v6956_v15  ;;  %v563_v13 = vld [vmem:[#allocation5 + $0xa68] sm:$0xff] }
 0x167   :  { %3645 = vmatprep.subr.bf16.mxu1 %v6949_v21  ;;  %v687_v14 = vld [vmem:[#allocation5 + $0xe48] sm:$0xff]  ;;  %v6893_v19 = vcombine.high %v559_v11, %v563_v13 }
 0x168   :  { %3605 = vmatpush1.bf16.msra.mxu0 %v6820_v24  ;;  %v691_v15 = vld [vmem:[#allocation5 + $0xe68] sm:$0xff] }
 0x169   :  { %3606 = vmatprep.subr.bf16.mxu0 %v6941_v27  ;;  %v7021_v20 = vcombine.high %v687_v14, %v691_v15  ;;  %v551_v21 = vld [vmem:[#allocation5 + $0xa08] sm:$0xff]  ;;  %v6892_v27 = vcombine.low %v559_v11, %v563_v13  ;;  %v7020_v28 = vcombine.low %v687_v14, %v691_v15  ;;  %v392_v13 = vld [vmem:[#allocation5 + $0x510] sm:$0xff] }
 0x16a   :  { %3646 = vmatpush1.bf16.msra.mxu1 %v6948_v25  ;;  %v555_v22 = vld [vmem:[#allocation5 + $0xa28] sm:$0xff]  ;;  %v396_v14 = vld [vmem:[#allocation5 + $0x530] sm:$0xff] }
 0x16b   :  { %3647 = vmatprep.subr.bf16.mxu1 %v7069_v31  ;;  %v679_v24 = vld [vmem:[#allocation5 + $0xe08] sm:$0xff]  ;;  %v6885_v29 = vcombine.high %v551_v21, %v555_v22  ;;  %v288_v31 = vld [vmem:[#allocation5 + $0x1d0] sm:$0xff] }
 0x16c   :  { %3607 = vmatpush2.bf16.msra.mxu0 %v6940_v33  ;;  %v683_v25 = vld [vmem:[#allocation5 + $0xe28] sm:$0xff]  ;;  %v416_v33 = vld [vmem:[#allocation5 + $0x5d0] sm:$0xff]  ;;  %v6623_v41 = vcombine.high %v288_v31, %v292_v32  ;;  %v6622_v50 = vcombine.low %v288_v31, %v292_v32  ;;  %v6726_v31 = vcombine.low %v392_v13, %v396_v14 }
 0x16d   :  { %3608 = vmatprep.subr.bf16.mxu0 %v6933_v36  ;;  %v7013_v30 = vcombine.high %v679_v24, %v683_v25  ;;  %v6884_v36 = vcombine.low %v551_v21, %v555_v22  ;;  %v7012_v39 = vcombine.low %v679_v24, %v683_v25  ;;  %v6727_v24 = vcombine.high %v392_v13, %v396_v14  ;;  %v256_v25 = vld [vmem:[#allocation5 + $0xd0] sm:$0xff] }
 0x16e   :  { %3648 = vmatpush2.bf16.msra.mxu1 %v7068_v35  ;;  %v420_v35 = vld [vmem:[#allocation5 + $0x5f0] sm:$0xff] }
 0x16f   :  { %3649 = vmatprep.subr.bf16.mxu1 %v7061_v37  ;;  %v8317_v37 = vsub.s32 0, %v8253_v45  ;;  %v6751_v42 = vcombine.high %v416_v33, %v420_v35  ;;  %v6750_v51 = vcombine.low %v416_v33, %v420_v35  ;;  %v248_v35 = vld [vmem:[#allocation5 + $0x90] sm:$0xff] }
 0x170   :  { %3609 = vmatpush2.bf16.msra.mxu0 %v6932_v43  ;;  %v8322_v43 = vsub.s32 1, %v8253_v45  ;;  %v344_v13 = vld [vmem:[#allocation5 + $0x390] sm:$0xff] }
 0x171   :  { %3610 = vmatprep.subr.bf16.mxu0 %v6925_v0  ;;  %v284_v0 = vld [vmem:[#allocation5 + $0x1b0] sm:$0xff]  ;;  %v747_v49 = vrot.slane %v8319_v40, %v8317_v37 }
 0x172   :  { %3650 = vmatpush2.bf16.msra.mxu1 %v7060_v44  ;;  %v280_v44 = vld [vmem:[#allocation5 + $0x190] sm:$0xff] }
 0x173   :  { %3651 = vmatprep.subr.bf16.mxu1 %v7053_v46  ;;  %v408_v46 = vld [vmem:[#allocation5 + $0x590] sm:$0xff] }
 0x174   :  { %3611 = vmatpush2.bf16.msra.mxu0 %v6924_v52  ;;  %v6615_v52 = vcombine.high %v280_v44, %v284_v0  ;;  %v6742_v4 = vcombine.low %v408_v46, %v412_v6  ;;  %v348_v14 = vld [vmem:[#allocation5 + $0x3b0] sm:$0xff] }
 0x175   :  { %3612 = vmatprep.subr.bf16.mxu0 %v6917_v55  ;;  %v6743_v55 = vcombine.high %v408_v46, %v412_v6  ;;  %v240_v6 = vld [vmem:[#allocation5 + $0x50] sm:$0xff] }
 0x176   :  { %3652 = vmatpush2.bf16.msra.mxu1 %v7052_v53  ;;  %v751_v53 = vrot.slane %v8319_v40, %v8322_v43 }
 0x177   :  { %3653 = vmatprep.subr.bf16.mxu1 %v7045_v56  ;;  %v272_v56 = vld [vmem:[#allocation5 + $0x150] sm:$0xff] }
 0x178   :  { %3613 = vmatpush2.bf16.msra.mxu0 %v6916_v63  ;;  %v6607_v5 = vcombine.high %v272_v56, %v276_v57 }
 0x179   :  { %3614 = vmatprep.subr.bf16.mxu0 %v6909_v2  ;;  %v6614_v2 = vcombine.low %v280_v44, %v284_v0 }
 0x17a   :  { %3654 = vmatpush2.bf16.msra.mxu1 %v7044_v1 }
 0x17b   :  { %3655 = vmatprep.subr.bf16.mxu1 %v7037_v3 }
 0x17c   :  { %3615 = vmatpush2.bf16.msra.mxu0 %v6908_v23 }
 0x17d   :  { %3616 = vmatprep.subr.bf16.mxu0 %v6901_v9  ;;  %v264_v9 = vld [vmem:[#allocation5 + $0x110] sm:$0xff] }
 0x17e   :  { %3656 = vmatpush2.bf16.msra.mxu1 %v7036_v26  ;;  %v6735_v26 = vcombine.high %v400_v59, %v404_v60 }
 0x17f   :  { %3657 = vmatprep.subr.bf16.mxu1 %v7029_v10  ;;  %v268_v10 = vld [vmem:[#allocation5 + $0x130] sm:$0xff] }
 0x180   :  { %3617 = vmatpush2.bf16.msra.mxu0 %v6900_v16  ;;  %v6599_v21 = vcombine.high %v264_v9, %v268_v10 }
 0x181   :  { %3618 = vmatprep.subr.bf16.mxu0 %v6893_v19 }
 0x182   :  { %3658 = vmatpush2.bf16.msra.mxu1 %v7028_v18  ;;  %v6606_v18 = vcombine.low %v272_v56, %v276_v57  ;;  %v232_v57 = vld [vmem:[#allocation5 + $0x10] sm:$0xff] }
 0x183   :  { %3659 = vmatprep.subr.bf16.mxu1 %v7021_v20  ;;  %v6734_v20 = vcombine.low %v400_v59, %v404_v60  ;;  %v360_v59 = vld [vmem:[#allocation5 + $0x410] sm:$0xff] }
 0x184   :  { %3619 = vmatpush2.bf16.msra.mxu0 %v6892_v27  ;;  %v260_v27 = vld [vmem:[#allocation5 + $0xf0] sm:$0xff] }
 0x185   :  { %3620 = vmatprep.subr.bf16.mxu0 %v6885_v29  ;;  %v388_v29 = vld [vmem:[#allocation5 + $0x4f0] sm:$0xff]  ;;  %v6591_v32 = vcombine.high %v256_v25, %v260_v27 }
 0x186   :  { %3660 = vmatpush2.bf16.msra.mxu1 %v7020_v28  ;;  %v384_v28 = vld [vmem:[#allocation5 + $0x4d0] sm:$0xff] }
 0x187   :  { %3661 = vmatprep.subr.bf16.mxu1 %v7013_v30  ;;  %v6598_v30 = vcombine.low %v264_v9, %v268_v10  ;;  %v6719_v33 = vcombine.high %v384_v28, %v388_v29  ;;  %v6718_v44 = vcombine.low %v384_v28, %v388_v29  ;;  %v364_v60 = vld [vmem:[#allocation5 + $0x430] sm:$0xff]  ;;  %v6678_v29 = vcombine.low %v344_v13, %v348_v14 }
 0x188   :  { %3621 = vmatpush2.bf16.msra.mxu0 %v6884_v36  ;;  %v252_v36 = vld [vmem:[#allocation5 + $0xb0] sm:$0xff]  ;;  %v6694_v9 = vcombine.low %v360_v59, %v364_v60 }
 0x189   :  { %3672 = vmatprep.subr.bf16.mxu0 %v6623_v41  ;;  %v380_v41 = vld [vmem:[#allocation5 + $0x4b0] sm:$0xff]  ;;  %v6583_v0 = vcombine.high %v248_v35, %v252_v36 }
 0x18a   :  { %3662 = vmatpush2.bf16.msra.mxu1 %v7012_v39  ;;  %v376_v39 = vld [vmem:[#allocation5 + $0x490] sm:$0xff] }
 0x18b   :  { %3713 = vmatprep.subr.bf16.mxu1 %v6751_v42  ;;  %v3378_v58 = vpop.f32.mrf.mxu0  ;;  %3623 = vmatmul.mubr.bf16.vlgmr.msra.gmra.mxu0 %v8302_v61  ;;  %v6590_v42 = vcombine.low %v256_v25, %v260_v27  ;;  %v6711_v46 = vcombine.high %v376_v39, %v380_v41  ;;  %v340_v25 = vld [vmem:[#allocation5 + $0x370] sm:$0xff] }
 0x18c   :  { %v3379_v63 = vadd.f32 %v3378_v58, %v747_v49  ;;  %3673 = vmatpush1.bf16.msra.mxu0 %v6622_v50  ;;  %3704 = vmatprep.mubr.bf16.mxu0 %v8266_v12  ;;  %v244_v49 = vld [vmem:[#allocation5 + $0x70] sm:$0xff] }
 0x18d   :  { %v3419_v1 = vpop.f32.mrf.mxu1  ;;  %3664 = vmatmul.mubr.bf16.vlgmr.msra.gmra.mxu1 %v8306_v62  ;;  %v3380_v3 = vpop.f32.mrf.mxu0  ;;  %3674 = vmatprep.subr.bf16.mxu0 %v6615_v52  ;;  %v368_v50 = vld [vmem:[#allocation5 + $0x450] sm:$0xff]  ;;  %v6582_v52 = vcombine.low %v248_v35, %v252_v36 }
 0x18e   :  { %3714 = vmatpush1.bf16.msra.mxu1 %v6750_v51  ;;  %v8330_v7 = vadd.f32 %v3419_v1, %v3379_v63  ;;  %v3381_v8 = vadd.f32 %v3380_v3, %v751_v53  ;;  %3745 = vmatprep.mubr.bf16.mxu1 %v8271_v17  ;;  %v372_v51 = vld [vmem:[#allocation5 + $0x470] sm:$0xff]  ;;  %v6710_v53 = vcombine.low %v376_v39, %v380_v41 }
 0x18f   :  { %v3421_v23 = vpop.f32.mrf.mxu1  ;;  %3715 = vmatprep.subr.bf16.mxu1 %v6743_v55  ;;  %v3382_v11 = vpop.f32.mrf.mxu0  ;;  %v6575_v55 = vcombine.high %v240_v6, %v244_v49  ;;  %v6703_v56 = vcombine.high %v368_v50, %v372_v51  ;;  %v236_v58 = vld [vmem:[#allocation5 + $0x30] sm:$0xff]  ;;  %v6574_v63 = vcombine.low %v240_v6, %v244_v49  ;;  %v6702_v1 = vcombine.low %v368_v50, %v372_v51 }
 0x190   :  { %v8334_v15 = vadd.f32 %v3421_v23, %v3381_v8  ;;  %3675 = vmatpush1.bf16.msra.mxu0 %v6614_v2  ;;  %v6567_v2 = vcombine.high %v232_v57, %v236_v58  ;;  %v6695_v3 = vcombine.high %v360_v59, %v364_v60  ;;  %v480_v8 = vld [vmem:[#allocation5 + $0x7d0] sm:$0xff] }
 0x191   :  { %v3423_v16 = vpop.f32.mrf.mxu1  ;;  %v3383_v19 = vpop.f32.mrf.mxu0  ;;  %3676 = vmatprep.subr.bf16.mxu0 %v6607_v5  ;;  %v356_v5 = vld [vmem:[#allocation5 + $0x3f0] sm:$0xff] }
 0x192   :  { %3716 = vmatpush1.bf16.msra.mxu1 %v6742_v4  ;;  %v352_v4 = vld [vmem:[#allocation5 + $0x3d0] sm:$0xff] }
 0x193   :  { %v3424_v22 = vpop.f32.mrf.mxu1  ;;  %3717 = vmatprep.subr.bf16.mxu1 %v6735_v26  ;;  %v484_v23 = vld [vmem:[#allocation5 + $0x7f0] sm:$0xff]  ;;  %v6566_v26 = vcombine.low %v232_v57, %v236_v58  ;;  %v6687_v10 = vcombine.high %v352_v4, %v356_v5  ;;  %v6686_v19 = vcombine.low %v352_v4, %v356_v5 }
 0x194   :  { %3677 = vmatpush1.bf16.msra.mxu0 %v6606_v18  ;;  %v6815_v11 = vcombine.high %v480_v8, %v484_v23  ;;  %v472_v16 = vld [vmem:[#allocation5 + $0x790] sm:$0xff] }
 0x195   :  { %3678 = vmatprep.subr.bf16.mxu0 %v6599_v21  ;;  %v476_v18 = vld [vmem:[#allocation5 + $0x7b0] sm:$0xff]  ;;  %v6679_v21 = vcombine.high %v344_v13, %v348_v14 }
 0x196   :  { %3718 = vmatpush1.bf16.msra.mxu1 %v6734_v20  ;;  %v6814_v20 = vcombine.low %v480_v8, %v484_v23  ;;  %v6807_v22 = vcombine.high %v472_v16, %v476_v18  ;;  %v464_v27 = vld [vmem:[#allocation5 + $0x750] sm:$0xff] }
 0x197   :  { %3719 = vmatprep.subr.bf16.mxu1 %v6727_v24  ;;  %v336_v24 = vld [vmem:[#allocation5 + $0x350] sm:$0xff] }
 0x198   :  { %3679 = vmatpush1.bf16.msra.mxu0 %v6598_v30  ;;  %v468_v28 = vld [vmem:[#allocation5 + $0x770] sm:$0xff]  ;;  %v6806_v30 = vcombine.low %v472_v16, %v476_v18  ;;  %v6670_v41 = vcombine.low %v336_v24, %v340_v25 }
 0x199   :  { %3680 = vmatprep.subr.bf16.mxu0 %v6591_v32  ;;  %v6799_v32 = vcombine.high %v464_v27, %v468_v28  ;;  %v332_v35 = vld [vmem:[#allocation5 + $0x330] sm:$0xff] }
 0x19a   :  { %3720 = vmatpush1.bf16.msra.mxu1 %v6726_v31  ;;  %v6671_v31 = vcombine.high %v336_v24, %v340_v25  ;;  %v456_v36 = vld [vmem:[#allocation5 + $0x710] sm:$0xff] }
 0x19b   :  { %3721 = vmatprep.subr.bf16.mxu1 %v6719_v33  ;;  %v328_v33 = vld [vmem:[#allocation5 + $0x310] sm:$0xff] }
 0x19c   :  { %3681 = vmatpush1.bf16.msra.mxu0 %v6590_v42  ;;  %v460_v39 = vld [vmem:[#allocation5 + $0x730] sm:$0xff]  ;;  %v6798_v42 = vcombine.low %v464_v27, %v468_v28  ;;  %v6662_v51 = vcombine.low %v328_v33, %v332_v35 }
 0x19d   :  { %3682 = vmatprep.subr.bf16.mxu0 %v6583_v0  ;;  %v6791_v0 = vcombine.high %v456_v36, %v460_v39  ;;  %v324_v6 = vld [vmem:[#allocation5 + $0x2f0] sm:$0xff] }
 0x19e   :  { %3722 = vmatpush1.bf16.msra.mxu1 %v6718_v44  ;;  %v6663_v44 = vcombine.high %v328_v33, %v332_v35  ;;  %v448_v49 = vld [vmem:[#allocation5 + $0x6d0] sm:$0xff] }
 0x19f   :  { %3723 = vmatprep.subr.bf16.mxu1 %v6711_v46  ;;  %v320_v46 = vld [vmem:[#allocation5 + $0x2d0] sm:$0xff] }
 0x1a0   :  { %3683 = vmatpush1.bf16.msra.mxu0 %v6582_v52  ;;  %v452_v50 = vld [vmem:[#allocation5 + $0x6f0] sm:$0xff]  ;;  %v6790_v52 = vcombine.low %v456_v36, %v460_v39  ;;  %v6654_v60 = vcombine.low %v320_v46, %v324_v6  ;;  %v4024_v39 = vld [vmem:[#allocation8] sm:$0xff] }
 0x1a1   :  { %3684 = vmatprep.subr.bf16.mxu0 %v6575_v55  ;;  %v6783_v55 = vcombine.high %v448_v49, %v452_v50  ;;  %v316_v57 = vld [vmem:[#allocation5 + $0x2b0] sm:$0xff] }
 0x1a2   :  { %3724 = vmatpush1.bf16.msra.mxu1 %v6710_v53  ;;  %v6655_v53 = vcombine.high %v320_v46, %v324_v6  ;;  %v440_v58 = vld [vmem:[#allocation5 + $0x690] sm:$0xff] }
 0x1a3   :  { %3725 = vmatprep.subr.bf16.mxu1 %v6703_v56  ;;  %v312_v56 = vld [vmem:[#allocation5 + $0x290] sm:$0xff] }
 0x1a4   :  { %3685 = vmatpush1.bf16.msra.mxu0 %v6574_v63  ;;  %v444_v59 = vld [vmem:[#allocation5 + $0x6b0] sm:$0xff]  ;;  %v6782_v63 = vcombine.low %v448_v49, %v452_v50  ;;  %v6646_v23 = vcombine.low %v312_v56, %v316_v57  ;;  %v8336_v50 = vunpack.c.l.bf16 %v4024_v39 }
 0x1a5   :  { %3686 = vmatprep.subr.bf16.mxu0 %v6567_v2  ;;  %v6775_v2 = vcombine.high %v440_v58, %v444_v59  ;;  %v308_v4 = vld [vmem:[#allocation5 + $0x270] sm:$0xff] }
 0x1a6   :  { %3726 = vmatpush1.bf16.msra.mxu1 %v6702_v1  ;;  %v6647_v1 = vcombine.high %v312_v56, %v316_v57  ;;  %v432_v5 = vld [vmem:[#allocation5 + $0x650] sm:$0xff] }
 0x1a7   :  { %3727 = vmatprep.subr.bf16.mxu1 %v6695_v3  ;;  %v304_v3 = vld [vmem:[#allocation5 + $0x250] sm:$0xff] }
 0x1a8   :  { %3687 = vmatpush1.bf16.msra.mxu0 %v6566_v26  ;;  %v436_v8 = vld [vmem:[#allocation5 + $0x670] sm:$0xff]  ;;  %v6774_v26 = vcombine.low %v440_v58, %v444_v59  ;;  %v6638_v18 = vcombine.low %v304_v3, %v308_v4 }
 0x1a9   :  { %3688 = vmatprep.subr.bf16.mxu0 %v6687_v10  ;;  %v6767_v10 = vcombine.high %v432_v5, %v436_v8  ;;  %v300_v13 = vld [vmem:[#allocation5 + $0x230] sm:$0xff] }
 0x1aa   :  { %3728 = vmatpush1.bf16.msra.mxu1 %v6694_v9  ;;  %v6639_v9 = vcombine.high %v304_v3, %v308_v4  ;;  %v424_v14 = vld [vmem:[#allocation5 + $0x610] sm:$0xff] }
 0x1ab   :  { %3729 = vmatprep.subr.bf16.mxu1 %v6815_v11  ;;  %v296_v11 = vld [vmem:[#allocation5 + $0x210] sm:$0xff] }
 0x1ac   :  { %3689 = vmatpush2.bf16.msra.mxu0 %v6686_v19  ;;  %v428_v16 = vld [vmem:[#allocation5 + $0x630] sm:$0xff]  ;;  %v6766_v19 = vcombine.low %v432_v5, %v436_v8  ;;  %v6630_v28 = vcombine.low %v296_v11, %v300_v13 }
 0x1ad   :  { %3690 = vmatprep.subr.bf16.mxu0 %v6679_v21  ;;  %v6759_v21 = vcombine.high %v424_v14, %v428_v16  ;;  %v548_v24 = vld [vmem:[#allocation5 + $0x9f0] sm:$0xff] }
 0x1ae   :  { %3730 = vmatpush2.bf16.msra.mxu1 %v6814_v20  ;;  %v6631_v20 = vcombine.high %v296_v11, %v300_v13  ;;  %v672_v25 = vld [vmem:[#allocation5 + $0xdd0] sm:$0xff] }
 0x1af   :  { %3731 = vmatprep.subr.bf16.mxu1 %v6807_v22  ;;  %v544_v22 = vld [vmem:[#allocation5 + $0x9d0] sm:$0xff] }
 0x1b0   :  { %3691 = vmatpush2.bf16.msra.mxu0 %v6678_v29  ;;  %v676_v27 = vld [vmem:[#allocation5 + $0xdf0] sm:$0xff]  ;;  %v6758_v29 = vcombine.low %v424_v14, %v428_v16 }
 0x1b1   :  { %3692 = vmatprep.subr.bf16.mxu0 %v6671_v31  ;;  %v7007_v31 = vcombine.high %v672_v25, %v676_v27  ;;  %v540_v33 = vld [vmem:[#allocation5 + $0x9b0] sm:$0xff] }
 0x1b2   :  { %3732 = vmatpush2.bf16.msra.mxu1 %v6806_v30  ;;  %v6879_v30 = vcombine.high %v544_v22, %v548_v24  ;;  %v664_v35 = vld [vmem:[#allocation5 + $0xd90] sm:$0xff] }
 0x1b3   :  { %3733 = vmatprep.subr.bf16.mxu1 %v6799_v32  ;;  %v536_v32 = vld [vmem:[#allocation5 + $0x990] sm:$0xff] }
 0x1b4   :  { %3693 = vmatpush2.bf16.msra.mxu0 %v6670_v41  ;;  %v668_v36 = vld [vmem:[#allocation5 + $0xdb0] sm:$0xff]  ;;  %v6878_v41 = vcombine.low %v544_v22, %v548_v24  ;;  %v6870_v56 = vcombine.low %v536_v32, %v540_v33 }
 0x1b5   :  { %3694 = vmatprep.subr.bf16.mxu0 %v6663_v44  ;;  %v6871_v44 = vcombine.high %v536_v32, %v540_v33  ;;  %v528_v46 = vld [vmem:[#allocation5 + $0x950] sm:$0xff]  ;;  %v6998_v58 = vcombine.low %v664_v35, %v668_v36 }
 0x1b6   :  { %3734 = vmatpush2.bf16.msra.mxu1 %v6798_v42  ;;  %v7006_v42 = vcombine.low %v672_v25, %v676_v27  ;;  %v532_v6 = vld [vmem:[#allocation5 + $0x970] sm:$0xff] }
 0x1b7   :  { %3735 = vmatprep.subr.bf16.mxu1 %v6791_v0  ;;  %v6999_v0 = vcombine.high %v664_v35, %v668_v36  ;;  %v6863_v59 = vcombine.high %v528_v46, %v532_v6  ;;  %v520_v3 = vld [vmem:[#allocation5 + $0x910] sm:$0xff] }
 0x1b8   :  { %3695 = vmatpush2.bf16.msra.mxu0 %v6662_v51  ;;  %v656_v51 = vld [vmem:[#allocation5 + $0xd50] sm:$0xff] }
 0x1b9   :  { %3696 = vmatprep.subr.bf16.mxu0 %v6655_v53  ;;  %v524_v4 = vld [vmem:[#allocation5 + $0x930] sm:$0xff] }
 0x1ba   :  { %3736 = vmatpush2.bf16.msra.mxu1 %v6790_v52  ;;  %v660_v52 = vld [vmem:[#allocation5 + $0xd70] sm:$0xff]  ;;  %v6855_v14 = vcombine.high %v520_v3, %v524_v4  ;;  %v6854_v27 = vcombine.low %v520_v3, %v524_v4 }
 0x1bb   :  { %3737 = vmatprep.subr.bf16.mxu1 %v6783_v55  ;;  %v648_v8 = vld [vmem:[#allocation5 + $0xd10] sm:$0xff]  ;;  %v6990_v13 = vcombine.low %v656_v51, %v660_v52 }
 0x1bc   :  { %3697 = vmatpush2.bf16.msra.mxu0 %v6654_v60  ;;  %v640_v24 = vld [vmem:[#allocation5 + $0xcd0] sm:$0xff] }
 0x1bd   :  { %3698 = vmatprep.subr.bf16.mxu0 %v6647_v1  ;;  %v644_v25 = vld [vmem:[#allocation5 + $0xcf0] sm:$0xff] }
 0x1be   :  { %3738 = vmatpush2.bf16.msra.mxu1 %v6782_v63  ;;  %v508_v32 = vld [vmem:[#allocation5 + $0x8b0] sm:$0xff]  ;;  %v6974_v39 = vcombine.low %v640_v24, %v644_v25 }
 0x1bf   :  { %3739 = vmatprep.subr.bf16.mxu1 %v6775_v2  ;;  %v6991_v2 = vcombine.high %v656_v51, %v660_v52  ;;  %v632_v33 = vld [vmem:[#allocation5 + $0xc90] sm:$0xff] }
 0x1c0   :  { %3699 = vmatpush2.bf16.msra.mxu0 %v6646_v23  ;;  %v652_v23 = vld [vmem:[#allocation5 + $0xd30] sm:$0xff] }
 0x1c1   :  { %3700 = vmatprep.subr.bf16.mxu0 %v6639_v9  ;;  %v636_v35 = vld [vmem:[#allocation5 + $0xcb0] sm:$0xff] }
 0x1c2   :  { %3740 = vmatpush2.bf16.msra.mxu1 %v6774_v26  ;;  %v6966_v51 = vcombine.low %v632_v33, %v636_v35  ;;  %v612_v3 = vld [vmem:[#allocation5 + $0xbf0] sm:$0xff] }
 0x1c3   :  { %3741 = vmatprep.subr.bf16.mxu1 %v6767_v10  ;;  %v6862_v10 = vcombine.low %v528_v46, %v532_v6  ;;  %v624_v46 = vld [vmem:[#allocation5 + $0xc50] sm:$0xff] }
 0x1c4   :  { %3701 = vmatpush2.bf16.msra.mxu0 %v6638_v18  ;;  %v628_v6 = vld [vmem:[#allocation5 + $0xc70] sm:$0xff] }
 0x1c5   :  { %3702 = vmatprep.subr.bf16.mxu0 %v6631_v20  ;;  %v512_v20 = vld [vmem:[#allocation5 + $0x8d0] sm:$0xff] }
 0x1c6   :  { %3742 = vmatpush2.bf16.msra.mxu1 %v6766_v19  ;;  %v6983_v19 = vcombine.high %v648_v8, %v652_v23  ;;  %v736_v4 = vld [vmem:[#allocation5 + $0xfd0] sm:$0xff] }
 0x1c7   :  { %3743 = vmatprep.subr.bf16.mxu1 %v6759_v21  ;;  %v516_v21 = vld [vmem:[#allocation5 + $0x8f0] sm:$0xff] }
 0x1c8   :  { %3703 = vmatpush2.bf16.msra.mxu0 %v6630_v28  ;;  %v6982_v28 = vcombine.low %v648_v8, %v652_v23  ;;  %v6846_v36 = vcombine.low %v512_v20, %v516_v21 }
 0x1c9   :  { %3754 = vmatprep.subr.bf16.mxu0 %v6879_v30  ;;  %v6975_v30 = vcombine.high %v640_v24, %v644_v25  ;;  %v596_v24 = vld [vmem:[#allocation5 + $0xb70] sm:$0xff] }
 0x1ca   :  { %3744 = vmatpush2.bf16.msra.mxu1 %v6758_v29  ;;  %v6847_v29 = vcombine.high %v512_v20, %v516_v21  ;;  %v592_v21 = vld [vmem:[#allocation5 + $0xb50] sm:$0xff] }
 0x1cb   :  { %3795 = vmatprep.subr.bf16.mxu1 %v7007_v31  ;;  %v3460_v49 = vpop.f32.mrf.mxu0  ;;  %3705 = vmatmul.mubr.bf16.vlgmr.msra.gmra.mxu0 %v8284_v34  ;;  %v504_v31 = vld [vmem:[#allocation5 + $0x890] sm:$0xff] }
 0x1cc   :  { %v3461_v53 = vadd.f32 %v3460_v49, %v8330_v7  ;;  %3755 = vmatpush1.bf16.msra.mxu0 %v6878_v41  ;;  %3786 = vmatprep.mubr.bf16.mxu0 %v8292_v47  ;;  %v8345_v7 = vrot.slane %v8336_v50, %v8256_v54  ;;  %v6839_v41 = vcombine.high %v504_v31, %v508_v32  ;;  %v720_v25 = vld [vmem:[#allocation5 + $0xf50] sm:$0xff] }
 0x1cd   :  { %v3501_v55 = vpop.f32.mrf.mxu1  ;;  %3746 = vmatmul.mubr.bf16.vlgmr.msra.gmra.mxu1 %v8290_v38  ;;  %v3462_v57 = vpop.f32.mrf.mxu0  ;;  %3756 = vmatprep.subr.bf16.mxu0 %v6871_v44  ;;  %v496_v44 = vld [vmem:[#allocation5 + $0x850] sm:$0xff]  ;;  %v6838_v49 = vcombine.low %v504_v31, %v508_v32 }
 0x1ce   :  { %3796 = vmatpush1.bf16.msra.mxu1 %v7006_v42  ;;  %v3502_v60 = vadd.f32 %v3501_v55, %v3461_v53  ;;  %v3463_v63 = vadd.f32 %v3462_v57, %v8334_v15  ;;  %3827 = vmatprep.mubr.bf16.mxu1 %v8295_v48  ;;  %v6967_v42 = vcombine.high %v632_v33, %v636_v35  ;;  %v488_v55 = vld [vmem:[#allocation5 + $0x810] sm:$0xff] }
 0x1cf   :  { %v3503_v1 = vpop.f32.mrf.mxu1  ;;  %3797 = vmatprep.subr.bf16.mxu1 %v6999_v0  ;;  %v3464_v5 = vpop.f32.mrf.mxu0  ;;  %v500_v0 = vld [vmem:[#allocation5 + $0x870] sm:$0xff]  ;;  %v6959_v53 = vcombine.high %v624_v46, %v628_v6 }
 0x1d0   :  { %vm4000_vm0 = vcmp.gt.f32.partialorder %v3502_v60, 0.0  ;;  %v4008_v26 = vmul.f32 0.2, %v3502_v60  ;;  %v8348_v9 = vadd.f32 %v3503_v1, %v3463_v63  ;;  %3757 = vmatpush1.bf16.msra.mxu0 %v6870_v56  ;;  %v6831_v52 = vcombine.high %v496_v44, %v500_v0  ;;  %v492_v56 = vld [vmem:[#allocation5 + $0x830] sm:$0xff] }
 0x1d1   :  { %v3505_v15 = vpop.f32.mrf.mxu1  ;;  %v3465_v11 = vpop.f32.mrf.mxu0  ;;  %3758 = vmatprep.subr.bf16.mxu0 %v6863_v59  ;;  %v616_v57 = vld [vmem:[#allocation5 + $0xc10] sm:$0xff]  ;;  %v6830_v59 = vcombine.low %v496_v44, %v500_v0  ;;  %v6823_v63 = vcombine.high %v488_v55, %v492_v56  ;;  %v6822_v8 = vcombine.low %v488_v55, %v492_v56 }
 0x1d2   :  { %3798 = vmatpush1.bf16.msra.mxu1 %v6998_v58  ;;  %v4016_v16 = vsel %vm4000_vm0, %v3502_v60, %v4008_v26  ;;  %v620_v58 = vld [vmem:[#allocation5 + $0xc30] sm:$0xff]  ;;  %v6958_v60 = vcombine.low %v624_v46, %v628_v6  ;;  %vm4001_vm2 = vcmp.gt.f32.partialorder %v8348_v9, 0.0 }
 0x1d3   :  { %v3506_v18 = vpop.f32.mrf.mxu1  ;;  %3799 = vmatprep.subr.bf16.mxu1 %v6991_v2  ;;  %v8351_v22 = vmul.f32 %v8345_v7, %v4016_v16  ;;  %v6951_v1 = vcombine.high %v616_v57, %v620_v58  ;;  %v608_v2 = vld [vmem:[#allocation5 + $0xbd0] sm:$0xff]  ;;  %v6950_v23 = vcombine.low %v616_v57, %v620_v58 }
 0x1d4   :  { %3759 = vmatpush1.bf16.msra.mxu0 %v6862_v10  ;;  %v740_v5 = vld [vmem:[#allocation5 + $0xff0] sm:$0xff]  ;;  %v6943_v26 = vcombine.high %v608_v2, %v612_v3  ;;  %v6942_v16 = vcombine.low %v608_v2, %v612_v3 }
 0x1d5   :  { %3760 = vmatprep.subr.bf16.mxu0 %v6855_v14  ;;  %v7071_v15 = vcombine.high %v736_v4, %v740_v5  ;;  %v600_v10 = vld [vmem:[#allocation5 + $0xb90] sm:$0xff]  ;;  %v7070_v18 = vcombine.low %v736_v4, %v740_v5 }
 0x1d6   :  { %3800 = vmatpush1.bf16.msra.mxu1 %v6990_v13  ;;  %v604_v11 = vld [vmem:[#allocation5 + $0xbb0] sm:$0xff] }
 0x1d7   :  { %3801 = vmatprep.subr.bf16.mxu1 %v6983_v19  ;;  %v728_v13 = vld [vmem:[#allocation5 + $0xf90] sm:$0xff]  ;;  %v6935_v19 = vcombine.high %v600_v10, %v604_v11 }
 0x1d8   :  { %3761 = vmatpush1.bf16.msra.mxu0 %v6854_v27  ;;  %v732_v14 = vld [vmem:[#allocation5 + $0xfb0] sm:$0xff] }
 0x1d9   :  { %3762 = vmatprep.subr.bf16.mxu0 %v6847_v29  ;;  %v7063_v20 = vcombine.high %v728_v13, %v732_v14  ;;  %v724_v27 = vld [vmem:[#allocation5 + $0xf70] sm:$0xff]  ;;  %v7062_v29 = vcombine.low %v728_v13, %v732_v14 }
 0x1da   :  { %3802 = vmatpush1.bf16.msra.mxu1 %v6982_v28  ;;  %v6934_v28 = vcombine.low %v600_v10, %v604_v11  ;;  %v7055_v31 = vcombine.high %v720_v25, %v724_v27  ;;  %v584_v32 = vld [vmem:[#allocation5 + $0xb10] sm:$0xff] }
 0x1db   :  { %3803 = vmatprep.subr.bf16.mxu1 %v6975_v30  ;;  %v6927_v30 = vcombine.high %v592_v21, %v596_v24  ;;  %v588_v33 = vld [vmem:[#allocation5 + $0xb30] sm:$0xff] }
 0x1dc   :  { %3763 = vmatpush1.bf16.msra.mxu0 %v6846_v36  ;;  %v712_v35 = vld [vmem:[#allocation5 + $0xf10] sm:$0xff] }
 0x1dd   :  { %3764 = vmatprep.subr.bf16.mxu0 %v6839_v41  ;;  %v716_v36 = vld [vmem:[#allocation5 + $0xf30] sm:$0xff]  ;;  %v7054_v41 = vcombine.low %v720_v25, %v724_v27  ;;  %v293_v25 = vld [vmem:[#allocation5 + $0x1f8] sm:$0xff] }
 0x1de   :  { %3804 = vmatpush1.bf16.msra.mxu1 %v6974_v39  ;;  %v6926_v39 = vcombine.low %v592_v21, %v596_v24  ;;  %v7047_v44 = vcombine.high %v712_v35, %v716_v36  ;;  %v576_v0 = vld [vmem:[#allocation5 + $0xad0] sm:$0xff]  ;;  %v289_v24 = vld [vmem:[#allocation5 + $0x1d8] sm:$0xff] }
 0x1df   :  { %3805 = vmatprep.subr.bf16.mxu1 %v6967_v42  ;;  %v6919_v42 = vcombine.high %v584_v32, %v588_v33  ;;  %v580_v46 = vld [vmem:[#allocation5 + $0xaf0] sm:$0xff]  ;;  %v417_v27 = vld [vmem:[#allocation5 + $0x5d8] sm:$0xff] }
 0x1e0   :  { %3765 = vmatpush1.bf16.msra.mxu0 %v6838_v49  ;;  %v704_v6 = vld [vmem:[#allocation5 + $0xed0] sm:$0xff] }
 0x1e1   :  { %3766 = vmatprep.subr.bf16.mxu0 %v6831_v52  ;;  %v708_v49 = vld [vmem:[#allocation5 + $0xef0] sm:$0xff]  ;;  %v7046_v52 = vcombine.low %v712_v35, %v716_v36  ;;  %v758_v35 = vsub.s32 3, %v8253_v45  ;;  %v281_v36 = vld [vmem:[#allocation5 + $0x198] sm:$0xff] }
 0x1e2   :  { %3806 = vmatpush1.bf16.msra.mxu1 %v6966_v51  ;;  %v6918_v51 = vcombine.low %v584_v32, %v588_v33  ;;  %v7039_v55 = vcombine.high %v704_v6, %v708_v49  ;;  %v568_v56 = vld [vmem:[#allocation5 + $0xa90] sm:$0xff]  ;;  %v6625_v32 = vcombine.high %v289_v24, %v293_v25 }
 0x1e3   :  { %3807 = vmatprep.subr.bf16.mxu1 %v6959_v53  ;;  %v6911_v53 = vcombine.high %v576_v0, %v580_v46  ;;  %v572_v57 = vld [vmem:[#allocation5 + $0xab0] sm:$0xff] }
 0x1e4   :  { %3767 = vmatpush1.bf16.msra.mxu0 %v6830_v59  ;;  %v696_v58 = vld [vmem:[#allocation5 + $0xe90] sm:$0xff] }
 0x1e5   :  { %3768 = vmatprep.subr.bf16.mxu0 %v6823_v63  ;;  %v700_v59 = vld [vmem:[#allocation5 + $0xeb0] sm:$0xff]  ;;  %v7038_v63 = vcombine.low %v704_v6, %v708_v49  ;;  %v759_v49 = vrot.slane %v8319_v40, %v758_v35 }
 0x1e6   :  { %3808 = vmatpush1.bf16.msra.mxu1 %v6958_v60  ;;  %v6910_v60 = vcombine.low %v576_v0, %v580_v46  ;;  %v7031_v2 = vcombine.high %v696_v58, %v700_v59  ;;  %v560_v3 = vld [vmem:[#allocation5 + $0xa50] sm:$0xff]  ;;  %v6624_v0 = vcombine.low %v289_v24, %v293_v25  ;;  %v257_v24 = vld [vmem:[#allocation5 + $0xd8] sm:$0xff] }
 0x1e7   :  { %3809 = vmatprep.subr.bf16.mxu1 %v6951_v1  ;;  %v6903_v1 = vcombine.high %v568_v56, %v572_v57  ;;  %v564_v4 = vld [vmem:[#allocation5 + $0xa70] sm:$0xff]  ;;  %v385_v25 = vld [vmem:[#allocation5 + $0x4d8] sm:$0xff] }
 0x1e8   :  { %3769 = vmatpush1.bf16.msra.mxu0 %v6822_v8  ;;  %v688_v5 = vld [vmem:[#allocation5 + $0xe50] sm:$0xff] }
 0x1e9   :  { %3770 = vmatprep.subr.bf16.mxu0 %v6943_v26  ;;  %v692_v8 = vld [vmem:[#allocation5 + $0xe70] sm:$0xff]  ;;  %v7030_v26 = vcombine.low %v696_v58, %v700_v59 }
 0x1ea   :  { %3810 = vmatpush1.bf16.msra.mxu1 %v6950_v23  ;;  %v6902_v23 = vcombine.low %v568_v56, %v572_v57  ;;  %v7023_v10 = vcombine.high %v688_v5, %v692_v8  ;;  %v552_v11 = vld [vmem:[#allocation5 + $0xa10] sm:$0xff]  ;;  %v401_v56 = vld [vmem:[#allocation5 + $0x558] sm:$0xff] }
 0x1eb   :  { %3811 = vmatprep.subr.bf16.mxu1 %v7071_v15  ;;  %v6895_v15 = vcombine.high %v560_v3, %v564_v4  ;;  %v556_v13 = vld [vmem:[#allocation5 + $0xa30] sm:$0xff]  ;;  %v405_v57 = vld [vmem:[#allocation5 + $0x578] sm:$0xff] }
 0x1ec   :  { %3771 = vmatpush2.bf16.msra.mxu0 %v6942_v16  ;;  %v680_v14 = vld [vmem:[#allocation5 + $0xe10] sm:$0xff] }
 0x1ed   :  { %3772 = vmatprep.subr.bf16.mxu0 %v6935_v19  ;;  %v684_v16 = vld [vmem:[#allocation5 + $0xe30] sm:$0xff]  ;;  %v7022_v19 = vcombine.low %v688_v5, %v692_v8  ;;  %v6737_v5 = vcombine.high %v401_v56, %v405_v57  ;;  %v265_v8 = vld [vmem:[#allocation5 + $0x118] sm:$0xff] }
 0x1ee   :  { %3812 = vmatpush2.bf16.msra.mxu1 %v7070_v18  ;;  %v6894_v18 = vcombine.low %v560_v3, %v564_v4  ;;  %v7015_v21 = vcombine.high %v680_v14, %v684_v16 }
 0x1ef   :  { %3813 = vmatprep.subr.bf16.mxu1 %v7063_v20  ;;  %v6887_v20 = vcombine.high %v552_v11, %v556_v13 }
 0x1f0   :  { %3773 = vmatpush2.bf16.msra.mxu0 %v6934_v28  ;;  %v421_v28 = vld [vmem:[#allocation5 + $0x5f8] sm:$0xff] }
 0x1f1   :  { %3774 = vmatprep.subr.bf16.mxu0 %v6927_v30  ;;  %v754_v30 = vsub.s32 2, %v8253_v45  ;;  %v6753_v33 = vcombine.high %v417_v27, %v421_v28  ;;  %v6752_v46 = vcombine.low %v417_v27, %v421_v28  ;;  %v389_v27 = vld [vmem:[#allocation5 + $0x4f8] sm:$0xff] }
 0x1f2   :  { %3814 = vmatpush2.bf16.msra.mxu1 %v7062_v29  ;;  %v6886_v29 = vcombine.low %v552_v11, %v556_v13 }
 0x1f3   :  { %3815 = vmatprep.subr.bf16.mxu1 %v7055_v31  ;;  %v7014_v31 = vcombine.low %v680_v14, %v684_v16 }
 0x1f4   :  { %3775 = vmatpush2.bf16.msra.mxu0 %v6926_v39  ;;  %v285_v39 = vld [vmem:[#allocation5 + $0x1b8] sm:$0xff] }
 0x1f5   :  { %3776 = vmatprep.subr.bf16.mxu0 %v6919_v42  ;;  %v413_v42 = vld [vmem:[#allocation5 + $0x5b8] sm:$0xff]  ;;  %v6617_v6 = vcombine.high %v281_v36, %v285_v39 }
 0x1f6   :  { %3816 = vmatpush2.bf16.msra.mxu1 %v7054_v41  ;;  %v409_v41 = vld [vmem:[#allocation5 + $0x598] sm:$0xff] }
 0x1f7   :  { %3817 = vmatprep.subr.bf16.mxu1 %v7047_v44  ;;  %v755_v44 = vrot.slane %v8319_v40, %v754_v30 }
 0x1f8   :  { %3777 = vmatpush2.bf16.msra.mxu0 %v6918_v51  ;;  %v6745_v51 = vcombine.high %v409_v41, %v413_v42 }
 0x1f9   :  { %3778 = vmatprep.subr.bf16.mxu0 %v6911_v53  ;;  %v277_v53 = vld [vmem:[#allocation5 + $0x178] sm:$0xff] }
 0x1fa   :  { %3818 = vmatpush2.bf16.msra.mxu1 %v7046_v52  ;;  %v273_v52 = vld [vmem:[#allocation5 + $0x158] sm:$0xff] }
 0x1fb   :  { %3819 = vmatprep.subr.bf16.mxu1 %v7039_v55  ;;  %v6608_v14 = vcombine.low %v273_v52, %v277_v53 }
 0x1fc   :  { %3779 = vmatpush2.bf16.msra.mxu0 %v6910_v60  ;;  %v6616_v60 = vcombine.low %v281_v36, %v285_v39  ;;  %v377_v36 = vld [vmem:[#allocation5 + $0x498] sm:$0xff] }
 0x1fd   :  { %3780 = vmatprep.subr.bf16.mxu0 %v6903_v1  ;;  %v6744_v1 = vcombine.low %v409_v41, %v413_v42  ;;  %v381_v39 = vld [vmem:[#allocation5 + $0x4b8] sm:$0xff]  ;;  %v6720_v42 = vcombine.low %v385_v25, %v389_v27 }
 0x1fe   :  { %3820 = vmatpush2.bf16.msra.mxu1 %v7038_v63 }
 0x1ff   :  { %3821 = vmatprep.subr.bf16.mxu1 %v7031_v2  ;;  %v6609_v2 = vcombine.high %v273_v52, %v277_v53  ;;  %v6712_v53 = vcombine.low %v377_v36, %v381_v39 }
 0x200   :  { %3781 = vmatpush2.bf16.msra.mxu0 %v6902_v23  ;;  %v269_v23 = vld [vmem:[#allocation5 + $0x138] sm:$0xff] }
 0x201   :  { %3782 = vmatprep.subr.bf16.mxu0 %v6895_v15  ;;  %v393_v15 = vld [vmem:[#allocation5 + $0x518] sm:$0xff]  ;;  %v6600_v28 = vcombine.low %v265_v8, %v269_v23 }
 0x202   :  { %3822 = vmatpush2.bf16.msra.mxu1 %v7030_v26 }
 0x203   :  { %3823 = vmatprep.subr.bf16.mxu1 %v7023_v10  ;;  %v397_v10 = vld [vmem:[#allocation5 + $0x538] sm:$0xff] }
 0x204   :  { %3783 = vmatpush2.bf16.msra.mxu0 %v6894_v18  ;;  %v6736_v18 = vcombine.low %v401_v56, %v405_v57  ;;  %v233_v57 = vld [vmem:[#allocation5 + $0x18] sm:$0xff] }
 0x205   :  { %3784 = vmatprep.subr.bf16.mxu0 %v6887_v20 }
 0x206   :  { %3824 = vmatpush2.bf16.msra.mxu1 %v7022_v19  ;;  %v6601_v19 = vcombine.high %v265_v8, %v269_v23  ;;  %v481_v8 = vld [vmem:[#allocation5 + $0x7d8] sm:$0xff] }
 0x207   :  { %3825 = vmatprep.subr.bf16.mxu1 %v7015_v21  ;;  %v6729_v21 = vcombine.high %v393_v15, %v397_v10  ;;  %v485_v23 = vld [vmem:[#allocation5 + $0x7f8] sm:$0xff] }
 0x208   :  { %3785 = vmatpush2.bf16.msra.mxu0 %v6886_v29 }
 0x209   :  { %3836 = vmatprep.subr.bf16.mxu0 %v6625_v32  ;;  %v249_v32 = vld [vmem:[#allocation5 + $0x98] sm:$0xff] }
 0x20a   :  { %3826 = vmatpush2.bf16.msra.mxu1 %v7014_v31  ;;  %v6721_v31 = vcombine.high %v385_v25, %v389_v27  ;;  %v337_v25 = vld [vmem:[#allocation5 + $0x358] sm:$0xff] }
 0x20b   :  { %3877 = vmatprep.subr.bf16.mxu1 %v6753_v33  ;;  %v3542_v55 = vpop.f32.mrf.mxu0  ;;  %3787 = vmatmul.mubr.bf16.vlgmr.msra.gmra.mxu0 %v8302_v61  ;;  %v253_v33 = vld [vmem:[#allocation5 + $0xb8] sm:$0xff] }
 0x20c   :  { %v3543_v58 = vadd.f32 %v3542_v55, %v755_v44  ;;  %3837 = vmatpush1.bf16.msra.mxu0 %v6624_v0  ;;  %3868 = vmatprep.mubr.bf16.mxu0 %v8266_v12  ;;  %v261_v12 = vld [vmem:[#allocation5 + $0xf8] sm:$0xff]  ;;  %v6585_v44 = vcombine.high %v249_v32, %v253_v33  ;;  %v6713_v0 = vcombine.high %v377_v36, %v381_v39 }
 0x20d   :  { %v3583_v59 = vpop.f32.mrf.mxu1  ;;  %3828 = vmatmul.mubr.bf16.vlgmr.msra.gmra.mxu1 %v8306_v62  ;;  %v3544_v63 = vpop.f32.mrf.mxu0  ;;  %3838 = vmatprep.subr.bf16.mxu0 %v6617_v6  ;;  %v6593_v29 = vcombine.high %v257_v24, %v261_v12  ;;  %v6592_v41 = vcombine.low %v257_v24, %v261_v12  ;;  %v245_v6 = vld [vmem:[#allocation5 + $0x78] sm:$0xff]  ;;  %v6584_v52 = vcombine.low %v249_v32, %v253_v33 }
 0x20e   :  { %3878 = vmatpush1.bf16.msra.mxu1 %v6752_v46  ;;  %v8363_v40 = vadd.f32 %v3583_v59, %v3543_v58  ;;  %v3545_v3 = vadd.f32 %v3544_v63, %v759_v49  ;;  %3909 = vmatprep.mubr.bf16.mxu1 %v8271_v17  ;;  %v6728_v17 = vcombine.low %v393_v15, %v397_v10  ;;  %v241_v46 = vld [vmem:[#allocation5 + $0x58] sm:$0xff] }
 0x20f   :  { %v3585_v4 = vpop.f32.mrf.mxu1  ;;  %3879 = vmatprep.subr.bf16.mxu1 %v6745_v51  ;;  %v3546_v26 = vpop.f32.mrf.mxu0  ;;  %v369_v49 = vld [vmem:[#allocation5 + $0x458] sm:$0xff]  ;;  %v6577_v55 = vcombine.high %v241_v46, %v245_v6  ;;  %v6576_v63 = vcombine.low %v241_v46, %v245_v6 }
 0x210   :  { %v8367_v11 = vadd.f32 %v3585_v4, %v3545_v3  ;;  %3839 = vmatpush1.bf16.msra.mxu0 %v6616_v60  ;;  %v373_v51 = vld [vmem:[#allocation5 + $0x478] sm:$0xff] }
 0x211   :  { %v3587_v13 = vpop.f32.mrf.mxu1  ;;  %v3547_v16 = vpop.f32.mrf.mxu0  ;;  %3840 = vmatprep.subr.bf16.mxu0 %v6609_v2  ;;  %v6705_v56 = vcombine.high %v369_v49, %v373_v51  ;;  %v237_v58 = vld [vmem:[#allocation5 + $0x38] sm:$0xff] }
 0x212   :  { %3880 = vmatpush1.bf16.msra.mxu1 %v6744_v1  ;;  %v361_v59 = vld [vmem:[#allocation5 + $0x418] sm:$0xff]  ;;  %v6704_v1 = vcombine.low %v369_v49, %v373_v51  ;;  %v6569_v2 = vcombine.high %v233_v57, %v237_v58  ;;  %v6568_v26 = vcombine.low %v233_v57, %v237_v58  ;;  %v6817_v13 = vcombine.high %v481_v8, %v485_v23 }
 0x213   :  { %v3588_v20 = vpop.f32.mrf.mxu1  ;;  %3881 = vmatprep.subr.bf16.mxu1 %v6737_v5  ;;  %v365_v60 = vld [vmem:[#allocation5 + $0x438] sm:$0xff] }
 0x214   :  { %3841 = vmatpush1.bf16.msra.mxu0 %v6608_v14  ;;  %v6697_v3 = vcombine.high %v361_v59, %v365_v60  ;;  %v353_v4 = vld [vmem:[#allocation5 + $0x3d8] sm:$0xff]  ;;  %v6696_v15 = vcombine.low %v361_v59, %v365_v60 }
 0x215   :  { %3842 = vmatprep.subr.bf16.mxu0 %v6601_v19  ;;  %v357_v5 = vld [vmem:[#allocation5 + $0x3f8] sm:$0xff] }
 0x216   :  { %3882 = vmatpush1.bf16.msra.mxu1 %v6736_v18  ;;  %v6689_v10 = vcombine.high %v353_v4, %v357_v5  ;;  %v345_v14 = vld [vmem:[#allocation5 + $0x398] sm:$0xff]  ;;  %v6688_v20 = vcombine.low %v353_v4, %v357_v5 }
 0x217   :  { %3883 = vmatprep.subr.bf16.mxu1 %v6729_v21  ;;  %v349_v16 = vld [vmem:[#allocation5 + $0x3b8] sm:$0xff]  ;;  %v6816_v21 = vcombine.low %v481_v8, %v485_v23 }
 0x218   :  { %3843 = vmatpush1.bf16.msra.mxu0 %v6600_v28  ;;  %v473_v18 = vld [vmem:[#allocation5 + $0x798] sm:$0xff]  ;;  %v6681_v24 = vcombine.high %v345_v14, %v349_v16 }
 0x219   :  { %3844 = vmatprep.subr.bf16.mxu0 %v6593_v29  ;;  %v477_v19 = vld [vmem:[#allocation5 + $0x7b8] sm:$0xff]  ;;  %v6680_v29 = vcombine.low %v345_v14, %v349_v16 }
 0x21a   :  { %3884 = vmatpush1.bf16.msra.mxu1 %v6728_v17  ;;  %v6809_v12 = vcombine.high %v473_v18, %v477_v19  ;;  %v341_v27 = vld [vmem:[#allocation5 + $0x378] sm:$0xff] }
 0x21b   :  { %3885 = vmatprep.subr.bf16.mxu1 %v6721_v31  ;;  %v465_v28 = vld [vmem:[#allocation5 + $0x758] sm:$0xff]  ;;  %v6808_v31 = vcombine.low %v473_v18, %v477_v19  ;;  %v6673_v32 = vcombine.high %v337_v25, %v341_v27 }
 0x21c   :  { %3845 = vmatpush1.bf16.msra.mxu0 %v6592_v41  ;;  %v469_v17 = vld [vmem:[#allocation5 + $0x778] sm:$0xff] }
 0x21d   :  { %3846 = vmatprep.subr.bf16.mxu0 %v6585_v44  ;;  %v6801_v33 = vcombine.high %v465_v28, %v469_v17  ;;  %v329_v36 = vld [vmem:[#allocation5 + $0x318] sm:$0xff]  ;;  %v6672_v44 = vcombine.low %v337_v25, %v341_v27 }
 0x21e   :  { %3886 = vmatpush1.bf16.msra.mxu1 %v6720_v42  ;;  %v333_v39 = vld [vmem:[#allocation5 + $0x338] sm:$0xff] }
 0x21f   :  { %3887 = vmatprep.subr.bf16.mxu1 %v6713_v0  ;;  %v457_v41 = vld [vmem:[#allocation5 + $0x718] sm:$0xff]  ;;  %v6800_v0 = vcombine.low %v465_v28, %v469_v17  ;;  %v6665_v46 = vcombine.high %v329_v36, %v333_v39 }
 0x220   :  { %3847 = vmatpush1.bf16.msra.mxu0 %v6584_v52  ;;  %v461_v42 = vld [vmem:[#allocation5 + $0x738] sm:$0xff] }
 0x221   :  { %3848 = vmatprep.subr.bf16.mxu0 %v6577_v55  ;;  %v6793_v6 = vcombine.high %v457_v41, %v461_v42  ;;  %v321_v49 = vld [vmem:[#allocation5 + $0x2d8] sm:$0xff]  ;;  %v6664_v55 = vcombine.low %v329_v36, %v333_v39 }
 0x222   :  { %3888 = vmatpush1.bf16.msra.mxu1 %v6712_v53  ;;  %v325_v51 = vld [vmem:[#allocation5 + $0x2f8] sm:$0xff] }
 0x223   :  { %3889 = vmatprep.subr.bf16.mxu1 %v6705_v56  ;;  %v449_v52 = vld [vmem:[#allocation5 + $0x6d8] sm:$0xff]  ;;  %v6792_v56 = vcombine.low %v457_v41, %v461_v42  ;;  %v6657_v57 = vcombine.high %v321_v49, %v325_v51 }
 0x224   :  { %3849 = vmatpush1.bf16.msra.mxu0 %v6576_v63  ;;  %v453_v53 = vld [vmem:[#allocation5 + $0x6f8] sm:$0xff] }
 0x225   :  { %3850 = vmatprep.subr.bf16.mxu0 %v6569_v2  ;;  %v6785_v58 = vcombine.high %v449_v52, %v453_v53  ;;  %v313_v59 = vld [vmem:[#allocation5 + $0x298] sm:$0xff]  ;;  %v6656_v2 = vcombine.low %v321_v49, %v325_v51 }
 0x226   :  { %3890 = vmatpush1.bf16.msra.mxu1 %v6704_v1  ;;  %v317_v60 = vld [vmem:[#allocation5 + $0x2b8] sm:$0xff] }
 0x227   :  { %3891 = vmatprep.subr.bf16.mxu1 %v6697_v3  ;;  %v441_v63 = vld [vmem:[#allocation5 + $0x698] sm:$0xff]  ;;  %v6784_v3 = vcombine.low %v449_v52, %v453_v53  ;;  %v6649_v4 = vcombine.high %v313_v59, %v317_v60 }
 0x228   :  { %3851 = vmatpush1.bf16.msra.mxu0 %v6568_v26  ;;  %v445_v1 = vld [vmem:[#allocation5 + $0x6b8] sm:$0xff] }
 0x229   :  { %3852 = vmatprep.subr.bf16.mxu0 %v6689_v10  ;;  %v6777_v5 = vcombine.high %v441_v63, %v445_v1  ;;  %v305_v8 = vld [vmem:[#allocation5 + $0x258] sm:$0xff]  ;;  %v6648_v10 = vcombine.low %v313_v59, %v317_v60 }
 0x22a   :  { %3892 = vmatpush1.bf16.msra.mxu1 %v6696_v15  ;;  %v309_v23 = vld [vmem:[#allocation5 + $0x278] sm:$0xff] }
 0x22b   :  { %3893 = vmatprep.subr.bf16.mxu1 %v6817_v13  ;;  %v433_v26 = vld [vmem:[#allocation5 + $0x658] sm:$0xff]  ;;  %v6776_v13 = vcombine.low %v441_v63, %v445_v1  ;;  %v6641_v14 = vcombine.high %v305_v8, %v309_v23 }
 0x22c   :  { %3853 = vmatpush2.bf16.msra.mxu0 %v6688_v20  ;;  %v437_v15 = vld [vmem:[#allocation5 + $0x678] sm:$0xff] }
 0x22d   :  { %3854 = vmatprep.subr.bf16.mxu0 %v6681_v24  ;;  %v6769_v16 = vcombine.high %v433_v26, %v437_v15  ;;  %v297_v18 = vld [vmem:[#allocation5 + $0x218] sm:$0xff]  ;;  %v6640_v24 = vcombine.low %v305_v8, %v309_v23 }
 0x22e   :  { %3894 = vmatpush2.bf16.msra.mxu1 %v6816_v21  ;;  %v301_v19 = vld [vmem:[#allocation5 + $0x238] sm:$0xff] }
 0x22f   :  { %3895 = vmatprep.subr.bf16.mxu1 %v6809_v12  ;;  %v425_v20 = vld [vmem:[#allocation5 + $0x618] sm:$0xff]  ;;  %v6768_v12 = vcombine.low %v433_v26, %v437_v15  ;;  %v6633_v25 = vcombine.high %v297_v18, %v301_v19 }
 0x230   :  { %3855 = vmatpush2.bf16.msra.mxu0 %v6680_v29  ;;  %v429_v21 = vld [vmem:[#allocation5 + $0x638] sm:$0xff] }
 0x231   :  { %3856 = vmatprep.subr.bf16.mxu0 %v6673_v32  ;;  %v6761_v27 = vcombine.high %v425_v20, %v429_v21  ;;  %v545_v28 = vld [vmem:[#allocation5 + $0x9d8] sm:$0xff]  ;;  %v6632_v32 = vcombine.low %v297_v18, %v301_v19 }
 0x232   :  { %3896 = vmatpush2.bf16.msra.mxu1 %v6808_v31  ;;  %v549_v17 = vld [vmem:[#allocation5 + $0x9f8] sm:$0xff] }
 0x233   :  { %3897 = vmatprep.subr.bf16.mxu1 %v6801_v33  ;;  %v673_v29 = vld [vmem:[#allocation5 + $0xdd8] sm:$0xff]  ;;  %v6760_v33 = vcombine.low %v425_v20, %v429_v21  ;;  %v6881_v36 = vcombine.high %v545_v28, %v549_v17 }
 0x234   :  { %3857 = vmatpush2.bf16.msra.mxu0 %v6672_v44  ;;  %v677_v31 = vld [vmem:[#allocation5 + $0xdf8] sm:$0xff] }
 0x235   :  { %3858 = vmatprep.subr.bf16.mxu0 %v6665_v46  ;;  %v7009_v39 = vcombine.high %v673_v29, %v677_v31  ;;  %v537_v41 = vld [vmem:[#allocation5 + $0x998] sm:$0xff]  ;;  %v6880_v46 = vcombine.low %v545_v28, %v549_v17 }
 0x236   :  { %3898 = vmatpush2.bf16.msra.mxu1 %v6800_v0  ;;  %v541_v42 = vld [vmem:[#allocation5 + $0x9b8] sm:$0xff] }
 0x237   :  { %3899 = vmatprep.subr.bf16.mxu1 %v6793_v6  ;;  %v665_v44 = vld [vmem:[#allocation5 + $0xd98] sm:$0xff]  ;;  %v7008_v6 = vcombine.low %v673_v29, %v677_v31  ;;  %v6873_v49 = vcombine.high %v537_v41, %v541_v42  ;;  %v6872_v63 = vcombine.low %v537_v41, %v541_v42 }
 0x238   :  { %3859 = vmatpush2.bf16.msra.mxu0 %v6664_v55  ;;  %v669_v0 = vld [vmem:[#allocation5 + $0xdb8] sm:$0xff] }
 0x239   :  { %3860 = vmatprep.subr.bf16.mxu0 %v6657_v57  ;;  %v7001_v51 = vcombine.high %v665_v44, %v669_v0  ;;  %v529_v52 = vld [vmem:[#allocation5 + $0x958] sm:$0xff] }
 0x23a   :  { %3900 = vmatpush2.bf16.msra.mxu1 %v6792_v56  ;;  %v533_v53 = vld [vmem:[#allocation5 + $0x978] sm:$0xff]  ;;  %v4029_v56 = vcombine.high %v8336_v50, %v8336_v50 }
 0x23b   :  { %3901 = vmatprep.subr.bf16.mxu1 %v6785_v58  ;;  %v657_v57 = vld [vmem:[#allocation5 + $0xd58] sm:$0xff] }
 0x23c   :  { %3861 = vmatpush2.bf16.msra.mxu0 %v6656_v2  ;;  %v661_v58 = vld [vmem:[#allocation5 + $0xd78] sm:$0xff]  ;;  %v7000_v2 = vcombine.low %v665_v44, %v669_v0 }
 0x23d   :  { %3862 = vmatprep.subr.bf16.mxu0 %v6649_v4  ;;  %v521_v50 = vld [vmem:[#allocation5 + $0x918] sm:$0xff] }
 0x23e   :  { %3902 = vmatpush2.bf16.msra.mxu1 %v6784_v3  ;;  %v6865_v3 = vcombine.high %v529_v52, %v533_v53  ;;  %v525_v8 = vld [vmem:[#allocation5 + $0x938] sm:$0xff] }
 0x23f   :  { %3903 = vmatprep.subr.bf16.mxu1 %v6777_v5  ;;  %v649_v23 = vld [vmem:[#allocation5 + $0xd18] sm:$0xff]  ;;  %v6857_v18 = vcombine.high %v521_v50, %v525_v8 }
 0x240   :  { %3863 = vmatpush2.bf16.msra.mxu0 %v6648_v10  ;;  %v653_v26 = vld [vmem:[#allocation5 + $0xd38] sm:$0xff] }
 0x241   :  { %3864 = vmatprep.subr.bf16.mxu0 %v6641_v14  ;;  %v6985_v20 = vcombine.high %v649_v23, %v653_v26  ;;  %v513_v21 = vld [vmem:[#allocation5 + $0x8d8] sm:$0xff]  ;;  %v6984_v28 = vcombine.low %v649_v23, %v653_v26 }
 0x242   :  { %3904 = vmatpush2.bf16.msra.mxu1 %v6776_v13  ;;  %v6864_v13 = vcombine.low %v529_v52, %v533_v53  ;;  %v505_v31 = vld [vmem:[#allocation5 + $0x898] sm:$0xff] }
 0x243   :  { %3905 = vmatprep.subr.bf16.mxu1 %v6769_v16  ;;  %v6992_v16 = vcombine.low %v657_v57, %v661_v58  ;;  %v497_v0 = vld [vmem:[#allocation5 + $0x858] sm:$0xff] }
 0x244   :  { %3865 = vmatpush2.bf16.msra.mxu0 %v6640_v24  ;;  %v517_v24 = vld [vmem:[#allocation5 + $0x8f8] sm:$0xff] }
 0x245   :  { %3866 = vmatprep.subr.bf16.mxu0 %v6633_v25  ;;  %v645_v25 = vld [vmem:[#allocation5 + $0xcf8] sm:$0xff]  ;;  %v6849_v17 = vcombine.high %v513_v21, %v517_v24 }
 0x246   :  { %3906 = vmatpush2.bf16.msra.mxu1 %v6768_v12 }
 0x247   :  { %3907 = vmatprep.subr.bf16.mxu1 %v6761_v27  ;;  %v6856_v27 = vcombine.low %v521_v50, %v525_v8  ;;  %v737_v50 = vld [vmem:[#allocation5 + $0xfd8] sm:$0xff] }
 0x248   :  { %3867 = vmatpush2.bf16.msra.mxu0 %v6632_v32  ;;  %v509_v32 = vld [vmem:[#allocation5 + $0x8b8] sm:$0xff] }
 0x249   :  { %3918 = vmatprep.subr.bf16.mxu0 %v6881_v36  ;;  %v637_v36 = vld [vmem:[#allocation5 + $0xcb8] sm:$0xff]  ;;  %v6841_v42 = vcombine.high %v505_v31, %v509_v32 }
 0x24a   :  { %3908 = vmatpush2.bf16.msra.mxu1 %v6760_v33  ;;  %v633_v33 = vld [vmem:[#allocation5 + $0xc98] sm:$0xff] }
 0x24b   :  { %3959 = vmatprep.subr.bf16.mxu1 %v7009_v39  ;;  %v3624_v55 = vpop.f32.mrf.mxu0  ;;  %3869 = vmatmul.mubr.bf16.vlgmr.msra.gmra.mxu0 %v8284_v34  ;;  %v6993_v34 = vcombine.high %v657_v57, %v661_v58  ;;  %v6848_v39 = vcombine.low %v513_v21, %v517_v24  ;;  %v6969_v44 = vcombine.high %v633_v33, %v637_v36  ;;  %v493_v57 = vld [vmem:[#allocation5 + $0x838] sm:$0xff] }
 0x24c   :  { %v3625_v59 = vadd.f32 %v3624_v55, %v8363_v40  ;;  %3919 = vmatpush1.bf16.msra.mxu0 %v6880_v46  ;;  %3950 = vmatprep.mubr.bf16.mxu0 %v8292_v47  ;;  %v8380_v40 = vrot.slane %v4029_v56, %v8256_v54  ;;  %v501_v46 = vld [vmem:[#allocation5 + $0x878] sm:$0xff]  ;;  %v6968_v52 = vcombine.low %v633_v33, %v637_v36 }
 0x24d   :  { %v3665_v60 = vpop.f32.mrf.mxu1  ;;  %3910 = vmatmul.mubr.bf16.vlgmr.msra.gmra.mxu1 %v8290_v38  ;;  %v8374_v1 = vpop.f32.mrf.mxu0  ;;  %3920 = vmatprep.subr.bf16.mxu0 %v6873_v49  ;;  %v629_v49 = vld [vmem:[#allocation5 + $0xc78] sm:$0xff]  ;;  %v6833_v53 = vcombine.high %v497_v0, %v501_v46 }
 0x24e   :  { %3960 = vmatpush1.bf16.msra.mxu1 %v7008_v6  ;;  %v3666_v4 = vadd.f32 %v3665_v60, %v3625_v59  ;;  %3991 = vmatprep.mubr.bf16.mxu1 %v8295_v48  ;;  %v641_v48 = vld [vmem:[#allocation5 + $0xcd8] sm:$0xff]  ;;  %v6832_v60 = vcombine.low %v497_v0, %v501_v46 }
 0x24f   :  { %v8376_v5 = vpop.f32.mrf.mxu1  ;;  %3961 = vmatprep.subr.bf16.mxu1 %v7001_v51  ;;  %v3628_v38 = vpop.f32.mrf.mxu0  ;;  %v6977_v29 = vcombine.high %v641_v48, %v645_v25  ;;  %v6976_v41 = vcombine.low %v641_v48, %v645_v25  ;;  %v625_v6 = vld [vmem:[#allocation5 + $0xc58] sm:$0xff]  ;;  %v6840_v51 = vcombine.low %v505_v31, %v509_v32 }
 0x250   :  { %vm4002_vm1 = vcmp.gt.f32.partialorder %v3666_v4, 0.0  ;;  %v4010_v15 = vmul.f32 0.2, %v3666_v4  ;;  %3921 = vmatpush1.bf16.msra.mxu0 %v6872_v63  ;;  %v6961_v55 = vcombine.high %v625_v6, %v629_v49  ;;  %v489_v56 = vld [vmem:[#allocation5 + $0x818] sm:$0xff]  ;;  %v6960_v63 = vcombine.low %v625_v6, %v629_v49 }
 0x251   :  { %v3669_v10 = vpop.f32.mrf.mxu1  ;;  %v3629_v14 = vpop.f32.mrf.mxu0  ;;  %3922 = vmatprep.subr.bf16.mxu0 %v6865_v3  ;;  %v617_v58 = vld [vmem:[#allocation5 + $0xc18] sm:$0xff]  ;;  %v6824_v38 = vcombine.low %v489_v56, %v493_v57 }
 0x252   :  { %3962 = vmatpush1.bf16.msra.mxu1 %v7000_v2  ;;  %v4018_v19 = vsel %vm4002_vm1, %v3666_v4, %v4010_v15  ;;  %v621_v59 = vld [vmem:[#allocation5 + $0xc38] sm:$0xff]  ;;  %v6825_v2 = vcombine.high %v489_v56, %v493_v57 }
 0x253   :  { %v3670_v47 = vpop.f32.mrf.mxu1  ;;  %3963 = vmatprep.subr.bf16.mxu1 %v6993_v34  ;;  %v8384_v12 = vmul.f32 %v8380_v40, %v4018_v19  ;;  %v6953_v3 = vcombine.high %v617_v58, %v621_v59  ;;  %v609_v4 = vld [vmem:[#allocation5 + $0xbd8] sm:$0xff]  ;;  %v6952_v23 = vcombine.low %v617_v58, %v621_v59 }
 0x254   :  { %3923 = vmatpush1.bf16.msra.mxu0 %v6864_v13  ;;  %v613_v34 = vld [vmem:[#allocation5 + $0xbf8] sm:$0xff] }
 0x255   :  { %3924 = vmatprep.subr.bf16.mxu0 %v6857_v18  ;;  %v741_v8 = vld [vmem:[#allocation5 + $0xff8] sm:$0xff]  ;;  %v6945_v26 = vcombine.high %v609_v4, %v613_v34  ;;  %v6944_v18 = vcombine.low %v609_v4, %v613_v34 }
 0x256   :  { %3964 = vmatpush1.bf16.msra.mxu1 %v6992_v16  ;;  %v7073_v15 = vcombine.high %v737_v50, %v741_v8  ;;  %v601_v10 = vld [vmem:[#allocation5 + $0xb98] sm:$0xff]  ;;  %v7072_v19 = vcombine.low %v737_v50, %v741_v8 }
 0x257   :  { %3965 = vmatprep.subr.bf16.mxu1 %v6985_v20  ;;  %v605_v13 = vld [vmem:[#allocation5 + $0xbb8] sm:$0xff] }
 0x258   :  { %3925 = vmatpush1.bf16.msra.mxu0 %v6856_v27  ;;  %v729_v14 = vld [vmem:[#allocation5 + $0xf98] sm:$0xff]  ;;  %v6937_v47 = vcombine.high %v601_v10, %v605_v13  ;;  %v6936_v27 = vcombine.low %v601_v10, %v605_v13 }
 0x259   :  { %3926 = vmatprep.subr.bf16.mxu0 %v6849_v17  ;;  %v733_v16 = vld [vmem:[#allocation5 + $0xfb8] sm:$0xff] }
 0x25a   :  { %3966 = vmatpush1.bf16.msra.mxu1 %v6984_v28  ;;  %v7065_v20 = vcombine.high %v729_v14, %v733_v16  ;;  %v593_v21 = vld [vmem:[#allocation5 + $0xb58] sm:$0xff]  ;;  %v7064_v28 = vcombine.low %v729_v14, %v733_v16 }
 0x25b   :  { %3967 = vmatprep.subr.bf16.mxu1 %v6977_v29  ;;  %v597_v24 = vld [vmem:[#allocation5 + $0xb78] sm:$0xff] }
 0x25c   :  { %3927 = vmatpush1.bf16.msra.mxu0 %v6848_v39  ;;  %v721_v48 = vld [vmem:[#allocation5 + $0xf58] sm:$0xff]  ;;  %v6929_v17 = vcombine.high %v593_v21, %v597_v24  ;;  %v6928_v39 = vcombine.low %v593_v21, %v597_v24  ;;  %v4044_v24 = vcombine.high %v8345_v7, %v8345_v7 }
 0x25d   :  { %3928 = vmatprep.subr.bf16.mxu0 %v6841_v42  ;;  %v725_v25 = vld [vmem:[#allocation5 + $0xf78] sm:$0xff] }
 0x25e   :  { %3968 = vmatpush1.bf16.msra.mxu1 %v6976_v41  ;;  %v7057_v29 = vcombine.high %v721_v48, %v725_v25  ;;  %v585_v31 = vld [vmem:[#allocation5 + $0xb18] sm:$0xff]  ;;  %v7056_v41 = vcombine.low %v721_v48, %v725_v25 }
 0x25f   :  { %3969 = vmatprep.subr.bf16.mxu1 %v6969_v44  ;;  %v589_v32 = vld [vmem:[#allocation5 + $0xb38] sm:$0xff] }
 0x260   :  { %3929 = vmatpush1.bf16.msra.mxu0 %v6840_v51  ;;  %v713_v33 = vld [vmem:[#allocation5 + $0xf18] sm:$0xff]  ;;  %v6921_v42 = vcombine.high %v585_v31, %v589_v32  ;;  %v6920_v51 = vcombine.low %v585_v31, %v589_v32  ;;  %v7418_v31 = vld [vmem:[#allocation10 + $0xe4] ss:$16 sps:$4 sm:$0xff]  }
 0x261   :  { %3930 = vmatprep.subr.bf16.mxu0 %v6833_v53  ;;  %v717_v36 = vld [vmem:[#allocation5 + $0xf38] sm:$0xff]  ;;  %v7421_v32 = vld [vmem:[#allocation10 + $0x2e4] ss:$16 sps:$4 sm:$0xff]  }
 0x262   :  { %3970 = vmatpush1.bf16.msra.mxu1 %v6968_v52  ;;  %v7049_v44 = vcombine.high %v713_v33, %v717_v36  ;;  %v577_v0 = vld [vmem:[#allocation5 + $0xad8] sm:$0xff]  ;;  %v7048_v52 = vcombine.low %v713_v33, %v717_v36  ;;  %v8397_v36 = vld [vmem:[#allocation7] sm:$0xff] }
 0x263   :  { %3971 = vmatprep.subr.bf16.mxu1 %v6961_v55  ;;  %v581_v46 = vld [vmem:[#allocation5 + $0xaf8] sm:$0xff] }
 0x264   :  { %3931 = vmatpush1.bf16.msra.mxu0 %v6832_v60  ;;  %v705_v6 = vld [vmem:[#allocation5 + $0xed8] sm:$0xff]  ;;  %v6913_v53 = vcombine.high %v577_v0, %v581_v46  ;;  %v6912_v60 = vcombine.low %v577_v0, %v581_v46  ;;  %v7427_v0 = vld [vmem:[#allocation10 + $0x2c4] ss:$16 sps:$4 sm:$0xff]  }
 0x265   :  { %3932 = vmatprep.subr.bf16.mxu0 %v6825_v2  ;;  %v709_v49 = vld [vmem:[#allocation5 + $0xef8] sm:$0xff] }
 0x266   :  { %3972 = vmatpush1.bf16.msra.mxu1 %v6960_v63  ;;  %v7041_v55 = vcombine.high %v705_v6, %v709_v49  ;;  %v569_v56 = vld [vmem:[#allocation5 + $0xa98] sm:$0xff]  ;;  %v3627_v63 = vadd.f32 %v8374_v1, %v8367_v11  ;;  %v7040_v2 = vcombine.low %v705_v6, %v709_v49 }
 0x267   :  { %3973 = vmatprep.subr.bf16.mxu1 %v6953_v3  ;;  %v573_v57 = vld [vmem:[#allocation5 + $0xab8] sm:$0xff] }
 0x268   :  { %3933 = vmatpush1.bf16.msra.mxu0 %v6824_v38  ;;  %v697_v58 = vld [vmem:[#allocation5 + $0xe98] sm:$0xff]  ;;  %v6905_v3 = vcombine.high %v569_v56, %v573_v57 }
 0x269   :  { %3934 = vmatprep.subr.bf16.mxu0 %v6945_v26  ;;  %v701_v59 = vld [vmem:[#allocation5 + $0xeb8] sm:$0xff]  ;;  %v3668_v26 = vadd.f32 %v8376_v5, %v3627_v63  ;;  %v7431_v63 = vld [vmem:[#allocation10 + $0x2a0] ss:$16 sps:$4 sm:$0xff]  }
 0x26a   :  { %3974 = vmatpush1.bf16.msra.mxu1 %v6952_v23  ;;  %v7033_v4 = vcombine.high %v697_v58, %v701_v59  ;;  %v561_v34 = vld [vmem:[#allocation5 + $0xa58] sm:$0xff]  ;;  %v6904_v23 = vcombine.low %v569_v56, %v573_v57  ;;  %v7433_v57 = vld [vmem:[#allocation10 + $0x2a4] ss:$16 sps:$4 sm:$0xff]  }
 0x26b   :  { %3975 = vmatprep.subr.bf16.mxu1 %v7073_v15  ;;  %v565_v50 = vld [vmem:[#allocation5 + $0xa78] sm:$0xff]  ;;  %v7032_v15 = vcombine.low %v697_v58, %v701_v59  ;;  %vm4003_vm3 = vcmp.gt.f32.partialorder %v3668_v26, 0.0  ;;  %v7428_v59 = vld [vmem:[#allocation10 + $0xa0] ss:$16 sps:$4 sm:$0xff]  }
 0x26c   :  { %3935 = vmatpush2.bf16.msra.mxu0 %v6944_v18  ;;  %v689_v8 = vld [vmem:[#allocation5 + $0xe58] sm:$0xff]  ;;  %v6897_v10 = vcombine.high %v561_v34, %v565_v50  ;;  %v4009_v18 = vmul.f32 0.2, %v8348_v9 }
 0x26d   :  { %3936 = vmatprep.subr.bf16.mxu0 %v6937_v47  ;;  %v693_v38 = vld [vmem:[#allocation5 + $0xe78] sm:$0xff]  ;;  %v4011_v47 = vmul.f32 0.2, %v3668_v26 }
 0x26e   :  { %3976 = vmatpush2.bf16.msra.mxu1 %v7072_v19  ;;  %v7025_v11 = vcombine.high %v689_v8, %v693_v38  ;;  %v553_v1 = vld [vmem:[#allocation5 + $0xa18] sm:$0xff]  ;;  %v6896_v19 = vcombine.low %v561_v34, %v565_v50  ;;  %v7024_v5 = vcombine.low %v689_v8, %v693_v38  ;;  %v4017_v48 = vsel %vm4001_vm2, %v8348_v9, %v4009_v18  ;;  %v7416_v9 = vld [vmem:[#allocation10 + $0xe0] ss:$16 sps:$4 sm:$0xff]   ;;  %v7442_v8 = vld [vmem:[#allocation10 + $0x64] ss:$16 sps:$4 sm:$0xff]  }
 0x26f   :  { %3977 = vmatprep.subr.bf16.mxu1 %v7065_v20  ;;  %v557_v13 = vld [vmem:[#allocation5 + $0xa38] sm:$0xff]  ;;  %v4072_v33 = vmul.f32 %v4044_v24, %v4017_v48  ;;  %v7434_v34 = vld [vmem:[#allocation10 + $0x80] ss:$16 sps:$4 sm:$0xff]   ;;  %v7445_v38 = vld [vmem:[#allocation10 + $0x264] ss:$16 sps:$4 sm:$0xff]  }
 0x270   :  { %3937 = vmatpush2.bf16.msra.mxu0 %v6936_v27  ;;  %v681_v14 = vld [vmem:[#allocation5 + $0xe18] sm:$0xff]  ;;  %v6889_v20 = vcombine.high %v553_v1, %v557_v13  ;;  %v6888_v25 = vcombine.low %v553_v1, %v557_v13  ;;  %v762_v27 = vsub.s32 4, %v8253_v45  ;;  %v7437_v50 = vld [vmem:[#allocation10 + $0x280] ss:$16 sps:$4 sm:$0xff]   ;;  %v7454_v13 = vld [vmem:[#allocation10 + $0x24] ss:$16 sps:$4 sm:$0xff]  }
 0x271   :  { %3938 = vmatprep.subr.bf16.mxu0 %v6929_v17  ;;  %v685_v16 = vld [vmem:[#allocation5 + $0xe38] sm:$0xff]  ;;  %v4019_v17 = vsel %vm4003_vm3, %v3668_v26, %v4011_v47  ;;  %v7443_v26 = vld [vmem:[#allocation10 + $0x260] ss:$16 sps:$4 sm:$0xff]   ;;  %v7463_v47 = vld [vmem:[#allocation10 + $0x204] ss:$16 sps:$4 sm:$0xff]  }
 0x272   :  { %3978 = vmatpush2.bf16.msra.mxu1 %v7064_v28  ;;  %v7017_v21 = vcombine.high %v681_v14, %v685_v16  ;;  %v4045_v28 = vcombine.high %v8380_v40, %v8380_v40  ;;  %v763_v7 = vrot.slane %v8397_v36, %v762_v27  ;;  %v7424_v40 = vld [vmem:[#allocation10 + $0xc4] ss:$16 sps:$4 sm:$0xff]   ;;  %v7449_v1 = vld [vmem:[#allocation10 + $0x240] ss:$16 sps:$4 sm:$0xff]  }
 0x273   :  { %3979 = vmatprep.subr.bf16.mxu1 %v7057_v29  ;;  %v7016_v29 = vcombine.low %v681_v14, %v685_v16  ;;  %v7457_v14 = vld [vmem:[#allocation10 + $0x224] ss:$16 sps:$4 sm:$0xff]   ;;  %v7452_v16 = vld [vmem:[#allocation10 + $0x20] ss:$16 sps:$4 sm:$0xff]  }
 0x274   :  { %3939 = vmatpush2.bf16.msra.mxu0 %v6928_v39  ;;  %v4074_v39 = vmul.f32 %v4045_v28, %v4019_v17  ;;  %v7455_v18 = vld [vmem:[#allocation10 + $0x220] ss:$16 sps:$4 sm:$0xff]   ;;  %v7469_v24 = vld [vmem:[#allocation10 + $0x3e4] ss:$16 sps:$4 sm:$0xff]  }
 0x275   :  { %3940 = vmatprep.subr.bf16.mxu0 %v6921_v42  ;;  %v7464_v48 = vld [vmem:[#allocation10 + $0x1e0] ss:$16 sps:$4 sm:$0xff]   ;;  %v7472_v27 = vld [vmem:[#allocation10 + $0x1c4] ss:$16 sps:$4 sm:$0xff]  }
 0x276   :  { %3980 = vmatpush2.bf16.msra.mxu1 %v7056_v41  ;;  %v7419_v41 = vld [vmem:[#allocation10 + $0x2e0] ss:$16 sps:$4 sm:$0xff]   ;;  %v8404_v49 = vpack.c.bf16 %v4074_v39, %v4074_v39  ;;  %v7475_v28 = vld [vmem:[#allocation10 + $0x3c4] ss:$16 sps:$4 sm:$0xff]  }
 0x277   :  { %3981 = vmatprep.subr.bf16.mxu1 %v7049_v44  ;;  %v8401_v44 = vpack.c.bf16 %v4072_v33, %v4072_v33  ;;  %v7470_v17 = vld [vmem:[#allocation10 + $0x1c0] ss:$16 sps:$4 sm:$0xff]   ;;  %v7487_v39 = vld [vmem:[#allocation10 + $0x384] ss:$16 sps:$4 sm:$0xff]  }
 0x278   :  { %3941 = vmatpush2.bf16.msra.mxu0 %v6920_v51  ;;  %v7422_v51 = vld [vmem:[#allocation10 + $0xc0] ss:$16 sps:$4 sm:$0xff]  }
 0x279   :  { %3942 = vmatprep.subr.bf16.mxu0 %v6913_v53  ;;  %v7425_v53 = vld [vmem:[#allocation10 + $0x2c0] ss:$16 sps:$4 sm:$0xff]  }
 0x27a   :  { %3982 = vmatpush2.bf16.msra.mxu1 %v7048_v52  ;;  %v7476_v33 = vld [vmem:[#allocation10 + $0x1a0] ss:$16 sps:$4 sm:$0xff]  }
 0x27b   :  { %3983 = vmatprep.subr.bf16.mxu1 %v7041_v55  ;;  %v7430_v55 = vld [vmem:[#allocation10 + $0xa4] ss:$16 sps:$4 sm:$0xff]  }
 0x27c   :  { %3943 = vmatpush2.bf16.msra.mxu0 %v6912_v60 }
 0x27d   :  { %3944 = vmatprep.subr.bf16.mxu0 %v6905_v3 }
 0x27e   :  { %3984 = vmatpush2.bf16.msra.mxu1 %v7040_v2  ;;  %v7436_v2 = vld [vmem:[#allocation10 + $0x84] ss:$16 sps:$4 sm:$0xff]  }
 0x27f   :  { %3985 = vmatprep.subr.bf16.mxu1 %v7033_v4  ;;  %v7439_v4 = vld [vmem:[#allocation10 + $0x284] ss:$16 sps:$4 sm:$0xff]  }
 0x280   :  { %3945 = vmatpush2.bf16.msra.mxu0 %v6904_v23  ;;  %v7440_v23 = vld [vmem:[#allocation10 + $0x60] ss:$16 sps:$4 sm:$0xff]  }
 0x281   :  { %3946 = vmatprep.subr.bf16.mxu0 %v6897_v10  ;;  %v7451_v10 = vld [vmem:[#allocation10 + $0x244] ss:$16 sps:$4 sm:$0xff]  }
 0x282   :  { %3986 = vmatpush2.bf16.msra.mxu1 %v7032_v15  ;;  %v7448_v15 = vld [vmem:[#allocation10 + $0x44] ss:$16 sps:$4 sm:$0xff]  }
 0x283   :  { %3987 = vmatprep.subr.bf16.mxu1 %v7025_v11  ;;  %v7446_v11 = vld [vmem:[#allocation10 + $0x40] ss:$16 sps:$4 sm:$0xff]  }
 0x284   :  { %3947 = vmatpush2.bf16.msra.mxu0 %v6896_v19  ;;  %v7460_v19 = vld [vmem:[#allocation10 + $0x4] ss:$16 sps:$4 sm:$0xff]  }
 0x285   :  { %3948 = vmatprep.subr.bf16.mxu0 %v6889_v20  ;;  %v7461_v20 = vld [vmem:[#allocation10 + $0x200] ss:$16 sps:$4 sm:$0xff]  }
 0x286   :  { %3988 = vmatpush2.bf16.msra.mxu1 %v7024_v5  ;;  %v7458_v5 = vld [vmem:[#allocation10] ss:$16 sps:$4 sm:$0xff]  }
 0x287   :  { %3989 = vmatprep.subr.bf16.mxu1 %v7017_v21  ;;  %v7466_v21 = vld [vmem:[#allocation10 + $0x1e4] ss:$16 sps:$4 sm:$0xff]  }
 0x288   :  { %3949 = vmatpush2.bf16.msra.mxu0 %v6888_v25  ;;  %v7467_v25 = vld [vmem:[#allocation10 + $0x3e0] ss:$16 sps:$4 sm:$0xff]  }
 0x289   :  { %5645 = vmatprep.subr.bf16.mxu0 %v7418_v31  ;;  %v7478_v31 = vld [vmem:[#allocation10 + $0x1a4] ss:$16 sps:$4 sm:$0xff]  }
 0x28a   :  { %3990 = vmatpush2.bf16.msra.mxu1 %v7016_v29  ;;  %v7473_v29 = vld [vmem:[#allocation10 + $0x3c0] ss:$16 sps:$4 sm:$0xff]  }
 0x28b   :  { %5686 = vmatprep.subr.bf16.mxu1 %v7421_v32  ;;  %v3706_v42 = vpop.f32.mrf.mxu0  ;;  %3951 = vmatmul.mubr.bf16.vlgmr.msra.gmra.mxu0 %v8302_v61  ;;  %v7481_v32 = vld [vmem:[#allocation10 + $0x3a4] ss:$16 sps:$4 sm:$0xff]  }
 0x28c   :  { %v3707_v46 = vadd.f32 %v3706_v42, %v763_v7  ;;  %5646 = vmatpush1.bf16.msra.mxu0 %v7416_v9  ;;  %5677 = vmatprep.mubr.bf16.mxu0 %v8401_v44  ;;  %v7479_v7 = vld [vmem:[#allocation10 + $0x3a0] ss:$16 sps:$4 sm:$0xff]   ;;  %v7484_v9 = vld [vmem:[#allocation10 + $0x184] ss:$16 sps:$4 sm:$0xff]  }
 0x28d   :  { %v3747_v6 = vpop.f32.mrf.mxu1  ;;  %3992 = vmatmul.mubr.bf16.vlgmr.msra.gmra.mxu1 %v8306_v62  ;;  %v8407_v52 = vpop.f32.mrf.mxu0  ;;  %5647 = vmatprep.subr.bf16.mxu0 %v7424_v40  ;;  %v7485_v40 = vld [vmem:[#allocation10 + $0x380] ss:$16 sps:$4 sm:$0xff]   ;;  %v7490_v42 = vld [vmem:[#allocation10 + $0x164] ss:$16 sps:$4 sm:$0xff]  }
 0x28e   :  { %5687 = vmatpush1.bf16.msra.mxu1 %v7419_v41  ;;  %v8409_v56 = vadd.f32 %v3747_v6, %v3707_v46  ;;  %5718 = vmatprep.mubr.bf16.mxu1 %v8404_v49  ;;  %v7482_v41 = vld [vmem:[#allocation10 + $0x180] ss:$16 sps:$4 sm:$0xff]  }
 0x28f   :  { %v8412_v61 = vpop.f32.mrf.mxu1  ;;  %v3710_v62 = vpop.f32.mrf.mxu0  ;;  %5688 = vmatprep.subr.bf16.mxu1 %v7427_v0  ;;  %v7493_v0 = vld [vmem:[#allocation10 + $0x364] ss:$16 sps:$4 sm:$0xff]   ;;  %v7488_v46 = vld [vmem:[#allocation10 + $0x160] ss:$16 sps:$4 sm:$0xff]  }
 0x290   :  { %5648 = vmatpush1.bf16.msra.mxu0 %v7422_v51  ;;  %v7491_v6 = vld [vmem:[#allocation10 + $0x360] ss:$16 sps:$4 sm:$0xff]   ;;  %v7496_v51 = vld [vmem:[#allocation10 + $0x144] ss:$16 sps:$4 sm:$0xff]  }
 0x291   :  { %v3751_v58 = vpop.f32.mrf.mxu1  ;;  %v3711_v60 = vpop.f32.mrf.mxu0  ;;  %5649 = vmatprep.subr.bf16.mxu0 %v7430_v55  ;;  %v7494_v55 = vld [vmem:[#allocation10 + $0x140] ss:$16 sps:$4 sm:$0xff]   ;;  %v7502_v62 = vld [vmem:[#allocation10 + $0x124] ss:$16 sps:$4 sm:$0xff]  }
 0x292   :  { %5689 = vmatpush1.bf16.msra.mxu1 %v7425_v53  ;;  %v7499_v53 = vld [vmem:[#allocation10 + $0x344] ss:$16 sps:$4 sm:$0xff]   ;;  %v7500_v60 = vld [vmem:[#allocation10 + $0x120] ss:$16 sps:$4 sm:$0xff]  }
 0x293   :  { %v3752_v3 = vpop.f32.mrf.mxu1  ;;  %5690 = vmatprep.subr.bf16.mxu1 %v7433_v57  ;;  %v7497_v57 = vld [vmem:[#allocation10 + $0x340] ss:$16 sps:$4 sm:$0xff]   ;;  %v7505_v58 = vld [vmem:[#allocation10 + $0x324] ss:$16 sps:$4 sm:$0xff]  }
 0x294   :  { %5650 = vmatpush1.bf16.msra.mxu0 %v7428_v59  ;;  %v766_v59 = vsub.s32 5, %v8253_v45  ;;  %v7511_v3 = vld [vmem:[#allocation10 + $0x304] ss:$16 sps:$4 sm:$0xff]  }
 0x295   :  { %5651 = vmatprep.subr.bf16.mxu0 %v7436_v2  ;;  %v7508_v2 = vld [vmem:[#allocation10 + $0x104] ss:$16 sps:$4 sm:$0xff]  }
 0x296   :  { %5691 = vmatpush1.bf16.msra.mxu1 %v7431_v63  ;;  %v7503_v63 = vld [vmem:[#allocation10 + $0x320] ss:$16 sps:$4 sm:$0xff]  }
 0x297   :  { %5692 = vmatprep.subr.bf16.mxu1 %v7439_v4  ;;  %v767_v4 = vrot.slane %v8397_v36, %v766_v59  ;;  %v7602_v59 = vld [vmem:[#allocation10 + $0x640] ss:$16 sps:$4 sm:$0xff]  }
 0x298   :  { %5652 = vmatpush1.bf16.msra.mxu0 %v7434_v34  ;;  %v7506_v34 = vld [vmem:[#allocation10 + $0x100] ss:$16 sps:$4 sm:$0xff]  }
 0x299   :  { %5653 = vmatprep.subr.bf16.mxu0 %v7442_v8  ;;  %v7514_v8 = vld [vmem:[#allocation10 + $0x4e4] ss:$16 sps:$4 sm:$0xff]  }
 0x29a   :  { %5693 = vmatpush1.bf16.msra.mxu1 %v7437_v50  ;;  %v7509_v50 = vld [vmem:[#allocation10 + $0x300] ss:$16 sps:$4 sm:$0xff]  }
 0x29b   :  { %5694 = vmatprep.subr.bf16.mxu1 %v7445_v38  ;;  %v7574_v38 = vld [vmem:[#allocation10 + $0x6e4] ss:$16 sps:$4 sm:$0xff]  }
 0x29c   :  { %5654 = vmatpush1.bf16.msra.mxu0 %v7440_v23  ;;  %v3709_v23 = vadd.f32 %v8407_v52, %v767_v4  ;;  %v7616_v4 = vld [vmem:[#allocation10 + $0x604] ss:$16 sps:$4 sm:$0xff]  }
 0x29d   :  { %5655 = vmatprep.subr.bf16.mxu0 %v7448_v15  ;;  %v8419_v15 = vpack.c.bf16 %v8351_v22, %v8351_v22 }
 0x29e   :  { %5695 = vmatpush1.bf16.msra.mxu1 %v7443_v26  ;;  %v7512_v26 = vld [vmem:[#allocation10 + $0x4e0] ss:$16 sps:$4 sm:$0xff]   ;;  %v3750_v22 = vadd.f32 %v8412_v61, %v3709_v23 }
 0x29f   :  { %5696 = vmatprep.subr.bf16.mxu1 %v7451_v10  ;;  %v7901_v10 = vld [vmem:[#allocation8] sm:$0xff]  ;;  %v7536_v23 = vld [vmem:[#allocation10 + $0x5e0] ss:$16 sps:$4 sm:$0xff]  }
 0x2a0   :  { %5656 = vmatpush1.bf16.msra.mxu0 %v7446_v11  ;;  %v8421_v11 = vunpack.c.h.bf16 %v7901_v10  ;;  %v7620_v10 = vld [vmem:[#allocation10 + $0x7e0] ss:$16 sps:$4 sm:$0xff]  }
 0x2a1   :  { %5657 = vmatprep.subr.bf16.mxu0 %v7454_v13  ;;  %v7572_v13 = vld [vmem:[#allocation10 + $0x6e0] ss:$16 sps:$4 sm:$0xff]  }
 0x2a2   :  { %5697 = vmatpush1.bf16.msra.mxu1 %v7449_v1  ;;  %v7517_v1 = vld [vmem:[#allocation10 + $0x4c4] ss:$16 sps:$4 sm:$0xff]  }
 0x2a3   :  { %5698 = vmatprep.subr.bf16.mxu1 %v7457_v14  ;;  %v8425_v14 = vpack.c.bf16 %v8384_v12, %v8384_v12 }
 0x2a4   :  { %5658 = vmatpush1.bf16.msra.mxu0 %v7452_v16  ;;  %v7580_v16 = vld [vmem:[#allocation10 + $0x6c4] ss:$16 sps:$4 sm:$0xff]  }
 0x2a5   :  { %5659 = vmatprep.subr.bf16.mxu0 %v7460_v19  ;;  %v7515_v19 = vld [vmem:[#allocation10 + $0x4c0] ss:$16 sps:$4 sm:$0xff]  }
 0x2a6   :  { %5699 = vmatpush1.bf16.msra.mxu1 %v7455_v18 }
 0x2a7   :  { %5700 = vmatprep.subr.bf16.mxu1 %v7463_v47  ;;  %v8436_v47 = vrot.slane %v8421_v11, %v8256_v54 }
 0x2a8   :  { %5660 = vmatpush1.bf16.msra.mxu0 %v7458_v5  ;;  %v7520_v5 = vld [vmem:[#allocation10 + $0x4a4] ss:$16 sps:$4 sm:$0xff]  }
 0x2a9   :  { %5661 = vmatprep.subr.bf16.mxu0 %v7466_v21 }
 0x2aa   :  { %5701 = vmatpush1.bf16.msra.mxu1 %v7461_v20  ;;  %v7578_v20 = vld [vmem:[#allocation10 + $0x6c0] ss:$16 sps:$4 sm:$0xff]  }
 0x2ab   :  { %5702 = vmatprep.subr.bf16.mxu1 %v7469_v24 }
 0x2ac   :  { %5662 = vmatpush2.bf16.msra.mxu0 %v7464_v48  ;;  %v7586_v48 = vld [vmem:[#allocation10 + $0x6a4] ss:$16 sps:$4 sm:$0xff]  }
 0x2ad   :  { %5663 = vmatprep.subr.bf16.mxu0 %v7472_v27 }
 0x2ae   :  { %5703 = vmatpush2.bf16.msra.mxu1 %v7467_v25 }
 0x2af   :  { %5704 = vmatprep.subr.bf16.mxu1 %v7475_v28  ;;  %v7518_v28 = vld [vmem:[#allocation10 + $0x4a0] ss:$16 sps:$4 sm:$0xff]  }
 0x2b0   :  { %5664 = vmatpush2.bf16.msra.mxu0 %v7470_v17 }
 0x2b1   :  { %5665 = vmatprep.subr.bf16.mxu0 %v7478_v31  ;;  %v4061_v31 = vcombine.high %v8436_v47, %v8436_v47 }
 0x2b2   :  { %5705 = vmatpush2.bf16.msra.mxu1 %v7473_v29  ;;  %v7523_v29 = vld [vmem:[#allocation10 + $0x484] ss:$16 sps:$4 sm:$0xff]  }
 0x2b3   :  { %5706 = vmatprep.subr.bf16.mxu1 %v7481_v32  ;;  %v7584_v32 = vld [vmem:[#allocation10 + $0x6a0] ss:$16 sps:$4 sm:$0xff]  }
 0x2b4   :  { %5666 = vmatpush2.bf16.msra.mxu0 %v7476_v33 }
 0x2b5   :  { %5667 = vmatprep.subr.bf16.mxu0 %v7484_v9  ;;  %v7592_v9 = vld [vmem:[#allocation10 + $0x684] ss:$16 sps:$4 sm:$0xff]  }
 0x2b6   :  { %5707 = vmatpush2.bf16.msra.mxu1 %v7479_v7 }
 0x2b7   :  { %5708 = vmatprep.subr.bf16.mxu1 %v7487_v39 }
 0x2b8   :  { %5668 = vmatpush2.bf16.msra.mxu0 %v7482_v41  ;;  %v7521_v41 = vld [vmem:[#allocation10 + $0x480] ss:$16 sps:$4 sm:$0xff]  }
 0x2b9   :  { %5669 = vmatprep.subr.bf16.mxu0 %v7490_v42  ;;  %v7526_v42 = vld [vmem:[#allocation10 + $0x464] ss:$16 sps:$4 sm:$0xff]  }
 0x2ba   :  { %5709 = vmatpush2.bf16.msra.mxu1 %v7485_v40 }
 0x2bb   :  { %5710 = vmatprep.subr.bf16.mxu1 %v7493_v0  ;;  %v7590_v0 = vld [vmem:[#allocation10 + $0x680] ss:$16 sps:$4 sm:$0xff]  }
 0x2bc   :  { %5670 = vmatpush2.bf16.msra.mxu0 %v7488_v46 }
 0x2bd   :  { %5671 = vmatprep.subr.bf16.mxu0 %v7496_v51  ;;  %v7524_v51 = vld [vmem:[#allocation10 + $0x460] ss:$16 sps:$4 sm:$0xff]  }
 0x2be   :  { %5711 = vmatpush2.bf16.msra.mxu1 %v7491_v6  ;;  %v7598_v6 = vld [vmem:[#allocation10 + $0x664] ss:$16 sps:$4 sm:$0xff]  }
 0x2bf   :  { %5712 = vmatprep.subr.bf16.mxu1 %v7499_v53  ;;  %v7529_v53 = vld [vmem:[#allocation10 + $0x444] ss:$16 sps:$4 sm:$0xff]  }
 0x2c0   :  { %5672 = vmatpush2.bf16.msra.mxu0 %v7494_v55  ;;  %v7596_v55 = vld [vmem:[#allocation10 + $0x660] ss:$16 sps:$4 sm:$0xff]  }
 0x2c1   :  { %5673 = vmatprep.subr.bf16.mxu0 %v7502_v62  ;;  %v7527_v62 = vld [vmem:[#allocation10 + $0x440] ss:$16 sps:$4 sm:$0xff]  }
 0x2c2   :  { %5713 = vmatpush2.bf16.msra.mxu1 %v7497_v57  ;;  %v7604_v57 = vld [vmem:[#allocation10 + $0x644] ss:$16 sps:$4 sm:$0xff]  }
 0x2c3   :  { %5714 = vmatprep.subr.bf16.mxu1 %v7505_v58  ;;  %v7532_v58 = vld [vmem:[#allocation10 + $0x424] ss:$16 sps:$4 sm:$0xff]  }
 0x2c4   :  { %5674 = vmatpush2.bf16.msra.mxu0 %v7500_v60  ;;  %v7610_v60 = vld [vmem:[#allocation10 + $0x624] ss:$16 sps:$4 sm:$0xff]  }
 0x2c5   :  { %5675 = vmatprep.subr.bf16.mxu0 %v7508_v2  ;;  %v7535_v2 = vld [vmem:[#allocation10 + $0x404] ss:$16 sps:$4 sm:$0xff]  }
 0x2c6   :  { %5715 = vmatpush2.bf16.msra.mxu1 %v7503_v63  ;;  %v7530_v63 = vld [vmem:[#allocation10 + $0x420] ss:$16 sps:$4 sm:$0xff]  }
 0x2c7   :  { %5716 = vmatprep.subr.bf16.mxu1 %v7511_v3  ;;  %v7608_v3 = vld [vmem:[#allocation10 + $0x620] ss:$16 sps:$4 sm:$0xff]  }
 0x2c8   :  { %5676 = vmatpush2.bf16.msra.mxu0 %v7506_v34  ;;  %v7533_v34 = vld [vmem:[#allocation10 + $0x400] ss:$16 sps:$4 sm:$0xff]  }
 0x2c9   :  { %5727 = vmatprep.subr.bf16.mxu0 %v7514_v8  ;;  %v7614_v8 = vld [vmem:[#allocation10 + $0x600] ss:$16 sps:$4 sm:$0xff]  }
 0x2ca   :  { %5717 = vmatpush2.bf16.msra.mxu1 %v7509_v50  ;;  %v7538_v50 = vld [vmem:[#allocation10 + $0x5e4] ss:$16 sps:$4 sm:$0xff]  }
 0x2cb   :  { %5768 = vmatprep.subr.bf16.mxu1 %v7574_v38  ;;  %v8427_v52 = vpop.f32.mrf.mxu0  ;;  %5678 = vmatmul.mubr.bf16.vlgmr.msra.gmra.mxu0 %v8419_v15  ;;  %v7622_v38 = vld [vmem:[#allocation10 + $0x7e4] ss:$16 sps:$4 sm:$0xff]  }
 0x2cc   :  { %5728 = vmatpush1.bf16.msra.mxu0 %v7512_v26  ;;  %v7541_v26 = vld [vmem:[#allocation10 + $0x5c4] ss:$16 sps:$4 sm:$0xff]  }
 0x2cd   :  { %v8431_v18 = vpop.f32.mrf.mxu1  ;;  %5719 = vmatmul.mubr.bf16.vlgmr.msra.gmra.mxu1 %v8425_v14  ;;  %v3790_v12 = vpop.f32.mrf.mxu0  ;;  %5729 = vmatprep.subr.bf16.mxu0 %v7517_v1  ;;  %v7628_v1 = vld [vmem:[#allocation10 + $0x7c4] ss:$16 sps:$4 sm:$0xff]  }
 0x2ce   :  { %5769 = vmatpush1.bf16.msra.mxu1 %v7572_v13  ;;  %v3791_v21 = vadd.f32 %v3790_v12, %v3750_v22  ;;  %v7539_v13 = vld [vmem:[#allocation10 + $0x5c0] ss:$16 sps:$4 sm:$0xff]  }
 0x2cf   :  { %v3831_v24 = vpop.f32.mrf.mxu1  ;;  %5770 = vmatprep.subr.bf16.mxu1 %v7580_v16  ;;  %v3792_v61 = vpop.f32.mrf.mxu0  ;;  %v7544_v16 = vld [vmem:[#allocation10 + $0x5a4] ss:$16 sps:$4 sm:$0xff]   ;;  %v7626_v22 = vld [vmem:[#allocation10 + $0x7c0] ss:$16 sps:$4 sm:$0xff]  }
 0x2d0   :  { %v3832_v25 = vadd.f32 %v3831_v24, %v3791_v21  ;;  %5730 = vmatpush1.bf16.msra.mxu0 %v7515_v19  ;;  %v7634_v19 = vld [vmem:[#allocation10 + $0x7a4] ss:$16 sps:$4 sm:$0xff]   ;;  %v7542_v12 = vld [vmem:[#allocation10 + $0x5a0] ss:$16 sps:$4 sm:$0xff]   ;;  %v3789_v61 = vadd.f32 %v8427_v52, %v8409_v56 }
 0x2d1   :  { %v3833_v27 = vpop.f32.mrf.mxu1  ;;  %v3793_v17 = vpop.f32.mrf.mxu0  ;;  %5731 = vmatprep.subr.bf16.mxu0 %v7520_v5  ;;  %v7547_v5 = vld [vmem:[#allocation10 + $0x584] ss:$16 sps:$4 sm:$0xff]   ;;  %v7545_v24 = vld [vmem:[#allocation10 + $0x580] ss:$16 sps:$4 sm:$0xff]  }
 0x2d2   :  { %5771 = vmatpush1.bf16.msra.mxu1 %v7578_v20  ;;  %vm4005_vm4 = vcmp.gt.f32.partialorder %v3832_v25, 0.0  ;;  %v4013_v33 = vmul.f32 0.2, %v3832_v25  ;;  %v7632_v20 = vld [vmem:[#allocation10 + $0x7a0] ss:$16 sps:$4 sm:$0xff]  }
 0x2d3   :  { %v3834_v7 = vpop.f32.mrf.mxu1  ;;  %5772 = vmatprep.subr.bf16.mxu1 %v7586_v48  ;;  %v7640_v21 = vld [vmem:[#allocation10 + $0x784] ss:$16 sps:$4 sm:$0xff]   ;;  %v7650_v56 = vld [vmem:[#allocation10 + $0x740] ss:$16 sps:$4 sm:$0xff]  }
 0x2d4   :  { %v4021_v39 = vsel %vm4005_vm4, %v3832_v25, %v4013_v33  ;;  %5732 = vmatpush1.bf16.msra.mxu0 %v7518_v28  ;;  %v7550_v48 = vld [vmem:[#allocation10 + $0x564] ss:$16 sps:$4 sm:$0xff]   ;;  %v7638_v25 = vld [vmem:[#allocation10 + $0x780] ss:$16 sps:$4 sm:$0xff]  }
 0x2d5   :  { %5733 = vmatprep.subr.bf16.mxu0 %v7523_v29  ;;  %v4076_v40 = vmul.f32 %v4061_v31, %v4021_v39  ;;  %v7646_v27 = vld [vmem:[#allocation10 + $0x764] ss:$16 sps:$4 sm:$0xff]   ;;  %v7548_v28 = vld [vmem:[#allocation10 + $0x560] ss:$16 sps:$4 sm:$0xff]   ;;  %v3830_v29 = vadd.f32 %v8431_v18, %v3789_v61  ;;  %v7611_v61 = vld [vmem:[#allocation10 + $0x1a8] ss:$16 sps:$4 sm:$0xff]  }
 0x2d6   :  { %5773 = vmatpush1.bf16.msra.mxu1 %v7584_v32  ;;  %v7553_v17 = vld [vmem:[#allocation10 + $0x544] ss:$16 sps:$4 sm:$0xff]   ;;  %v7644_v31 = vld [vmem:[#allocation10 + $0x760] ss:$16 sps:$4 sm:$0xff]  }
 0x2d7   :  { %5774 = vmatprep.subr.bf16.mxu1 %v7592_v9  ;;  %v8440_v46 = vpack.c.bf16 %v4076_v40, %v4076_v40  ;;  %v7652_v32 = vld [vmem:[#allocation10 + $0x744] ss:$16 sps:$4 sm:$0xff]   ;;  %v7551_v33 = vld [vmem:[#allocation10 + $0x540] ss:$16 sps:$4 sm:$0xff]   ;;  %v4012_v9 = vmul.f32 0.2, %v3830_v29 }
 0x2d8   :  { %5734 = vmatpush1.bf16.msra.mxu0 %v7521_v41  ;;  %v7556_v7 = vld [vmem:[#allocation10 + $0x524] ss:$16 sps:$4 sm:$0xff]   ;;  %vm4004_vm5 = vcmp.gt.f32.partialorder %v3830_v29, 0.0  ;;  %v7554_v39 = vld [vmem:[#allocation10 + $0x520] ss:$16 sps:$4 sm:$0xff]  }
 0x2d9   :  { %5759 = vmatprep.mubr.bf16.mxu0 %v8440_v46  ;;  %5735 = vmatprep.subr.bf16.mxu0 %v7526_v42  ;;  %v7658_v52 = vld [vmem:[#allocation10 + $0x724] ss:$16 sps:$4 sm:$0xff]   ;;  %v4020_v40 = vsel %vm4004_vm5, %v3830_v29, %v4012_v9  ;;  %v7656_v18 = vld [vmem:[#allocation10 + $0x720] ss:$16 sps:$4 sm:$0xff]   ;;  %v7631_v29 = vld [vmem:[#allocation10 + $0x14c] ss:$16 sps:$4 sm:$0xff]  }
 0x2da   :  { %5775 = vmatpush1.bf16.msra.mxu1 %v7590_v0  ;;  %v7559_v41 = vld [vmem:[#allocation10 + $0x504] ss:$16 sps:$4 sm:$0xff]   ;;  %v7557_v0 = vld [vmem:[#allocation10 + $0x500] ss:$16 sps:$4 sm:$0xff]   ;;  %v7635_v9 = vld [vmem:[#allocation10 + $0x128] ss:$16 sps:$4 sm:$0xff]  }
 0x2db   :  { %5776 = vmatprep.subr.bf16.mxu1 %v7598_v6  ;;  %v7664_v42 = vld [vmem:[#allocation10 + $0x704] ss:$16 sps:$4 sm:$0xff]   ;;  %v4075_v6 = vmul.f32 %v8436_v47, %v4020_v40  ;;  %v7563_v47 = vld [vmem:[#allocation10 + $0xc8] ss:$16 sps:$4 sm:$0xff]   ;;  %v7649_v40 = vld [vmem:[#allocation10 + $0x4ec] ss:$16 sps:$4 sm:$0xff]  }
 0x2dc   :  { %5736 = vmatpush1.bf16.msra.mxu0 %v7524_v51  ;;  %v7562_v51 = vld [vmem:[#allocation10 + $0xec] ss:$16 sps:$4 sm:$0xff]  }
 0x2dd   :  { %5737 = vmatprep.subr.bf16.mxu0 %v7529_v53  ;;  %v7662_v53 = vld [vmem:[#allocation10 + $0x700] ss:$16 sps:$4 sm:$0xff]  }
 0x2de   :  { %5777 = vmatpush1.bf16.msra.mxu1 %v7596_v55  ;;  %v7670_v55 = vld [vmem:[#allocation10 + $0x2ec] ss:$16 sps:$4 sm:$0xff]  }
 0x2df   :  { %5778 = vmatprep.subr.bf16.mxu1 %v7604_v57  ;;  %v7560_v57 = vld [vmem:[#allocation10 + $0xe8] ss:$16 sps:$4 sm:$0xff]  }
 0x2e0   :  { %5738 = vmatpush1.bf16.msra.mxu0 %v7527_v62  ;;  %v8447_v62 = vpack.c.bf16 %v4075_v6, %v4075_v6  ;;  %v4046_v6 = vcombine.high %v8421_v11, %v8421_v11  ;;  %v7661_v11 = vld [vmem:[#allocation10 + $0x4ac] ss:$16 sps:$4 sm:$0xff]  }
 0x2e1   :  { %5739 = vmatprep.subr.bf16.mxu0 %v7532_v58  ;;  %v7565_v58 = vld [vmem:[#allocation10 + $0xcc] ss:$16 sps:$4 sm:$0xff]  }
 0x2e2   :  { %5779 = vmatpush1.bf16.msra.mxu1 %v7602_v59 }
 0x2e3   :  { %5780 = vmatprep.subr.bf16.mxu1 %v7610_v60 }
 0x2e4   :  { %5740 = vmatpush1.bf16.msra.mxu0 %v7530_v63 }
 0x2e5   :  { %5741 = vmatprep.subr.bf16.mxu0 %v7535_v2  ;;  %v7568_v2 = vld [vmem:[#allocation10 + $0xac] ss:$16 sps:$4 sm:$0xff]  }
 0x2e6   :  { %5781 = vmatpush1.bf16.msra.mxu1 %v7608_v3 }
 0x2e7   :  { %5782 = vmatprep.subr.bf16.mxu1 %v7616_v4 }
 0x2e8   :  { %5742 = vmatpush1.bf16.msra.mxu0 %v7533_v34 }
 0x2e9   :  { %5743 = vmatprep.subr.bf16.mxu0 %v7538_v50  ;;  %v7566_v50 = vld [vmem:[#allocation10 + $0xa8] ss:$16 sps:$4 sm:$0xff]  }
 0x2ea   :  { %5783 = vmatpush1.bf16.msra.mxu1 %v7614_v8 }
 0x2eb   :  { %5784 = vmatprep.subr.bf16.mxu1 %v7622_v38  ;;  %v7571_v38 = vld [vmem:[#allocation10 + $0x8c] ss:$16 sps:$4 sm:$0xff]  }
 0x2ec   :  { %5744 = vmatpush2.bf16.msra.mxu0 %v7536_v23 }
 0x2ed   :  { %5745 = vmatprep.subr.bf16.mxu0 %v7541_v26  ;;  %v7569_v26 = vld [vmem:[#allocation10 + $0x88] ss:$16 sps:$4 sm:$0xff]  }
 0x2ee   :  { %5785 = vmatpush2.bf16.msra.mxu1 %v7620_v10  ;;  %v7577_v10 = vld [vmem:[#allocation10 + $0x6c] ss:$16 sps:$4 sm:$0xff]  }
 0x2ef   :  { %5786 = vmatprep.subr.bf16.mxu1 %v7628_v1  ;;  %v7583_v1 = vld [vmem:[#allocation10 + $0x4c] ss:$16 sps:$4 sm:$0xff]  }
 0x2f0   :  { %5746 = vmatpush2.bf16.msra.mxu0 %v7539_v13  ;;  %v7581_v13 = vld [vmem:[#allocation10 + $0x48] ss:$16 sps:$4 sm:$0xff]  }
 0x2f1   :  { %5747 = vmatprep.subr.bf16.mxu0 %v7544_v16  ;;  %v7589_v16 = vld [vmem:[#allocation10 + $0x2c] ss:$16 sps:$4 sm:$0xff]  }
 0x2f2   :  { %5787 = vmatpush2.bf16.msra.mxu1 %v7626_v22  ;;  %v7587_v22 = vld [vmem:[#allocation10 + $0x28] ss:$16 sps:$4 sm:$0xff]  }
 0x2f3   :  { %5788 = vmatprep.subr.bf16.mxu1 %v7634_v19  ;;  %v7595_v19 = vld [vmem:[#allocation10 + $0xc] ss:$16 sps:$4 sm:$0xff]  }
 0x2f4   :  { %5748 = vmatpush2.bf16.msra.mxu0 %v7542_v12  ;;  %v7593_v12 = vld [vmem:[#allocation10 + $0x8] ss:$16 sps:$4 sm:$0xff]  }
 0x2f5   :  { %5749 = vmatprep.subr.bf16.mxu0 %v7547_v5  ;;  %v7601_v5 = vld [vmem:[#allocation10 + $0x1ec] ss:$16 sps:$4 sm:$0xff]  }
 0x2f6   :  { %5789 = vmatpush2.bf16.msra.mxu1 %v7632_v20  ;;  %v7599_v20 = vld [vmem:[#allocation10 + $0x1e8] ss:$16 sps:$4 sm:$0xff]  }
 0x2f7   :  { %5790 = vmatprep.subr.bf16.mxu1 %v7640_v21  ;;  %v7607_v21 = vld [vmem:[#allocation10 + $0x1cc] ss:$16 sps:$4 sm:$0xff]  }
 0x2f8   :  { %5750 = vmatpush2.bf16.msra.mxu0 %v7545_v24  ;;  %v7605_v24 = vld [vmem:[#allocation10 + $0x1c8] ss:$16 sps:$4 sm:$0xff]  }
 0x2f9   :  { %5751 = vmatprep.subr.bf16.mxu0 %v7550_v48  ;;  %v7613_v48 = vld [vmem:[#allocation10 + $0x1ac] ss:$16 sps:$4 sm:$0xff]  }
 0x2fa   :  { %5791 = vmatpush2.bf16.msra.mxu1 %v7638_v25  ;;  %v7619_v25 = vld [vmem:[#allocation10 + $0x18c] ss:$16 sps:$4 sm:$0xff]  }
 0x2fb   :  { %5792 = vmatprep.subr.bf16.mxu1 %v7646_v27  ;;  %v7617_v27 = vld [vmem:[#allocation10 + $0x188] ss:$16 sps:$4 sm:$0xff]  }
 0x2fc   :  { %5752 = vmatpush2.bf16.msra.mxu0 %v7548_v28  ;;  %v7625_v28 = vld [vmem:[#allocation10 + $0x16c] ss:$16 sps:$4 sm:$0xff]  }
 0x2fd   :  { %5753 = vmatprep.subr.bf16.mxu0 %v7553_v17  ;;  %v7623_v17 = vld [vmem:[#allocation10 + $0x168] ss:$16 sps:$4 sm:$0xff]  }
 0x2fe   :  { %5793 = vmatpush2.bf16.msra.mxu1 %v7644_v31  ;;  %v7629_v31 = vld [vmem:[#allocation10 + $0x148] ss:$16 sps:$4 sm:$0xff]  }
 0x2ff   :  { %5794 = vmatprep.subr.bf16.mxu1 %v7652_v32  ;;  %v7637_v32 = vld [vmem:[#allocation10 + $0x12c] ss:$16 sps:$4 sm:$0xff]  }
 0x300   :  { %5754 = vmatpush2.bf16.msra.mxu0 %v7551_v33  ;;  %v770_v33 = vsub.s32 6, %v8253_v45 }
 0x301   :  { %5755 = vmatprep.subr.bf16.mxu0 %v7556_v7  ;;  %v774_v7 = vsub.s32 7, %v8253_v45 }
 0x302   :  { %5795 = vmatpush2.bf16.msra.mxu1 %v7650_v56  ;;  %v7643_v56 = vld [vmem:[#allocation10 + $0x10c] ss:$16 sps:$4 sm:$0xff]  }
 0x303   :  { %5796 = vmatprep.subr.bf16.mxu1 %v7658_v52  ;;  %v771_v52 = vrot.slane %v8397_v36, %v770_v33  ;;  %v7686_v33 = vld [vmem:[#allocation10 + $0x288] ss:$16 sps:$4 sm:$0xff]  }
 0x304   :  { %5756 = vmatpush2.bf16.msra.mxu0 %v7554_v39  ;;  %v775_v39 = vrot.slane %v8397_v36, %v774_v7  ;;  %v7694_v7 = vld [vmem:[#allocation10 + $0x26c] ss:$16 sps:$4 sm:$0xff]  }
 0x305   :  { %5757 = vmatprep.subr.bf16.mxu0 %v7559_v41  ;;  %v7641_v41 = vld [vmem:[#allocation10 + $0x108] ss:$16 sps:$4 sm:$0xff]  }
 0x306   :  { %5797 = vmatpush2.bf16.msra.mxu1 %v7656_v18 }
 0x307   :  { %5798 = vmatprep.subr.bf16.mxu1 %v7664_v42 }
 0x308   :  { %5758 = vmatpush2.bf16.msra.mxu0 %v7557_v0  ;;  %v7647_v0 = vld [vmem:[#allocation10 + $0x4e8] ss:$16 sps:$4 sm:$0xff]  }
 0x309   :  { %5809 = vmatprep.subr.bf16.mxu0 %v7562_v51  ;;  %v7655_v51 = vld [vmem:[#allocation10 + $0x4cc] ss:$16 sps:$4 sm:$0xff]  }
 0x30a   :  { %5799 = vmatpush2.bf16.msra.mxu1 %v7662_v53 }
 0x30b   :  { %v8449_v59 = vpop.f32.mrf.mxu0  ;;  %5760 = vmatmul.mubr.bf16.vlgmr.msra.gmra.mxu0 %v8447_v62  ;;  %5850 = vmatprep.subr.bf16.mxu1 %v7670_v55 }
 0x30c   :  { %5810 = vmatpush1.bf16.msra.mxu0 %v7560_v57  ;;  %5841 = vmatprep.mubr.bf16.mxu0 %v8401_v44  ;;  %v7575_v44 = vld [vmem:[#allocation10 + $0x68] ss:$16 sps:$4 sm:$0xff]   ;;  %v3871_v18 = vadd.f32 %v8449_v59, %v771_v52 }
 0x30d   :  { %v8452_v60 = vpop.f32.mrf.mxu1  ;;  %v8455_v63 = vpop.f32.mrf.mxu0  ;;  %5811 = vmatprep.subr.bf16.mxu0 %v7565_v58  ;;  %v7653_v59 = vld [vmem:[#allocation10 + $0x4c8] ss:$16 sps:$4 sm:$0xff]  }
 0x30e   :  { %v3873_v42 = vadd.f32 %v8455_v63, %v775_v39  ;;  %v3912_v53 = vadd.f32 %v8452_v60, %v3871_v18  ;;  %v7695_v52 = vld [vmem:[#allocation10 + $0x5e8] ss:$16 sps:$4 sm:$0xff]   ;;  %v7700_v39 = vld [vmem:[#allocation10 + $0x24c] ss:$16 sps:$4 sm:$0xff]  }
 0x30f   :  { %v8457_v3 = vpop.f32.mrf.mxu1  ;;  %v3874_v4 = vpop.f32.mrf.mxu0  ;;  %v7701_v18 = vld [vmem:[#allocation10 + $0x5c8] ss:$16 sps:$4 sm:$0xff]  }
 0x310   :  { %5812 = vmatpush1.bf16.msra.mxu0 %v7563_v47  ;;  %v3914_v36 = vadd.f32 %v8457_v3, %v3873_v42  ;;  %v4060_v47 = vrot.slane %v4046_v6, %v8256_v54  ;;  %v7659_v3 = vld [vmem:[#allocation10 + $0x4a8] ss:$16 sps:$4 sm:$0xff]   ;;  %v7706_v42 = vld [vmem:[#allocation10 + $0x22c] ss:$16 sps:$4 sm:$0xff]  }
 0x311   :  { %v3915_v34 = vpop.f32.mrf.mxu1  ;;  %v3875_v8 = vpop.f32.mrf.mxu0  ;;  %5813 = vmatprep.subr.bf16.mxu0 %v7568_v2  ;;  %v7704_v6 = vld [vmem:[#allocation10 + $0x228] ss:$16 sps:$4 sm:$0xff]  }
 0x313   :  { %v3916_v23 = vpop.f32.mrf.mxu1 }
 0x314   :  { %5814 = vmatpush1.bf16.msra.mxu0 %v7566_v50  ;;  %v7667_v23 = vld [vmem:[#allocation10 + $0x48c] ss:$16 sps:$4 sm:$0xff]  }
 0x315   :  { %5815 = vmatprep.subr.bf16.mxu0 %v7571_v38 }
 0x318   :  { %5816 = vmatpush1.bf16.msra.mxu0 %v7569_v26 }
 0x319   :  { %5817 = vmatprep.subr.bf16.mxu0 %v7577_v10 }
 0x31c   :  { %5818 = vmatpush1.bf16.msra.mxu0 %v7575_v44 }
 0x31d   :  { %5819 = vmatprep.subr.bf16.mxu0 %v7583_v1 }
 0x320   :  { %5820 = vmatpush1.bf16.msra.mxu0 %v7581_v13 }
 0x321   :  { %5821 = vmatprep.subr.bf16.mxu0 %v7589_v16  ;;  %v7665_v16 = vld [vmem:[#allocation10 + $0x488] ss:$16 sps:$4 sm:$0xff]  }
 0x324   :  { %5822 = vmatpush1.bf16.msra.mxu0 %v7587_v22 }
 0x325   :  { %5823 = vmatprep.subr.bf16.mxu0 %v7595_v19  ;;  %v7673_v19 = vld [vmem:[#allocation10 + $0x46c] ss:$16 sps:$4 sm:$0xff]  }
 0x328   :  { %5824 = vmatpush1.bf16.msra.mxu0 %v7593_v12 }
 0x329   :  { %5825 = vmatprep.subr.bf16.mxu0 %v7601_v5  ;;  %v7668_v5 = vld [vmem:[#allocation10 + $0x2e8] ss:$16 sps:$4 sm:$0xff]  }
 0x32c   :  { %5826 = vmatpush2.bf16.msra.mxu0 %v7599_v20 }
 0x32d   :  { %5827 = vmatprep.subr.bf16.mxu0 %v7607_v21  ;;  %v7671_v21 = vld [vmem:[#allocation10 + $0x468] ss:$16 sps:$4 sm:$0xff]  }
 0x330   :  { %5828 = vmatpush2.bf16.msra.mxu0 %v7605_v24  ;;  %v7676_v24 = vld [vmem:[#allocation10 + $0x2cc] ss:$16 sps:$4 sm:$0xff]  }
 0x331   :  { %5829 = vmatprep.subr.bf16.mxu0 %v7613_v48  ;;  %v7679_v48 = vld [vmem:[#allocation10 + $0x44c] ss:$16 sps:$4 sm:$0xff]  }
 0x334   :  { %5830 = vmatpush2.bf16.msra.mxu0 %v7611_v61  ;;  %v7674_v61 = vld [vmem:[#allocation10 + $0x2c8] ss:$16 sps:$4 sm:$0xff]  }
 0x335   :  { %5831 = vmatprep.subr.bf16.mxu0 %v7619_v25  ;;  %v7677_v25 = vld [vmem:[#allocation10 + $0x448] ss:$16 sps:$4 sm:$0xff]  }
 0x338   :  { %5832 = vmatpush2.bf16.msra.mxu0 %v7617_v27  ;;  %v7682_v27 = vld [vmem:[#allocation10 + $0x2ac] ss:$16 sps:$4 sm:$0xff]  }
 0x339   :  { %5833 = vmatprep.subr.bf16.mxu0 %v7625_v28  ;;  %v7685_v28 = vld [vmem:[#allocation10 + $0x42c] ss:$16 sps:$4 sm:$0xff]  }
 0x33c   :  { %5834 = vmatpush2.bf16.msra.mxu0 %v7623_v17  ;;  %v7680_v17 = vld [vmem:[#allocation10 + $0x2a8] ss:$16 sps:$4 sm:$0xff]  }
 0x33d   :  { %5835 = vmatprep.subr.bf16.mxu0 %v7631_v29  ;;  %v7683_v29 = vld [vmem:[#allocation10 + $0x428] ss:$16 sps:$4 sm:$0xff]  }
 0x340   :  { %5836 = vmatpush2.bf16.msra.mxu0 %v7629_v31  ;;  %v7688_v31 = vld [vmem:[#allocation10 + $0x28c] ss:$16 sps:$4 sm:$0xff]  }
 0x341   :  { %5837 = vmatprep.subr.bf16.mxu0 %v7637_v32  ;;  %v7691_v32 = vld [vmem:[#allocation10 + $0x40c] ss:$16 sps:$4 sm:$0xff]  }
 0x344   :  { %5838 = vmatpush2.bf16.msra.mxu0 %v7635_v9  ;;  %v7697_v9 = vld [vmem:[#allocation10 + $0x5ec] ss:$16 sps:$4 sm:$0xff]  }
 0x345   :  { %5839 = vmatprep.subr.bf16.mxu0 %v7643_v56  ;;  %v7692_v56 = vld [vmem:[#allocation10 + $0x268] ss:$16 sps:$4 sm:$0xff]  }
 0x348   :  { %5840 = vmatpush2.bf16.msra.mxu0 %v7641_v41  ;;  %v7703_v41 = vld [vmem:[#allocation10 + $0x5cc] ss:$16 sps:$4 sm:$0xff]  }
 0x349   :  { %5891 = vmatprep.subr.bf16.mxu0 %v7649_v40  ;;  %v7698_v40 = vld [vmem:[#allocation10 + $0x248] ss:$16 sps:$4 sm:$0xff]  }
 0x34b   :  { %v3952_v55 = vpop.f32.mrf.mxu0  ;;  %5842 = vmatmul.mubr.bf16.vlgmr.msra.gmra.mxu0 %v8419_v15 }
 0x34c   :  { %v3953_v57 = vadd.f32 %v3952_v55, %v3912_v53  ;;  %5892 = vmatpush1.bf16.msra.mxu0 %v7647_v0  ;;  %5923 = vmatprep.mubr.bf16.mxu0 %v8440_v46  ;;  %v4062_v46 = vcombine.high %v4060_v47, %v4060_v47  ;;  %v7709_v0 = vld [vmem:[#allocation10 + $0x5ac] ss:$16 sps:$4 sm:$0xff]  }
 0x34d   :  { %v3993_v58 = vpop.f32.mrf.mxu1  ;;  %v3954_v63 = vpop.f32.mrf.mxu0  ;;  %5893 = vmatprep.subr.bf16.mxu0 %v7655_v51  ;;  %v7707_v51 = vld [vmem:[#allocation10 + $0x5a8] ss:$16 sps:$4 sm:$0xff]   ;;  %v7712_v53 = vld [vmem:[#allocation10 + $0x20c] ss:$16 sps:$4 sm:$0xff]  }
 0x34e   :  { %v3994_v2 = vadd.f32 %v3993_v58, %v3953_v57  ;;  %v3955_v4 = vadd.f32 %v3954_v63, %v3914_v36  ;;  %v7715_v55 = vld [vmem:[#allocation10 + $0x58c] ss:$16 sps:$4 sm:$0xff]   ;;  %v7710_v36 = vld [vmem:[#allocation10 + $0x208] ss:$16 sps:$4 sm:$0xff]  }
 0x34f   :  { %v3995_v34 = vpop.f32.mrf.mxu1  ;;  %v3956_v60 = vpop.f32.mrf.mxu0  ;;  %v7713_v57 = vld [vmem:[#allocation10 + $0x588] ss:$16 sps:$4 sm:$0xff]   ;;  %v7718_v58 = vld [vmem:[#allocation10 + $0x3ec] ss:$16 sps:$4 sm:$0xff]  }
 0x350   :  { %vm4006_vm6 = vcmp.gt.f32.partialorder %v3994_v2, 0.0  ;;  %v4014_v50 = vmul.f32 0.2, %v3994_v2  ;;  %v3996_v15 = vadd.f32 %v3995_v34, %v3955_v4  ;;  %5894 = vmatpush1.bf16.msra.mxu0 %v7653_v59  ;;  %v7721_v59 = vld [vmem:[#allocation10 + $0x56c] ss:$16 sps:$4 sm:$0xff]  }
 0x351   :  { %v3997_v8 = vpop.f32.mrf.mxu1  ;;  %v3957_v38 = vpop.f32.mrf.mxu0  ;;  %5895 = vmatprep.subr.bf16.mxu0 %v7661_v11  ;;  %v7719_v63 = vld [vmem:[#allocation10 + $0x568] ss:$16 sps:$4 sm:$0xff]   ;;  %v7724_v11 = vld [vmem:[#allocation10 + $0x3cc] ss:$16 sps:$4 sm:$0xff]  }
 0x352   :  { %v4022_v26 = vsel %vm4006_vm6, %v3994_v2, %v4014_v50  ;;  %vm4007_vm7 = vcmp.gt.f32.partialorder %v3996_v15, 0.0  ;;  %v4015_v10 = vmul.f32 0.2, %v3996_v15  ;;  %v7727_v2 = vld [vmem:[#allocation10 + $0x54c] ss:$16 sps:$4 sm:$0xff]  }
 0x353   :  { %v3998_v44 = vpop.f32.mrf.mxu1  ;;  %v4077_v1 = vmul.f32 %v4060_v47, %v4022_v26  ;;  %v7716_v47 = vld [vmem:[#allocation10 + $0x3e8] ss:$16 sps:$4 sm:$0xff]   ;;  %v7730_v60 = vld [vmem:[#allocation10 + $0x3ac] ss:$16 sps:$4 sm:$0xff]  }
 0x354   :  { %v4023_v13 = vsel %vm4007_vm7, %v3996_v15, %v4015_v10  ;;  %5896 = vmatpush1.bf16.msra.mxu0 %v7659_v3  ;;  %v7722_v4 = vld [vmem:[#allocation10 + $0x3c8] ss:$16 sps:$4 sm:$0xff]   ;;  %v7733_v50 = vld [vmem:[#allocation10 + $0x52c] ss:$16 sps:$4 sm:$0xff]   ;;  %v8479_v10 = vld [vmem:[#allocation11] sm:$0xf] }
 0x355   :  { %5897 = vmatprep.subr.bf16.mxu0 %v7667_v23  ;;  %v4078_v22 = vmul.f32 %v4062_v46, %v4023_v13  ;;  %v8474_v20 = vpack.c.bf16 %v4077_v1, %v4077_v1  ;;  %v7725_v34 = vld [vmem:[#allocation10 + $0x548] ss:$16 sps:$4 sm:$0xff]   ;;  %v7736_v3 = vld [vmem:[#allocation10 + $0x38c] ss:$16 sps:$4 sm:$0xff]   ;;  %v4348_v13 = vrot.slane %v8479_v10, %v8317_v37 }
 0x356   :  { %v7728_v15 = vld [vmem:[#allocation10 + $0x3a8] ss:$16 sps:$4 sm:$0xff]   ;;  %v7739_v38 = vld [vmem:[#allocation10 + $0x50c] ss:$16 sps:$4 sm:$0xff]  }
 0x357   :  { %v8472_v12 = vpack.c.bf16 %v4078_v22, %v4078_v22  ;;  %v7731_v8 = vld [vmem:[#allocation10 + $0x528] ss:$16 sps:$4 sm:$0xff]   ;;  %v7742_v26 = vld [vmem:[#allocation10 + $0x36c] ss:$16 sps:$4 sm:$0xff]  }
 0x358   :  { %5898 = vmatpush1.bf16.msra.mxu0 %v7665_v16  ;;  %v7734_v23 = vld [vmem:[#allocation10 + $0x388] ss:$16 sps:$4 sm:$0xff]   ;;  %v7802_v44 = vld [vmem:[#allocation14 + $0x74] ss:$8 sps:$4 sm:$0xff]  }
 0x359   :  { %5800 = vmatprep.mubr.bf16.mxu1 %v8472_v12  ;;  %5899 = vmatprep.subr.bf16.mxu0 %v7673_v19  ;;  %v7737_v46 = vld [vmem:[#allocation10 + $0x508] ss:$16 sps:$4 sm:$0xff]   ;;  %v7745_v16 = vld [vmem:[#allocation10 + $0x34c] ss:$16 sps:$4 sm:$0xff]  }
 0x35a   :  { %5801 = vmatmul.mubr.bf16.vlgmr.msra.gmra.mxu1 %v8474_v20  ;;  %v7740_v1 = vld [vmem:[#allocation10 + $0x368] ss:$16 sps:$4 sm:$0xff]   ;;  %v7805_v19 = vld [vmem:[#allocation14 + $0x64] ss:$8 sps:$4 sm:$0xff]  }
 0x35b   :  { %5851 = vmatpush1.bf16.msra.mxu1 %v7668_v5  ;;  %5882 = vmatprep.mubr.bf16.mxu1 %v8404_v49  ;;  %v7689_v49 = vld [vmem:[#allocation10 + $0x408] ss:$16 sps:$4 sm:$0xff]   ;;  %v4352_v5 = vrot.slane %v8479_v10, %v8322_v43 }
 0x35c   :  { %5900 = vmatpush1.bf16.msra.mxu0 %v7671_v21  ;;  %5852 = vmatprep.subr.bf16.mxu1 %v7676_v24  ;;  %v7800_v22 = vld [vmem:[#allocation14 + $0x70] ss:$8 sps:$4 sm:$0xff]  }
 0x35d   :  { %5901 = vmatprep.subr.bf16.mxu0 %v7679_v48  ;;  %v7743_v24 = vld [vmem:[#allocation10 + $0x348] ss:$16 sps:$4 sm:$0xff]  }
 0x35f   :  { %5853 = vmatpush1.bf16.msra.mxu1 %v7674_v61 }
 0x360   :  { %5902 = vmatpush1.bf16.msra.mxu0 %v7677_v25  ;;  %5854 = vmatprep.subr.bf16.mxu1 %v7682_v27  ;;  %v7748_v25 = vld [vmem:[#allocation10 + $0x32c] ss:$16 sps:$4 sm:$0xff]   ;;  %v7803_v27 = vld [vmem:[#allocation14 + $0x60] ss:$8 sps:$4 sm:$0xff]  }
 0x361   :  { %5903 = vmatprep.subr.bf16.mxu0 %v7685_v28 }
 0x363   :  { %5855 = vmatpush1.bf16.msra.mxu1 %v7680_v17  ;;  %v7808_v17 = vld [vmem:[#allocation14 + $0x54] ss:$8 sps:$4 sm:$0xff]  }
 0x364   :  { %5904 = vmatpush1.bf16.msra.mxu0 %v7683_v29  ;;  %5856 = vmatprep.subr.bf16.mxu1 %v7688_v31 }
 0x365   :  { %5905 = vmatprep.subr.bf16.mxu0 %v7691_v32 }
 0x367   :  { %5857 = vmatpush1.bf16.msra.mxu1 %v7686_v33 }
 0x368   :  { %5906 = vmatpush1.bf16.msra.mxu0 %v7689_v49  ;;  %5858 = vmatprep.subr.bf16.mxu1 %v7694_v7  ;;  %v7746_v49 = vld [vmem:[#allocation10 + $0x328] ss:$16 sps:$4 sm:$0xff]  }
 0x369   :  { %5907 = vmatprep.subr.bf16.mxu0 %v7697_v9  ;;  %v7751_v9 = vld [vmem:[#allocation10 + $0x30c] ss:$16 sps:$4 sm:$0xff]  }
 0x36b   :  { %5859 = vmatpush1.bf16.msra.mxu1 %v7692_v56  ;;  %v7806_v56 = vld [vmem:[#allocation14 + $0x50] ss:$8 sps:$4 sm:$0xff]  }
 0x36c   :  { %5908 = vmatpush2.bf16.msra.mxu0 %v7695_v52  ;;  %5860 = vmatprep.subr.bf16.mxu1 %v7700_v39  ;;  %v7811_v39 = vld [vmem:[#allocation14 + $0x44] ss:$8 sps:$4 sm:$0xff]  }
 0x36d   :  { %5909 = vmatprep.subr.bf16.mxu0 %v7703_v41 }
 0x36f   :  { %5861 = vmatpush1.bf16.msra.mxu1 %v7698_v40  ;;  %v7749_v40 = vld [vmem:[#allocation10 + $0x308] ss:$16 sps:$4 sm:$0xff]  }
 0x370   :  { %5910 = vmatpush2.bf16.msra.mxu0 %v7701_v18  ;;  %5862 = vmatprep.subr.bf16.mxu1 %v7706_v42  ;;  %v7754_v18 = vld [vmem:[#allocation10 + $0x6ec] ss:$16 sps:$4 sm:$0xff]   ;;  %v7809_v42 = vld [vmem:[#allocation14 + $0x40] ss:$8 sps:$4 sm:$0xff]  }
 0x371   :  { %5911 = vmatprep.subr.bf16.mxu0 %v7709_v0  ;;  %v7814_v0 = vld [vmem:[#allocation14 + $0x34] ss:$8 sps:$4 sm:$0xff]  }
 0x373   :  { %5863 = vmatpush1.bf16.msra.mxu1 %v7704_v6  ;;  %v7752_v6 = vld [vmem:[#allocation10 + $0x6e8] ss:$16 sps:$4 sm:$0xff]  }
 0x374   :  { %5912 = vmatpush2.bf16.msra.mxu0 %v7707_v51  ;;  %5864 = vmatprep.subr.bf16.mxu1 %v7712_v53  ;;  %v7757_v51 = vld [vmem:[#allocation10 + $0x6cc] ss:$16 sps:$4 sm:$0xff]   ;;  %v7812_v53 = vld [vmem:[#allocation14 + $0x30] ss:$8 sps:$4 sm:$0xff]  }
 0x375   :  { %5913 = vmatprep.subr.bf16.mxu0 %v7715_v55  ;;  %v7817_v55 = vld [vmem:[#allocation14 + $0x24] ss:$8 sps:$4 sm:$0xff]  }
 0x377   :  { %5865 = vmatpush1.bf16.msra.mxu1 %v7710_v36  ;;  %v7755_v36 = vld [vmem:[#allocation10 + $0x6c8] ss:$16 sps:$4 sm:$0xff]  }
 0x378   :  { %5914 = vmatpush2.bf16.msra.mxu0 %v7713_v57  ;;  %5866 = vmatprep.subr.bf16.mxu1 %v7718_v58  ;;  %v7760_v57 = vld [vmem:[#allocation10 + $0x6ac] ss:$16 sps:$4 sm:$0xff]   ;;  %v7815_v58 = vld [vmem:[#allocation14 + $0x20] ss:$8 sps:$4 sm:$0xff]  }
 0x379   :  { %5915 = vmatprep.subr.bf16.mxu0 %v7721_v59  ;;  %v7820_v59 = vld [vmem:[#allocation14 + $0x14] ss:$8 sps:$4 sm:$0xff]  }
 0x37b   :  { %5867 = vmatpush2.bf16.msra.mxu1 %v7716_v47  ;;  %v7758_v47 = vld [vmem:[#allocation10 + $0x6a8] ss:$16 sps:$4 sm:$0xff]  }
 0x37c   :  { %5916 = vmatpush2.bf16.msra.mxu0 %v7719_v63  ;;  %5868 = vmatprep.subr.bf16.mxu1 %v7724_v11  ;;  %v7763_v63 = vld [vmem:[#allocation10 + $0x68c] ss:$16 sps:$4 sm:$0xff]   ;;  %v7818_v11 = vld [vmem:[#allocation14 + $0x10] ss:$8 sps:$4 sm:$0xff]  }
 0x37d   :  { %5917 = vmatprep.subr.bf16.mxu0 %v7727_v2  ;;  %v7823_v2 = vld [vmem:[#allocation14 + $0x4] ss:$8 sps:$4 sm:$0xff]  }
 0x37f   :  { %5869 = vmatpush2.bf16.msra.mxu1 %v7722_v4  ;;  %v7766_v4 = vld [vmem:[#allocation10 + $0x66c] ss:$16 sps:$4 sm:$0xff]  }
 0x380   :  { %5918 = vmatpush2.bf16.msra.mxu0 %v7725_v34  ;;  %5870 = vmatprep.subr.bf16.mxu1 %v7730_v60  ;;  %v7826_v34 = vld [vmem:[#allocation14 + $0xf4] ss:$8 sps:$4 sm:$0xff]   ;;  %v7764_v60 = vld [vmem:[#allocation10 + $0x668] ss:$16 sps:$4 sm:$0xff]  }
 0x381   :  { %5919 = vmatprep.subr.bf16.mxu0 %v7733_v50  ;;  %v7769_v50 = vld [vmem:[#allocation10 + $0x64c] ss:$16 sps:$4 sm:$0xff]  }
 0x383   :  { %5871 = vmatpush2.bf16.msra.mxu1 %v7728_v15  ;;  %v7824_v15 = vld [vmem:[#allocation14 + $0xf0] ss:$8 sps:$4 sm:$0xff]  }
 0x384   :  { %5920 = vmatpush2.bf16.msra.mxu0 %v7731_v8  ;;  %5872 = vmatprep.subr.bf16.mxu1 %v7736_v3  ;;  %v7829_v8 = vld [vmem:[#allocation14 + $0xe4] ss:$8 sps:$4 sm:$0xff]   ;;  %v7767_v3 = vld [vmem:[#allocation10 + $0x648] ss:$16 sps:$4 sm:$0xff]  }
 0x385   :  { %5921 = vmatprep.subr.bf16.mxu0 %v7739_v38  ;;  %v7772_v38 = vld [vmem:[#allocation10 + $0x62c] ss:$16 sps:$4 sm:$0xff]  }
 0x387   :  { %5873 = vmatpush2.bf16.msra.mxu1 %v7734_v23  ;;  %v7827_v23 = vld [vmem:[#allocation14 + $0xe0] ss:$8 sps:$4 sm:$0xff]  }
 0x388   :  { %5922 = vmatpush2.bf16.msra.mxu0 %v7737_v46  ;;  %5874 = vmatprep.subr.bf16.mxu1 %v7742_v26  ;;  %v7832_v46 = vld [vmem:[#allocation14 + $0xd4] ss:$8 sps:$4 sm:$0xff]   ;;  %v7770_v26 = vld [vmem:[#allocation10 + $0x628] ss:$16 sps:$4 sm:$0xff]  }
 0x389   :  { %6413 = vmatprep.subr.bf16.mxu0 %v7802_v44  ;;  %v7775_v44 = vld [vmem:[#allocation10 + $0x60c] ss:$16 sps:$4 sm:$0xff]  }
 0x38b   :  { %5875 = vmatpush2.bf16.msra.mxu1 %v7740_v1  ;;  %v5679_v21 = vpop.f32.mrf.mxu0  ;;  %5924 = vmatmul.mubr.bf16.vlgmr.msra.gmra.mxu0 %v8447_v62  ;;  %v7830_v1 = vld [vmem:[#allocation14 + $0xd0] ss:$8 sps:$4 sm:$0xff]  }
 0x38c   :  { %v5680_v48 = vadd.f32 %v5679_v21, %v4348_v13  ;;  %5876 = vmatprep.subr.bf16.mxu1 %v7745_v16  ;;  %6414 = vmatpush1.bf16.msra.mxu0 %v7800_v22  ;;  %v7835_v13 = vld [vmem:[#allocation14 + $0xc4] ss:$8 sps:$4 sm:$0xff]   ;;  %v7773_v16 = vld [vmem:[#allocation10 + $0x608] ss:$16 sps:$4 sm:$0xff]  }
 0x38d   :  { %v5720_v61 = vpop.f32.mrf.mxu1  ;;  %v5681_v28 = vpop.f32.mrf.mxu0  ;;  %6415 = vmatprep.subr.bf16.mxu0 %v7805_v19  ;;  %v7778_v22 = vld [vmem:[#allocation10 + $0x7ec] ss:$16 sps:$4 sm:$0xff]   ;;  %v7833_v19 = vld [vmem:[#allocation14 + $0xc0] ss:$8 sps:$4 sm:$0xff]  }
 0x38e   :  { %v8486_v29 = vadd.f32 %v5720_v61, %v5680_v48  ;;  %v5682_v31 = vadd.f32 %v5681_v28, %v4352_v5  ;;  %v7838_v5 = vld [vmem:[#allocation14 + $0xb4] ss:$8 sps:$4 sm:$0xff]   ;;  %v7776_v21 = vld [vmem:[#allocation10 + $0x7e8] ss:$16 sps:$4 sm:$0xff]   ;;  %v7841_v61 = vld [vmem:[#allocation14 + $0xa4] ss:$8 sps:$4 sm:$0xff]  }
 0x38f   :  { %v5722_v32 = vpop.f32.mrf.mxu1  ;;  %5877 = vmatpush2.bf16.msra.mxu1 %v7743_v24  ;;  %v5683_v33 = vpop.f32.mrf.mxu0  ;;  %v7781_v24 = vld [vmem:[#allocation10 + $0x7cc] ss:$16 sps:$4 sm:$0xff]   ;;  %v7836_v48 = vld [vmem:[#allocation14 + $0xb0] ss:$8 sps:$4 sm:$0xff]   ;;  %v7839_v28 = vld [vmem:[#allocation14 + $0xa0] ss:$8 sps:$4 sm:$0xff]  }
 0x390   :  { %v8488_v7 = vadd.f32 %v5722_v32, %v5682_v31  ;;  %5878 = vmatprep.subr.bf16.mxu1 %v7748_v25  ;;  %6416 = vmatpush1.bf16.msra.mxu0 %v7803_v27  ;;  %v7779_v25 = vld [vmem:[#allocation10 + $0x7c8] ss:$16 sps:$4 sm:$0xff]   ;;  %v7784_v27 = vld [vmem:[#allocation10 + $0x7ac] ss:$16 sps:$4 sm:$0xff]  }
 0x391   :  { %v5724_v62 = vpop.f32.mrf.mxu1  ;;  %v5684_v52 = vpop.f32.mrf.mxu0  ;;  %6417 = vmatprep.subr.bf16.mxu0 %v7808_v17  ;;  %v7844_v17 = vld [vmem:[#allocation14 + $0x94] ss:$8 sps:$4 sm:$0xff]   ;;  %v7782_v31 = vld [vmem:[#allocation10 + $0x7a8] ss:$16 sps:$4 sm:$0xff]  }
 0x392   :  { %v7787_v32 = vld [vmem:[#allocation10 + $0x78c] ss:$16 sps:$4 sm:$0xff]   ;;  %v7842_v33 = vld [vmem:[#allocation14 + $0x90] ss:$8 sps:$4 sm:$0xff]  }
 0x393   :  { %v5725_v41 = vpop.f32.mrf.mxu1  ;;  %5879 = vmatpush2.bf16.msra.mxu1 %v7746_v49  ;;  %v7847_v49 = vld [vmem:[#allocation14 + $0x84] ss:$8 sps:$4 sm:$0xff]   ;;  %v7785_v62 = vld [vmem:[#allocation10 + $0x788] ss:$16 sps:$4 sm:$0xff]  }
 0x394   :  { %5880 = vmatprep.subr.bf16.mxu1 %v7751_v9  ;;  %6418 = vmatpush1.bf16.msra.mxu0 %v7806_v56  ;;  %v7790_v9 = vld [vmem:[#allocation10 + $0x76c] ss:$16 sps:$4 sm:$0xff]   ;;  %v7845_v56 = vld [vmem:[#allocation14 + $0x80] ss:$8 sps:$4 sm:$0xff]  }
 0x395   :  { %6419 = vmatprep.subr.bf16.mxu0 %v7811_v39  ;;  %v7788_v52 = vld [vmem:[#allocation10 + $0x768] ss:$16 sps:$4 sm:$0xff]   ;;  %v7793_v39 = vld [vmem:[#allocation10 + $0x74c] ss:$16 sps:$4 sm:$0xff]  }
 0x397   :  { %5881 = vmatpush2.bf16.msra.mxu1 %v7749_v40  ;;  %v7791_v40 = vld [vmem:[#allocation10 + $0x748] ss:$16 sps:$4 sm:$0xff]  }
 0x398   :  { %5932 = vmatprep.subr.bf16.mxu1 %v7754_v18  ;;  %6420 = vmatpush1.bf16.msra.mxu0 %v7809_v42  ;;  %v7796_v42 = vld [vmem:[#allocation10 + $0x72c] ss:$16 sps:$4 sm:$0xff]  }
 0x399   :  { %6421 = vmatprep.subr.bf16.mxu0 %v7814_v0 }
 0x39a   :  { %5883 = vmatmul.mubr.bf16.vlgmr.msra.gmra.mxu1 %v8425_v14  ;;  %v7761_v14 = vld [vmem:[#allocation10 + $0x688] ss:$16 sps:$4 sm:$0xff]  }
 0x39b   :  { %5933 = vmatpush1.bf16.msra.mxu1 %v7752_v6  ;;  %5964 = vmatprep.mubr.bf16.mxu1 %v8472_v12  ;;  %v7821_v12 = vld [vmem:[#allocation14] ss:$8 sps:$4 sm:$0xff]  }
 0x39c   :  { %5934 = vmatprep.subr.bf16.mxu1 %v7757_v51  ;;  %6422 = vmatpush1.bf16.msra.mxu0 %v7812_v53  ;;  %v7794_v53 = vld [vmem:[#allocation10 + $0x728] ss:$16 sps:$4 sm:$0xff]  }
 0x39d   :  { %6423 = vmatprep.subr.bf16.mxu0 %v7817_v55  ;;  %v7799_v55 = vld [vmem:[#allocation10 + $0x70c] ss:$16 sps:$4 sm:$0xff]  }
 0x39f   :  { %5935 = vmatpush1.bf16.msra.mxu1 %v7755_v36 }
 0x3a0   :  { %5936 = vmatprep.subr.bf16.mxu1 %v7760_v57  ;;  %6424 = vmatpush1.bf16.msra.mxu0 %v7815_v58  ;;  %v7797_v57 = vld [vmem:[#allocation10 + $0x708] ss:$16 sps:$4 sm:$0xff]   ;;  %v7850_v58 = vld [vmem:[#allocation14 + $0x174] ss:$8 sps:$4 sm:$0xff]  }
 0x3a1   :  { %6425 = vmatprep.subr.bf16.mxu0 %v7820_v59  ;;  %v7853_v59 = vld [vmem:[#allocation14 + $0x164] ss:$8 sps:$4 sm:$0xff]  }
 0x3a3   :  { %5937 = vmatpush1.bf16.msra.mxu1 %v7758_v47  ;;  %v7851_v47 = vld [vmem:[#allocation14 + $0x160] ss:$8 sps:$4 sm:$0xff]  }
 0x3a4   :  { %5938 = vmatprep.subr.bf16.mxu1 %v7763_v63  ;;  %6426 = vmatpush1.bf16.msra.mxu0 %v7818_v11  ;;  %v7854_v63 = vld [vmem:[#allocation14 + $0x150] ss:$8 sps:$4 sm:$0xff]   ;;  %v7859_v11 = vld [vmem:[#allocation14 + $0x144] ss:$8 sps:$4 sm:$0xff]  }
 0x3a5   :  { %6427 = vmatprep.subr.bf16.mxu0 %v7823_v2  ;;  %v7857_v2 = vld [vmem:[#allocation14 + $0x140] ss:$8 sps:$4 sm:$0xff]  }
 0x3a7   :  { %5939 = vmatpush1.bf16.msra.mxu1 %v7761_v14  ;;  %v7862_v14 = vld [vmem:[#allocation14 + $0x134] ss:$8 sps:$4 sm:$0xff]  }
 0x3a8   :  { %5940 = vmatprep.subr.bf16.mxu1 %v7766_v4  ;;  %6428 = vmatpush1.bf16.msra.mxu0 %v7821_v12  ;;  %v7860_v4 = vld [vmem:[#allocation14 + $0x130] ss:$8 sps:$4 sm:$0xff]   ;;  %v7863_v12 = vld [vmem:[#allocation14 + $0x120] ss:$8 sps:$4 sm:$0xff]  }
 0x3a9   :  { %6429 = vmatprep.subr.bf16.mxu0 %v7826_v34  ;;  %v7868_v34 = vld [vmem:[#allocation14 + $0x114] ss:$8 sps:$4 sm:$0xff]  }
 0x3ab   :  { %5941 = vmatpush1.bf16.msra.mxu1 %v7764_v60  ;;  %v7866_v60 = vld [vmem:[#allocation14 + $0x110] ss:$8 sps:$4 sm:$0xff]  }
 0x3ac   :  { %5942 = vmatprep.subr.bf16.mxu1 %v7769_v50  ;;  %6430 = vmatpush2.bf16.msra.mxu0 %v7824_v15  ;;  %v7871_v50 = vld [vmem:[#allocation14 + $0x104] ss:$8 sps:$4 sm:$0xff]   ;;  %v7869_v15 = vld [vmem:[#allocation14 + $0x100] ss:$8 sps:$4 sm:$0xff]  }
 0x3ad   :  { %6431 = vmatprep.subr.bf16.mxu0 %v7829_v8  ;;  %v7874_v8 = vld [vmem:[#allocation14 + $0x1f4] ss:$8 sps:$4 sm:$0xff]  }
 0x3af   :  { %5943 = vmatpush1.bf16.msra.mxu1 %v7767_v3  ;;  %v7872_v3 = vld [vmem:[#allocation14 + $0x1f0] ss:$8 sps:$4 sm:$0xff]  }
 0x3b0   :  { %5944 = vmatprep.subr.bf16.mxu1 %v7772_v38  ;;  %6432 = vmatpush2.bf16.msra.mxu0 %v7827_v23  ;;  %v7877_v38 = vld [vmem:[#allocation14 + $0x1e4] ss:$8 sps:$4 sm:$0xff]   ;;  %v7875_v23 = vld [vmem:[#allocation14 + $0x1e0] ss:$8 sps:$4 sm:$0xff]  }
 0x3b1   :  { %6433 = vmatprep.subr.bf16.mxu0 %v7832_v46  ;;  %v7880_v46 = vld [vmem:[#allocation14 + $0x1d4] ss:$8 sps:$4 sm:$0xff]  }
 0x3b3   :  { %5945 = vmatpush1.bf16.msra.mxu1 %v7770_v26  ;;  %v7878_v26 = vld [vmem:[#allocation14 + $0x1d0] ss:$8 sps:$4 sm:$0xff]  }
 0x3b4   :  { %5946 = vmatprep.subr.bf16.mxu1 %v7775_v44  ;;  %6434 = vmatpush2.bf16.msra.mxu0 %v7830_v1  ;;  %v7883_v44 = vld [vmem:[#allocation14 + $0x1c4] ss:$8 sps:$4 sm:$0xff]  }
 0x3b5   :  { %6435 = vmatprep.subr.bf16.mxu0 %v7835_v13  ;;  %v7881_v13 = vld [vmem:[#allocation14 + $0x1c0] ss:$8 sps:$4 sm:$0xff]  }
 0x3b7   :  { %5947 = vmatpush1.bf16.msra.mxu1 %v7773_v16  ;;  %v7886_v16 = vld [vmem:[#allocation14 + $0x1b4] ss:$8 sps:$4 sm:$0xff]  }
 0x3b8   :  { %5948 = vmatprep.subr.bf16.mxu1 %v7778_v22  ;;  %6436 = vmatpush2.bf16.msra.mxu0 %v7833_v19 }
 0x3b9   :  { %6437 = vmatprep.subr.bf16.mxu0 %v7838_v5  ;;  %v7884_v5 = vld [vmem:[#allocation14 + $0x1b0] ss:$8 sps:$4 sm:$0xff]  }
 0x3bb   :  { %5949 = vmatpush2.bf16.msra.mxu1 %v7776_v21 }
 0x3bc   :  { %5950 = vmatprep.subr.bf16.mxu1 %v7781_v24  ;;  %6438 = vmatpush2.bf16.msra.mxu0 %v7836_v48  ;;  %v5985_v24 = vld [vmem:[#allocation13] sm:$0xf] }
 0x3bd   :  { %6439 = vmatprep.subr.bf16.mxu0 %v7841_v61  ;;  %v5986_v48 = vunpack.c.l.bf16 %v5985_v24  ;;  %v6081_v24 = vld [vmem:[#allocation16] sm:$0x3] }
 0x3bf   :  { %5951 = vmatpush2.bf16.msra.mxu1 %v7779_v25  ;;  %v5995_v25 = vrot.slane %v5986_v48, %v8256_v54 }
 0x3c0   :  { %5952 = vmatprep.subr.bf16.mxu1 %v7784_v27  ;;  %6440 = vmatpush2.bf16.msra.mxu0 %v7839_v28  ;;  %v7889_v27 = vld [vmem:[#allocation14 + $0x1a4] ss:$8 sps:$4 sm:$0xff]  }
 0x3c1   :  { %6441 = vmatprep.subr.bf16.mxu0 %v7844_v17  ;;  %v7887_v17 = vld [vmem:[#allocation14 + $0x1a0] ss:$8 sps:$4 sm:$0xff]  }
 0x3c3   :  { %5953 = vmatpush2.bf16.msra.mxu1 %v7782_v31 }
 0x3c4   :  { %5954 = vmatprep.subr.bf16.mxu1 %v7787_v32  ;;  %6442 = vmatpush2.bf16.msra.mxu0 %v7842_v33 }
 0x3c5   :  { %6443 = vmatprep.subr.bf16.mxu0 %v7847_v49 }
 0x3c7   :  { %5955 = vmatpush2.bf16.msra.mxu1 %v7785_v62  ;;  %v6003_v62 = vcombine.high %v5995_v25, %v5995_v25 }
 0x3c8   :  { %5956 = vmatprep.subr.bf16.mxu1 %v7790_v9  ;;  %6444 = vmatpush2.bf16.msra.mxu0 %v7845_v56  ;;  %v7892_v9 = vld [vmem:[#allocation14 + $0x194] ss:$8 sps:$4 sm:$0xff]  }
 0x3cb   :  { %5957 = vmatpush2.bf16.msra.mxu1 %v7788_v52  ;;  %v5761_v41 = vpop.f32.mrf.mxu0 }
 0x3cc   :  { %v8493_v18 = vadd.f32 %v5761_v41, %v8486_v29  ;;  %5958 = vmatprep.subr.bf16.mxu1 %v7793_v39  ;;  %v7848_v29 = vld [vmem:[#allocation14 + $0x170] ss:$8 sps:$4 sm:$0xff]  }
 0x3cd   :  { %v5763_v0 = vpop.f32.mrf.mxu0  ;;  %v7890_v39 = vld [vmem:[#allocation14 + $0x190] ss:$8 sps:$4 sm:$0xff]  }
 0x3ce   :  { %v8496_v6 = vadd.f32 %v5763_v0, %v8488_v7  ;;  %v7856_v7 = vld [vmem:[#allocation14 + $0x154] ss:$8 sps:$4 sm:$0xff]   ;;  %v7893_v0 = vld [vmem:[#allocation14 + $0x180] ss:$8 sps:$4 sm:$0xff]  }
 0x3cf   :  { %5959 = vmatpush2.bf16.msra.mxu1 %v7791_v40  ;;  %v5765_v51 = vpop.f32.mrf.mxu0 }
 0x3d0   :  { %5960 = vmatprep.subr.bf16.mxu1 %v7796_v42  ;;  %v7895_v51 = vld [vmem:[#allocation14 + $0x184] ss:$8 sps:$4 sm:$0xff]  }
 0x3d1   :  { %v5766_v36 = vpop.f32.mrf.mxu0 }
 0x3d3   :  { %5961 = vmatpush2.bf16.msra.mxu1 %v7794_v53 }
 0x3d4   :  { %5962 = vmatprep.subr.bf16.mxu1 %v7799_v55 }
 0x3d7   :  { %5963 = vmatpush2.bf16.msra.mxu1 %v7797_v57 }
 0x3d8   :  { %6454 = vmatprep.subr.bf16.mxu1 %v7850_v58  ;;  %v4356_v58 = vrot.slane %v8479_v10, %v754_v30 }
 0x3da   :  { %5965 = vmatmul.mubr.bf16.vlgmr.msra.gmra.mxu1 %v8474_v20  ;;  %v7865_v20 = vld [vmem:[#allocation14 + $0x124] ss:$8 sps:$4 sm:$0xff]  }
 0x3db   :  { %6455 = vmatpush1.bf16.msra.mxu1 %v7848_v29 }
 0x3dc   :  { %6456 = vmatprep.subr.bf16.mxu1 %v7853_v59  ;;  %v4360_v59 = vrot.slane %v8479_v10, %v758_v35 }
 0x3df   :  { %6457 = vmatpush1.bf16.msra.mxu1 %v7851_v47 }
 0x3e0   :  { %6458 = vmatprep.subr.bf16.mxu1 %v7856_v7 }
 0x3e3   :  { %6459 = vmatpush1.bf16.msra.mxu1 %v7854_v63 }
 0x3e4   :  { %6460 = vmatprep.subr.bf16.mxu1 %v7859_v11 }
 0x3e7   :  { %6461 = vmatpush1.bf16.msra.mxu1 %v7857_v2 }
 0x3e8   :  { %6462 = vmatprep.subr.bf16.mxu1 %v7862_v14 }
 0x3eb   :  { %6463 = vmatpush1.bf16.msra.mxu1 %v7860_v4 }
 0x3ec   :  { %6464 = vmatprep.subr.bf16.mxu1 %v7865_v20 }
 0x3ef   :  { %6465 = vmatpush1.bf16.msra.mxu1 %v7863_v12 }
 0x3f0   :  { %6466 = vmatprep.subr.bf16.mxu1 %v7868_v34 }
 0x3f3   :  { %6467 = vmatpush1.bf16.msra.mxu1 %v7866_v60  ;;  %v5988_v60 = vcombine.high %v5986_v48, %v5986_v48  ;;  %v6501_v48 = vld [vmem:[#allocation17] sm:$0x3] }
 0x3f4   :  { %6468 = vmatprep.subr.bf16.mxu1 %v7871_v50 }
 0x3f7   :  { %6469 = vmatpush1.bf16.msra.mxu1 %v7869_v15  ;;  %v6002_v15 = vrot.slane %v5988_v60, %v8256_v54 }
 0x3f8   :  { %6470 = vmatprep.subr.bf16.mxu1 %v7874_v8 }
 0x3f9   :  { %v6004_v10 = vcombine.high %v6002_v15, %v6002_v15 }
 0x3fb   :  { %6471 = vmatpush2.bf16.msra.mxu1 %v7872_v3 }
 0x3fc   :  { %6472 = vmatprep.subr.bf16.mxu1 %v7877_v38 }
 0x3ff   :  { %6473 = vmatpush2.bf16.msra.mxu1 %v7875_v23 }
 0x400   :  { %6474 = vmatprep.subr.bf16.mxu1 %v7880_v46 }
 0x403   :  { %6475 = vmatpush2.bf16.msra.mxu1 %v7878_v26 }
 0x404   :  { %6476 = vmatprep.subr.bf16.mxu1 %v7883_v44 }
 0x407   :  { %6477 = vmatpush2.bf16.msra.mxu1 %v7881_v13 }
 0x408   :  { %6478 = vmatprep.subr.bf16.mxu1 %v7886_v16 }
 0x40b   :  { %v5843_v1 = vpop.f32.mrf.mxu0  ;;  %6479 = vmatpush2.bf16.msra.mxu1 %v7884_v5 }
 0x40c   :  { %6480 = vmatprep.subr.bf16.mxu1 %v7889_v27  ;;  %v5844_v47 = vadd.f32 %v5843_v1, %v4356_v58  ;;  %v6090_v27 = vrot.slane %v6081_v24, %v8322_v43  ;;  %v7394_v58 = vld [vmem:[#allocation2] ss:$0 sm:$0xff] }
 0x40d   :  { %v5845_v22 = vpop.f32.mrf.mxu0 }
 0x40e   :  { %v5846_v63 = vadd.f32 %v5845_v22, %v4360_v59 }
 0x40f   :  { %v5847_v19 = vpop.f32.mrf.mxu0  ;;  %6481 = vmatpush2.bf16.msra.mxu1 %v7887_v17 }
 0x410   :  { %6482 = vmatprep.subr.bf16.mxu1 %v7892_v9 }
 0x411   :  { %v5848_v21 = vpop.f32.mrf.mxu0 }
 0x413   :  { %6483 = vmatpush2.bf16.msra.mxu1 %v7890_v39 }
 0x414   :  { %6484 = vmatprep.subr.bf16.mxu1 %v7895_v51 }
 0x417   :  { %6485 = vmatpush2.bf16.msra.mxu1 %v7893_v0 }
 0x41a   :  { %v5802_v61 = vpop.f32.mrf.mxu1 }
 0x41b   :  { %v5803_v28 = vadd.f32 %v5802_v61, %v8493_v18  ;;  %v6086_v61 = vrot.slane %v6081_v24, %v8317_v37 }
 0x41c   :  { %v5804_v31 = vpop.f32.mrf.mxu1 }
 0x41d   :  { %vm5973_vm8 = vcmp.gt.f32.partialorder %v5803_v28, 0.0  ;;  %v5977_v32 = vmul.f32 0.2, %v5803_v28  ;;  %v5805_v33 = vadd.f32 %v5804_v31, %v8496_v6 }
 0x41e   :  { %v5806_v49 = vpop.f32.mrf.mxu1 }
 0x41f   :  { %v5981_v56 = vsel %vm5973_vm8, %v5803_v28, %v5977_v32  ;;  %vm5974_vm9 = vcmp.gt.f32.partialorder %v5805_v33, 0.0  ;;  %v5978_v52 = vmul.f32 0.2, %v5805_v33  ;;  %v6516_v49 = vld [vmem:[#allocation19] sm:$0x3] }
 0x420   :  { %v5807_v41 = vpop.f32.mrf.mxu1  ;;  %v6009_v40 = vmul.f32 %v5995_v25, %v5981_v56  ;;  %v6502_v25 = vunpack.c.l.bf16 %v6501_v48  ;;  %v6525_v51 = vrot.slane %v6516_v49, %v8322_v43 }
 0x421   :  { %v5982_v42 = vsel %vm5974_vm9, %v5805_v33, %v5978_v52  ;;  %v6521_v41 = vrot.slane %v6516_v49, %v8317_v37 }
 0x422   :  { %v6010_v18 = vmul.f32 %v6003_v62, %v5982_v42  ;;  %v6013_v55 = vpack.c.bf16 %v6009_v40, %v6009_v40  ;;  %v6510_v31 = vrot.slane %v6502_v25, %v8256_v54 }
 0x424   :  { %v6014_v53 = vpack.c.bf16 %v6010_v18, %v6010_v18  ;;  %v6511_v39 = vcombine.high %v6510_v31, %v6510_v31 }
 0x426   :  { %6445 = vmatprep.mubr.bf16.mxu0 %v6014_v53 }
 0x427   :  { %6446 = vmatmul.mubr.bf16.vlgmr.msra.gmra.mxu0 %v6013_v55 }
 0x44b   :  { %v5925_v6 = vpop.f32.mrf.mxu0 }
 0x44d   :  { %v5927_v36 = vpop.f32.mrf.mxu0 }
 0x44f   :  { %v5929_v57 = vpop.f32.mrf.mxu0 }
 0x451   :  { %v5930_v29 = vpop.f32.mrf.mxu0 }
 0x45a   :  { %v5884_v7 = vpop.f32.mrf.mxu1 }
 0x45b   :  { %v5885_v11 = vadd.f32 %v5884_v7, %v5844_v47 }
 0x45c   :  { %v5886_v2 = vpop.f32.mrf.mxu1 }
 0x45d   :  { %v5887_v14 = vadd.f32 %v5886_v2, %v5846_v63  ;;  %v5926_v4 = vadd.f32 %v5925_v6, %v5885_v11 }
 0x45e   :  { %v5888_v20 = vpop.f32.mrf.mxu1 }
 0x45f   :  { %v5928_v12 = vadd.f32 %v5927_v36, %v5887_v14 }
 0x460   :  { %v5889_v34 = vpop.f32.mrf.mxu1 }
 0x49a   :  { %v5966_v50 = vpop.f32.mrf.mxu1 }
 0x49b   :  { %v5967_v8 = vadd.f32 %v5966_v50, %v5926_v4 }
 0x49c   :  { %v5968_v30 = vpop.f32.mrf.mxu1 }
 0x49d   :  { %vm5975_vm10 = vcmp.gt.f32.partialorder %v5967_v8, 0.0  ;;  %v5979_v45 = vmul.f32 0.2, %v5967_v8  ;;  %v5969_v3 = vadd.f32 %v5968_v30, %v5928_v12 }
 0x49e   :  { %v5970_v35 = vpop.f32.mrf.mxu1 }
 0x49f   :  { %v5983_v38 = vsel %vm5975_vm10, %v5967_v8, %v5979_v45  ;;  %vm5976_vm11 = vcmp.gt.f32.partialorder %v5969_v3, 0.0  ;;  %v5980_v23 = vmul.f32 0.2, %v5969_v3 }
 0x4a0   :  { %v5971_v46 = vpop.f32.mrf.mxu1  ;;  %v6011_v26 = vmul.f32 %v6002_v15, %v5983_v38 }
 0x4a1   :  { %v5984_v44 = vsel %vm5976_vm11, %v5969_v3, %v5980_v23 }
 0x4a2   :  { %v6012_v1 = vmul.f32 %v6004_v10, %v5984_v44  ;;  %v6015_v16 = vpack.c.bf16 %v6011_v26, %v6011_v26 }
 0x4a4   :  { %v6016_v13 = vpack.c.bf16 %v6012_v1, %v6012_v1 }
 0x4a6   :  { %6486 = vmatprep.mubr.bf16.mxu1 %v6016_v13 }
 0x4a7   :  { %6487 = vmatmul.mubr.bf16.vlgmr.msra.gmra.mxu1 %v6015_v16 }
 0x4e7   :  { %v6447_v22 = vpop.f32.mrf.mxu0 }
 0x4e8   :  { %v6448_v28 = vadd.f32 %v6447_v22, %v6086_v61 }
 0x4e9   :  { %v6449_v19 = vpop.f32.mrf.mxu0 }
 0x4ea   :  { %v6450_v32 = vadd.f32 %v6449_v19, %v6090_v27 }
 0x4eb   :  { %v6451_v5 = vpop.f32.mrf.mxu0 }
 0x4ed   :  { %v6452_v21 = vpop.f32.mrf.mxu0 }
 0x567   :  { %v6488_v17 = vpop.f32.mrf.mxu1 }
 0x568   :  { %v6489_v33 = vadd.f32 %v6488_v17, %v6448_v28 }
 0x569   :  { %v6490_v62 = vpop.f32.mrf.mxu1 }
 0x56a   :  { %vm6495_vm12 = vcmp.gt.f32.partialorder %v6489_v33, 0.0  ;;  %v6497_v9 = vmul.f32 0.2, %v6489_v33  ;;  %v6491_v56 = vadd.f32 %v6490_v62, %v6450_v32 }
 0x56b   :  { %v6492_v52 = vpop.f32.mrf.mxu1 }
 0x56c   :  { %v6499_v40 = vsel %vm6495_vm12, %v6489_v33, %v6497_v9  ;;  %vm6496_vm13 = vcmp.gt.f32.partialorder %v6491_v56, 0.0  ;;  %v6498_v42 = vmul.f32 0.2, %v6491_v56 }
 0x56d   :  { %v6493_v18 = vpop.f32.mrf.mxu1  ;;  %v6514_v0 = vmul.f32 %v6510_v31, %v6499_v40 }
 0x56e   :  { %v6500_v53 = vsel %vm6496_vm13, %v6491_v56, %v6498_v42 }
 0x56f   :  { %v6515_v54 = vmul.f32 %v6511_v39, %v6500_v53  ;;  %v6528_v55 = vmul.f32 %v6521_v41, %v6514_v0 }
 0x571   :  { %v6529_v6 = vmul.f32 %v6525_v51, %v6515_v54  ;;  %v6531_v36 = vsel %vm6530_vm14, %v6528_v55, 0.0 }
 0x573   :  { %v6532_v57 = vsel %vm6530_vm14, %v6529_v6, 0.0 }
 0x574   :  { %v6533_v29 = vadd.f32 %v6532_v57, %v6531_v36 }
 0x576   :  { %6534 = vadd.xlane.f32.xlu0 %v6533_v29 }
 0x5ff   :  { %v6535_v59 = vpop.xlane.xlu0 %6534 }
 0x600   :  { %v6543_v47 = vadd.f32 %v7394_v58, %v6535_v59 }
 0x602   :  { %v7395_v37 = vmul.f32 -1.442695, %v6543_v47 }
 0x604   :  { %7896 = vpow2.f32 %v7395_v37 }
 0x611   :  { %v7897_v7 = vpop.eup %7896 }
 0x612   :  { %v6547_v63 = vadd.f32 1.0, %v7897_v7 }
 0x614   :  { %7898 = vrcp.f32 %v6547_v63 }
 0x621   :  { %v7899_v11 = vpop.eup %7898 }
 0x622   :  { %6551 = vst.msk [vmem:[%s8529_s12] sm:$0x3] %vm6550_vm15, %v7899_v11 }
 0x623   :  { %6556 = vsyncpa [#allocation4], 1 }
 0x624   :  { %6557 = vsyncpa [#allocation6], 1 }
 0x625   :  { %6558 = vsyncpa [#allocation9], 1 }
 0x626   :  { %6559 = vsyncpa [#allocation12], 1 }
 0x627   :  { %6560 = vsyncpa [#allocation15], 1 }
 0x628   :  { %6561 = vsyncpa [#allocation18], 1 }

// kernel: tpu_custom_call.1
= control target key start
LH: loop header
LB: loop body
LE: loop exit
PB: predicated region body
PF: predicated region fallthrough
CT: control target
= control target key end

     0   :  { %s8517_s0 = inlined_call_operand.hbm [shape: f32[2,1024], index: 0, kind: input, shape index: {}]   ;;  %s8518_s1 = inlined_call_operand.hbm [shape: bf16[1024,1024], index: 1, kind: input, shape index: {}]   ;;  %s8519_s2 = inlined_call_operand.hbm [shape: f32[1,1024], index: 2, kind: input, shape index: {}]   ;;  %s8520_s3 = inlined_call_operand.hbm [shape: bf16[2,1024], index: 3, kind: input, shape index: {}]   ;;  %s8521_s4 = inlined_call_operand.hbm [shape: bf16[1024,512], index: 4, kind: input, shape index: {}]   ;;  %s8522_s5 = inlined_call_operand.hbm [shape: f32[1,512], index: 5, kind: input, shape index: {}]   ;;  %s8523_s6 = inlined_call_operand.hbm [shape: bf16[2,512], index: 6, kind: input, shape index: {}]   ;;  %s8524_s7 = inlined_call_operand.hbm [shape: bf16[512,256], index: 7, kind: input, shape index: {}]   ;;  %s8525_s8 = inlined_call_operand.hbm [shape: f32[1,256], index: 8, kind: input, shape index: {}]   ;;  %s8526_s9 = inlined_call_operand.hbm [shape: bf16[2,256], index: 9, kind: input, shape index: {}]   ;;  %s8527_s10 = inlined_call_operand.hbm [shape: f32[1,256], index: 10, kind: input, shape index: {}]   ;;  %s8528_s11 = inlined_call_operand.<no memory space> [shape: f32[1,1], index: 11, kind: input, shape index: {}]   ;;  %s8529_s12 = inlined_call_operand.vmem [shape: f32[2,1], index: 12, kind: output, shape index: {}]  }
   0x1   :  { %v17_v0 = vstv %s8528_s11 }
   0x2   :  { %18 = vst [vmem:[#allocation2] sm:$0x1] %v17_v0 }
   0x3   :  { %19 = vsyncpa [#allocation4], 0 }
   0x4   :  { %20 = vsyncpa [#allocation6], 0 }
   0x5   :  { %21 = vsyncpa [#allocation9], 0 }
   0x6   :  { %22 = vsyncpa [#allocation12], 0 }
   0x7   :  { %23 = vsyncpa [#allocation15], 0 }
   0x8   :  { %24 = vsyncpa [#allocation18], 0  ;;  %s8134_s23 = smov [#allocation5]  }
   0x9   :  { %s40_s24 = sshll.u32 %s8134_s23, 4  ;;  %s41_s24 = int_to_ptr.vmem [resolvable:$true] %s40_s24 }
   0xa   :  { %s7910_s25 = scalar_lea.vmem %s41_s24, 65536  ;;  %p7915_p1 = scmp.lt.s32.totalorder %s41_s24, %s41_s24 }
   0xb   :  { %p7911_p0 = scmp.ne.s32.totalorder %s41_s24, %s7910_s25  ;;  %p7916_p2 = scmp.lt.s32.totalorder %s7910_s25, %s7910_s25 }
   0xd   :  { %p7917_p3 = por %p7916_p2, %p7915_p1 }
   0xf   :  { %p7918_p4 = pnand %p7917_p3, %p7911_p0 }
  0x11   :  { %7921 = shalt.err (!%p7918_p4)
}
  0x12   :  { %s8135_s26 = smov 512   ;;  %s8136_s27 = smov 32  }
  0x13   :  { %46 = dma.hbm_to_vmem [thread:$0]  %s8518_s1, 65536, %s41_s24, [#allocation6], %s8135_s26, %s8135_s26, %s8136_s27  }
  0x14   :  { %s8137_s29 = smov [#allocation8]   ;;  %s8138_s13 = smov [#allocation11]  }
  0x15   :  { %s63_s30 = sshll.u32 %s8137_s29, 4  ;;  %s85_s14 = sshll.u32 %s8138_s13, 4  ;;  %s64_s30 = int_to_ptr.vmem [resolvable:$true] %s63_s30  ;;  %s86_s14 = int_to_ptr.vmem [resolvable:$true] %s85_s14 }
  0x16   :  { %s7930_s15 = scalar_lea.vmem %s64_s30, 128  ;;  %p7935_p6 = scmp.lt.s32.totalorder %s64_s30, %s64_s30 }
  0x17   :  { %p7931_p5 = scmp.ne.s32.totalorder %s64_s30, %s7930_s15  ;;  %p7936_p7 = scmp.lt.s32.totalorder %s7930_s15, %s7930_s15 }
  0x19   :  { %p7937_p8 = por %p7936_p7, %p7935_p6 }
  0x1b   :  { %p7938_p9 = pnand %p7937_p8, %p7931_p5 }
  0x1d   :  { %7941 = shalt.err (!%p7938_p9)
}
  0x1e   :  { %66 = dma.hbm_to_vmem [thread:$0]  %s8520_s3, 128, %s64_s30, [#allocation9]  }
  0x1f   :  { %s7950_s18 = scalar_lea.vmem %s86_s14, 64  ;;  %p7955_p11 = scmp.lt.s32.totalorder %s86_s14, %s86_s14 }
  0x20   :  { %p7951_p10 = scmp.ne.s32.totalorder %s86_s14, %s7950_s18  ;;  %p7956_p12 = scmp.lt.s32.totalorder %s7950_s18, %s7950_s18 }
  0x22   :  { %p7957_p13 = por %p7956_p12, %p7955_p11 }
  0x24   :  { %p7958_p0 = pnand %p7957_p13, %p7951_p10 }
  0x26   :  { %7961 = shalt.err (!%p7958_p0)
}
  0x27   :  { %88 = dma.hbm_to_vmem [thread:$0]  %s8522_s5, 64, %s86_s14, [#allocation12]  }
  0x28   :  { %s8139_s20 = smov [#allocation14]  }
  0x29   :  { %s104_s21 = sshll.u32 %s8139_s20, 4  ;;  %s105_s21 = int_to_ptr.vmem [resolvable:$true] %s104_s21 }
  0x2a   :  { %s7970_s22 = scalar_lea.vmem %s105_s21, 8192  ;;  %p7975_p2 = scmp.lt.s32.totalorder %s105_s21, %s105_s21 }
  0x2b   :  { %p7971_p1 = scmp.ne.s32.totalorder %s105_s21, %s7970_s22  ;;  %p7976_p3 = scmp.lt.s32.totalorder %s7970_s22, %s7970_s22 }
  0x2d   :  { %p7977_p4 = por %p7976_p3, %p7975_p2 }
  0x2f   :  { %p7978_p5 = pnand %p7977_p4, %p7971_p1 }
  0x31   :  { %7981 = shalt.err (!%p7978_p5)
}
  0x32   :  { %s8140_s3 = smov 128   ;;  %s8141_s23 = smov 8  }
  0x33   :  { %110 = dma.hbm_to_vmem [thread:$0]  %s8524_s7, 8192, %s105_s21, [#allocation15], %s8140_s3, %s8140_s3, %s8141_s23  }
  0x34   :  { %s8142_s26 = smov [#allocation17]   ;;  %s8143_s11 = smov [#allocation3]  }
  0x35   :  { %s127_s27 = sshll.u32 %s8142_s26, 4  ;;  %s31_s5 = sshll.u32 %s8143_s11, 4  ;;  %s128_s27 = int_to_ptr.vmem [resolvable:$true] %s127_s27  ;;  %s32_s5 = int_to_ptr.vmem [resolvable:$true] %s31_s5 }
  0x36   :  { %s7990_s28 = scalar_lea.vmem %s128_s27, 32  ;;  %p7995_p7 = scmp.lt.s32.totalorder %s128_s27, %s128_s27 }
  0x37   :  { %p7991_p6 = scmp.ne.s32.totalorder %s128_s27, %s7990_s28  ;;  %p7996_p8 = scmp.lt.s32.totalorder %s7990_s28, %s7990_s28 }
  0x39   :  { %p7997_p9 = por %p7996_p8, %p7995_p7 }
  0x3b   :  { %p7998_p10 = pnand %p7997_p9, %p7991_p6 }
  0x3d   :  { %8001 = shalt.err (!%p7998_p10)
}
  0x3e   :  { %130 = dma.hbm_to_vmem [thread:$0]  %s8526_s9, 32, %s128_s27, [#allocation18]  }
  0x3f   :  { %s8010_s13 = scalar_lea.vmem %s32_s5, 256  ;;  %p8015_p12 = scmp.lt.s32.totalorder %s32_s5, %s32_s5 }
  0x40   :  { %p8011_p11 = scmp.ne.s32.totalorder %s32_s5, %s8010_s13  ;;  %p8016_p13 = scmp.lt.s32.totalorder %s8010_s13, %s8010_s13 }
  0x42   :  { %p8017_p0 = por %p8016_p13, %p8015_p12 }
  0x44   :  { %p8018_p1 = pnand %p8017_p0, %p8011_p11 }
  0x46   :  { %8021 = shalt.err (!%p8018_p1)
}
  0x47   :  { %34 = dma.hbm_to_vmem [thread:$0]  %s8517_s0, 256, %s32_s5, [#allocation4]  }
  0x48   :  { %s8144_s15 = smov [#allocation7]   ;;  %s8145_s17 = smov [#allocation10]  }
  0x49   :  { %s53_s16 = sshll.u32 %s8144_s15, 4  ;;  %s72_s18 = sshll.u32 %s8145_s17, 4  ;;  %s54_s16 = int_to_ptr.vmem [resolvable:$true] %s53_s16  ;;  %s73_s18 = int_to_ptr.vmem [resolvable:$true] %s72_s18 }
  0x4a   :  { %s8030_s1 = scalar_lea.vmem %s54_s16, 128  ;;  %p8035_p3 = scmp.lt.s32.totalorder %s54_s16, %s54_s16 }
  0x4b   :  { %p8031_p2 = scmp.ne.s32.totalorder %s54_s16, %s8030_s1  ;;  %p8036_p4 = scmp.lt.s32.totalorder %s8030_s1, %s8030_s1 }
  0x4d   :  { %p8037_p5 = por %p8036_p4, %p8035_p3 }
  0x4f   :  { %p8038_p6 = pnand %p8037_p5, %p8031_p2 }
  0x51   :  { %8041 = shalt.err (!%p8038_p6)
}
  0x52   :  { %56 = dma.hbm_to_vmem [thread:$0]  %s8519_s2, 128, %s54_s16, [#allocation6]  }
  0x53   :  { %s8050_s20 = scalar_lea.vmem %s73_s18, 32768  ;;  %p8055_p8 = scmp.lt.s32.totalorder %s73_s18, %s73_s18 }
  0x54   :  { %p8051_p7 = scmp.ne.s32.totalorder %s73_s18, %s8050_s20  ;;  %p8056_p9 = scmp.lt.s32.totalorder %s8050_s20, %s8050_s20 }
  0x56   :  { %p8057_p10 = por %p8056_p9, %p8055_p8 }
  0x58   :  { %p8058_p11 = pnand %p8057_p10, %p8051_p7 }
  0x5a   :  { %8061 = shalt.err (!%p8058_p11)
}
  0x5b   :  { %s8146_s0 = smov 256   ;;  %s8147_s21 = smov 16  }
  0x5c   :  { %78 = dma.hbm_to_vmem [thread:$0]  %s8521_s4, 32768, %s73_s18, [#allocation9], %s8146_s0, %s8146_s0, %s8147_s21  }
  0x5d   :  { %s8148_s23 = smov [#allocation13]   ;;  %s8149_s25 = smov [#allocation16]  }
  0x5e   :  { %s95_s24 = sshll.u32 %s8148_s23, 4  ;;  %s117_s26 = sshll.u32 %s8149_s25, 4  ;;  %s96_s24 = int_to_ptr.vmem [resolvable:$true] %s95_s24  ;;  %s118_s26 = int_to_ptr.vmem [resolvable:$true] %s117_s26 }
  0x5f   :  { %s8070_s2 = scalar_lea.vmem %s96_s24, 64  ;;  %p8075_p13 = scmp.lt.s32.totalorder %s96_s24, %s96_s24 }
  0x60   :  { %p8071_p12 = scmp.ne.s32.totalorder %s96_s24, %s8070_s2  ;;  %p8076_p0 = scmp.lt.s32.totalorder %s8070_s2, %s8070_s2 }
  0x62   :  { %p8077_p1 = por %p8076_p0, %p8075_p13 }
  0x64   :  { %p8078_p2 = pnand %p8077_p1, %p8071_p12 }
  0x66   :  { %8081 = shalt.err (!%p8078_p2)
}
  0x67   :  { %98 = dma.hbm_to_vmem [thread:$0]  %s8523_s6, 64, %s96_s24, [#allocation12]  }
  0x68   :  { %s8090_s5 = scalar_lea.vmem %s118_s26, 32  ;;  %p8095_p4 = scmp.lt.s32.totalorder %s118_s26, %s118_s26 }
  0x69   :  { %p8091_p3 = scmp.ne.s32.totalorder %s118_s26, %s8090_s5  ;;  %p8096_p5 = scmp.lt.s32.totalorder %s8090_s5, %s8090_s5 }
  0x6b   :  { %p8097_p6 = por %p8096_p5, %p8095_p4 }
  0x6d   :  { %p8098_p7 = pnand %p8097_p6, %p8091_p3 }
  0x6f   :  { %8101 = shalt.err (!%p8098_p7)
}
  0x70   :  { %120 = dma.hbm_to_vmem [thread:$0]  %s8525_s8, 32, %s118_s26, [#allocation15]  }
  0x71   :  { %s8150_s29 = smov [#allocation19]  }
  0x72   :  { %s137_s30 = sshll.u32 %s8150_s29, 4  ;;  %s138_s30 = int_to_ptr.vmem [resolvable:$true] %s137_s30 }
  0x73   :  { %s8110_s13 = scalar_lea.vmem %s138_s30, 32  ;;  %p8115_p9 = scmp.lt.s32.totalorder %s138_s30, %s138_s30 }
  0x74   :  { %p8111_p8 = scmp.ne.s32.totalorder %s138_s30, %s8110_s13  ;;  %p8116_p10 = scmp.lt.s32.totalorder %s8110_s13, %s8110_s13 }
  0x76   :  { %p8117_p11 = por %p8116_p10, %p8115_p9 }
  0x78   :  { %p8118_p12 = pnand %p8117_p11, %p8111_p8 }
  0x7a   :  { %8121 = shalt.err (!%p8118_p12)
}
  0x7b   :  { %140 = dma.hbm_to_vmem [thread:$0]  %s8527_s10, 32, %s138_s30, [#allocation18]  }
  0x7c   :  { %8122 = dma.done.wait [#allocation4], 256  }
  0x7d   :  { %8123 = vsyncadd [#allocation4], 4294967040 }
  0x7e   :  { %8124 = dma.done.wait [#allocation6], 65664  }
  0x7f   :  { %8125 = vsyncadd [#allocation6], 4294901632 }
  0x80   :  { %8126 = dma.done.wait [#allocation9], 32896  }
  0x81   :  { %8127 = vsyncadd [#allocation9], 4294934400 }
  0x82   :  { %8128 = dma.done.wait [#allocation12], 128  }
  0x83   :  { %8129 = vsyncadd [#allocation12], 4294967168 }
  0x84   :  { %8130 = dma.done.wait [#allocation15], 8224  }
  0x85   :  { %8131 = vsyncadd [#allocation15], 4294959072 }
  0x86   :  { %8132 = dma.done.wait [#allocation18], 64  }
  0x87   :  { %8133 = vsyncadd [#allocation18], 4294967232  ;;  %v286_v1 = vld [vmem:[#allocation5 + $0x1c0] sm:$0xff]  ;;  %v8151_v33 = vmov 1983009808   ;;  %v184_v35 = vlaneseq  ;;  %v176_v60 = vld [vmem:[#allocation3] sm:$0xff] }
  0x88   :  { %v290_v2 = vld [vmem:[#allocation5 + $0x1e0] sm:$0xff]  ;;  %v182_v34 = vunpack.c.l.s4 %v8151_v33  ;;  %vm6530_vm14 = vcmask 1041408   ;;  %vm6550_vm15 = vcmask 1024  }
  0x89   :  { %v414_v3 = vld [vmem:[#allocation5 + $0x5c0] sm:$0xff]  ;;  %v6619_v4 = vcombine.high %v286_v1, %v290_v2  ;;  %v6618_v6 = vcombine.low %v286_v1, %v290_v2  ;;  %v8253_v45 = vshrl.u32 %v184_v35, 7  ;;  %v180_v1 = vcombine.high %v176_v60, %v176_v60 }
  0x8a   :  { %v418_v5 = vld [vmem:[#allocation5 + $0x5e0] sm:$0xff]  ;;  %v183_v44 = vunpack.c.0.s8 %v182_v34 }
  0x8b   :  { %v278_v7 = vld [vmem:[#allocation5 + $0x180] sm:$0xff]  ;;  %v6747_v9 = vcombine.high %v414_v3, %v418_v5  ;;  %v6746_v10 = vcombine.low %v414_v3, %v418_v5  ;;  %3344 = vmatprep.subr.bf16.mxu0 %v6619_v4 }
  0x8c   :  { %v282_v8 = vld [vmem:[#allocation5 + $0x1a0] sm:$0xff]  ;;  %3345 = vmatpush1.bf16.msra.mxu0 %v6618_v6  ;;  %v8256_v54 = vsub.s32 %v183_v44, %v8253_v45 }
  0x8d   :  { %v6611_v11 = vcombine.high %v278_v7, %v282_v8  ;;  %v406_v12 = vld [vmem:[#allocation5 + $0x580] sm:$0xff]  ;;  %3385 = vmatprep.subr.bf16.mxu1 %v6747_v9  ;;  %v6610_v19 = vcombine.low %v278_v7, %v282_v8 }
  0x8e   :  { %v410_v13 = vld [vmem:[#allocation5 + $0x5a0] sm:$0xff]  ;;  %3386 = vmatpush1.bf16.msra.mxu1 %v6746_v10  ;;  %v8259_v0 = vrot.slane %v176_v60, %v8256_v54  ;;  %v8264_v6 = vrot.slane %v180_v1, %v8256_v54 }
  0x8f   :  { %v270_v14 = vld [vmem:[#allocation5 + $0x140] sm:$0xff]  ;;  %v6739_v15 = vcombine.high %v406_v12, %v410_v13  ;;  %3346 = vmatprep.subr.bf16.mxu0 %v6611_v11  ;;  %v6738_v20 = vcombine.low %v406_v12, %v410_v13 }
  0x90   :  { %v274_v16 = vld [vmem:[#allocation5 + $0x160] sm:$0xff]  ;;  %3347 = vmatpush1.bf16.msra.mxu0 %v6610_v19  ;;  %v195_v5 = vcombine.high %v8259_v0, %v8259_v0  ;;  %v196_v13 = vcombine.high %v8264_v6, %v8264_v6 }
  0x91   :  { %v398_v17 = vld [vmem:[#allocation5 + $0x540] sm:$0xff]  ;;  %v6603_v21 = vcombine.high %v270_v14, %v274_v16  ;;  %3387 = vmatprep.subr.bf16.mxu1 %v6739_v15  ;;  %v6602_v27 = vcombine.low %v270_v14, %v274_v16 }
  0x92   :  { %v402_v18 = vld [vmem:[#allocation5 + $0x560] sm:$0xff]  ;;  %3388 = vmatpush1.bf16.msra.mxu1 %v6738_v20  ;;  %v8266_v12 = vpack.c.bf16 %v195_v5, %v195_v5  ;;  %v177_v5 = vld [vmem:[#allocation3 + $0x8] sm:$0xff] }
  0x93   :  { %v6731_v22 = vcombine.high %v398_v17, %v402_v18  ;;  %v262_v23 = vld [vmem:[#allocation5 + $0x100] sm:$0xff]  ;;  %3348 = vmatprep.subr.bf16.mxu0 %v6603_v21  ;;  %v6730_v28 = vcombine.low %v398_v17, %v402_v18  ;;  %v8271_v17 = vpack.c.bf16 %v196_v13, %v196_v13 }
  0x94   :  { %v266_v24 = vld [vmem:[#allocation5 + $0x120] sm:$0xff]  ;;  %3349 = vmatpush1.bf16.msra.mxu0 %v6602_v27  ;;  %3376 = vmatprep.mubr.bf16.mxu0 %v8266_v12 }
  0x95   :  { %v390_v25 = vld [vmem:[#allocation5 + $0x500] sm:$0xff]  ;;  %v6595_v29 = vcombine.high %v262_v23, %v266_v24  ;;  %3389 = vmatprep.subr.bf16.mxu1 %v6731_v22  ;;  %v6594_v38 = vcombine.low %v262_v23, %v266_v24  ;;  %3417 = vmatprep.mubr.bf16.mxu1 %v8271_v17 }
  0x96   :  { %v394_v26 = vld [vmem:[#allocation5 + $0x520] sm:$0xff]  ;;  %3390 = vmatpush1.bf16.msra.mxu1 %v6730_v28 }
  0x97   :  { %v6723_v30 = vcombine.high %v390_v25, %v394_v26  ;;  %v254_v31 = vld [vmem:[#allocation5 + $0xc0] sm:$0xff]  ;;  %3350 = vmatprep.subr.bf16.mxu0 %v6595_v29  ;;  %v6722_v39 = vcombine.low %v390_v25, %v394_v26 }
  0x98   :  { %v258_v32 = vld [vmem:[#allocation5 + $0xe0] sm:$0xff]  ;;  %3351 = vmatpush1.bf16.msra.mxu0 %v6594_v38 }
  0x99   :  { %v382_v36 = vld [vmem:[#allocation5 + $0x4c0] sm:$0xff]  ;;  %v6587_v40 = vcombine.high %v254_v31, %v258_v32  ;;  %3391 = vmatprep.subr.bf16.mxu1 %v6723_v30  ;;  %v6586_v48 = vcombine.low %v254_v31, %v258_v32 }
  0x9a   :  { %v386_v37 = vld [vmem:[#allocation5 + $0x4e0] sm:$0xff]  ;;  %3392 = vmatpush1.bf16.msra.mxu1 %v6722_v39 }
  0x9b   :  { %v6715_v41 = vcombine.high %v382_v36, %v386_v37  ;;  %v246_v42 = vld [vmem:[#allocation5 + $0x80] sm:$0xff]  ;;  %3352 = vmatprep.subr.bf16.mxu0 %v6587_v40  ;;  %v6714_v49 = vcombine.low %v382_v36, %v386_v37 }
  0x9c   :  { %v250_v43 = vld [vmem:[#allocation5 + $0xa0] sm:$0xff]  ;;  %3353 = vmatpush1.bf16.msra.mxu0 %v6586_v48 }
  0x9d   :  { %v374_v46 = vld [vmem:[#allocation5 + $0x480] sm:$0xff]  ;;  %v6579_v50 = vcombine.high %v246_v42, %v250_v43  ;;  %3393 = vmatprep.subr.bf16.mxu1 %v6715_v41  ;;  %v6578_v57 = vcombine.low %v246_v42, %v250_v43 }
  0x9e   :  { %v378_v47 = vld [vmem:[#allocation5 + $0x4a0] sm:$0xff]  ;;  %3394 = vmatpush1.bf16.msra.mxu1 %v6714_v49 }
  0x9f   :  { %v6707_v51 = vcombine.high %v374_v46, %v378_v47  ;;  %v238_v52 = vld [vmem:[#allocation5 + $0x40] sm:$0xff]  ;;  %3354 = vmatprep.subr.bf16.mxu0 %v6579_v50  ;;  %v6706_v58 = vcombine.low %v374_v46, %v378_v47 }
  0xa0   :  { %v242_v53 = vld [vmem:[#allocation5 + $0x60] sm:$0xff]  ;;  %3355 = vmatpush1.bf16.msra.mxu0 %v6578_v57 }
  0xa1   :  { %v366_v55 = vld [vmem:[#allocation5 + $0x440] sm:$0xff]  ;;  %v6571_v59 = vcombine.high %v238_v52, %v242_v53  ;;  %3395 = vmatprep.subr.bf16.mxu1 %v6707_v51  ;;  %v6570_v4 = vcombine.low %v238_v52, %v242_v53 }
  0xa2   :  { %v370_v56 = vld [vmem:[#allocation5 + $0x460] sm:$0xff]  ;;  %3396 = vmatpush1.bf16.msra.mxu1 %v6706_v58 }
  0xa3   :  { %v6699_v61 = vcombine.high %v366_v55, %v370_v56  ;;  %v230_v62 = vld [vmem:[#allocation5] sm:$0xff]  ;;  %3356 = vmatprep.subr.bf16.mxu0 %v6571_v59  ;;  %v6698_v7 = vcombine.low %v366_v55, %v370_v56 }
  0xa4   :  { %v234_v63 = vld [vmem:[#allocation5 + $0x20] sm:$0xff]  ;;  %3357 = vmatpush1.bf16.msra.mxu0 %v6570_v4 }
  0xa5   :  { %v358_v2 = vld [vmem:[#allocation5 + $0x400] sm:$0xff]  ;;  %v6563_v8 = vcombine.high %v230_v62, %v234_v63  ;;  %3397 = vmatprep.subr.bf16.mxu1 %v6699_v61  ;;  %v6562_v16 = vcombine.low %v230_v62, %v234_v63 }
  0xa6   :  { %v362_v3 = vld [vmem:[#allocation5 + $0x420] sm:$0xff]  ;;  %3398 = vmatpush1.bf16.msra.mxu1 %v6698_v7 }
  0xa7   :  { %v6691_v9 = vcombine.high %v358_v2, %v362_v3  ;;  %v350_v10 = vld [vmem:[#allocation5 + $0x3c0] sm:$0xff]  ;;  %3358 = vmatprep.subr.bf16.mxu0 %v6563_v8  ;;  %v6690_v18 = vcombine.low %v358_v2, %v362_v3 }
  0xa8   :  { %v354_v11 = vld [vmem:[#allocation5 + $0x3e0] sm:$0xff]  ;;  %3359 = vmatpush1.bf16.msra.mxu0 %v6562_v16 }
  0xa9   :  { %v478_v14 = vld [vmem:[#allocation5 + $0x7c0] sm:$0xff]  ;;  %v6683_v19 = vcombine.high %v350_v10, %v354_v11  ;;  %3399 = vmatprep.subr.bf16.mxu1 %v6691_v9  ;;  %v6682_v25 = vcombine.low %v350_v10, %v354_v11 }
  0xaa   :  { %v482_v15 = vld [vmem:[#allocation5 + $0x7e0] sm:$0xff]  ;;  %3400 = vmatpush1.bf16.msra.mxu1 %v6690_v18 }
  0xab   :  { %v6811_v20 = vcombine.high %v478_v14, %v482_v15  ;;  %v342_v21 = vld [vmem:[#allocation5 + $0x380] sm:$0xff]  ;;  %3360 = vmatprep.subr.bf16.mxu0 %v6683_v19  ;;  %v6810_v26 = vcombine.low %v478_v14, %v482_v15  ;;  %v197_v15 = vcombine.high %v177_v5, %v177_v5 }
  0xac   :  { %v346_v22 = vld [vmem:[#allocation5 + $0x3a0] sm:$0xff]  ;;  %3361 = vmatpush2.bf16.msra.mxu0 %v6682_v25 }
  0xad   :  { %v470_v23 = vld [vmem:[#allocation5 + $0x780] sm:$0xff]  ;;  %v6675_v27 = vcombine.high %v342_v21, %v346_v22  ;;  %3401 = vmatprep.subr.bf16.mxu1 %v6811_v20  ;;  %v6674_v33 = vcombine.low %v342_v21, %v346_v22 }
  0xae   :  { %v474_v24 = vld [vmem:[#allocation5 + $0x7a0] sm:$0xff]  ;;  %3402 = vmatpush2.bf16.msra.mxu1 %v6810_v26  ;;  %v8278_v26 = vrot.slane %v197_v15, %v8256_v54 }
  0xaf   :  { %v6803_v28 = vcombine.high %v470_v23, %v474_v24  ;;  %v334_v29 = vld [vmem:[#allocation5 + $0x340] sm:$0xff]  ;;  %3362 = vmatprep.subr.bf16.mxu0 %v6675_v27  ;;  %v6802_v34 = vcombine.low %v470_v23, %v474_v24  ;;  %v8275_v23 = vrot.slane %v177_v5, %v8256_v54 }
  0xb0   :  { %v338_v30 = vld [vmem:[#allocation5 + $0x360] sm:$0xff]  ;;  %3363 = vmatpush2.bf16.msra.mxu0 %v6674_v33 }
  0xb1   :  { %v462_v31 = vld [vmem:[#allocation5 + $0x740] sm:$0xff]  ;;  %v6667_v35 = vcombine.high %v334_v29, %v338_v30  ;;  %3403 = vmatprep.subr.bf16.mxu1 %v6803_v28  ;;  %v6666_v41 = vcombine.low %v334_v29, %v338_v30  ;;  %v212_v33 = vcombine.high %v8275_v23, %v8275_v23 }
  0xb2   :  { %v466_v32 = vld [vmem:[#allocation5 + $0x760] sm:$0xff]  ;;  %3404 = vmatpush2.bf16.msra.mxu1 %v6802_v34  ;;  %v8284_v34 = vpack.c.bf16 %v8259_v0, %v8259_v0 }
  0xb3   :  { %v6795_v36 = vcombine.high %v462_v31, %v466_v32  ;;  %v326_v37 = vld [vmem:[#allocation5 + $0x300] sm:$0xff]  ;;  %3364 = vmatprep.subr.bf16.mxu0 %v6667_v35  ;;  %v6794_v42 = vcombine.low %v462_v31, %v466_v32 }
  0xb4   :  { %v330_v38 = vld [vmem:[#allocation5 + $0x320] sm:$0xff]  ;;  %3365 = vmatpush2.bf16.msra.mxu0 %v6666_v41 }
  0xb5   :  { %v454_v39 = vld [vmem:[#allocation5 + $0x700] sm:$0xff]  ;;  %v6659_v43 = vcombine.high %v326_v37, %v330_v38  ;;  %3405 = vmatprep.subr.bf16.mxu1 %v6795_v36  ;;  %v6658_v50 = vcombine.low %v326_v37, %v330_v38  ;;  %v213_v37 = vcombine.high %v8278_v26, %v8278_v26  ;;  %v8290_v38 = vpack.c.bf16 %v8264_v6, %v8264_v6 }
  0xb6   :  { %v458_v40 = vld [vmem:[#allocation5 + $0x720] sm:$0xff]  ;;  %3406 = vmatpush2.bf16.msra.mxu1 %v6794_v42 }
  0xb7   :  { %v6787_v44 = vcombine.high %v454_v39, %v458_v40  ;;  %v318_v46 = vld [vmem:[#allocation5 + $0x2c0] sm:$0xff]  ;;  %3366 = vmatprep.subr.bf16.mxu0 %v6659_v43  ;;  %v6786_v51 = vcombine.low %v454_v39, %v458_v40 }
  0xb8   :  { %v322_v47 = vld [vmem:[#allocation5 + $0x2e0] sm:$0xff]  ;;  %3367 = vmatpush2.bf16.msra.mxu0 %v6658_v50 }
  0xb9   :  { %v446_v48 = vld [vmem:[#allocation5 + $0x6c0] sm:$0xff]  ;;  %v6651_v52 = vcombine.high %v318_v46, %v322_v47  ;;  %3407 = vmatprep.subr.bf16.mxu1 %v6787_v44  ;;  %v6650_v59 = vcombine.low %v318_v46, %v322_v47  ;;  %v8292_v47 = vpack.c.bf16 %v212_v33, %v212_v33 }
  0xba   :  { %v450_v49 = vld [vmem:[#allocation5 + $0x6e0] sm:$0xff]  ;;  %3408 = vmatpush2.bf16.msra.mxu1 %v6786_v51 }
  0xbb   :  { %v6779_v53 = vcombine.high %v446_v48, %v450_v49  ;;  %v310_v55 = vld [vmem:[#allocation5 + $0x280] sm:$0xff]  ;;  %3368 = vmatprep.subr.bf16.mxu0 %v6651_v52  ;;  %v6778_v60 = vcombine.low %v446_v48, %v450_v49  ;;  %v8295_v48 = vpack.c.bf16 %v213_v37, %v213_v37 }
  0xbc   :  { %v314_v56 = vld [vmem:[#allocation5 + $0x2a0] sm:$0xff]  ;;  %3369 = vmatpush2.bf16.msra.mxu0 %v6650_v59 }
  0xbd   :  { %v438_v57 = vld [vmem:[#allocation5 + $0x680] sm:$0xff]  ;;  %v6643_v61 = vcombine.high %v310_v55, %v314_v56  ;;  %3409 = vmatprep.subr.bf16.mxu1 %v6779_v53  ;;  %v6642_v4 = vcombine.low %v310_v55, %v314_v56 }
  0xbe   :  { %v442_v58 = vld [vmem:[#allocation5 + $0x6a0] sm:$0xff]  ;;  %3410 = vmatpush2.bf16.msra.mxu1 %v6778_v60 }
  0xbf   :  { %v6771_v62 = vcombine.high %v438_v57, %v442_v58  ;;  %v302_v63 = vld [vmem:[#allocation5 + $0x240] sm:$0xff]  ;;  %3370 = vmatprep.subr.bf16.mxu0 %v6643_v61  ;;  %v6770_v7 = vcombine.low %v438_v57, %v442_v58 }
  0xc0   :  { %v306_v1 = vld [vmem:[#allocation5 + $0x260] sm:$0xff]  ;;  %3371 = vmatpush2.bf16.msra.mxu0 %v6642_v4 }
  0xc1   :  { %v430_v2 = vld [vmem:[#allocation5 + $0x640] sm:$0xff]  ;;  %v6635_v8 = vcombine.high %v302_v63, %v306_v1  ;;  %3411 = vmatprep.subr.bf16.mxu1 %v6771_v62  ;;  %v6634_v16 = vcombine.low %v302_v63, %v306_v1 }
  0xc2   :  { %v434_v3 = vld [vmem:[#allocation5 + $0x660] sm:$0xff]  ;;  %3412 = vmatpush2.bf16.msra.mxu1 %v6770_v7 }
  0xc3   :  { %v6763_v9 = vcombine.high %v430_v2, %v434_v3  ;;  %v294_v10 = vld [vmem:[#allocation5 + $0x200] sm:$0xff]  ;;  %3372 = vmatprep.subr.bf16.mxu0 %v6635_v8  ;;  %v6762_v18 = vcombine.low %v430_v2, %v434_v3 }
  0xc4   :  { %v298_v11 = vld [vmem:[#allocation5 + $0x220] sm:$0xff]  ;;  %3373 = vmatpush2.bf16.msra.mxu0 %v6634_v16 }
  0xc5   :  { %v422_v13 = vld [vmem:[#allocation5 + $0x600] sm:$0xff]  ;;  %v6627_v19 = vcombine.high %v294_v10, %v298_v11  ;;  %3413 = vmatprep.subr.bf16.mxu1 %v6763_v9  ;;  %v6626_v27 = vcombine.low %v294_v10, %v298_v11 }
  0xc6   :  { %v426_v14 = vld [vmem:[#allocation5 + $0x620] sm:$0xff]  ;;  %3414 = vmatpush2.bf16.msra.mxu1 %v6762_v18 }
  0xc7   :  { %v6755_v20 = vcombine.high %v422_v13, %v426_v14  ;;  %v542_v21 = vld [vmem:[#allocation5 + $0x9c0] sm:$0xff]  ;;  %3374 = vmatprep.subr.bf16.mxu0 %v6627_v19  ;;  %v6754_v28 = vcombine.low %v422_v13, %v426_v14 }
  0xc8   :  { %v546_v22 = vld [vmem:[#allocation5 + $0x9e0] sm:$0xff]  ;;  %3375 = vmatpush2.bf16.msra.mxu0 %v6626_v27 }
  0xc9   :  { %v670_v24 = vld [vmem:[#allocation5 + $0xdc0] sm:$0xff]  ;;  %v6875_v29 = vcombine.high %v542_v21, %v546_v22  ;;  %3415 = vmatprep.subr.bf16.mxu1 %v6755_v20  ;;  %v6874_v39 = vcombine.low %v542_v21, %v546_v22 }
  0xca   :  { %v674_v25 = vld [vmem:[#allocation5 + $0xde0] sm:$0xff]  ;;  %3416 = vmatpush2.bf16.msra.mxu1 %v6754_v28 }
  0xcb   :  { %v7003_v30 = vcombine.high %v670_v24, %v674_v25  ;;  %v534_v31 = vld [vmem:[#allocation5 + $0x980] sm:$0xff]  ;;  %3426 = vmatprep.subr.bf16.mxu0 %v6875_v29  ;;  %v7002_v40 = vcombine.low %v670_v24, %v674_v25  ;;  %3377 = vmatmul.mubr.bf16.vlgmr.msra.gmra.mxu0 %v8284_v34 }
  0xcc   :  { %v538_v32 = vld [vmem:[#allocation5 + $0x9a0] sm:$0xff]  ;;  %3427 = vmatpush1.bf16.msra.mxu0 %v6874_v39  ;;  %3458 = vmatprep.mubr.bf16.mxu0 %v8292_v47 }
  0xcd   :  { %v662_v35 = vld [vmem:[#allocation5 + $0xd80] sm:$0xff]  ;;  %v6867_v41 = vcombine.high %v534_v31, %v538_v32  ;;  %3467 = vmatprep.subr.bf16.mxu1 %v7003_v30  ;;  %3418 = vmatmul.mubr.bf16.vlgmr.msra.gmra.mxu1 %v8290_v38  ;;  %v6866_v6 = vcombine.low %v534_v31, %v538_v32 }
  0xce   :  { %v666_v36 = vld [vmem:[#allocation5 + $0xda0] sm:$0xff]  ;;  %3468 = vmatpush1.bf16.msra.mxu1 %v7002_v40  ;;  %3499 = vmatprep.mubr.bf16.mxu1 %v8295_v48 }
  0xcf   :  { %v526_v42 = vld [vmem:[#allocation5 + $0x940] sm:$0xff]  ;;  %v6995_v0 = vcombine.high %v662_v35, %v666_v36  ;;  %3428 = vmatprep.subr.bf16.mxu0 %v6867_v41  ;;  %v6994_v49 = vcombine.low %v662_v35, %v666_v36 }
  0xd0   :  { %v530_v43 = vld [vmem:[#allocation5 + $0x960] sm:$0xff]  ;;  %3429 = vmatpush1.bf16.msra.mxu0 %v6866_v6 }
  0xd1   :  { %v654_v44 = vld [vmem:[#allocation5 + $0xd40] sm:$0xff]  ;;  %v6859_v50 = vcombine.high %v526_v42, %v530_v43  ;;  %3469 = vmatprep.subr.bf16.mxu1 %v6995_v0  ;;  %v6858_v57 = vcombine.low %v526_v42, %v530_v43 }
  0xd2   :  { %v658_v46 = vld [vmem:[#allocation5 + $0xd60] sm:$0xff]  ;;  %3470 = vmatpush1.bf16.msra.mxu1 %v6994_v49 }
  0xd3   :  { %v518_v51 = vld [vmem:[#allocation5 + $0x900] sm:$0xff]  ;;  %v6987_v55 = vcombine.high %v654_v44, %v658_v46  ;;  %3430 = vmatprep.subr.bf16.mxu0 %v6859_v50  ;;  %v6986_v58 = vcombine.low %v654_v44, %v658_v46 }
  0xd4   :  { %v522_v52 = vld [vmem:[#allocation5 + $0x920] sm:$0xff]  ;;  %3431 = vmatpush1.bf16.msra.mxu0 %v6858_v57 }
  0xd5   :  { %v646_v53 = vld [vmem:[#allocation5 + $0xd00] sm:$0xff]  ;;  %v6851_v59 = vcombine.high %v518_v51, %v522_v52  ;;  %3471 = vmatprep.subr.bf16.mxu1 %v6987_v55  ;;  %v6850_v2 = vcombine.low %v518_v51, %v522_v52 }
  0xd6   :  { %v650_v56 = vld [vmem:[#allocation5 + $0xd20] sm:$0xff]  ;;  %3472 = vmatpush1.bf16.msra.mxu1 %v6986_v58 }
  0xd7   :  { %v510_v60 = vld [vmem:[#allocation5 + $0x8c0] sm:$0xff]  ;;  %v6979_v63 = vcombine.high %v646_v53, %v650_v56  ;;  %3432 = vmatprep.subr.bf16.mxu0 %v6851_v59  ;;  %v6978_v3 = vcombine.low %v646_v53, %v650_v56 }
  0xd8   :  { %v514_v61 = vld [vmem:[#allocation5 + $0x8e0] sm:$0xff]  ;;  %3433 = vmatpush1.bf16.msra.mxu0 %v6850_v2 }
  0xd9   :  { %v638_v62 = vld [vmem:[#allocation5 + $0xcc0] sm:$0xff]  ;;  %v6843_v4 = vcombine.high %v510_v60, %v514_v61  ;;  %3473 = vmatprep.subr.bf16.mxu1 %v6979_v63  ;;  %v6842_v11 = vcombine.low %v510_v60, %v514_v61 }
  0xda   :  { %v642_v1 = vld [vmem:[#allocation5 + $0xce0] sm:$0xff]  ;;  %3474 = vmatpush1.bf16.msra.mxu1 %v6978_v3 }
  0xdb   :  { %v502_v5 = vld [vmem:[#allocation5 + $0x880] sm:$0xff]  ;;  %v6971_v9 = vcombine.high %v638_v62, %v642_v1  ;;  %3434 = vmatprep.subr.bf16.mxu0 %v6843_v4  ;;  %v6970_v13 = vcombine.low %v638_v62, %v642_v1 }
  0xdc   :  { %v506_v7 = vld [vmem:[#allocation5 + $0x8a0] sm:$0xff]  ;;  %3435 = vmatpush1.bf16.msra.mxu0 %v6842_v11 }
  0xdd   :  { %v630_v8 = vld [vmem:[#allocation5 + $0xc80] sm:$0xff]  ;;  %v6835_v14 = vcombine.high %v502_v5, %v506_v7  ;;  %3475 = vmatprep.subr.bf16.mxu1 %v6971_v9  ;;  %v6834_v21 = vcombine.low %v502_v5, %v506_v7 }
  0xde   :  { %v634_v10 = vld [vmem:[#allocation5 + $0xca0] sm:$0xff]  ;;  %3476 = vmatpush1.bf16.msra.mxu1 %v6970_v13 }
  0xdf   :  { %v494_v15 = vld [vmem:[#allocation5 + $0x840] sm:$0xff]  ;;  %v6963_v19 = vcombine.high %v630_v8, %v634_v10  ;;  %3436 = vmatprep.subr.bf16.mxu0 %v6835_v14  ;;  %v6962_v22 = vcombine.low %v630_v8, %v634_v10 }
  0xe0   :  { %v498_v16 = vld [vmem:[#allocation5 + $0x860] sm:$0xff]  ;;  %3437 = vmatpush1.bf16.msra.mxu0 %v6834_v21 }
  0xe1   :  { %v622_v18 = vld [vmem:[#allocation5 + $0xc40] sm:$0xff]  ;;  %v6827_v24 = vcombine.high %v494_v15, %v498_v16  ;;  %3477 = vmatprep.subr.bf16.mxu1 %v6963_v19  ;;  %v6826_v31 = vcombine.low %v494_v15, %v498_v16 }
  0xe2   :  { %v626_v20 = vld [vmem:[#allocation5 + $0xc60] sm:$0xff]  ;;  %3478 = vmatpush1.bf16.msra.mxu1 %v6962_v22 }
  0xe3   :  { %v486_v25 = vld [vmem:[#allocation5 + $0x800] sm:$0xff]  ;;  %v6955_v29 = vcombine.high %v622_v18, %v626_v20  ;;  %3438 = vmatprep.subr.bf16.mxu0 %v6827_v24  ;;  %v6954_v32 = vcombine.low %v622_v18, %v626_v20 }
  0xe4   :  { %v490_v27 = vld [vmem:[#allocation5 + $0x820] sm:$0xff]  ;;  %3439 = vmatpush1.bf16.msra.mxu0 %v6826_v31 }
  0xe5   :  { %v614_v28 = vld [vmem:[#allocation5 + $0xc00] sm:$0xff]  ;;  %v6819_v33 = vcombine.high %v486_v25, %v490_v27  ;;  %3479 = vmatprep.subr.bf16.mxu1 %v6955_v29  ;;  %v6818_v41 = vcombine.low %v486_v25, %v490_v27 }
  0xe6   :  { %v618_v30 = vld [vmem:[#allocation5 + $0xc20] sm:$0xff]  ;;  %3480 = vmatpush1.bf16.msra.mxu1 %v6954_v32 }
  0xe7   :  { %v606_v35 = vld [vmem:[#allocation5 + $0xbc0] sm:$0xff]  ;;  %v6947_v39 = vcombine.high %v614_v28, %v618_v30  ;;  %3440 = vmatprep.subr.bf16.mxu0 %v6819_v33  ;;  %v6946_v42 = vcombine.low %v614_v28, %v618_v30 }
  0xe8   :  { %v610_v36 = vld [vmem:[#allocation5 + $0xbe0] sm:$0xff]  ;;  %3441 = vmatpush1.bf16.msra.mxu0 %v6818_v41 }
  0xe9   :  { %v734_v37 = vld [vmem:[#allocation5 + $0xfc0] sm:$0xff]  ;;  %v6939_v43 = vcombine.high %v606_v35, %v610_v36  ;;  %3481 = vmatprep.subr.bf16.mxu1 %v6947_v39  ;;  %v6938_v50 = vcombine.low %v606_v35, %v610_v36 }
  0xea   :  { %v738_v40 = vld [vmem:[#allocation5 + $0xfe0] sm:$0xff]  ;;  %3482 = vmatpush1.bf16.msra.mxu1 %v6946_v42 }
  0xeb   :  { %v598_v44 = vld [vmem:[#allocation5 + $0xb80] sm:$0xff]  ;;  %v7067_v6 = vcombine.high %v734_v37, %v738_v40  ;;  %3442 = vmatprep.subr.bf16.mxu0 %v6939_v43  ;;  %v7066_v51 = vcombine.low %v734_v37, %v738_v40 }
  0xec   :  { %v602_v0 = vld [vmem:[#allocation5 + $0xba0] sm:$0xff]  ;;  %3443 = vmatpush2.bf16.msra.mxu0 %v6938_v50 }
  0xed   :  { %v726_v46 = vld [vmem:[#allocation5 + $0xf80] sm:$0xff]  ;;  %v6931_v52 = vcombine.high %v598_v44, %v602_v0  ;;  %3483 = vmatprep.subr.bf16.mxu1 %v7067_v6  ;;  %v6930_v59 = vcombine.low %v598_v44, %v602_v0  ;;  %v291_v6 = vld [vmem:[#allocation5 + $0x1e8] sm:$0xff] }
  0xee   :  { %v730_v49 = vld [vmem:[#allocation5 + $0xfa0] sm:$0xff]  ;;  %3484 = vmatpush2.bf16.msra.mxu1 %v7066_v51  ;;  %v419_v51 = vld [vmem:[#allocation5 + $0x5e8] sm:$0xff] }
  0xef   :  { %v590_v53 = vld [vmem:[#allocation5 + $0xb40] sm:$0xff]  ;;  %v7059_v57 = vcombine.high %v726_v46, %v730_v49  ;;  %3444 = vmatprep.subr.bf16.mxu0 %v6931_v52  ;;  %v7058_v60 = vcombine.low %v726_v46, %v730_v49  ;;  %v287_v46 = vld [vmem:[#allocation5 + $0x1c8] sm:$0xff] }
  0xf0   :  { %v594_v55 = vld [vmem:[#allocation5 + $0xb60] sm:$0xff]  ;;  %3445 = vmatpush2.bf16.msra.mxu0 %v6930_v59  ;;  %v415_v49 = vld [vmem:[#allocation5 + $0x5c8] sm:$0xff] }
  0xf1   :  { %v718_v56 = vld [vmem:[#allocation5 + $0xf40] sm:$0xff]  ;;  %v6923_v61 = vcombine.high %v590_v53, %v594_v55  ;;  %3485 = vmatprep.subr.bf16.mxu1 %v7059_v57  ;;  %v6922_v4 = vcombine.low %v590_v53, %v594_v55  ;;  %v6621_v55 = vcombine.high %v287_v46, %v291_v6  ;;  %v283_v57 = vld [vmem:[#allocation5 + $0x1a8] sm:$0xff]  ;;  %v6749_v59 = vcombine.high %v415_v49, %v419_v51 }
  0xf2   :  { %v722_v58 = vld [vmem:[#allocation5 + $0xf60] sm:$0xff]  ;;  %3486 = vmatpush2.bf16.msra.mxu1 %v7058_v60  ;;  %v411_v60 = vld [vmem:[#allocation5 + $0x5a8] sm:$0xff] }
  0xf3   :  { %v582_v62 = vld [vmem:[#allocation5 + $0xb00] sm:$0xff]  ;;  %v7051_v2 = vcombine.high %v718_v56, %v722_v58  ;;  %3446 = vmatprep.subr.bf16.mxu0 %v6923_v61  ;;  %v7050_v5 = vcombine.low %v718_v56, %v722_v58  ;;  %v279_v56 = vld [vmem:[#allocation5 + $0x188] sm:$0xff]  ;;  %v8302_v61 = vpack.c.bf16 %v8275_v23, %v8275_v23 }
  0xf4   :  { %v586_v63 = vld [vmem:[#allocation5 + $0xb20] sm:$0xff]  ;;  %3447 = vmatpush2.bf16.msra.mxu0 %v6922_v4  ;;  %v407_v58 = vld [vmem:[#allocation5 + $0x588] sm:$0xff]  ;;  %v6612_v23 = vcombine.low %v279_v56, %v283_v57 }
  0xf5   :  { %v710_v1 = vld [vmem:[#allocation5 + $0xf00] sm:$0xff]  ;;  %v6915_v7 = vcombine.high %v582_v62, %v586_v63  ;;  %3487 = vmatprep.subr.bf16.mxu1 %v7051_v2  ;;  %v6914_v14 = vcombine.low %v582_v62, %v586_v63  ;;  %v8306_v62 = vpack.c.bf16 %v8278_v26, %v8278_v26  ;;  %v6620_v63 = vcombine.low %v287_v46, %v291_v6  ;;  %v275_v4 = vld [vmem:[#allocation5 + $0x168] sm:$0xff] }
  0xf6   :  { %v714_v3 = vld [vmem:[#allocation5 + $0xf20] sm:$0xff]  ;;  %3488 = vmatpush2.bf16.msra.mxu1 %v7050_v5  ;;  %v6613_v2 = vcombine.high %v279_v56, %v283_v57  ;;  %v6741_v5 = vcombine.high %v407_v58, %v411_v60  ;;  %v6740_v26 = vcombine.low %v407_v58, %v411_v60  ;;  %v351_v58 = vld [vmem:[#allocation5 + $0x3c8] sm:$0xff] }
  0xf7   :  { %v574_v8 = vld [vmem:[#allocation5 + $0xac0] sm:$0xff]  ;;  %v7043_v11 = vcombine.high %v710_v1, %v714_v3  ;;  %3448 = vmatprep.subr.bf16.mxu0 %v6915_v7  ;;  %v7042_v15 = vcombine.low %v710_v1, %v714_v3  ;;  %v6748_v1 = vcombine.low %v415_v49, %v419_v51  ;;  %v271_v3 = vld [vmem:[#allocation5 + $0x148] sm:$0xff] }
  0xf8   :  { %v578_v9 = vld [vmem:[#allocation5 + $0xae0] sm:$0xff]  ;;  %3449 = vmatpush2.bf16.msra.mxu0 %v6914_v14  ;;  %v399_v7 = vld [vmem:[#allocation5 + $0x548] sm:$0xff] }
  0xf9   :  { %v702_v10 = vld [vmem:[#allocation5 + $0xec0] sm:$0xff]  ;;  %v6907_v16 = vcombine.high %v574_v8, %v578_v9  ;;  %3489 = vmatprep.subr.bf16.mxu1 %v7043_v11  ;;  %v6906_v24 = vcombine.low %v574_v8, %v578_v9  ;;  %v403_v8 = vld [vmem:[#allocation5 + $0x568] sm:$0xff]  ;;  %v6605_v9 = vcombine.high %v271_v3, %v275_v4 }
  0xfa   :  { %v706_v13 = vld [vmem:[#allocation5 + $0xee0] sm:$0xff]  ;;  %3490 = vmatpush2.bf16.msra.mxu1 %v7042_v15  ;;  %v267_v11 = vld [vmem:[#allocation5 + $0x128] sm:$0xff]  ;;  %v6733_v14 = vcombine.high %v399_v7, %v403_v8 }
  0xfb   :  { %v566_v18 = vld [vmem:[#allocation5 + $0xa80] sm:$0xff]  ;;  %v7035_v21 = vcombine.high %v702_v10, %v706_v13  ;;  %3450 = vmatprep.subr.bf16.mxu0 %v6907_v16  ;;  %v7034_v25 = vcombine.low %v702_v10, %v706_v13  ;;  %v263_v10 = vld [vmem:[#allocation5 + $0x108] sm:$0xff]  ;;  %v6604_v16 = vcombine.low %v271_v3, %v275_v4 }
  0xfc   :  { %v570_v19 = vld [vmem:[#allocation5 + $0xaa0] sm:$0xff]  ;;  %3451 = vmatpush2.bf16.msra.mxu0 %v6906_v24  ;;  %v391_v13 = vld [vmem:[#allocation5 + $0x508] sm:$0xff] }
  0xfd   :  { %v694_v20 = vld [vmem:[#allocation5 + $0xe80] sm:$0xff]  ;;  %v6899_v27 = vcombine.high %v566_v18, %v570_v19  ;;  %3491 = vmatprep.subr.bf16.mxu1 %v7035_v21  ;;  %v6898_v33 = vcombine.low %v566_v18, %v570_v19  ;;  %v395_v15 = vld [vmem:[#allocation5 + $0x528] sm:$0xff]  ;;  %v6732_v18 = vcombine.low %v399_v7, %v403_v8  ;;  %v6597_v19 = vcombine.high %v263_v10, %v267_v11 }
  0xfe   :  { %v698_v22 = vld [vmem:[#allocation5 + $0xea0] sm:$0xff]  ;;  %3492 = vmatpush2.bf16.msra.mxu1 %v7034_v25  ;;  %v259_v21 = vld [vmem:[#allocation5 + $0xe8] sm:$0xff]  ;;  %v6725_v24 = vcombine.high %v391_v13, %v395_v15 }
  0xff   :  { %v558_v28 = vld [vmem:[#allocation5 + $0xa40] sm:$0xff]  ;;  %v7027_v31 = vcombine.high %v694_v20, %v698_v22  ;;  %3452 = vmatprep.subr.bf16.mxu0 %v6899_v27  ;;  %v7026_v35 = vcombine.low %v694_v20, %v698_v22  ;;  %v255_v20 = vld [vmem:[#allocation5 + $0xc8] sm:$0xff]  ;;  %v6596_v27 = vcombine.low %v263_v10, %v267_v11 }
 0x100   :  { %v562_v29 = vld [vmem:[#allocation5 + $0xa60] sm:$0xff]  ;;  %3453 = vmatpush2.bf16.msra.mxu0 %v6898_v33  ;;  %v383_v22 = vld [vmem:[#allocation5 + $0x4c8] sm:$0xff] }
 0x101   :  { %v686_v30 = vld [vmem:[#allocation5 + $0xe40] sm:$0xff]  ;;  %v6891_v36 = vcombine.high %v558_v28, %v562_v29  ;;  %3493 = vmatprep.subr.bf16.mxu1 %v7027_v31  ;;  %v6890_v43 = vcombine.low %v558_v28, %v562_v29  ;;  %v387_v25 = vld [vmem:[#allocation5 + $0x4e8] sm:$0xff]  ;;  %v6724_v28 = vcombine.low %v391_v13, %v395_v15  ;;  %v6589_v29 = vcombine.high %v255_v20, %v259_v21 }
 0x102   :  { %v690_v32 = vld [vmem:[#allocation5 + $0xe60] sm:$0xff]  ;;  %3494 = vmatpush2.bf16.msra.mxu1 %v7026_v35  ;;  %v251_v31 = vld [vmem:[#allocation5 + $0xa8] sm:$0xff]  ;;  %v6717_v33 = vcombine.high %v383_v22, %v387_v25 }
 0x103   :  { %v550_v37 = vld [vmem:[#allocation5 + $0xa00] sm:$0xff]  ;;  %v7019_v41 = vcombine.high %v686_v30, %v690_v32  ;;  %3454 = vmatprep.subr.bf16.mxu0 %v6891_v36  ;;  %v7018_v44 = vcombine.low %v686_v30, %v690_v32  ;;  %v247_v30 = vld [vmem:[#allocation5 + $0x88] sm:$0xff]  ;;  %v6588_v36 = vcombine.low %v255_v20, %v259_v21 }
 0x104   :  { %v554_v39 = vld [vmem:[#allocation5 + $0xa20] sm:$0xff]  ;;  %3455 = vmatpush2.bf16.msra.mxu0 %v6890_v43  ;;  %v375_v32 = vld [vmem:[#allocation5 + $0x488] sm:$0xff] }
 0x105   :  { %v678_v40 = vld [vmem:[#allocation5 + $0xe00] sm:$0xff]  ;;  %v6883_v0 = vcombine.high %v550_v37, %v554_v39  ;;  %3495 = vmatprep.subr.bf16.mxu1 %v7019_v41  ;;  %v6882_v52 = vcombine.low %v550_v37, %v554_v39  ;;  %v379_v35 = vld [vmem:[#allocation5 + $0x4a8] sm:$0xff]  ;;  %v6716_v37 = vcombine.low %v383_v22, %v387_v25  ;;  %v6581_v39 = vcombine.high %v247_v30, %v251_v31 }
 0x106   :  { %v682_v42 = vld [vmem:[#allocation5 + $0xe20] sm:$0xff]  ;;  %3496 = vmatpush2.bf16.msra.mxu1 %v7018_v44  ;;  %v243_v41 = vld [vmem:[#allocation5 + $0x68] sm:$0xff]  ;;  %v6709_v43 = vcombine.high %v375_v32, %v379_v35  ;;  %v6708_v46 = vcombine.low %v375_v32, %v379_v35 }
 0x107   :  { %v7011_v50 = vcombine.high %v678_v40, %v682_v42  ;;  %3456 = vmatprep.subr.bf16.mxu0 %v6883_v0  ;;  %v7010_v53 = vcombine.low %v678_v40, %v682_v42  ;;  %v239_v40 = vld [vmem:[#allocation5 + $0x48] sm:$0xff]  ;;  %v6580_v0 = vcombine.low %v247_v30, %v251_v31 }
 0x108   :  { %3457 = vmatpush2.bf16.msra.mxu0 %v6882_v52  ;;  %v367_v42 = vld [vmem:[#allocation5 + $0x448] sm:$0xff]  ;;  %v6573_v6 = vcombine.high %v239_v40, %v243_v41 }
 0x109   :  { %3497 = vmatprep.subr.bf16.mxu1 %v7011_v50  ;;  %3508 = vmatprep.subr.bf16.mxu0 %v6621_v55  ;;  %v371_v44 = vld [vmem:[#allocation5 + $0x468] sm:$0xff]  ;;  %v6572_v55 = vcombine.low %v239_v40, %v243_v41 }
 0x10a   :  { %3498 = vmatpush2.bf16.msra.mxu1 %v7010_v53  ;;  %v231_v49 = vld [vmem:[#allocation5 + $0x8] sm:$0xff]  ;;  %v6701_v52 = vcombine.high %v367_v42, %v371_v44  ;;  %v6700_v56 = vcombine.low %v367_v42, %v371_v44 }
 0x10b   :  { %3549 = vmatprep.subr.bf16.mxu1 %v6749_v59  ;;  %3459 = vmatmul.mubr.bf16.vlgmr.msra.gmra.mxu0 %v8302_v61  ;;  %v235_v50 = vld [vmem:[#allocation5 + $0x28] sm:$0xff] }
 0x10c   :  { %3509 = vmatpush1.bf16.msra.mxu0 %v6620_v63  ;;  %3540 = vmatprep.mubr.bf16.mxu0 %v8266_v12  ;;  %v359_v51 = vld [vmem:[#allocation5 + $0x408] sm:$0xff]  ;;  %v6565_v57 = vcombine.high %v231_v49, %v235_v50 }
 0x10d   :  { %3500 = vmatmul.mubr.bf16.vlgmr.msra.gmra.mxu1 %v8306_v62  ;;  %3510 = vmatprep.subr.bf16.mxu0 %v6613_v2  ;;  %v363_v53 = vld [vmem:[#allocation5 + $0x428] sm:$0xff]  ;;  %v6564_v2 = vcombine.low %v231_v49, %v235_v50 }
 0x10e   :  { %3550 = vmatpush1.bf16.msra.mxu1 %v6748_v1  ;;  %3581 = vmatprep.mubr.bf16.mxu1 %v8271_v17  ;;  %v355_v59 = vld [vmem:[#allocation5 + $0x3e8] sm:$0xff]  ;;  %v6693_v63 = vcombine.high %v359_v51, %v363_v53  ;;  %v6692_v3 = vcombine.low %v359_v51, %v363_v53 }
 0x10f   :  { %3551 = vmatprep.subr.bf16.mxu1 %v6741_v5  ;;  %v479_v60 = vld [vmem:[#allocation5 + $0x7c8] sm:$0xff]  ;;  %v6685_v4 = vcombine.high %v351_v58, %v355_v59 }
 0x110   :  { %3511 = vmatpush1.bf16.msra.mxu0 %v6612_v23  ;;  %v483_v1 = vld [vmem:[#allocation5 + $0x7e8] sm:$0xff] }
 0x111   :  { %3512 = vmatprep.subr.bf16.mxu0 %v6605_v9  ;;  %v343_v5 = vld [vmem:[#allocation5 + $0x388] sm:$0xff]  ;;  %v6813_v23 = vcombine.high %v479_v60, %v483_v1  ;;  %v6684_v9 = vcombine.low %v351_v58, %v355_v59  ;;  %v6812_v10 = vcombine.low %v479_v60, %v483_v1 }
 0x112   :  { %3552 = vmatpush1.bf16.msra.mxu1 %v6740_v26  ;;  %v347_v7 = vld [vmem:[#allocation5 + $0x3a8] sm:$0xff] }
 0x113   :  { %3553 = vmatprep.subr.bf16.mxu1 %v6733_v14  ;;  %v471_v8 = vld [vmem:[#allocation5 + $0x788] sm:$0xff]  ;;  %v6677_v11 = vcombine.high %v343_v5, %v347_v7 }
 0x114   :  { %3513 = vmatpush1.bf16.msra.mxu0 %v6604_v16  ;;  %v475_v26 = vld [vmem:[#allocation5 + $0x7a8] sm:$0xff] }
 0x115   :  { %3514 = vmatprep.subr.bf16.mxu0 %v6597_v19  ;;  %v335_v13 = vld [vmem:[#allocation5 + $0x348] sm:$0xff]  ;;  %v6805_v16 = vcombine.high %v471_v8, %v475_v26  ;;  %v6676_v19 = vcombine.low %v343_v5, %v347_v7  ;;  %v6804_v20 = vcombine.low %v471_v8, %v475_v26 }
 0x116   :  { %3554 = vmatpush1.bf16.msra.mxu1 %v6732_v18  ;;  %v339_v14 = vld [vmem:[#allocation5 + $0x368] sm:$0xff] }
 0x117   :  { %3555 = vmatprep.subr.bf16.mxu1 %v6725_v24  ;;  %v463_v15 = vld [vmem:[#allocation5 + $0x748] sm:$0xff]  ;;  %v6669_v21 = vcombine.high %v335_v13, %v339_v14 }
 0x118   :  { %3515 = vmatpush1.bf16.msra.mxu0 %v6596_v27  ;;  %v467_v18 = vld [vmem:[#allocation5 + $0x768] sm:$0xff] }
 0x119   :  { %3516 = vmatprep.subr.bf16.mxu0 %v6589_v29  ;;  %v327_v22 = vld [vmem:[#allocation5 + $0x308] sm:$0xff]  ;;  %v6797_v27 = vcombine.high %v463_v15, %v467_v18  ;;  %v6668_v29 = vcombine.low %v335_v13, %v339_v14  ;;  %v6796_v30 = vcombine.low %v463_v15, %v467_v18 }
 0x11a   :  { %3556 = vmatpush1.bf16.msra.mxu1 %v6724_v28  ;;  %v331_v24 = vld [vmem:[#allocation5 + $0x328] sm:$0xff] }
 0x11b   :  { %3557 = vmatprep.subr.bf16.mxu1 %v6717_v33  ;;  %v455_v25 = vld [vmem:[#allocation5 + $0x708] sm:$0xff]  ;;  %v6661_v31 = vcombine.high %v327_v22, %v331_v24 }
 0x11c   :  { %3517 = vmatpush1.bf16.msra.mxu0 %v6588_v36  ;;  %v459_v28 = vld [vmem:[#allocation5 + $0x728] sm:$0xff] }
 0x11d   :  { %3518 = vmatprep.subr.bf16.mxu0 %v6581_v39  ;;  %v319_v32 = vld [vmem:[#allocation5 + $0x2c8] sm:$0xff]  ;;  %v6789_v36 = vcombine.high %v455_v25, %v459_v28  ;;  %v6660_v39 = vcombine.low %v327_v22, %v331_v24  ;;  %v6788_v40 = vcombine.low %v455_v25, %v459_v28 }
 0x11e   :  { %3558 = vmatpush1.bf16.msra.mxu1 %v6716_v37  ;;  %v323_v33 = vld [vmem:[#allocation5 + $0x2e8] sm:$0xff] }
 0x11f   :  { %3559 = vmatprep.subr.bf16.mxu1 %v6709_v43  ;;  %v447_v35 = vld [vmem:[#allocation5 + $0x6c8] sm:$0xff]  ;;  %v6653_v41 = vcombine.high %v319_v32, %v323_v33 }
 0x120   :  { %3519 = vmatpush1.bf16.msra.mxu0 %v6580_v0  ;;  %v451_v37 = vld [vmem:[#allocation5 + $0x6e8] sm:$0xff] }
 0x121   :  { %3520 = vmatprep.subr.bf16.mxu0 %v6573_v6  ;;  %v311_v42 = vld [vmem:[#allocation5 + $0x288] sm:$0xff]  ;;  %v6781_v0 = vcombine.high %v447_v35, %v451_v37  ;;  %v6652_v6 = vcombine.low %v319_v32, %v323_v33  ;;  %v6780_v49 = vcombine.low %v447_v35, %v451_v37 }
 0x122   :  { %3560 = vmatpush1.bf16.msra.mxu1 %v6708_v46  ;;  %v315_v43 = vld [vmem:[#allocation5 + $0x2a8] sm:$0xff] }
 0x123   :  { %3561 = vmatprep.subr.bf16.mxu1 %v6701_v52  ;;  %v439_v44 = vld [vmem:[#allocation5 + $0x688] sm:$0xff]  ;;  %v6645_v50 = vcombine.high %v311_v42, %v315_v43 }
 0x124   :  { %3521 = vmatpush1.bf16.msra.mxu0 %v6572_v55  ;;  %v443_v46 = vld [vmem:[#allocation5 + $0x6a8] sm:$0xff] }
 0x125   :  { %3522 = vmatprep.subr.bf16.mxu0 %v6565_v57  ;;  %v303_v51 = vld [vmem:[#allocation5 + $0x248] sm:$0xff]  ;;  %v6773_v55 = vcombine.high %v439_v44, %v443_v46  ;;  %v6644_v57 = vcombine.low %v311_v42, %v315_v43  ;;  %v6772_v58 = vcombine.low %v439_v44, %v443_v46 }
 0x126   :  { %3562 = vmatpush1.bf16.msra.mxu1 %v6700_v56  ;;  %v307_v52 = vld [vmem:[#allocation5 + $0x268] sm:$0xff] }
 0x127   :  { %3563 = vmatprep.subr.bf16.mxu1 %v6693_v63  ;;  %v431_v53 = vld [vmem:[#allocation5 + $0x648] sm:$0xff]  ;;  %v6637_v59 = vcombine.high %v303_v51, %v307_v52 }
 0x128   :  { %3523 = vmatpush1.bf16.msra.mxu0 %v6564_v2  ;;  %v435_v56 = vld [vmem:[#allocation5 + $0x668] sm:$0xff] }
 0x129   :  { %3524 = vmatprep.subr.bf16.mxu0 %v6685_v4  ;;  %v295_v60 = vld [vmem:[#allocation5 + $0x208] sm:$0xff]  ;;  %v6765_v2 = vcombine.high %v431_v53, %v435_v56  ;;  %v6636_v4 = vcombine.low %v303_v51, %v307_v52  ;;  %v6764_v5 = vcombine.low %v431_v53, %v435_v56 }
 0x12a   :  { %3564 = vmatpush1.bf16.msra.mxu1 %v6692_v3  ;;  %v299_v63 = vld [vmem:[#allocation5 + $0x228] sm:$0xff] }
 0x12b   :  { %3565 = vmatprep.subr.bf16.mxu1 %v6813_v23  ;;  %v423_v1 = vld [vmem:[#allocation5 + $0x608] sm:$0xff]  ;;  %v6629_v7 = vcombine.high %v295_v60, %v299_v63 }
 0x12c   :  { %3525 = vmatpush2.bf16.msra.mxu0 %v6684_v9  ;;  %v427_v3 = vld [vmem:[#allocation5 + $0x628] sm:$0xff] }
 0x12d   :  { %3526 = vmatprep.subr.bf16.mxu0 %v6677_v11  ;;  %v543_v8 = vld [vmem:[#allocation5 + $0x9c8] sm:$0xff]  ;;  %v6757_v9 = vcombine.high %v423_v1, %v427_v3  ;;  %v6628_v11 = vcombine.low %v295_v60, %v299_v63  ;;  %v6756_v13 = vcombine.low %v423_v1, %v427_v3 }
 0x12e   :  { %3566 = vmatpush2.bf16.msra.mxu1 %v6812_v10  ;;  %v547_v23 = vld [vmem:[#allocation5 + $0x9e8] sm:$0xff] }
 0x12f   :  { %3567 = vmatprep.subr.bf16.mxu1 %v6805_v16  ;;  %v671_v26 = vld [vmem:[#allocation5 + $0xdc8] sm:$0xff]  ;;  %v6877_v14 = vcombine.high %v543_v8, %v547_v23 }
 0x130   :  { %3527 = vmatpush2.bf16.msra.mxu0 %v6676_v19  ;;  %v675_v10 = vld [vmem:[#allocation5 + $0xde8] sm:$0xff] }
 0x131   :  { %3528 = vmatprep.subr.bf16.mxu0 %v6669_v21  ;;  %v535_v15 = vld [vmem:[#allocation5 + $0x988] sm:$0xff]  ;;  %v7005_v19 = vcombine.high %v671_v26, %v675_v10  ;;  %v6876_v21 = vcombine.low %v543_v8, %v547_v23  ;;  %v7004_v22 = vcombine.low %v671_v26, %v675_v10 }
 0x132   :  { %3568 = vmatpush2.bf16.msra.mxu1 %v6804_v20  ;;  %v539_v16 = vld [vmem:[#allocation5 + $0x9a8] sm:$0xff] }
 0x133   :  { %3569 = vmatprep.subr.bf16.mxu1 %v6797_v27  ;;  %v663_v18 = vld [vmem:[#allocation5 + $0xd88] sm:$0xff]  ;;  %v6869_v24 = vcombine.high %v535_v15, %v539_v16 }
 0x134   :  { %3529 = vmatpush2.bf16.msra.mxu0 %v6668_v29  ;;  %v667_v20 = vld [vmem:[#allocation5 + $0xda8] sm:$0xff] }
 0x135   :  { %3530 = vmatprep.subr.bf16.mxu0 %v6661_v31  ;;  %v527_v25 = vld [vmem:[#allocation5 + $0x948] sm:$0xff]  ;;  %v6997_v29 = vcombine.high %v663_v18, %v667_v20  ;;  %v6868_v31 = vcombine.low %v535_v15, %v539_v16  ;;  %v6996_v32 = vcombine.low %v663_v18, %v667_v20 }
 0x136   :  { %3570 = vmatpush2.bf16.msra.mxu1 %v6796_v30  ;;  %v531_v27 = vld [vmem:[#allocation5 + $0x968] sm:$0xff] }
 0x137   :  { %3571 = vmatprep.subr.bf16.mxu1 %v6789_v36  ;;  %v655_v28 = vld [vmem:[#allocation5 + $0xd48] sm:$0xff]  ;;  %v6861_v33 = vcombine.high %v527_v25, %v531_v27 }
 0x138   :  { %3531 = vmatpush2.bf16.msra.mxu0 %v6660_v39  ;;  %v659_v30 = vld [vmem:[#allocation5 + $0xd68] sm:$0xff] }
 0x139   :  { %3532 = vmatprep.subr.bf16.mxu0 %v6653_v41  ;;  %v519_v35 = vld [vmem:[#allocation5 + $0x908] sm:$0xff]  ;;  %v6989_v37 = vcombine.high %v655_v28, %v659_v30  ;;  %v6860_v41 = vcombine.low %v527_v25, %v531_v27  ;;  %v6988_v42 = vcombine.low %v655_v28, %v659_v30 }
 0x13a   :  { %3572 = vmatpush2.bf16.msra.mxu1 %v6788_v40  ;;  %v523_v36 = vld [vmem:[#allocation5 + $0x928] sm:$0xff] }
 0x13b   :  { %3573 = vmatprep.subr.bf16.mxu1 %v6781_v0  ;;  %v647_v39 = vld [vmem:[#allocation5 + $0xd08] sm:$0xff]  ;;  %v6853_v43 = vcombine.high %v519_v35, %v523_v36 }
 0x13c   :  { %3533 = vmatpush2.bf16.msra.mxu0 %v6652_v6  ;;  %v651_v40 = vld [vmem:[#allocation5 + $0xd28] sm:$0xff] }
 0x13d   :  { %3534 = vmatprep.subr.bf16.mxu0 %v6645_v50  ;;  %v511_v44 = vld [vmem:[#allocation5 + $0x8c8] sm:$0xff]  ;;  %v6981_v6 = vcombine.high %v647_v39, %v651_v40  ;;  %v6852_v50 = vcombine.low %v519_v35, %v523_v36  ;;  %v6980_v51 = vcombine.low %v647_v39, %v651_v40 }
 0x13e   :  { %3574 = vmatpush2.bf16.msra.mxu1 %v6780_v49  ;;  %v515_v0 = vld [vmem:[#allocation5 + $0x8e8] sm:$0xff] }
 0x13f   :  { %3575 = vmatprep.subr.bf16.mxu1 %v6773_v55  ;;  %v639_v46 = vld [vmem:[#allocation5 + $0xcc8] sm:$0xff]  ;;  %v6845_v52 = vcombine.high %v511_v44, %v515_v0 }
 0x140   :  { %3535 = vmatpush2.bf16.msra.mxu0 %v6644_v57  ;;  %v643_v49 = vld [vmem:[#allocation5 + $0xce8] sm:$0xff] }
 0x141   :  { %3536 = vmatprep.subr.bf16.mxu0 %v6637_v59  ;;  %v503_v53 = vld [vmem:[#allocation5 + $0x888] sm:$0xff]  ;;  %v6973_v57 = vcombine.high %v639_v46, %v643_v49  ;;  %v6844_v59 = vcombine.low %v511_v44, %v515_v0  ;;  %v6972_v60 = vcombine.low %v639_v46, %v643_v49 }
 0x142   :  { %3576 = vmatpush2.bf16.msra.mxu1 %v6772_v58  ;;  %v507_v55 = vld [vmem:[#allocation5 + $0x8a8] sm:$0xff] }
 0x143   :  { %3577 = vmatprep.subr.bf16.mxu1 %v6765_v2  ;;  %v631_v56 = vld [vmem:[#allocation5 + $0xc88] sm:$0xff]  ;;  %v6837_v63 = vcombine.high %v503_v53, %v507_v55 }
 0x144   :  { %3537 = vmatpush2.bf16.msra.mxu0 %v6636_v4  ;;  %v635_v58 = vld [vmem:[#allocation5 + $0xca8] sm:$0xff] }
 0x145   :  { %3538 = vmatprep.subr.bf16.mxu0 %v6629_v7  ;;  %v495_v1 = vld [vmem:[#allocation5 + $0x848] sm:$0xff]  ;;  %v6965_v4 = vcombine.high %v631_v56, %v635_v58  ;;  %v6836_v7 = vcombine.low %v503_v53, %v507_v55  ;;  %v6964_v8 = vcombine.low %v631_v56, %v635_v58 }
 0x146   :  { %3578 = vmatpush2.bf16.msra.mxu1 %v6764_v5  ;;  %v499_v2 = vld [vmem:[#allocation5 + $0x868] sm:$0xff] }
 0x147   :  { %3579 = vmatprep.subr.bf16.mxu1 %v6757_v9  ;;  %v623_v3 = vld [vmem:[#allocation5 + $0xc48] sm:$0xff]  ;;  %v6829_v23 = vcombine.high %v495_v1, %v499_v2 }
 0x148   :  { %3539 = vmatpush2.bf16.msra.mxu0 %v6628_v11  ;;  %v627_v5 = vld [vmem:[#allocation5 + $0xc68] sm:$0xff] }
 0x149   :  { %3590 = vmatprep.subr.bf16.mxu0 %v6877_v14  ;;  %v487_v26 = vld [vmem:[#allocation5 + $0x808] sm:$0xff]  ;;  %v6957_v11 = vcombine.high %v623_v3, %v627_v5  ;;  %v6828_v14 = vcombine.low %v495_v1, %v499_v2  ;;  %v6956_v15 = vcombine.low %v623_v3, %v627_v5 }
 0x14a   :  { %3580 = vmatpush2.bf16.msra.mxu1 %v6756_v13  ;;  %v491_v9 = vld [vmem:[#allocation5 + $0x828] sm:$0xff] }
 0x14b   :  { %3631 = vmatprep.subr.bf16.mxu1 %v7005_v19  ;;  %3541 = vmatmul.mubr.bf16.vlgmr.msra.gmra.mxu0 %v8284_v34  ;;  %v615_v10 = vld [vmem:[#allocation5 + $0xc08] sm:$0xff]  ;;  %v6821_v16 = vcombine.high %v487_v26, %v491_v9 }
 0x14c   :  { %3591 = vmatpush1.bf16.msra.mxu0 %v6876_v21  ;;  %3622 = vmatprep.mubr.bf16.mxu0 %v8292_v47  ;;  %v619_v13 = vld [vmem:[#allocation5 + $0xc28] sm:$0xff] }
 0x14d   :  { %3582 = vmatmul.mubr.bf16.vlgmr.msra.gmra.mxu1 %v8290_v38  ;;  %3592 = vmatprep.subr.bf16.mxu0 %v6869_v24  ;;  %v607_v18 = vld [vmem:[#allocation5 + $0xbc8] sm:$0xff]  ;;  %v6949_v21 = vcombine.high %v615_v10, %v619_v13  ;;  %v6820_v24 = vcombine.low %v487_v26, %v491_v9  ;;  %v6948_v25 = vcombine.low %v615_v10, %v619_v13 }
 0x14e   :  { %3632 = vmatpush1.bf16.msra.mxu1 %v7004_v22  ;;  %3663 = vmatprep.mubr.bf16.mxu1 %v8295_v48  ;;  %v611_v19 = vld [vmem:[#allocation5 + $0xbe8] sm:$0xff] }
 0x14f   :  { %3633 = vmatprep.subr.bf16.mxu1 %v6997_v29  ;;  %v735_v20 = vld [vmem:[#allocation5 + $0xfc8] sm:$0xff]  ;;  %v6941_v27 = vcombine.high %v607_v18, %v611_v19 }
 0x150   :  { %3593 = vmatpush1.bf16.msra.mxu0 %v6868_v31  ;;  %v739_v22 = vld [vmem:[#allocation5 + $0xfe8] sm:$0xff] }
 0x151   :  { %3594 = vmatprep.subr.bf16.mxu0 %v6861_v33  ;;  %v599_v28 = vld [vmem:[#allocation5 + $0xb88] sm:$0xff]  ;;  %v7069_v31 = vcombine.high %v735_v20, %v739_v22  ;;  %v6940_v33 = vcombine.low %v607_v18, %v611_v19  ;;  %v7068_v35 = vcombine.low %v735_v20, %v739_v22 }
 0x152   :  { %3634 = vmatpush1.bf16.msra.mxu1 %v6996_v32  ;;  %v603_v29 = vld [vmem:[#allocation5 + $0xba8] sm:$0xff] }
 0x153   :  { %3635 = vmatprep.subr.bf16.mxu1 %v6989_v37  ;;  %v727_v30 = vld [vmem:[#allocation5 + $0xf88] sm:$0xff]  ;;  %v6933_v36 = vcombine.high %v599_v28, %v603_v29 }
 0x154   :  { %3595 = vmatpush1.bf16.msra.mxu0 %v6860_v41  ;;  %v731_v32 = vld [vmem:[#allocation5 + $0xfa8] sm:$0xff] }
 0x155   :  { %3596 = vmatprep.subr.bf16.mxu0 %v6853_v43  ;;  %v7061_v37 = vcombine.high %v727_v30, %v731_v32  ;;  %v591_v39 = vld [vmem:[#allocation5 + $0xb48] sm:$0xff]  ;;  %v6932_v43 = vcombine.low %v599_v28, %v603_v29  ;;  %v7060_v44 = vcombine.low %v727_v30, %v731_v32  ;;  %v292_v32 = vld [vmem:[#allocation5 + $0x1f0] sm:$0xff] }
 0x156   :  { %3636 = vmatpush1.bf16.msra.mxu1 %v6988_v42  ;;  %v595_v40 = vld [vmem:[#allocation5 + $0xb68] sm:$0xff] }
 0x157   :  { %3637 = vmatprep.subr.bf16.mxu1 %v6981_v6  ;;  %v719_v41 = vld [vmem:[#allocation5 + $0xf48] sm:$0xff]  ;;  %v6925_v0 = vcombine.high %v591_v39, %v595_v40 }
 0x158   :  { %3597 = vmatpush1.bf16.msra.mxu0 %v6852_v50  ;;  %v723_v42 = vld [vmem:[#allocation5 + $0xf68] sm:$0xff] }
 0x159   :  { %3598 = vmatprep.subr.bf16.mxu0 %v6845_v52  ;;  %v7053_v46 = vcombine.high %v719_v41, %v723_v42  ;;  %v583_v6 = vld [vmem:[#allocation5 + $0xb08] sm:$0xff]  ;;  %v6924_v52 = vcombine.low %v591_v39, %v595_v40  ;;  %v7052_v53 = vcombine.low %v719_v41, %v723_v42  ;;  %v8319_v40 = vld [vmem:[#allocation7] sm:$0xff] }
 0x15a   :  { %3638 = vmatpush1.bf16.msra.mxu1 %v6980_v51  ;;  %v587_v49 = vld [vmem:[#allocation5 + $0xb28] sm:$0xff] }
 0x15b   :  { %3639 = vmatprep.subr.bf16.mxu1 %v6973_v57  ;;  %v711_v50 = vld [vmem:[#allocation5 + $0xf08] sm:$0xff]  ;;  %v6917_v55 = vcombine.high %v583_v6, %v587_v49 }
 0x15c   :  { %3599 = vmatpush1.bf16.msra.mxu0 %v6844_v59  ;;  %v715_v51 = vld [vmem:[#allocation5 + $0xf28] sm:$0xff] }
 0x15d   :  { %3600 = vmatprep.subr.bf16.mxu0 %v6837_v63  ;;  %v7045_v56 = vcombine.high %v711_v50, %v715_v51  ;;  %v575_v57 = vld [vmem:[#allocation5 + $0xac8] sm:$0xff]  ;;  %v6916_v63 = vcombine.low %v583_v6, %v587_v49  ;;  %v7044_v1 = vcombine.low %v711_v50, %v715_v51  ;;  %v412_v6 = vld [vmem:[#allocation5 + $0x5b0] sm:$0xff] }
 0x15e   :  { %3640 = vmatpush1.bf16.msra.mxu1 %v6972_v60  ;;  %v579_v58 = vld [vmem:[#allocation5 + $0xae8] sm:$0xff] }
 0x15f   :  { %3641 = vmatprep.subr.bf16.mxu1 %v6965_v4  ;;  %v703_v59 = vld [vmem:[#allocation5 + $0xec8] sm:$0xff]  ;;  %v6909_v2 = vcombine.high %v575_v57, %v579_v58 }
 0x160   :  { %3601 = vmatpush1.bf16.msra.mxu0 %v6836_v7  ;;  %v707_v60 = vld [vmem:[#allocation5 + $0xee8] sm:$0xff] }
 0x161   :  { %3602 = vmatprep.subr.bf16.mxu0 %v6829_v23  ;;  %v7037_v3 = vcombine.high %v703_v59, %v707_v60  ;;  %v567_v4 = vld [vmem:[#allocation5 + $0xa88] sm:$0xff]  ;;  %v6908_v23 = vcombine.low %v575_v57, %v579_v58  ;;  %v7036_v26 = vcombine.low %v703_v59, %v707_v60  ;;  %v276_v57 = vld [vmem:[#allocation5 + $0x170] sm:$0xff] }
 0x162   :  { %3642 = vmatpush1.bf16.msra.mxu1 %v6964_v8  ;;  %v571_v5 = vld [vmem:[#allocation5 + $0xaa8] sm:$0xff]  ;;  %v400_v59 = vld [vmem:[#allocation5 + $0x550] sm:$0xff] }
 0x163   :  { %3643 = vmatprep.subr.bf16.mxu1 %v6957_v11  ;;  %v695_v7 = vld [vmem:[#allocation5 + $0xe88] sm:$0xff]  ;;  %v6901_v9 = vcombine.high %v567_v4, %v571_v5  ;;  %v404_v60 = vld [vmem:[#allocation5 + $0x570] sm:$0xff] }
 0x164   :  { %3603 = vmatpush1.bf16.msra.mxu0 %v6828_v14  ;;  %v699_v8 = vld [vmem:[#allocation5 + $0xea8] sm:$0xff] }
 0x165   :  { %3604 = vmatprep.subr.bf16.mxu0 %v6821_v16  ;;  %v7029_v10 = vcombine.high %v695_v7, %v699_v8  ;;  %v559_v11 = vld [vmem:[#allocation5 + $0xa48] sm:$0xff]  ;;  %v6900_v16 = vcombine.low %v567_v4, %v571_v5  ;;  %v7028_v18 = vcombine.low %v695_v7, %v699_v8 }
 0x166   :  { %3644 = vmatpush1.bf16.msra.mxu1 %v6956_v15  ;;  %v563_v13 = vld [vmem:[#allocation5 + $0xa68] sm:$0xff] }
 0x167   :  { %3645 = vmatprep.subr.bf16.mxu1 %v6949_v21  ;;  %v687_v14 = vld [vmem:[#allocation5 + $0xe48] sm:$0xff]  ;;  %v6893_v19 = vcombine.high %v559_v11, %v563_v13 }
 0x168   :  { %3605 = vmatpush1.bf16.msra.mxu0 %v6820_v24  ;;  %v691_v15 = vld [vmem:[#allocation5 + $0xe68] sm:$0xff] }
 0x169   :  { %3606 = vmatprep.subr.bf16.mxu0 %v6941_v27  ;;  %v7021_v20 = vcombine.high %v687_v14, %v691_v15  ;;  %v551_v21 = vld [vmem:[#allocation5 + $0xa08] sm:$0xff]  ;;  %v6892_v27 = vcombine.low %v559_v11, %v563_v13  ;;  %v7020_v28 = vcombine.low %v687_v14, %v691_v15  ;;  %v392_v13 = vld [vmem:[#allocation5 + $0x510] sm:$0xff] }
 0x16a   :  { %3646 = vmatpush1.bf16.msra.mxu1 %v6948_v25  ;;  %v555_v22 = vld [vmem:[#allocation5 + $0xa28] sm:$0xff]  ;;  %v396_v14 = vld [vmem:[#allocation5 + $0x530] sm:$0xff] }
 0x16b   :  { %3647 = vmatprep.subr.bf16.mxu1 %v7069_v31  ;;  %v679_v24 = vld [vmem:[#allocation5 + $0xe08] sm:$0xff]  ;;  %v6885_v29 = vcombine.high %v551_v21, %v555_v22  ;;  %v288_v31 = vld [vmem:[#allocation5 + $0x1d0] sm:$0xff] }
 0x16c   :  { %3607 = vmatpush2.bf16.msra.mxu0 %v6940_v33  ;;  %v683_v25 = vld [vmem:[#allocation5 + $0xe28] sm:$0xff]  ;;  %v416_v33 = vld [vmem:[#allocation5 + $0x5d0] sm:$0xff]  ;;  %v6623_v41 = vcombine.high %v288_v31, %v292_v32  ;;  %v6622_v50 = vcombine.low %v288_v31, %v292_v32  ;;  %v6726_v31 = vcombine.low %v392_v13, %v396_v14 }
 0x16d   :  { %3608 = vmatprep.subr.bf16.mxu0 %v6933_v36  ;;  %v7013_v30 = vcombine.high %v679_v24, %v683_v25  ;;  %v6884_v36 = vcombine.low %v551_v21, %v555_v22  ;;  %v7012_v39 = vcombine.low %v679_v24, %v683_v25  ;;  %v6727_v24 = vcombine.high %v392_v13, %v396_v14  ;;  %v256_v25 = vld [vmem:[#allocation5 + $0xd0] sm:$0xff] }
 0x16e   :  { %3648 = vmatpush2.bf16.msra.mxu1 %v7068_v35  ;;  %v420_v35 = vld [vmem:[#allocation5 + $0x5f0] sm:$0xff] }
 0x16f   :  { %3649 = vmatprep.subr.bf16.mxu1 %v7061_v37  ;;  %v8317_v37 = vsub.s32 0, %v8253_v45  ;;  %v6751_v42 = vcombine.high %v416_v33, %v420_v35  ;;  %v6750_v51 = vcombine.low %v416_v33, %v420_v35  ;;  %v248_v35 = vld [vmem:[#allocation5 + $0x90] sm:$0xff] }
 0x170   :  { %3609 = vmatpush2.bf16.msra.mxu0 %v6932_v43  ;;  %v8322_v43 = vsub.s32 1, %v8253_v45  ;;  %v344_v13 = vld [vmem:[#allocation5 + $0x390] sm:$0xff] }
 0x171   :  { %3610 = vmatprep.subr.bf16.mxu0 %v6925_v0  ;;  %v284_v0 = vld [vmem:[#allocation5 + $0x1b0] sm:$0xff]  ;;  %v747_v49 = vrot.slane %v8319_v40, %v8317_v37 }
 0x172   :  { %3650 = vmatpush2.bf16.msra.mxu1 %v7060_v44  ;;  %v280_v44 = vld [vmem:[#allocation5 + $0x190] sm:$0xff] }
 0x173   :  { %3651 = vmatprep.subr.bf16.mxu1 %v7053_v46  ;;  %v408_v46 = vld [vmem:[#allocation5 + $0x590] sm:$0xff] }
 0x174   :  { %3611 = vmatpush2.bf16.msra.mxu0 %v6924_v52  ;;  %v6615_v52 = vcombine.high %v280_v44, %v284_v0  ;;  %v6742_v4 = vcombine.low %v408_v46, %v412_v6  ;;  %v348_v14 = vld [vmem:[#allocation5 + $0x3b0] sm:$0xff] }
 0x175   :  { %3612 = vmatprep.subr.bf16.mxu0 %v6917_v55  ;;  %v6743_v55 = vcombine.high %v408_v46, %v412_v6  ;;  %v240_v6 = vld [vmem:[#allocation5 + $0x50] sm:$0xff] }
 0x176   :  { %3652 = vmatpush2.bf16.msra.mxu1 %v7052_v53  ;;  %v751_v53 = vrot.slane %v8319_v40, %v8322_v43 }
 0x177   :  { %3653 = vmatprep.subr.bf16.mxu1 %v7045_v56  ;;  %v272_v56 = vld [vmem:[#allocation5 + $0x150] sm:$0xff] }
 0x178   :  { %3613 = vmatpush2.bf16.msra.mxu0 %v6916_v63  ;;  %v6607_v5 = vcombine.high %v272_v56, %v276_v57 }
 0x179   :  { %3614 = vmatprep.subr.bf16.mxu0 %v6909_v2  ;;  %v6614_v2 = vcombine.low %v280_v44, %v284_v0 }
 0x17a   :  { %3654 = vmatpush2.bf16.msra.mxu1 %v7044_v1 }
 0x17b   :  { %3655 = vmatprep.subr.bf16.mxu1 %v7037_v3 }
 0x17c   :  { %3615 = vmatpush2.bf16.msra.mxu0 %v6908_v23 }
 0x17d   :  { %3616 = vmatprep.subr.bf16.mxu0 %v6901_v9  ;;  %v264_v9 = vld [vmem:[#allocation5 + $0x110] sm:$0xff] }
 0x17e   :  { %3656 = vmatpush2.bf16.msra.mxu1 %v7036_v26  ;;  %v6735_v26 = vcombine.high %v400_v59, %v404_v60 }
 0x17f   :  { %3657 = vmatprep.subr.bf16.mxu1 %v7029_v10  ;;  %v268_v10 = vld [vmem:[#allocation5 + $0x130] sm:$0xff] }
 0x180   :  { %3617 = vmatpush2.bf16.msra.mxu0 %v6900_v16  ;;  %v6599_v21 = vcombine.high %v264_v9, %v268_v10 }
 0x181   :  { %3618 = vmatprep.subr.bf16.mxu0 %v6893_v19 }
 0x182   :  { %3658 = vmatpush2.bf16.msra.mxu1 %v7028_v18  ;;  %v6606_v18 = vcombine.low %v272_v56, %v276_v57  ;;  %v232_v57 = vld [vmem:[#allocation5 + $0x10] sm:$0xff] }
 0x183   :  { %3659 = vmatprep.subr.bf16.mxu1 %v7021_v20  ;;  %v6734_v20 = vcombine.low %v400_v59, %v404_v60  ;;  %v360_v59 = vld [vmem:[#allocation5 + $0x410] sm:$0xff] }
 0x184   :  { %3619 = vmatpush2.bf16.msra.mxu0 %v6892_v27  ;;  %v260_v27 = vld [vmem:[#allocation5 + $0xf0] sm:$0xff] }
 0x185   :  { %3620 = vmatprep.subr.bf16.mxu0 %v6885_v29  ;;  %v388_v29 = vld [vmem:[#allocation5 + $0x4f0] sm:$0xff]  ;;  %v6591_v32 = vcombine.high %v256_v25, %v260_v27 }
 0x186   :  { %3660 = vmatpush2.bf16.msra.mxu1 %v7020_v28  ;;  %v384_v28 = vld [vmem:[#allocation5 + $0x4d0] sm:$0xff] }
 0x187   :  { %3661 = vmatprep.subr.bf16.mxu1 %v7013_v30  ;;  %v6598_v30 = vcombine.low %v264_v9, %v268_v10  ;;  %v6719_v33 = vcombine.high %v384_v28, %v388_v29  ;;  %v6718_v44 = vcombine.low %v384_v28, %v388_v29  ;;  %v364_v60 = vld [vmem:[#allocation5 + $0x430] sm:$0xff]  ;;  %v6678_v29 = vcombine.low %v344_v13, %v348_v14 }
 0x188   :  { %3621 = vmatpush2.bf16.msra.mxu0 %v6884_v36  ;;  %v252_v36 = vld [vmem:[#allocation5 + $0xb0] sm:$0xff]  ;;  %v6694_v9 = vcombine.low %v360_v59, %v364_v60 }
 0x189   :  { %3672 = vmatprep.subr.bf16.mxu0 %v6623_v41  ;;  %v380_v41 = vld [vmem:[#allocation5 + $0x4b0] sm:$0xff]  ;;  %v6583_v0 = vcombine.high %v248_v35, %v252_v36 }
 0x18a   :  { %3662 = vmatpush2.bf16.msra.mxu1 %v7012_v39  ;;  %v376_v39 = vld [vmem:[#allocation5 + $0x490] sm:$0xff] }
 0x18b   :  { %3713 = vmatprep.subr.bf16.mxu1 %v6751_v42  ;;  %v3378_v58 = vpop.f32.mrf.mxu0  ;;  %3623 = vmatmul.mubr.bf16.vlgmr.msra.gmra.mxu0 %v8302_v61  ;;  %v6590_v42 = vcombine.low %v256_v25, %v260_v27  ;;  %v6711_v46 = vcombine.high %v376_v39, %v380_v41  ;;  %v340_v25 = vld [vmem:[#allocation5 + $0x370] sm:$0xff] }
 0x18c   :  { %v3379_v63 = vadd.f32 %v3378_v58, %v747_v49  ;;  %3673 = vmatpush1.bf16.msra.mxu0 %v6622_v50  ;;  %3704 = vmatprep.mubr.bf16.mxu0 %v8266_v12  ;;  %v244_v49 = vld [vmem:[#allocation5 + $0x70] sm:$0xff] }
 0x18d   :  { %v3419_v1 = vpop.f32.mrf.mxu1  ;;  %3664 = vmatmul.mubr.bf16.vlgmr.msra.gmra.mxu1 %v8306_v62  ;;  %v3380_v3 = vpop.f32.mrf.mxu0  ;;  %3674 = vmatprep.subr.bf16.mxu0 %v6615_v52  ;;  %v368_v50 = vld [vmem:[#allocation5 + $0x450] sm:$0xff]  ;;  %v6582_v52 = vcombine.low %v248_v35, %v252_v36 }
 0x18e   :  { %3714 = vmatpush1.bf16.msra.mxu1 %v6750_v51  ;;  %v8330_v7 = vadd.f32 %v3419_v1, %v3379_v63  ;;  %v3381_v8 = vadd.f32 %v3380_v3, %v751_v53  ;;  %3745 = vmatprep.mubr.bf16.mxu1 %v8271_v17  ;;  %v372_v51 = vld [vmem:[#allocation5 + $0x470] sm:$0xff]  ;;  %v6710_v53 = vcombine.low %v376_v39, %v380_v41 }
 0x18f   :  { %v3421_v23 = vpop.f32.mrf.mxu1  ;;  %3715 = vmatprep.subr.bf16.mxu1 %v6743_v55  ;;  %v3382_v11 = vpop.f32.mrf.mxu0  ;;  %v6575_v55 = vcombine.high %v240_v6, %v244_v49  ;;  %v6703_v56 = vcombine.high %v368_v50, %v372_v51  ;;  %v236_v58 = vld [vmem:[#allocation5 + $0x30] sm:$0xff]  ;;  %v6574_v63 = vcombine.low %v240_v6, %v244_v49  ;;  %v6702_v1 = vcombine.low %v368_v50, %v372_v51 }
 0x190   :  { %v8334_v15 = vadd.f32 %v3421_v23, %v3381_v8  ;;  %3675 = vmatpush1.bf16.msra.mxu0 %v6614_v2  ;;  %v6567_v2 = vcombine.high %v232_v57, %v236_v58  ;;  %v6695_v3 = vcombine.high %v360_v59, %v364_v60  ;;  %v480_v8 = vld [vmem:[#allocation5 + $0x7d0] sm:$0xff] }
 0x191   :  { %v3423_v16 = vpop.f32.mrf.mxu1  ;;  %v3383_v19 = vpop.f32.mrf.mxu0  ;;  %3676 = vmatprep.subr.bf16.mxu0 %v6607_v5  ;;  %v356_v5 = vld [vmem:[#allocation5 + $0x3f0] sm:$0xff] }
 0x192   :  { %3716 = vmatpush1.bf16.msra.mxu1 %v6742_v4  ;;  %v352_v4 = vld [vmem:[#allocation5 + $0x3d0] sm:$0xff] }
 0x193   :  { %v3424_v22 = vpop.f32.mrf.mxu1  ;;  %3717 = vmatprep.subr.bf16.mxu1 %v6735_v26  ;;  %v484_v23 = vld [vmem:[#allocation5 + $0x7f0] sm:$0xff]  ;;  %v6566_v26 = vcombine.low %v232_v57, %v236_v58  ;;  %v6687_v10 = vcombine.high %v352_v4, %v356_v5  ;;  %v6686_v19 = vcombine.low %v352_v4, %v356_v5 }
 0x194   :  { %3677 = vmatpush1.bf16.msra.mxu0 %v6606_v18  ;;  %v6815_v11 = vcombine.high %v480_v8, %v484_v23  ;;  %v472_v16 = vld [vmem:[#allocation5 + $0x790] sm:$0xff] }
 0x195   :  { %3678 = vmatprep.subr.bf16.mxu0 %v6599_v21  ;;  %v476_v18 = vld [vmem:[#allocation5 + $0x7b0] sm:$0xff]  ;;  %v6679_v21 = vcombine.high %v344_v13, %v348_v14 }
 0x196   :  { %3718 = vmatpush1.bf16.msra.mxu1 %v6734_v20  ;;  %v6814_v20 = vcombine.low %v480_v8, %v484_v23  ;;  %v6807_v22 = vcombine.high %v472_v16, %v476_v18  ;;  %v464_v27 = vld [vmem:[#allocation5 + $0x750] sm:$0xff] }
 0x197   :  { %3719 = vmatprep.subr.bf16.mxu1 %v6727_v24  ;;  %v336_v24 = vld [vmem:[#allocation5 + $0x350] sm:$0xff] }
 0x198   :  { %3679 = vmatpush1.bf16.msra.mxu0 %v6598_v30  ;;  %v468_v28 = vld [vmem:[#allocation5 + $0x770] sm:$0xff]  ;;  %v6806_v30 = vcombine.low %v472_v16, %v476_v18  ;;  %v6670_v41 = vcombine.low %v336_v24, %v340_v25 }
 0x199   :  { %3680 = vmatprep.subr.bf16.mxu0 %v6591_v32  ;;  %v6799_v32 = vcombine.high %v464_v27, %v468_v28  ;;  %v332_v35 = vld [vmem:[#allocation5 + $0x330] sm:$0xff] }
 0x19a   :  { %3720 = vmatpush1.bf16.msra.mxu1 %v6726_v31  ;;  %v6671_v31 = vcombine.high %v336_v24, %v340_v25  ;;  %v456_v36 = vld [vmem:[#allocation5 + $0x710] sm:$0xff] }
 0x19b   :  { %3721 = vmatprep.subr.bf16.mxu1 %v6719_v33  ;;  %v328_v33 = vld [vmem:[#allocation5 + $0x310] sm:$0xff] }
 0x19c   :  { %3681 = vmatpush1.bf16.msra.mxu0 %v6590_v42  ;;  %v460_v39 = vld [vmem:[#allocation5 + $0x730] sm:$0xff]  ;;  %v6798_v42 = vcombine.low %v464_v27, %v468_v28  ;;  %v6662_v51 = vcombine.low %v328_v33, %v332_v35 }
 0x19d   :  { %3682 = vmatprep.subr.bf16.mxu0 %v6583_v0  ;;  %v6791_v0 = vcombine.high %v456_v36, %v460_v39  ;;  %v324_v6 = vld [vmem:[#allocation5 + $0x2f0] sm:$0xff] }
 0x19e   :  { %3722 = vmatpush1.bf16.msra.mxu1 %v6718_v44  ;;  %v6663_v44 = vcombine.high %v328_v33, %v332_v35  ;;  %v448_v49 = vld [vmem:[#allocation5 + $0x6d0] sm:$0xff] }
 0x19f   :  { %3723 = vmatprep.subr.bf16.mxu1 %v6711_v46  ;;  %v320_v46 = vld [vmem:[#allocation5 + $0x2d0] sm:$0xff] }
 0x1a0   :  { %3683 = vmatpush1.bf16.msra.mxu0 %v6582_v52  ;;  %v452_v50 = vld [vmem:[#allocation5 + $0x6f0] sm:$0xff]  ;;  %v6790_v52 = vcombine.low %v456_v36, %v460_v39  ;;  %v6654_v60 = vcombine.low %v320_v46, %v324_v6  ;;  %v4024_v39 = vld [vmem:[#allocation8] sm:$0xff] }
 0x1a1   :  { %3684 = vmatprep.subr.bf16.mxu0 %v6575_v55  ;;  %v6783_v55 = vcombine.high %v448_v49, %v452_v50  ;;  %v316_v57 = vld [vmem:[#allocation5 + $0x2b0] sm:$0xff] }
 0x1a2   :  { %3724 = vmatpush1.bf16.msra.mxu1 %v6710_v53  ;;  %v6655_v53 = vcombine.high %v320_v46, %v324_v6  ;;  %v440_v58 = vld [vmem:[#allocation5 + $0x690] sm:$0xff] }
 0x1a3   :  { %3725 = vmatprep.subr.bf16.mxu1 %v6703_v56  ;;  %v312_v56 = vld [vmem:[#allocation5 + $0x290] sm:$0xff] }
 0x1a4   :  { %3685 = vmatpush1.bf16.msra.mxu0 %v6574_v63  ;;  %v444_v59 = vld [vmem:[#allocation5 + $0x6b0] sm:$0xff]  ;;  %v6782_v63 = vcombine.low %v448_v49, %v452_v50  ;;  %v6646_v23 = vcombine.low %v312_v56, %v316_v57  ;;  %v8336_v50 = vunpack.c.l.bf16 %v4024_v39 }
 0x1a5   :  { %3686 = vmatprep.subr.bf16.mxu0 %v6567_v2  ;;  %v6775_v2 = vcombine.high %v440_v58, %v444_v59  ;;  %v308_v4 = vld [vmem:[#allocation5 + $0x270] sm:$0xff] }
 0x1a6   :  { %3726 = vmatpush1.bf16.msra.mxu1 %v6702_v1  ;;  %v6647_v1 = vcombine.high %v312_v56, %v316_v57  ;;  %v432_v5 = vld [vmem:[#allocation5 + $0x650] sm:$0xff] }
 0x1a7   :  { %3727 = vmatprep.subr.bf16.mxu1 %v6695_v3  ;;  %v304_v3 = vld [vmem:[#allocation5 + $0x250] sm:$0xff] }
 0x1a8   :  { %3687 = vmatpush1.bf16.msra.mxu0 %v6566_v26  ;;  %v436_v8 = vld [vmem:[#allocation5 + $0x670] sm:$0xff]  ;;  %v6774_v26 = vcombine.low %v440_v58, %v444_v59  ;;  %v6638_v18 = vcombine.low %v304_v3, %v308_v4 }
 0x1a9   :  { %3688 = vmatprep.subr.bf16.mxu0 %v6687_v10  ;;  %v6767_v10 = vcombine.high %v432_v5, %v436_v8  ;;  %v300_v13 = vld [vmem:[#allocation5 + $0x230] sm:$0xff] }
 0x1aa   :  { %3728 = vmatpush1.bf16.msra.mxu1 %v6694_v9  ;;  %v6639_v9 = vcombine.high %v304_v3, %v308_v4  ;;  %v424_v14 = vld [vmem:[#allocation5 + $0x610] sm:$0xff] }
 0x1ab   :  { %3729 = vmatprep.subr.bf16.mxu1 %v6815_v11  ;;  %v296_v11 = vld [vmem:[#allocation5 + $0x210] sm:$0xff] }
 0x1ac   :  { %3689 = vmatpush2.bf16.msra.mxu0 %v6686_v19  ;;  %v428_v16 = vld [vmem:[#allocation5 + $0x630] sm:$0xff]  ;;  %v6766_v19 = vcombine.low %v432_v5, %v436_v8  ;;  %v6630_v28 = vcombine.low %v296_v11, %v300_v13 }
 0x1ad   :  { %3690 = vmatprep.subr.bf16.mxu0 %v6679_v21  ;;  %v6759_v21 = vcombine.high %v424_v14, %v428_v16  ;;  %v548_v24 = vld [vmem:[#allocation5 + $0x9f0] sm:$0xff] }
 0x1ae   :  { %3730 = vmatpush2.bf16.msra.mxu1 %v6814_v20  ;;  %v6631_v20 = vcombine.high %v296_v11, %v300_v13  ;;  %v672_v25 = vld [vmem:[#allocation5 + $0xdd0] sm:$0xff] }
 0x1af   :  { %3731 = vmatprep.subr.bf16.mxu1 %v6807_v22  ;;  %v544_v22 = vld [vmem:[#allocation5 + $0x9d0] sm:$0xff] }
 0x1b0   :  { %3691 = vmatpush2.bf16.msra.mxu0 %v6678_v29  ;;  %v676_v27 = vld [vmem:[#allocation5 + $0xdf0] sm:$0xff]  ;;  %v6758_v29 = vcombine.low %v424_v14, %v428_v16 }
 0x1b1   :  { %3692 = vmatprep.subr.bf16.mxu0 %v6671_v31  ;;  %v7007_v31 = vcombine.high %v672_v25, %v676_v27  ;;  %v540_v33 = vld [vmem:[#allocation5 + $0x9b0] sm:$0xff] }
 0x1b2   :  { %3732 = vmatpush2.bf16.msra.mxu1 %v6806_v30  ;;  %v6879_v30 = vcombine.high %v544_v22, %v548_v24  ;;  %v664_v35 = vld [vmem:[#allocation5 + $0xd90] sm:$0xff] }
 0x1b3   :  { %3733 = vmatprep.subr.bf16.mxu1 %v6799_v32  ;;  %v536_v32 = vld [vmem:[#allocation5 + $0x990] sm:$0xff] }
 0x1b4   :  { %3693 = vmatpush2.bf16.msra.mxu0 %v6670_v41  ;;  %v668_v36 = vld [vmem:[#allocation5 + $0xdb0] sm:$0xff]  ;;  %v6878_v41 = vcombine.low %v544_v22, %v548_v24  ;;  %v6870_v56 = vcombine.low %v536_v32, %v540_v33 }
 0x1b5   :  { %3694 = vmatprep.subr.bf16.mxu0 %v6663_v44  ;;  %v6871_v44 = vcombine.high %v536_v32, %v540_v33  ;;  %v528_v46 = vld [vmem:[#allocation5 + $0x950] sm:$0xff]  ;;  %v6998_v58 = vcombine.low %v664_v35, %v668_v36 }
 0x1b6   :  { %3734 = vmatpush2.bf16.msra.mxu1 %v6798_v42  ;;  %v7006_v42 = vcombine.low %v672_v25, %v676_v27  ;;  %v532_v6 = vld [vmem:[#allocation5 + $0x970] sm:$0xff] }
 0x1b7   :  { %3735 = vmatprep.subr.bf16.mxu1 %v6791_v0  ;;  %v6999_v0 = vcombine.high %v664_v35, %v668_v36  ;;  %v6863_v59 = vcombine.high %v528_v46, %v532_v6  ;;  %v520_v3 = vld [vmem:[#allocation5 + $0x910] sm:$0xff] }
 0x1b8   :  { %3695 = vmatpush2.bf16.msra.mxu0 %v6662_v51  ;;  %v656_v51 = vld [vmem:[#allocation5 + $0xd50] sm:$0xff] }
 0x1b9   :  { %3696 = vmatprep.subr.bf16.mxu0 %v6655_v53  ;;  %v524_v4 = vld [vmem:[#allocation5 + $0x930] sm:$0xff] }
 0x1ba   :  { %3736 = vmatpush2.bf16.msra.mxu1 %v6790_v52  ;;  %v660_v52 = vld [vmem:[#allocation5 + $0xd70] sm:$0xff]  ;;  %v6855_v14 = vcombine.high %v520_v3, %v524_v4  ;;  %v6854_v27 = vcombine.low %v520_v3, %v524_v4 }
 0x1bb   :  { %3737 = vmatprep.subr.bf16.mxu1 %v6783_v55  ;;  %v648_v8 = vld [vmem:[#allocation5 + $0xd10] sm:$0xff]  ;;  %v6990_v13 = vcombine.low %v656_v51, %v660_v52 }
 0x1bc   :  { %3697 = vmatpush2.bf16.msra.mxu0 %v6654_v60  ;;  %v640_v24 = vld [vmem:[#allocation5 + $0xcd0] sm:$0xff] }
 0x1bd   :  { %3698 = vmatprep.subr.bf16.mxu0 %v6647_v1  ;;  %v644_v25 = vld [vmem:[#allocation5 + $0xcf0] sm:$0xff] }
 0x1be   :  { %3738 = vmatpush2.bf16.msra.mxu1 %v6782_v63  ;;  %v508_v32 = vld [vmem:[#allocation5 + $0x8b0] sm:$0xff]  ;;  %v6974_v39 = vcombine.low %v640_v24, %v644_v25 }
 0x1bf   :  { %3739 = vmatprep.subr.bf16.mxu1 %v6775_v2  ;;  %v6991_v2 = vcombine.high %v656_v51, %v660_v52  ;;  %v632_v33 = vld [vmem:[#allocation5 + $0xc90] sm:$0xff] }
 0x1c0   :  { %3699 = vmatpush2.bf16.msra.mxu0 %v6646_v23  ;;  %v652_v23 = vld [vmem:[#allocation5 + $0xd30] sm:$0xff] }
 0x1c1   :  { %3700 = vmatprep.subr.bf16.mxu0 %v6639_v9  ;;  %v636_v35 = vld [vmem:[#allocation5 + $0xcb0] sm:$0xff] }
 0x1c2   :  { %3740 = vmatpush2.bf16.msra.mxu1 %v6774_v26  ;;  %v6966_v51 = vcombine.low %v632_v33, %v636_v35  ;;  %v612_v3 = vld [vmem:[#allocation5 + $0xbf0] sm:$0xff] }
 0x1c3   :  { %3741 = vmatprep.subr.bf16.mxu1 %v6767_v10  ;;  %v6862_v10 = vcombine.low %v528_v46, %v532_v6  ;;  %v624_v46 = vld [vmem:[#allocation5 + $0xc50] sm:$0xff] }
 0x1c4   :  { %3701 = vmatpush2.bf16.msra.mxu0 %v6638_v18  ;;  %v628_v6 = vld [vmem:[#allocation5 + $0xc70] sm:$0xff] }
 0x1c5   :  { %3702 = vmatprep.subr.bf16.mxu0 %v6631_v20  ;;  %v512_v20 = vld [vmem:[#allocation5 + $0x8d0] sm:$0xff] }
 0x1c6   :  { %3742 = vmatpush2.bf16.msra.mxu1 %v6766_v19  ;;  %v6983_v19 = vcombine.high %v648_v8, %v652_v23  ;;  %v736_v4 = vld [vmem:[#allocation5 + $0xfd0] sm:$0xff] }
 0x1c7   :  { %3743 = vmatprep.subr.bf16.mxu1 %v6759_v21  ;;  %v516_v21 = vld [vmem:[#allocation5 + $0x8f0] sm:$0xff] }
 0x1c8   :  { %3703 = vmatpush2.bf16.msra.mxu0 %v6630_v28  ;;  %v6982_v28 = vcombine.low %v648_v8, %v652_v23  ;;  %v6846_v36 = vcombine.low %v512_v20, %v516_v21 }
 0x1c9   :  { %3754 = vmatprep.subr.bf16.mxu0 %v6879_v30  ;;  %v6975_v30 = vcombine.high %v640_v24, %v644_v25  ;;  %v596_v24 = vld [vmem:[#allocation5 + $0xb70] sm:$0xff] }
 0x1ca   :  { %3744 = vmatpush2.bf16.msra.mxu1 %v6758_v29  ;;  %v6847_v29 = vcombine.high %v512_v20, %v516_v21  ;;  %v592_v21 = vld [vmem:[#allocation5 + $0xb50] sm:$0xff] }
 0x1cb   :  { %3795 = vmatprep.subr.bf16.mxu1 %v7007_v31  ;;  %v3460_v49 = vpop.f32.mrf.mxu0  ;;  %3705 = vmatmul.mubr.bf16.vlgmr.msra.gmra.mxu0 %v8284_v34  ;;  %v504_v31 = vld [vmem:[#allocation5 + $0x890] sm:$0xff] }
 0x1cc   :  { %v3461_v53 = vadd.f32 %v3460_v49, %v8330_v7  ;;  %3755 = vmatpush1.bf16.msra.mxu0 %v6878_v41  ;;  %3786 = vmatprep.mubr.bf16.mxu0 %v8292_v47  ;;  %v8345_v7 = vrot.slane %v8336_v50, %v8256_v54  ;;  %v6839_v41 = vcombine.high %v504_v31, %v508_v32  ;;  %v720_v25 = vld [vmem:[#allocation5 + $0xf50] sm:$0xff] }
 0x1cd   :  { %v3501_v55 = vpop.f32.mrf.mxu1  ;;  %3746 = vmatmul.mubr.bf16.vlgmr.msra.gmra.mxu1 %v8290_v38  ;;  %v3462_v57 = vpop.f32.mrf.mxu0  ;;  %3756 = vmatprep.subr.bf16.mxu0 %v6871_v44  ;;  %v496_v44 = vld [vmem:[#allocation5 + $0x850] sm:$0xff]  ;;  %v6838_v49 = vcombine.low %v504_v31, %v508_v32 }
 0x1ce   :  { %3796 = vmatpush1.bf16.msra.mxu1 %v7006_v42  ;;  %v3502_v60 = vadd.f32 %v3501_v55, %v3461_v53  ;;  %v3463_v63 = vadd.f32 %v3462_v57, %v8334_v15  ;;  %3827 = vmatprep.mubr.bf16.mxu1 %v8295_v48  ;;  %v6967_v42 = vcombine.high %v632_v33, %v636_v35  ;;  %v488_v55 = vld [vmem:[#allocation5 + $0x810] sm:$0xff] }
 0x1cf   :  { %v3503_v1 = vpop.f32.mrf.mxu1  ;;  %3797 = vmatprep.subr.bf16.mxu1 %v6999_v0  ;;  %v3464_v5 = vpop.f32.mrf.mxu0  ;;  %v500_v0 = vld [vmem:[#allocation5 + $0x870] sm:$0xff]  ;;  %v6959_v53 = vcombine.high %v624_v46, %v628_v6 }
 0x1d0   :  { %vm4000_vm0 = vcmp.gt.f32.partialorder %v3502_v60, 0.0  ;;  %v4008_v26 = vmul.f32 0.2, %v3502_v60  ;;  %v8348_v9 = vadd.f32 %v3503_v1, %v3463_v63  ;;  %3757 = vmatpush1.bf16.msra.mxu0 %v6870_v56  ;;  %v6831_v52 = vcombine.high %v496_v44, %v500_v0  ;;  %v492_v56 = vld [vmem:[#allocation5 + $0x830] sm:$0xff] }
 0x1d1   :  { %v3505_v15 = vpop.f32.mrf.mxu1  ;;  %v3465_v11 = vpop.f32.mrf.mxu0  ;;  %3758 = vmatprep.subr.bf16.mxu0 %v6863_v59  ;;  %v616_v57 = vld [vmem:[#allocation5 + $0xc10] sm:$0xff]  ;;  %v6830_v59 = vcombine.low %v496_v44, %v500_v0  ;;  %v6823_v63 = vcombine.high %v488_v55, %v492_v56  ;;  %v6822_v8 = vcombine.low %v488_v55, %v492_v56 }
 0x1d2   :  { %3798 = vmatpush1.bf16.msra.mxu1 %v6998_v58  ;;  %v4016_v16 = vsel %vm4000_vm0, %v3502_v60, %v4008_v26  ;;  %v620_v58 = vld [vmem:[#allocation5 + $0xc30] sm:$0xff]  ;;  %v6958_v60 = vcombine.low %v624_v46, %v628_v6  ;;  %vm4001_vm2 = vcmp.gt.f32.partialorder %v8348_v9, 0.0 }
 0x1d3   :  { %v3506_v18 = vpop.f32.mrf.mxu1  ;;  %3799 = vmatprep.subr.bf16.mxu1 %v6991_v2  ;;  %v8351_v22 = vmul.f32 %v8345_v7, %v4016_v16  ;;  %v6951_v1 = vcombine.high %v616_v57, %v620_v58  ;;  %v608_v2 = vld [vmem:[#allocation5 + $0xbd0] sm:$0xff]  ;;  %v6950_v23 = vcombine.low %v616_v57, %v620_v58 }
 0x1d4   :  { %3759 = vmatpush1.bf16.msra.mxu0 %v6862_v10  ;;  %v740_v5 = vld [vmem:[#allocation5 + $0xff0] sm:$0xff]  ;;  %v6943_v26 = vcombine.high %v608_v2, %v612_v3  ;;  %v6942_v16 = vcombine.low %v608_v2, %v612_v3 }
 0x1d5   :  { %3760 = vmatprep.subr.bf16.mxu0 %v6855_v14  ;;  %v7071_v15 = vcombine.high %v736_v4, %v740_v5  ;;  %v600_v10 = vld [vmem:[#allocation5 + $0xb90] sm:$0xff]  ;;  %v7070_v18 = vcombine.low %v736_v4, %v740_v5 }
 0x1d6   :  { %3800 = vmatpush1.bf16.msra.mxu1 %v6990_v13  ;;  %v604_v11 = vld [vmem:[#allocation5 + $0xbb0] sm:$0xff] }
 0x1d7   :  { %3801 = vmatprep.subr.bf16.mxu1 %v6983_v19  ;;  %v728_v13 = vld [vmem:[#allocation5 + $0xf90] sm:$0xff]  ;;  %v6935_v19 = vcombine.high %v600_v10, %v604_v11 }
 0x1d8   :  { %3761 = vmatpush1.bf16.msra.mxu0 %v6854_v27  ;;  %v732_v14 = vld [vmem:[#allocation5 + $0xfb0] sm:$0xff] }
 0x1d9   :  { %3762 = vmatprep.subr.bf16.mxu0 %v6847_v29  ;;  %v7063_v20 = vcombine.high %v728_v13, %v732_v14  ;;  %v724_v27 = vld [vmem:[#allocation5 + $0xf70] sm:$0xff]  ;;  %v7062_v29 = vcombine.low %v728_v13, %v732_v14 }
 0x1da   :  { %3802 = vmatpush1.bf16.msra.mxu1 %v6982_v28  ;;  %v6934_v28 = vcombine.low %v600_v10, %v604_v11  ;;  %v7055_v31 = vcombine.high %v720_v25, %v724_v27  ;;  %v584_v32 = vld [vmem:[#allocation5 + $0xb10] sm:$0xff] }
 0x1db   :  { %3803 = vmatprep.subr.bf16.mxu1 %v6975_v30  ;;  %v6927_v30 = vcombine.high %v592_v21, %v596_v24  ;;  %v588_v33 = vld [vmem:[#allocation5 + $0xb30] sm:$0xff] }
 0x1dc   :  { %3763 = vmatpush1.bf16.msra.mxu0 %v6846_v36  ;;  %v712_v35 = vld [vmem:[#allocation5 + $0xf10] sm:$0xff] }
 0x1dd   :  { %3764 = vmatprep.subr.bf16.mxu0 %v6839_v41  ;;  %v716_v36 = vld [vmem:[#allocation5 + $0xf30] sm:$0xff]  ;;  %v7054_v41 = vcombine.low %v720_v25, %v724_v27  ;;  %v293_v25 = vld [vmem:[#allocation5 + $0x1f8] sm:$0xff] }
 0x1de   :  { %3804 = vmatpush1.bf16.msra.mxu1 %v6974_v39  ;;  %v6926_v39 = vcombine.low %v592_v21, %v596_v24  ;;  %v7047_v44 = vcombine.high %v712_v35, %v716_v36  ;;  %v576_v0 = vld [vmem:[#allocation5 + $0xad0] sm:$0xff]  ;;  %v289_v24 = vld [vmem:[#allocation5 + $0x1d8] sm:$0xff] }
 0x1df   :  { %3805 = vmatprep.subr.bf16.mxu1 %v6967_v42  ;;  %v6919_v42 = vcombine.high %v584_v32, %v588_v33  ;;  %v580_v46 = vld [vmem:[#allocation5 + $0xaf0] sm:$0xff]  ;;  %v417_v27 = vld [vmem:[#allocation5 + $0x5d8] sm:$0xff] }
 0x1e0   :  { %3765 = vmatpush1.bf16.msra.mxu0 %v6838_v49  ;;  %v704_v6 = vld [vmem:[#allocation5 + $0xed0] sm:$0xff] }
 0x1e1   :  { %3766 = vmatprep.subr.bf16.mxu0 %v6831_v52  ;;  %v708_v49 = vld [vmem:[#allocation5 + $0xef0] sm:$0xff]  ;;  %v7046_v52 = vcombine.low %v712_v35, %v716_v36  ;;  %v758_v35 = vsub.s32 3, %v8253_v45  ;;  %v281_v36 = vld [vmem:[#allocation5 + $0x198] sm:$0xff] }
 0x1e2   :  { %3806 = vmatpush1.bf16.msra.mxu1 %v6966_v51  ;;  %v6918_v51 = vcombine.low %v584_v32, %v588_v33  ;;  %v7039_v55 = vcombine.high %v704_v6, %v708_v49  ;;  %v568_v56 = vld [vmem:[#allocation5 + $0xa90] sm:$0xff]  ;;  %v6625_v32 = vcombine.high %v289_v24, %v293_v25 }
 0x1e3   :  { %3807 = vmatprep.subr.bf16.mxu1 %v6959_v53  ;;  %v6911_v53 = vcombine.high %v576_v0, %v580_v46  ;;  %v572_v57 = vld [vmem:[#allocation5 + $0xab0] sm:$0xff] }
 0x1e4   :  { %3767 = vmatpush1.bf16.msra.mxu0 %v6830_v59  ;;  %v696_v58 = vld [vmem:[#allocation5 + $0xe90] sm:$0xff] }
 0x1e5   :  { %3768 = vmatprep.subr.bf16.mxu0 %v6823_v63  ;;  %v700_v59 = vld [vmem:[#allocation5 + $0xeb0] sm:$0xff]  ;;  %v7038_v63 = vcombine.low %v704_v6, %v708_v49  ;;  %v759_v49 = vrot.slane %v8319_v40, %v758_v35 }
 0x1e6   :  { %3808 = vmatpush1.bf16.msra.mxu1 %v6958_v60  ;;  %v6910_v60 = vcombine.low %v576_v0, %v580_v46  ;;  %v7031_v2 = vcombine.high %v696_v58, %v700_v59  ;;  %v560_v3 = vld [vmem:[#allocation5 + $0xa50] sm:$0xff]  ;;  %v6624_v0 = vcombine.low %v289_v24, %v293_v25  ;;  %v257_v24 = vld [vmem:[#allocation5 + $0xd8] sm:$0xff] }
 0x1e7   :  { %3809 = vmatprep.subr.bf16.mxu1 %v6951_v1  ;;  %v6903_v1 = vcombine.high %v568_v56, %v572_v57  ;;  %v564_v4 = vld [vmem:[#allocation5 + $0xa70] sm:$0xff]  ;;  %v385_v25 = vld [vmem:[#allocation5 + $0x4d8] sm:$0xff] }
 0x1e8   :  { %3769 = vmatpush1.bf16.msra.mxu0 %v6822_v8  ;;  %v688_v5 = vld [vmem:[#allocation5 + $0xe50] sm:$0xff] }
 0x1e9   :  { %3770 = vmatprep.subr.bf16.mxu0 %v6943_v26  ;;  %v692_v8 = vld [vmem:[#allocation5 + $0xe70] sm:$0xff]  ;;  %v7030_v26 = vcombine.low %v696_v58, %v700_v59 }
 0x1ea   :  { %3810 = vmatpush1.bf16.msra.mxu1 %v6950_v23  ;;  %v6902_v23 = vcombine.low %v568_v56, %v572_v57  ;;  %v7023_v10 = vcombine.high %v688_v5, %v692_v8  ;;  %v552_v11 = vld [vmem:[#allocation5 + $0xa10] sm:$0xff]  ;;  %v401_v56 = vld [vmem:[#allocation5 + $0x558] sm:$0xff] }
 0x1eb   :  { %3811 = vmatprep.subr.bf16.mxu1 %v7071_v15  ;;  %v6895_v15 = vcombine.high %v560_v3, %v564_v4  ;;  %v556_v13 = vld [vmem:[#allocation5 + $0xa30] sm:$0xff]  ;;  %v405_v57 = vld [vmem:[#allocation5 + $0x578] sm:$0xff] }
 0x1ec   :  { %3771 = vmatpush2.bf16.msra.mxu0 %v6942_v16  ;;  %v680_v14 = vld [vmem:[#allocation5 + $0xe10] sm:$0xff] }
 0x1ed   :  { %3772 = vmatprep.subr.bf16.mxu0 %v6935_v19  ;;  %v684_v16 = vld [vmem:[#allocation5 + $0xe30] sm:$0xff]  ;;  %v7022_v19 = vcombine.low %v688_v5, %v692_v8  ;;  %v6737_v5 = vcombine.high %v401_v56, %v405_v57  ;;  %v265_v8 = vld [vmem:[#allocation5 + $0x118] sm:$0xff] }
 0x1ee   :  { %3812 = vmatpush2.bf16.msra.mxu1 %v7070_v18  ;;  %v6894_v18 = vcombine.low %v560_v3, %v564_v4  ;;  %v7015_v21 = vcombine.high %v680_v14, %v684_v16 }
 0x1ef   :  { %3813 = vmatprep.subr.bf16.mxu1 %v7063_v20  ;;  %v6887_v20 = vcombine.high %v552_v11, %v556_v13 }
 0x1f0   :  { %3773 = vmatpush2.bf16.msra.mxu0 %v6934_v28  ;;  %v421_v28 = vld [vmem:[#allocation5 + $0x5f8] sm:$0xff] }
 0x1f1   :  { %3774 = vmatprep.subr.bf16.mxu0 %v6927_v30  ;;  %v754_v30 = vsub.s32 2, %v8253_v45  ;;  %v6753_v33 = vcombine.high %v417_v27, %v421_v28  ;;  %v6752_v46 = vcombine.low %v417_v27, %v421_v28  ;;  %v389_v27 = vld [vmem:[#allocation5 + $0x4f8] sm:$0xff] }
 0x1f2   :  { %3814 = vmatpush2.bf16.msra.mxu1 %v7062_v29  ;;  %v6886_v29 = vcombine.low %v552_v11, %v556_v13 }
 0x1f3   :  { %3815 = vmatprep.subr.bf16.mxu1 %v7055_v31  ;;  %v7014_v31 = vcombine.low %v680_v14, %v684_v16 }
 0x1f4   :  { %3775 = vmatpush2.bf16.msra.mxu0 %v6926_v39  ;;  %v285_v39 = vld [vmem:[#allocation5 + $0x1b8] sm:$0xff] }
 0x1f5   :  { %3776 = vmatprep.subr.bf16.mxu0 %v6919_v42  ;;  %v413_v42 = vld [vmem:[#allocation5 + $0x5b8] sm:$0xff]  ;;  %v6617_v6 = vcombine.high %v281_v36, %v285_v39 }
 0x1f6   :  { %3816 = vmatpush2.bf16.msra.mxu1 %v7054_v41  ;;  %v409_v41 = vld [vmem:[#allocation5 + $0x598] sm:$0xff] }
 0x1f7   :  { %3817 = vmatprep.subr.bf16.mxu1 %v7047_v44  ;;  %v755_v44 = vrot.slane %v8319_v40, %v754_v30 }
 0x1f8   :  { %3777 = vmatpush2.bf16.msra.mxu0 %v6918_v51  ;;  %v6745_v51 = vcombine.high %v409_v41, %v413_v42 }
 0x1f9   :  { %3778 = vmatprep.subr.bf16.mxu0 %v6911_v53  ;;  %v277_v53 = vld [vmem:[#allocation5 + $0x178] sm:$0xff] }
 0x1fa   :  { %3818 = vmatpush2.bf16.msra.mxu1 %v7046_v52  ;;  %v273_v52 = vld [vmem:[#allocation5 + $0x158] sm:$0xff] }
 0x1fb   :  { %3819 = vmatprep.subr.bf16.mxu1 %v7039_v55  ;;  %v6608_v14 = vcombine.low %v273_v52, %v277_v53 }
 0x1fc   :  { %3779 = vmatpush2.bf16.msra.mxu0 %v6910_v60  ;;  %v6616_v60 = vcombine.low %v281_v36, %v285_v39  ;;  %v377_v36 = vld [vmem:[#allocation5 + $0x498] sm:$0xff] }
 0x1fd   :  { %3780 = vmatprep.subr.bf16.mxu0 %v6903_v1  ;;  %v6744_v1 = vcombine.low %v409_v41, %v413_v42  ;;  %v381_v39 = vld [vmem:[#allocation5 + $0x4b8] sm:$0xff]  ;;  %v6720_v42 = vcombine.low %v385_v25, %v389_v27 }
 0x1fe   :  { %3820 = vmatpush2.bf16.msra.mxu1 %v7038_v63 }
 0x1ff   :  { %3821 = vmatprep.subr.bf16.mxu1 %v7031_v2  ;;  %v6609_v2 = vcombine.high %v273_v52, %v277_v53  ;;  %v6712_v53 = vcombine.low %v377_v36, %v381_v39 }
 0x200   :  { %3781 = vmatpush2.bf16.msra.mxu0 %v6902_v23  ;;  %v269_v23 = vld [vmem:[#allocation5 + $0x138] sm:$0xff] }
 0x201   :  { %3782 = vmatprep.subr.bf16.mxu0 %v6895_v15  ;;  %v393_v15 = vld [vmem:[#allocation5 + $0x518] sm:$0xff]  ;;  %v6600_v28 = vcombine.low %v265_v8, %v269_v23 }
 0x202   :  { %3822 = vmatpush2.bf16.msra.mxu1 %v7030_v26 }
 0x203   :  { %3823 = vmatprep.subr.bf16.mxu1 %v7023_v10  ;;  %v397_v10 = vld [vmem:[#allocation5 + $0x538] sm:$0xff] }
 0x204   :  { %3783 = vmatpush2.bf16.msra.mxu0 %v6894_v18  ;;  %v6736_v18 = vcombine.low %v401_v56, %v405_v57  ;;  %v233_v57 = vld [vmem:[#allocation5 + $0x18] sm:$0xff] }
 0x205   :  { %3784 = vmatprep.subr.bf16.mxu0 %v6887_v20 }
 0x206   :  { %3824 = vmatpush2.bf16.msra.mxu1 %v7022_v19  ;;  %v6601_v19 = vcombine.high %v265_v8, %v269_v23  ;;  %v481_v8 = vld [vmem:[#allocation5 + $0x7d8] sm:$0xff] }
 0x207   :  { %3825 = vmatprep.subr.bf16.mxu1 %v7015_v21  ;;  %v6729_v21 = vcombine.high %v393_v15, %v397_v10  ;;  %v485_v23 = vld [vmem:[#allocation5 + $0x7f8] sm:$0xff] }
 0x208   :  { %3785 = vmatpush2.bf16.msra.mxu0 %v6886_v29 }
 0x209   :  { %3836 = vmatprep.subr.bf16.mxu0 %v6625_v32  ;;  %v249_v32 = vld [vmem:[#allocation5 + $0x98] sm:$0xff] }
 0x20a   :  { %3826 = vmatpush2.bf16.msra.mxu1 %v7014_v31  ;;  %v6721_v31 = vcombine.high %v385_v25, %v389_v27  ;;  %v337_v25 = vld [vmem:[#allocation5 + $0x358] sm:$0xff] }
 0x20b   :  { %3877 = vmatprep.subr.bf16.mxu1 %v6753_v33  ;;  %v3542_v55 = vpop.f32.mrf.mxu0  ;;  %3787 = vmatmul.mubr.bf16.vlgmr.msra.gmra.mxu0 %v8302_v61  ;;  %v253_v33 = vld [vmem:[#allocation5 + $0xb8] sm:$0xff] }
 0x20c   :  { %v3543_v58 = vadd.f32 %v3542_v55, %v755_v44  ;;  %3837 = vmatpush1.bf16.msra.mxu0 %v6624_v0  ;;  %3868 = vmatprep.mubr.bf16.mxu0 %v8266_v12  ;;  %v261_v12 = vld [vmem:[#allocation5 + $0xf8] sm:$0xff]  ;;  %v6585_v44 = vcombine.high %v249_v32, %v253_v33  ;;  %v6713_v0 = vcombine.high %v377_v36, %v381_v39 }
 0x20d   :  { %v3583_v59 = vpop.f32.mrf.mxu1  ;;  %3828 = vmatmul.mubr.bf16.vlgmr.msra.gmra.mxu1 %v8306_v62  ;;  %v3544_v63 = vpop.f32.mrf.mxu0  ;;  %3838 = vmatprep.subr.bf16.mxu0 %v6617_v6  ;;  %v6593_v29 = vcombine.high %v257_v24, %v261_v12  ;;  %v6592_v41 = vcombine.low %v257_v24, %v261_v12  ;;  %v245_v6 = vld [vmem:[#allocation5 + $0x78] sm:$0xff]  ;;  %v6584_v52 = vcombine.low %v249_v32, %v253_v33 }
 0x20e   :  { %3878 = vmatpush1.bf16.msra.mxu1 %v6752_v46  ;;  %v8363_v40 = vadd.f32 %v3583_v59, %v3543_v58  ;;  %v3545_v3 = vadd.f32 %v3544_v63, %v759_v49  ;;  %3909 = vmatprep.mubr.bf16.mxu1 %v8271_v17  ;;  %v6728_v17 = vcombine.low %v393_v15, %v397_v10  ;;  %v241_v46 = vld [vmem:[#allocation5 + $0x58] sm:$0xff] }
 0x20f   :  { %v3585_v4 = vpop.f32.mrf.mxu1  ;;  %3879 = vmatprep.subr.bf16.mxu1 %v6745_v51  ;;  %v3546_v26 = vpop.f32.mrf.mxu0  ;;  %v369_v49 = vld [vmem:[#allocation5 + $0x458] sm:$0xff]  ;;  %v6577_v55 = vcombine.high %v241_v46, %v245_v6  ;;  %v6576_v63 = vcombine.low %v241_v46, %v245_v6 }
 0x210   :  { %v8367_v11 = vadd.f32 %v3585_v4, %v3545_v3  ;;  %3839 = vmatpush1.bf16.msra.mxu0 %v6616_v60  ;;  %v373_v51 = vld [vmem:[#allocation5 + $0x478] sm:$0xff] }
 0x211   :  { %v3587_v13 = vpop.f32.mrf.mxu1  ;;  %v3547_v16 = vpop.f32.mrf.mxu0  ;;  %3840 = vmatprep.subr.bf16.mxu0 %v6609_v2  ;;  %v6705_v56 = vcombine.high %v369_v49, %v373_v51  ;;  %v237_v58 = vld [vmem:[#allocation5 + $0x38] sm:$0xff] }
 0x212   :  { %3880 = vmatpush1.bf16.msra.mxu1 %v6744_v1  ;;  %v361_v59 = vld [vmem:[#allocation5 + $0x418] sm:$0xff]  ;;  %v6704_v1 = vcombine.low %v369_v49, %v373_v51  ;;  %v6569_v2 = vcombine.high %v233_v57, %v237_v58  ;;  %v6568_v26 = vcombine.low %v233_v57, %v237_v58  ;;  %v6817_v13 = vcombine.high %v481_v8, %v485_v23 }
 0x213   :  { %v3588_v20 = vpop.f32.mrf.mxu1  ;;  %3881 = vmatprep.subr.bf16.mxu1 %v6737_v5  ;;  %v365_v60 = vld [vmem:[#allocation5 + $0x438] sm:$0xff] }
 0x214   :  { %3841 = vmatpush1.bf16.msra.mxu0 %v6608_v14  ;;  %v6697_v3 = vcombine.high %v361_v59, %v365_v60  ;;  %v353_v4 = vld [vmem:[#allocation5 + $0x3d8] sm:$0xff]  ;;  %v6696_v15 = vcombine.low %v361_v59, %v365_v60 }
 0x215   :  { %3842 = vmatprep.subr.bf16.mxu0 %v6601_v19  ;;  %v357_v5 = vld [vmem:[#allocation5 + $0x3f8] sm:$0xff] }
 0x216   :  { %3882 = vmatpush1.bf16.msra.mxu1 %v6736_v18  ;;  %v6689_v10 = vcombine.high %v353_v4, %v357_v5  ;;  %v345_v14 = vld [vmem:[#allocation5 + $0x398] sm:$0xff]  ;;  %v6688_v20 = vcombine.low %v353_v4, %v357_v5 }
 0x217   :  { %3883 = vmatprep.subr.bf16.mxu1 %v6729_v21  ;;  %v349_v16 = vld [vmem:[#allocation5 + $0x3b8] sm:$0xff]  ;;  %v6816_v21 = vcombine.low %v481_v8, %v485_v23 }
 0x218   :  { %3843 = vmatpush1.bf16.msra.mxu0 %v6600_v28  ;;  %v473_v18 = vld [vmem:[#allocation5 + $0x798] sm:$0xff]  ;;  %v6681_v24 = vcombine.high %v345_v14, %v349_v16 }
 0x219   :  { %3844 = vmatprep.subr.bf16.mxu0 %v6593_v29  ;;  %v477_v19 = vld [vmem:[#allocation5 + $0x7b8] sm:$0xff]  ;;  %v6680_v29 = vcombine.low %v345_v14, %v349_v16 }
 0x21a   :  { %3884 = vmatpush1.bf16.msra.mxu1 %v6728_v17  ;;  %v6809_v12 = vcombine.high %v473_v18, %v477_v19  ;;  %v341_v27 = vld [vmem:[#allocation5 + $0x378] sm:$0xff] }
 0x21b   :  { %3885 = vmatprep.subr.bf16.mxu1 %v6721_v31  ;;  %v465_v28 = vld [vmem:[#allocation5 + $0x758] sm:$0xff]  ;;  %v6808_v31 = vcombine.low %v473_v18, %v477_v19  ;;  %v6673_v32 = vcombine.high %v337_v25, %v341_v27 }
 0x21c   :  { %3845 = vmatpush1.bf16.msra.mxu0 %v6592_v41  ;;  %v469_v17 = vld [vmem:[#allocation5 + $0x778] sm:$0xff] }
 0x21d   :  { %3846 = vmatprep.subr.bf16.mxu0 %v6585_v44  ;;  %v6801_v33 = vcombine.high %v465_v28, %v469_v17  ;;  %v329_v36 = vld [vmem:[#allocation5 + $0x318] sm:$0xff]  ;;  %v6672_v44 = vcombine.low %v337_v25, %v341_v27 }
 0x21e   :  { %3886 = vmatpush1.bf16.msra.mxu1 %v6720_v42  ;;  %v333_v39 = vld [vmem:[#allocation5 + $0x338] sm:$0xff] }
 0x21f   :  { %3887 = vmatprep.subr.bf16.mxu1 %v6713_v0  ;;  %v457_v41 = vld [vmem:[#allocation5 + $0x718] sm:$0xff]  ;;  %v6800_v0 = vcombine.low %v465_v28, %v469_v17  ;;  %v6665_v46 = vcombine.high %v329_v36, %v333_v39 }
 0x220   :  { %3847 = vmatpush1.bf16.msra.mxu0 %v6584_v52  ;;  %v461_v42 = vld [vmem:[#allocation5 + $0x738] sm:$0xff] }
 0x221   :  { %3848 = vmatprep.subr.bf16.mxu0 %v6577_v55  ;;  %v6793_v6 = vcombine.high %v457_v41, %v461_v42  ;;  %v321_v49 = vld [vmem:[#allocation5 + $0x2d8] sm:$0xff]  ;;  %v6664_v55 = vcombine.low %v329_v36, %v333_v39 }
 0x222   :  { %3888 = vmatpush1.bf16.msra.mxu1 %v6712_v53  ;;  %v325_v51 = vld [vmem:[#allocation5 + $0x2f8] sm:$0xff] }
 0x223   :  { %3889 = vmatprep.subr.bf16.mxu1 %v6705_v56  ;;  %v449_v52 = vld [vmem:[#allocation5 + $0x6d8] sm:$0xff]  ;;  %v6792_v56 = vcombine.low %v457_v41, %v461_v42  ;;  %v6657_v57 = vcombine.high %v321_v49, %v325_v51 }
 0x224   :  { %3849 = vmatpush1.bf16.msra.mxu0 %v6576_v63  ;;  %v453_v53 = vld [vmem:[#allocation5 + $0x6f8] sm:$0xff] }
 0x225   :  { %3850 = vmatprep.subr.bf16.mxu0 %v6569_v2  ;;  %v6785_v58 = vcombine.high %v449_v52, %v453_v53  ;;  %v313_v59 = vld [vmem:[#allocation5 + $0x298] sm:$0xff]  ;;  %v6656_v2 = vcombine.low %v321_v49, %v325_v51 }
 0x226   :  { %3890 = vmatpush1.bf16.msra.mxu1 %v6704_v1  ;;  %v317_v60 = vld [vmem:[#allocation5 + $0x2b8] sm:$0xff] }
 0x227   :  { %3891 = vmatprep.subr.bf16.mxu1 %v6697_v3  ;;  %v441_v63 = vld [vmem:[#allocation5 + $0x698] sm:$0xff]  ;;  %v6784_v3 = vcombine.low %v449_v52, %v453_v53  ;;  %v6649_v4 = vcombine.high %v313_v59, %v317_v60 }
 0x228   :  { %3851 = vmatpush1.bf16.msra.mxu0 %v6568_v26  ;;  %v445_v1 = vld [vmem:[#allocation5 + $0x6b8] sm:$0xff] }
 0x229   :  { %3852 = vmatprep.subr.bf16.mxu0 %v6689_v10  ;;  %v6777_v5 = vcombine.high %v441_v63, %v445_v1  ;;  %v305_v8 = vld [vmem:[#allocation5 + $0x258] sm:$0xff]  ;;  %v6648_v10 = vcombine.low %v313_v59, %v317_v60 }
 0x22a   :  { %3892 = vmatpush1.bf16.msra.mxu1 %v6696_v15  ;;  %v309_v23 = vld [vmem:[#allocation5 + $0x278] sm:$0xff] }
 0x22b   :  { %3893 = vmatprep.subr.bf16.mxu1 %v6817_v13  ;;  %v433_v26 = vld [vmem:[#allocation5 + $0x658] sm:$0xff]  ;;  %v6776_v13 = vcombine.low %v441_v63, %v445_v1  ;;  %v6641_v14 = vcombine.high %v305_v8, %v309_v23 }
 0x22c   :  { %3853 = vmatpush2.bf16.msra.mxu0 %v6688_v20  ;;  %v437_v15 = vld [vmem:[#allocation5 + $0x678] sm:$0xff] }
 0x22d   :  { %3854 = vmatprep.subr.bf16.mxu0 %v6681_v24  ;;  %v6769_v16 = vcombine.high %v433_v26, %v437_v15  ;;  %v297_v18 = vld [vmem:[#allocation5 + $0x218] sm:$0xff]  ;;  %v6640_v24 = vcombine.low %v305_v8, %v309_v23 }
 0x22e   :  { %3894 = vmatpush2.bf16.msra.mxu1 %v6816_v21  ;;  %v301_v19 = vld [vmem:[#allocation5 + $0x238] sm:$0xff] }
 0x22f   :  { %3895 = vmatprep.subr.bf16.mxu1 %v6809_v12  ;;  %v425_v20 = vld [vmem:[#allocation5 + $0x618] sm:$0xff]  ;;  %v6768_v12 = vcombine.low %v433_v26, %v437_v15  ;;  %v6633_v25 = vcombine.high %v297_v18, %v301_v19 }
 0x230   :  { %3855 = vmatpush2.bf16.msra.mxu0 %v6680_v29  ;;  %v429_v21 = vld [vmem:[#allocation5 + $0x638] sm:$0xff] }
 0x231   :  { %3856 = vmatprep.subr.bf16.mxu0 %v6673_v32  ;;  %v6761_v27 = vcombine.high %v425_v20, %v429_v21  ;;  %v545_v28 = vld [vmem:[#allocation5 + $0x9d8] sm:$0xff]  ;;  %v6632_v32 = vcombine.low %v297_v18, %v301_v19 }
 0x232   :  { %3896 = vmatpush2.bf16.msra.mxu1 %v6808_v31  ;;  %v549_v17 = vld [vmem:[#allocation5 + $0x9f8] sm:$0xff] }
 0x233   :  { %3897 = vmatprep.subr.bf16.mxu1 %v6801_v33  ;;  %v673_v29 = vld [vmem:[#allocation5 + $0xdd8] sm:$0xff]  ;;  %v6760_v33 = vcombine.low %v425_v20, %v429_v21  ;;  %v6881_v36 = vcombine.high %v545_v28, %v549_v17 }
 0x234   :  { %3857 = vmatpush2.bf16.msra.mxu0 %v6672_v44  ;;  %v677_v31 = vld [vmem:[#allocation5 + $0xdf8] sm:$0xff] }
 0x235   :  { %3858 = vmatprep.subr.bf16.mxu0 %v6665_v46  ;;  %v7009_v39 = vcombine.high %v673_v29, %v677_v31  ;;  %v537_v41 = vld [vmem:[#allocation5 + $0x998] sm:$0xff]  ;;  %v6880_v46 = vcombine.low %v545_v28, %v549_v17 }
 0x236   :  { %3898 = vmatpush2.bf16.msra.mxu1 %v6800_v0  ;;  %v541_v42 = vld [vmem:[#allocation5 + $0x9b8] sm:$0xff] }
 0x237   :  { %3899 = vmatprep.subr.bf16.mxu1 %v6793_v6  ;;  %v665_v44 = vld [vmem:[#allocation5 + $0xd98] sm:$0xff]  ;;  %v7008_v6 = vcombine.low %v673_v29, %v677_v31  ;;  %v6873_v49 = vcombine.high %v537_v41, %v541_v42  ;;  %v6872_v63 = vcombine.low %v537_v41, %v541_v42 }
 0x238   :  { %3859 = vmatpush2.bf16.msra.mxu0 %v6664_v55  ;;  %v669_v0 = vld [vmem:[#allocation5 + $0xdb8] sm:$0xff] }
 0x239   :  { %3860 = vmatprep.subr.bf16.mxu0 %v6657_v57  ;;  %v7001_v51 = vcombine.high %v665_v44, %v669_v0  ;;  %v529_v52 = vld [vmem:[#allocation5 + $0x958] sm:$0xff] }
 0x23a   :  { %3900 = vmatpush2.bf16.msra.mxu1 %v6792_v56  ;;  %v533_v53 = vld [vmem:[#allocation5 + $0x978] sm:$0xff]  ;;  %v4029_v56 = vcombine.high %v8336_v50, %v8336_v50 }
 0x23b   :  { %3901 = vmatprep.subr.bf16.mxu1 %v6785_v58  ;;  %v657_v57 = vld [vmem:[#allocation5 + $0xd58] sm:$0xff] }
 0x23c   :  { %3861 = vmatpush2.bf16.msra.mxu0 %v6656_v2  ;;  %v661_v58 = vld [vmem:[#allocation5 + $0xd78] sm:$0xff]  ;;  %v7000_v2 = vcombine.low %v665_v44, %v669_v0 }
 0x23d   :  { %3862 = vmatprep.subr.bf16.mxu0 %v6649_v4  ;;  %v521_v50 = vld [vmem:[#allocation5 + $0x918] sm:$0xff] }
 0x23e   :  { %3902 = vmatpush2.bf16.msra.mxu1 %v6784_v3  ;;  %v6865_v3 = vcombine.high %v529_v52, %v533_v53  ;;  %v525_v8 = vld [vmem:[#allocation5 + $0x938] sm:$0xff] }
 0x23f   :  { %3903 = vmatprep.subr.bf16.mxu1 %v6777_v5  ;;  %v649_v23 = vld [vmem:[#allocation5 + $0xd18] sm:$0xff]  ;;  %v6857_v18 = vcombine.high %v521_v50, %v525_v8 }
 0x240   :  { %3863 = vmatpush2.bf16.msra.mxu0 %v6648_v10  ;;  %v653_v26 = vld [vmem:[#allocation5 + $0xd38] sm:$0xff] }
 0x241   :  { %3864 = vmatprep.subr.bf16.mxu0 %v6641_v14  ;;  %v6985_v20 = vcombine.high %v649_v23, %v653_v26  ;;  %v513_v21 = vld [vmem:[#allocation5 + $0x8d8] sm:$0xff]  ;;  %v6984_v28 = vcombine.low %v649_v23, %v653_v26 }
 0x242   :  { %3904 = vmatpush2.bf16.msra.mxu1 %v6776_v13  ;;  %v6864_v13 = vcombine.low %v529_v52, %v533_v53  ;;  %v505_v31 = vld [vmem:[#allocation5 + $0x898] sm:$0xff] }
 0x243   :  { %3905 = vmatprep.subr.bf16.mxu1 %v6769_v16  ;;  %v6992_v16 = vcombine.low %v657_v57, %v661_v58  ;;  %v497_v0 = vld [vmem:[#allocation5 + $0x858] sm:$0xff] }
 0x244   :  { %3865 = vmatpush2.bf16.msra.mxu0 %v6640_v24  ;;  %v517_v24 = vld [vmem:[#allocation5 + $0x8f8] sm:$0xff] }
 0x245   :  { %3866 = vmatprep.subr.bf16.mxu0 %v6633_v25  ;;  %v645_v25 = vld [vmem:[#allocation5 + $0xcf8] sm:$0xff]  ;;  %v6849_v17 = vcombine.high %v513_v21, %v517_v24 }
 0x246   :  { %3906 = vmatpush2.bf16.msra.mxu1 %v6768_v12 }
 0x247   :  { %3907 = vmatprep.subr.bf16.mxu1 %v6761_v27  ;;  %v6856_v27 = vcombine.low %v521_v50, %v525_v8  ;;  %v737_v50 = vld [vmem:[#allocation5 + $0xfd8] sm:$0xff] }
 0x248   :  { %3867 = vmatpush2.bf16.msra.mxu0 %v6632_v32  ;;  %v509_v32 = vld [vmem:[#allocation5 + $0x8b8] sm:$0xff] }
 0x249   :  { %3918 = vmatprep.subr.bf16.mxu0 %v6881_v36  ;;  %v637_v36 = vld [vmem:[#allocation5 + $0xcb8] sm:$0xff]  ;;  %v6841_v42 = vcombine.high %v505_v31, %v509_v32 }
 0x24a   :  { %3908 = vmatpush2.bf16.msra.mxu1 %v6760_v33  ;;  %v633_v33 = vld [vmem:[#allocation5 + $0xc98] sm:$0xff] }
 0x24b   :  { %3959 = vmatprep.subr.bf16.mxu1 %v7009_v39  ;;  %v3624_v55 = vpop.f32.mrf.mxu0  ;;  %3869 = vmatmul.mubr.bf16.vlgmr.msra.gmra.mxu0 %v8284_v34  ;;  %v6993_v34 = vcombine.high %v657_v57, %v661_v58  ;;  %v6848_v39 = vcombine.low %v513_v21, %v517_v24  ;;  %v6969_v44 = vcombine.high %v633_v33, %v637_v36  ;;  %v493_v57 = vld [vmem:[#allocation5 + $0x838] sm:$0xff] }
 0x24c   :  { %v3625_v59 = vadd.f32 %v3624_v55, %v8363_v40  ;;  %3919 = vmatpush1.bf16.msra.mxu0 %v6880_v46  ;;  %3950 = vmatprep.mubr.bf16.mxu0 %v8292_v47  ;;  %v8380_v40 = vrot.slane %v4029_v56, %v8256_v54  ;;  %v501_v46 = vld [vmem:[#allocation5 + $0x878] sm:$0xff]  ;;  %v6968_v52 = vcombine.low %v633_v33, %v637_v36 }
 0x24d   :  { %v3665_v60 = vpop.f32.mrf.mxu1  ;;  %3910 = vmatmul.mubr.bf16.vlgmr.msra.gmra.mxu1 %v8290_v38  ;;  %v8374_v1 = vpop.f32.mrf.mxu0  ;;  %3920 = vmatprep.subr.bf16.mxu0 %v6873_v49  ;;  %v629_v49 = vld [vmem:[#allocation5 + $0xc78] sm:$0xff]  ;;  %v6833_v53 = vcombine.high %v497_v0, %v501_v46 }
 0x24e   :  { %3960 = vmatpush1.bf16.msra.mxu1 %v7008_v6  ;;  %v3666_v4 = vadd.f32 %v3665_v60, %v3625_v59  ;;  %3991 = vmatprep.mubr.bf16.mxu1 %v8295_v48  ;;  %v641_v48 = vld [vmem:[#allocation5 + $0xcd8] sm:$0xff]  ;;  %v6832_v60 = vcombine.low %v497_v0, %v501_v46 }
 0x24f   :  { %v8376_v5 = vpop.f32.mrf.mxu1  ;;  %3961 = vmatprep.subr.bf16.mxu1 %v7001_v51  ;;  %v3628_v38 = vpop.f32.mrf.mxu0  ;;  %v6977_v29 = vcombine.high %v641_v48, %v645_v25  ;;  %v6976_v41 = vcombine.low %v641_v48, %v645_v25  ;;  %v625_v6 = vld [vmem:[#allocation5 + $0xc58] sm:$0xff]  ;;  %v6840_v51 = vcombine.low %v505_v31, %v509_v32 }
 0x250   :  { %vm4002_vm1 = vcmp.gt.f32.partialorder %v3666_v4, 0.0  ;;  %v4010_v15 = vmul.f32 0.2, %v3666_v4  ;;  %3921 = vmatpush1.bf16.msra.mxu0 %v6872_v63  ;;  %v6961_v55 = vcombine.high %v625_v6, %v629_v49  ;;  %v489_v56 = vld [vmem:[#allocation5 + $0x818] sm:$0xff]  ;;  %v6960_v63 = vcombine.low %v625_v6, %v629_v49 }
 0x251   :  { %v3669_v10 = vpop.f32.mrf.mxu1  ;;  %v3629_v14 = vpop.f32.mrf.mxu0  ;;  %3922 = vmatprep.subr.bf16.mxu0 %v6865_v3  ;;  %v617_v58 = vld [vmem:[#allocation5 + $0xc18] sm:$0xff]  ;;  %v6824_v38 = vcombine.low %v489_v56, %v493_v57 }
 0x252   :  { %3962 = vmatpush1.bf16.msra.mxu1 %v7000_v2  ;;  %v4018_v19 = vsel %vm4002_vm1, %v3666_v4, %v4010_v15  ;;  %v621_v59 = vld [vmem:[#allocation5 + $0xc38] sm:$0xff]  ;;  %v6825_v2 = vcombine.high %v489_v56, %v493_v57 }
 0x253   :  { %v3670_v47 = vpop.f32.mrf.mxu1  ;;  %3963 = vmatprep.subr.bf16.mxu1 %v6993_v34  ;;  %v8384_v12 = vmul.f32 %v8380_v40, %v4018_v19  ;;  %v6953_v3 = vcombine.high %v617_v58, %v621_v59  ;;  %v609_v4 = vld [vmem:[#allocation5 + $0xbd8] sm:$0xff]  ;;  %v6952_v23 = vcombine.low %v617_v58, %v621_v59 }
 0x254   :  { %3923 = vmatpush1.bf16.msra.mxu0 %v6864_v13  ;;  %v613_v34 = vld [vmem:[#allocation5 + $0xbf8] sm:$0xff] }
 0x255   :  { %3924 = vmatprep.subr.bf16.mxu0 %v6857_v18  ;;  %v741_v8 = vld [vmem:[#allocation5 + $0xff8] sm:$0xff]  ;;  %v6945_v26 = vcombine.high %v609_v4, %v613_v34  ;;  %v6944_v18 = vcombine.low %v609_v4, %v613_v34 }
 0x256   :  { %3964 = vmatpush1.bf16.msra.mxu1 %v6992_v16  ;;  %v7073_v15 = vcombine.high %v737_v50, %v741_v8  ;;  %v601_v10 = vld [vmem:[#allocation5 + $0xb98] sm:$0xff]  ;;  %v7072_v19 = vcombine.low %v737_v50, %v741_v8 }
 0x257   :  { %3965 = vmatprep.subr.bf16.mxu1 %v6985_v20  ;;  %v605_v13 = vld [vmem:[#allocation5 + $0xbb8] sm:$0xff] }
 0x258   :  { %3925 = vmatpush1.bf16.msra.mxu0 %v6856_v27  ;;  %v729_v14 = vld [vmem:[#allocation5 + $0xf98] sm:$0xff]  ;;  %v6937_v47 = vcombine.high %v601_v10, %v605_v13  ;;  %v6936_v27 = vcombine.low %v601_v10, %v605_v13 }
 0x259   :  { %3926 = vmatprep.subr.bf16.mxu0 %v6849_v17  ;;  %v733_v16 = vld [vmem:[#allocation5 + $0xfb8] sm:$0xff] }
 0x25a   :  { %3966 = vmatpush1.bf16.msra.mxu1 %v6984_v28  ;;  %v7065_v20 = vcombine.high %v729_v14, %v733_v16  ;;  %v593_v21 = vld [vmem:[#allocation5 + $0xb58] sm:$0xff]  ;;  %v7064_v28 = vcombine.low %v729_v14, %v733_v16 }
 0x25b   :  { %3967 = vmatprep.subr.bf16.mxu1 %v6977_v29  ;;  %v597_v24 = vld [vmem:[#allocation5 + $0xb78] sm:$0xff] }
 0x25c   :  { %3927 = vmatpush1.bf16.msra.mxu0 %v6848_v39  ;;  %v721_v48 = vld [vmem:[#allocation5 + $0xf58] sm:$0xff]  ;;  %v6929_v17 = vcombine.high %v593_v21, %v597_v24  ;;  %v6928_v39 = vcombine.low %v593_v21, %v597_v24  ;;  %v4044_v24 = vcombine.high %v8345_v7, %v8345_v7 }
 0x25d   :  { %3928 = vmatprep.subr.bf16.mxu0 %v6841_v42  ;;  %v725_v25 = vld [vmem:[#allocation5 + $0xf78] sm:$0xff] }
 0x25e   :  { %3968 = vmatpush1.bf16.msra.mxu1 %v6976_v41  ;;  %v7057_v29 = vcombine.high %v721_v48, %v725_v25  ;;  %v585_v31 = vld [vmem:[#allocation5 + $0xb18] sm:$0xff]  ;;  %v7056_v41 = vcombine.low %v721_v48, %v725_v25 }
 0x25f   :  { %3969 = vmatprep.subr.bf16.mxu1 %v6969_v44  ;;  %v589_v32 = vld [vmem:[#allocation5 + $0xb38] sm:$0xff] }
 0x260   :  { %3929 = vmatpush1.bf16.msra.mxu0 %v6840_v51  ;;  %v713_v33 = vld [vmem:[#allocation5 + $0xf18] sm:$0xff]  ;;  %v6921_v42 = vcombine.high %v585_v31, %v589_v32  ;;  %v6920_v51 = vcombine.low %v585_v31, %v589_v32  ;;  %v7418_v31 = vld [vmem:[#allocation10 + $0xe4] ss:$16 sps:$4 sm:$0xff]  }
 0x261   :  { %3930 = vmatprep.subr.bf16.mxu0 %v6833_v53  ;;  %v717_v36 = vld [vmem:[#allocation5 + $0xf38] sm:$0xff]  ;;  %v7421_v32 = vld [vmem:[#allocation10 + $0x2e4] ss:$16 sps:$4 sm:$0xff]  }
 0x262   :  { %3970 = vmatpush1.bf16.msra.mxu1 %v6968_v52  ;;  %v7049_v44 = vcombine.high %v713_v33, %v717_v36  ;;  %v577_v0 = vld [vmem:[#allocation5 + $0xad8] sm:$0xff]  ;;  %v7048_v52 = vcombine.low %v713_v33, %v717_v36  ;;  %v8397_v36 = vld [vmem:[#allocation7] sm:$0xff] }
 0x263   :  { %3971 = vmatprep.subr.bf16.mxu1 %v6961_v55  ;;  %v581_v46 = vld [vmem:[#allocation5 + $0xaf8] sm:$0xff] }
 0x264   :  { %3931 = vmatpush1.bf16.msra.mxu0 %v6832_v60  ;;  %v705_v6 = vld [vmem:[#allocation5 + $0xed8] sm:$0xff]  ;;  %v6913_v53 = vcombine.high %v577_v0, %v581_v46  ;;  %v6912_v60 = vcombine.low %v577_v0, %v581_v46  ;;  %v7427_v0 = vld [vmem:[#allocation10 + $0x2c4] ss:$16 sps:$4 sm:$0xff]  }
 0x265   :  { %3932 = vmatprep.subr.bf16.mxu0 %v6825_v2  ;;  %v709_v49 = vld [vmem:[#allocation5 + $0xef8] sm:$0xff] }
 0x266   :  { %3972 = vmatpush1.bf16.msra.mxu1 %v6960_v63  ;;  %v7041_v55 = vcombine.high %v705_v6, %v709_v49  ;;  %v569_v56 = vld [vmem:[#allocation5 + $0xa98] sm:$0xff]  ;;  %v3627_v63 = vadd.f32 %v8374_v1, %v8367_v11  ;;  %v7040_v2 = vcombine.low %v705_v6, %v709_v49 }
 0x267   :  { %3973 = vmatprep.subr.bf16.mxu1 %v6953_v3  ;;  %v573_v57 = vld [vmem:[#allocation5 + $0xab8] sm:$0xff] }
 0x268   :  { %3933 = vmatpush1.bf16.msra.mxu0 %v6824_v38  ;;  %v697_v58 = vld [vmem:[#allocation5 + $0xe98] sm:$0xff]  ;;  %v6905_v3 = vcombine.high %v569_v56, %v573_v57 }
 0x269   :  { %3934 = vmatprep.subr.bf16.mxu0 %v6945_v26  ;;  %v701_v59 = vld [vmem:[#allocation5 + $0xeb8] sm:$0xff]  ;;  %v3668_v26 = vadd.f32 %v8376_v5, %v3627_v63  ;;  %v7431_v63 = vld [vmem:[#allocation10 + $0x2a0] ss:$16 sps:$4 sm:$0xff]  }
 0x26a   :  { %3974 = vmatpush1.bf16.msra.mxu1 %v6952_v23  ;;  %v7033_v4 = vcombine.high %v697_v58, %v701_v59  ;;  %v561_v34 = vld [vmem:[#allocation5 + $0xa58] sm:$0xff]  ;;  %v6904_v23 = vcombine.low %v569_v56, %v573_v57  ;;  %v7433_v57 = vld [vmem:[#allocation10 + $0x2a4] ss:$16 sps:$4 sm:$0xff]  }
 0x26b   :  { %3975 = vmatprep.subr.bf16.mxu1 %v7073_v15  ;;  %v565_v50 = vld [vmem:[#allocation5 + $0xa78] sm:$0xff]  ;;  %v7032_v15 = vcombine.low %v697_v58, %v701_v59  ;;  %vm4003_vm3 = vcmp.gt.f32.partialorder %v3668_v26, 0.0  ;;  %v7428_v59 = vld [vmem:[#allocation10 + $0xa0] ss:$16 sps:$4 sm:$0xff]  }
 0x26c   :  { %3935 = vmatpush2.bf16.msra.mxu0 %v6944_v18  ;;  %v689_v8 = vld [vmem:[#allocation5 + $0xe58] sm:$0xff]  ;;  %v6897_v10 = vcombine.high %v561_v34, %v565_v50  ;;  %v4009_v18 = vmul.f32 0.2, %v8348_v9 }
 0x26d   :  { %3936 = vmatprep.subr.bf16.mxu0 %v6937_v47  ;;  %v693_v38 = vld [vmem:[#allocation5 + $0xe78] sm:$0xff]  ;;  %v4011_v47 = vmul.f32 0.2, %v3668_v26 }
 0x26e   :  { %3976 = vmatpush2.bf16.msra.mxu1 %v7072_v19  ;;  %v7025_v11 = vcombine.high %v689_v8, %v693_v38  ;;  %v553_v1 = vld [vmem:[#allocation5 + $0xa18] sm:$0xff]  ;;  %v6896_v19 = vcombine.low %v561_v34, %v565_v50  ;;  %v7024_v5 = vcombine.low %v689_v8, %v693_v38  ;;  %v4017_v48 = vsel %vm4001_vm2, %v8348_v9, %v4009_v18  ;;  %v7416_v9 = vld [vmem:[#allocation10 + $0xe0] ss:$16 sps:$4 sm:$0xff]   ;;  %v7442_v8 = vld [vmem:[#allocation10 + $0x64] ss:$16 sps:$4 sm:$0xff]  }
 0x26f   :  { %3977 = vmatprep.subr.bf16.mxu1 %v7065_v20  ;;  %v557_v13 = vld [vmem:[#allocation5 + $0xa38] sm:$0xff]  ;;  %v4072_v33 = vmul.f32 %v4044_v24, %v4017_v48  ;;  %v7434_v34 = vld [vmem:[#allocation10 + $0x80] ss:$16 sps:$4 sm:$0xff]   ;;  %v7445_v38 = vld [vmem:[#allocation10 + $0x264] ss:$16 sps:$4 sm:$0xff]  }
 0x270   :  { %3937 = vmatpush2.bf16.msra.mxu0 %v6936_v27  ;;  %v681_v14 = vld [vmem:[#allocation5 + $0xe18] sm:$0xff]  ;;  %v6889_v20 = vcombine.high %v553_v1, %v557_v13  ;;  %v6888_v25 = vcombine.low %v553_v1, %v557_v13  ;;  %v762_v27 = vsub.s32 4, %v8253_v45  ;;  %v7437_v50 = vld [vmem:[#allocation10 + $0x280] ss:$16 sps:$4 sm:$0xff]   ;;  %v7454_v13 = vld [vmem:[#allocation10 + $0x24] ss:$16 sps:$4 sm:$0xff]  }
 0x271   :  { %3938 = vmatprep.subr.bf16.mxu0 %v6929_v17  ;;  %v685_v16 = vld [vmem:[#allocation5 + $0xe38] sm:$0xff]  ;;  %v4019_v17 = vsel %vm4003_vm3, %v3668_v26, %v4011_v47  ;;  %v7443_v26 = vld [vmem:[#allocation10 + $0x260] ss:$16 sps:$4 sm:$0xff]   ;;  %v7463_v47 = vld [vmem:[#allocation10 + $0x204] ss:$16 sps:$4 sm:$0xff]  }
 0x272   :  { %3978 = vmatpush2.bf16.msra.mxu1 %v7064_v28  ;;  %v7017_v21 = vcombine.high %v681_v14, %v685_v16  ;;  %v4045_v28 = vcombine.high %v8380_v40, %v8380_v40  ;;  %v763_v7 = vrot.slane %v8397_v36, %v762_v27  ;;  %v7424_v40 = vld [vmem:[#allocation10 + $0xc4] ss:$16 sps:$4 sm:$0xff]   ;;  %v7449_v1 = vld [vmem:[#allocation10 + $0x240] ss:$16 sps:$4 sm:$0xff]  }
 0x273   :  { %3979 = vmatprep.subr.bf16.mxu1 %v7057_v29  ;;  %v7016_v29 = vcombine.low %v681_v14, %v685_v16  ;;  %v7457_v14 = vld [vmem:[#allocation10 + $0x224] ss:$16 sps:$4 sm:$0xff]   ;;  %v7452_v16 = vld [vmem:[#allocation10 + $0x20] ss:$16 sps:$4 sm:$0xff]  }
 0x274   :  { %3939 = vmatpush2.bf16.msra.mxu0 %v6928_v39  ;;  %v4074_v39 = vmul.f32 %v4045_v28, %v4019_v17  ;;  %v7455_v18 = vld [vmem:[#allocation10 + $0x220] ss:$16 sps:$4 sm:$0xff]   ;;  %v7469_v24 = vld [vmem:[#allocation10 + $0x3e4] ss:$16 sps:$4 sm:$0xff]  }
 0x275   :  { %3940 = vmatprep.subr.bf16.mxu0 %v6921_v42  ;;  %v7464_v48 = vld [vmem:[#allocation10 + $0x1e0] ss:$16 sps:$4 sm:$0xff]   ;;  %v7472_v27 = vld [vmem:[#allocation10 + $0x1c4] ss:$16 sps:$4 sm:$0xff]  }
 0x276   :  { %3980 = vmatpush2.bf16.msra.mxu1 %v7056_v41  ;;  %v7419_v41 = vld [vmem:[#allocation10 + $0x2e0] ss:$16 sps:$4 sm:$0xff]   ;;  %v8404_v49 = vpack.c.bf16 %v4074_v39, %v4074_v39  ;;  %v7475_v28 = vld [vmem:[#allocation10 + $0x3c4] ss:$16 sps:$4 sm:$0xff]  }
 0x277   :  { %3981 = vmatprep.subr.bf16.mxu1 %v7049_v44  ;;  %v8401_v44 = vpack.c.bf16 %v4072_v33, %v4072_v33  ;;  %v7470_v17 = vld [vmem:[#allocation10 + $0x1c0] ss:$16 sps:$4 sm:$0xff]   ;;  %v7487_v39 = vld [vmem:[#allocation10 + $0x384] ss:$16 sps:$4 sm:$0xff]  }
 0x278   :  { %3941 = vmatpush2.bf16.msra.mxu0 %v6920_v51  ;;  %v7422_v51 = vld [vmem:[#allocation10 + $0xc0] ss:$16 sps:$4 sm:$0xff]  }
 0x279   :  { %3942 = vmatprep.subr.bf16.mxu0 %v6913_v53  ;;  %v7425_v53 = vld [vmem:[#allocation10 + $0x2c0] ss:$16 sps:$4 sm:$0xff]  }
 0x27a   :  { %3982 = vmatpush2.bf16.msra.mxu1 %v7048_v52  ;;  %v7476_v33 = vld [vmem:[#allocation10 + $0x1a0] ss:$16 sps:$4 sm:$0xff]  }
 0x27b   :  { %3983 = vmatprep.subr.bf16.mxu1 %v7041_v55  ;;  %v7430_v55 = vld [vmem:[#allocation10 + $0xa4] ss:$16 sps:$4 sm:$0xff]  }
 0x27c   :  { %3943 = vmatpush2.bf16.msra.mxu0 %v6912_v60 }
 0x27d   :  { %3944 = vmatprep.subr.bf16.mxu0 %v6905_v3 }
 0x27e   :  { %3984 = vmatpush2.bf16.msra.mxu1 %v7040_v2  ;;  %v7436_v2 = vld [vmem:[#allocation10 + $0x84] ss:$16 sps:$4 sm:$0xff]  }
 0x27f   :  { %3985 = vmatprep.subr.bf16.mxu1 %v7033_v4  ;;  %v7439_v4 = vld [vmem:[#allocation10 + $0x284] ss:$16 sps:$4 sm:$0xff]  }
 0x280   :  { %3945 = vmatpush2.bf16.msra.mxu0 %v6904_v23  ;;  %v7440_v23 = vld [vmem:[#allocation10 + $0x60] ss:$16 sps:$4 sm:$0xff]  }
 0x281   :  { %3946 = vmatprep.subr.bf16.mxu0 %v6897_v10  ;;  %v7451_v10 = vld [vmem:[#allocation10 + $0x244] ss:$16 sps:$4 sm:$0xff]  }
 0x282   :  { %3986 = vmatpush2.bf16.msra.mxu1 %v7032_v15  ;;  %v7448_v15 = vld [vmem:[#allocation10 + $0x44] ss:$16 sps:$4 sm:$0xff]  }
 0x283   :  { %3987 = vmatprep.subr.bf16.mxu1 %v7025_v11  ;;  %v7446_v11 = vld [vmem:[#allocation10 + $0x40] ss:$16 sps:$4 sm:$0xff]  }
 0x284   :  { %3947 = vmatpush2.bf16.msra.mxu0 %v6896_v19  ;;  %v7460_v19 = vld [vmem:[#allocation10 + $0x4] ss:$16 sps:$4 sm:$0xff]  }
 0x285   :  { %3948 = vmatprep.subr.bf16.mxu0 %v6889_v20  ;;  %v7461_v20 = vld [vmem:[#allocation10 + $0x200] ss:$16 sps:$4 sm:$0xff]  }
 0x286   :  { %3988 = vmatpush2.bf16.msra.mxu1 %v7024_v5  ;;  %v7458_v5 = vld [vmem:[#allocation10] ss:$16 sps:$4 sm:$0xff]  }
 0x287   :  { %3989 = vmatprep.subr.bf16.mxu1 %v7017_v21  ;;  %v7466_v21 = vld [vmem:[#allocation10 + $0x1e4] ss:$16 sps:$4 sm:$0xff]  }
 0x288   :  { %3949 = vmatpush2.bf16.msra.mxu0 %v6888_v25  ;;  %v7467_v25 = vld [vmem:[#allocation10 + $0x3e0] ss:$16 sps:$4 sm:$0xff]  }
 0x289   :  { %5645 = vmatprep.subr.bf16.mxu0 %v7418_v31  ;;  %v7478_v31 = vld [vmem:[#allocation10 + $0x1a4] ss:$16 sps:$4 sm:$0xff]  }
 0x28a   :  { %3990 = vmatpush2.bf16.msra.mxu1 %v7016_v29  ;;  %v7473_v29 = vld [vmem:[#allocation10 + $0x3c0] ss:$16 sps:$4 sm:$0xff]  }
 0x28b   :  { %5686 = vmatprep.subr.bf16.mxu1 %v7421_v32  ;;  %v3706_v42 = vpop.f32.mrf.mxu0  ;;  %3951 = vmatmul.mubr.bf16.vlgmr.msra.gmra.mxu0 %v8302_v61  ;;  %v7481_v32 = vld [vmem:[#allocation10 + $0x3a4] ss:$16 sps:$4 sm:$0xff]  }
 0x28c   :  { %v3707_v46 = vadd.f32 %v3706_v42, %v763_v7  ;;  %5646 = vmatpush1.bf16.msra.mxu0 %v7416_v9  ;;  %5677 = vmatprep.mubr.bf16.mxu0 %v8401_v44  ;;  %v7479_v7 = vld [vmem:[#allocation10 + $0x3a0] ss:$16 sps:$4 sm:$0xff]   ;;  %v7484_v9 = vld [vmem:[#allocation10 + $0x184] ss:$16 sps:$4 sm:$0xff]  }
 0x28d   :  { %v3747_v6 = vpop.f32.mrf.mxu1  ;;  %3992 = vmatmul.mubr.bf16.vlgmr.msra.gmra.mxu1 %v8306_v62  ;;  %v8407_v52 = vpop.f32.mrf.mxu0  ;;  %5647 = vmatprep.subr.bf16.mxu0 %v7424_v40  ;;  %v7485_v40 = vld [vmem:[#allocation10 + $0x380] ss:$16 sps:$4 sm:$0xff]   ;;  %v7490_v42 = vld [vmem:[#allocation10 + $0x164] ss:$16 sps:$4 sm:$0xff]  }
 0x28e   :  { %5687 = vmatpush1.bf16.msra.mxu1 %v7419_v41  ;;  %v8409_v56 = vadd.f32 %v3747_v6, %v3707_v46  ;;  %5718 = vmatprep.mubr.bf16.mxu1 %v8404_v49  ;;  %v7482_v41 = vld [vmem:[#allocation10 + $0x180] ss:$16 sps:$4 sm:$0xff]  }
 0x28f   :  { %v8412_v61 = vpop.f32.mrf.mxu1  ;;  %v3710_v62 = vpop.f32.mrf.mxu0  ;;  %5688 = vmatprep.subr.bf16.mxu1 %v7427_v0  ;;  %v7493_v0 = vld [vmem:[#allocation10 + $0x364] ss:$16 sps:$4 sm:$0xff]   ;;  %v7488_v46 = vld [vmem:[#allocation10 + $0x160] ss:$16 sps:$4 sm:$0xff]  }
 0x290   :  { %5648 = vmatpush1.bf16.msra.mxu0 %v7422_v51  ;;  %v7491_v6 = vld [vmem:[#allocation10 + $0x360] ss:$16 sps:$4 sm:$0xff]   ;;  %v7496_v51 = vld [vmem:[#allocation10 + $0x144] ss:$16 sps:$4 sm:$0xff]  }
 0x291   :  { %v3751_v58 = vpop.f32.mrf.mxu1  ;;  %v3711_v60 = vpop.f32.mrf.mxu0  ;;  %5649 = vmatprep.subr.bf16.mxu0 %v7430_v55  ;;  %v7494_v55 = vld [vmem:[#allocation10 + $0x140] ss:$16 sps:$4 sm:$0xff]   ;;  %v7502_v62 = vld [vmem:[#allocation10 + $0x124] ss:$16 sps:$4 sm:$0xff]  }
 0x292   :  { %5689 = vmatpush1.bf16.msra.mxu1 %v7425_v53  ;;  %v7499_v53 = vld [vmem:[#allocation10 + $0x344] ss:$16 sps:$4 sm:$0xff]   ;;  %v7500_v60 = vld [vmem:[#allocation10 + $0x120] ss:$16 sps:$4 sm:$0xff]  }
 0x293   :  { %v3752_v3 = vpop.f32.mrf.mxu1  ;;  %5690 = vmatprep.subr.bf16.mxu1 %v7433_v57  ;;  %v7497_v57 = vld [vmem:[#allocation10 + $0x340] ss:$16 sps:$4 sm:$0xff]   ;;  %v7505_v58 = vld [vmem:[#allocation10 + $0x324] ss:$16 sps:$4 sm:$0xff]  }
 0x294   :  { %5650 = vmatpush1.bf16.msra.mxu0 %v7428_v59  ;;  %v766_v59 = vsub.s32 5, %v8253_v45  ;;  %v7511_v3 = vld [vmem:[#allocation10 + $0x304] ss:$16 sps:$4 sm:$0xff]  }
 0x295   :  { %5651 = vmatprep.subr.bf16.mxu0 %v7436_v2  ;;  %v7508_v2 = vld [vmem:[#allocation10 + $0x104] ss:$16 sps:$4 sm:$0xff]  }
 0x296   :  { %5691 = vmatpush1.bf16.msra.mxu1 %v7431_v63  ;;  %v7503_v63 = vld [vmem:[#allocation10 + $0x320] ss:$16 sps:$4 sm:$0xff]  }
 0x297   :  { %5692 = vmatprep.subr.bf16.mxu1 %v7439_v4  ;;  %v767_v4 = vrot.slane %v8397_v36, %v766_v59  ;;  %v7602_v59 = vld [vmem:[#allocation10 + $0x640] ss:$16 sps:$4 sm:$0xff]  }
 0x298   :  { %5652 = vmatpush1.bf16.msra.mxu0 %v7434_v34  ;;  %v7506_v34 = vld [vmem:[#allocation10 + $0x100] ss:$16 sps:$4 sm:$0xff]  }
 0x299   :  { %5653 = vmatprep.subr.bf16.mxu0 %v7442_v8  ;;  %v7514_v8 = vld [vmem:[#allocation10 + $0x4e4] ss:$16 sps:$4 sm:$0xff]  }
 0x29a   :  { %5693 = vmatpush1.bf16.msra.mxu1 %v7437_v50  ;;  %v7509_v50 = vld [vmem:[#allocation10 + $0x300] ss:$16 sps:$4 sm:$0xff]  }
 0x29b   :  { %5694 = vmatprep.subr.bf16.mxu1 %v7445_v38  ;;  %v7574_v38 = vld [vmem:[#allocation10 + $0x6e4] ss:$16 sps:$4 sm:$0xff]  }
 0x29c   :  { %5654 = vmatpush1.bf16.msra.mxu0 %v7440_v23  ;;  %v3709_v23 = vadd.f32 %v8407_v52, %v767_v4  ;;  %v7616_v4 = vld [vmem:[#allocation10 + $0x604] ss:$16 sps:$4 sm:$0xff]  }
 0x29d   :  { %5655 = vmatprep.subr.bf16.mxu0 %v7448_v15  ;;  %v8419_v15 = vpack.c.bf16 %v8351_v22, %v8351_v22 }
 0x29e   :  { %5695 = vmatpush1.bf16.msra.mxu1 %v7443_v26  ;;  %v7512_v26 = vld [vmem:[#allocation10 + $0x4e0] ss:$16 sps:$4 sm:$0xff]   ;;  %v3750_v22 = vadd.f32 %v8412_v61, %v3709_v23 }
 0x29f   :  { %5696 = vmatprep.subr.bf16.mxu1 %v7451_v10  ;;  %v7901_v10 = vld [vmem:[#allocation8] sm:$0xff]  ;;  %v7536_v23 = vld [vmem:[#allocation10 + $0x5e0] ss:$16 sps:$4 sm:$0xff]  }
 0x2a0   :  { %5656 = vmatpush1.bf16.msra.mxu0 %v7446_v11  ;;  %v8421_v11 = vunpack.c.h.bf16 %v7901_v10  ;;  %v7620_v10 = vld [vmem:[#allocation10 + $0x7e0] ss:$16 sps:$4 sm:$0xff]  }
 0x2a1   :  { %5657 = vmatprep.subr.bf16.mxu0 %v7454_v13  ;;  %v7572_v13 = vld [vmem:[#allocation10 + $0x6e0] ss:$16 sps:$4 sm:$0xff]  }
 0x2a2   :  { %5697 = vmatpush1.bf16.msra.mxu1 %v7449_v1  ;;  %v7517_v1 = vld [vmem:[#allocation10 + $0x4c4] ss:$16 sps:$4 sm:$0xff]  }
 0x2a3   :  { %5698 = vmatprep.subr.bf16.mxu1 %v7457_v14  ;;  %v8425_v14 = vpack.c.bf16 %v8384_v12, %v8384_v12 }
 0x2a4   :  { %5658 = vmatpush1.bf16.msra.mxu0 %v7452_v16  ;;  %v7580_v16 = vld [vmem:[#allocation10 + $0x6c4] ss:$16 sps:$4 sm:$0xff]  }
 0x2a5   :  { %5659 = vmatprep.subr.bf16.mxu0 %v7460_v19  ;;  %v7515_v19 = vld [vmem:[#allocation10 + $0x4c0] ss:$16 sps:$4 sm:$0xff]  }
 0x2a6   :  { %5699 = vmatpush1.bf16.msra.mxu1 %v7455_v18 }
 0x2a7   :  { %5700 = vmatprep.subr.bf16.mxu1 %v7463_v47  ;;  %v8436_v47 = vrot.slane %v8421_v11, %v8256_v54 }
 0x2a8   :  { %5660 = vmatpush1.bf16.msra.mxu0 %v7458_v5  ;;  %v7520_v5 = vld [vmem:[#allocation10 + $0x4a4] ss:$16 sps:$4 sm:$0xff]  }
 0x2a9   :  { %5661 = vmatprep.subr.bf16.mxu0 %v7466_v21 }
 0x2aa   :  { %5701 = vmatpush1.bf16.msra.mxu1 %v7461_v20  ;;  %v7578_v20 = vld [vmem:[#allocation10 + $0x6c0] ss:$16 sps:$4 sm:$0xff]  }
 0x2ab   :  { %5702 = vmatprep.subr.bf16.mxu1 %v7469_v24 }
 0x2ac   :  { %5662 = vmatpush2.bf16.msra.mxu0 %v7464_v48  ;;  %v7586_v48 = vld [vmem:[#allocation10 + $0x6a4] ss:$16 sps:$4 sm:$0xff]  }
 0x2ad   :  { %5663 = vmatprep.subr.bf16.mxu0 %v7472_v27 }
 0x2ae   :  { %5703 = vmatpush2.bf16.msra.mxu1 %v7467_v25 }
 0x2af   :  { %5704 = vmatprep.subr.bf16.mxu1 %v7475_v28  ;;  %v7518_v28 = vld [vmem:[#allocation10 + $0x4a0] ss:$16 sps:$4 sm:$0xff]  }
 0x2b0   :  { %5664 = vmatpush2.bf16.msra.mxu0 %v7470_v17 }
 0x2b1   :  { %5665 = vmatprep.subr.bf16.mxu0 %v7478_v31  ;;  %v4061_v31 = vcombine.high %v8436_v47, %v8436_v47 }
 0x2b2   :  { %5705 = vmatpush2.bf16.msra.mxu1 %v7473_v29  ;;  %v7523_v29 = vld [vmem:[#allocation10 + $0x484] ss:$16 sps:$4 sm:$0xff]  }
 0x2b3   :  { %5706 = vmatprep.subr.bf16.mxu1 %v7481_v32  ;;  %v7584_v32 = vld [vmem:[#allocation10 + $0x6a0] ss:$16 sps:$4 sm:$0xff]  }
 0x2b4   :  { %5666 = vmatpush2.bf16.msra.mxu0 %v7476_v33 }
 0x2b5   :  { %5667 = vmatprep.subr.bf16.mxu0 %v7484_v9  ;;  %v7592_v9 = vld [vmem:[#allocation10 + $0x684] ss:$16 sps:$4 sm:$0xff]  }
 0x2b6   :  { %5707 = vmatpush2.bf16.msra.mxu1 %v7479_v7 }
 0x2b7   :  { %5708 = vmatprep.subr.bf16.mxu1 %v7487_v39 }
 0x2b8   :  { %5668 = vmatpush2.bf16.msra.mxu0 %v7482_v41  ;;  %v7521_v41 = vld [vmem:[#allocation10 + $0x480] ss:$16 sps:$4 sm:$0xff]  }
 0x2b9   :  { %5669 = vmatprep.subr.bf16.mxu0 %v7490_v42  ;;  %v7526_v42 = vld [vmem:[#allocation10 + $0x464] ss:$16 sps:$4 sm:$0xff]  }
 0x2ba   :  { %5709 = vmatpush2.bf16.msra.mxu1 %v7485_v40 }
 0x2bb   :  { %5710 = vmatprep.subr.bf16.mxu1 %v7493_v0  ;;  %v7590_v0 = vld [vmem:[#allocation10 + $0x680] ss:$16 sps:$4 sm:$0xff]  }
 0x2bc   :  { %5670 = vmatpush2.bf16.msra.mxu0 %v7488_v46 }
 0x2bd   :  { %5671 = vmatprep.subr.bf16.mxu0 %v7496_v51  ;;  %v7524_v51 = vld [vmem:[#allocation10 + $0x460] ss:$16 sps:$4 sm:$0xff]  }
 0x2be   :  { %5711 = vmatpush2.bf16.msra.mxu1 %v7491_v6  ;;  %v7598_v6 = vld [vmem:[#allocation10 + $0x664] ss:$16 sps:$4 sm:$0xff]  }
 0x2bf   :  { %5712 = vmatprep.subr.bf16.mxu1 %v7499_v53  ;;  %v7529_v53 = vld [vmem:[#allocation10 + $0x444] ss:$16 sps:$4 sm:$0xff]  }
 0x2c0   :  { %5672 = vmatpush2.bf16.msra.mxu0 %v7494_v55  ;;  %v7596_v55 = vld [vmem:[#allocation10 + $0x660] ss:$16 sps:$4 sm:$0xff]  }
 0x2c1   :  { %5673 = vmatprep.subr.bf16.mxu0 %v7502_v62  ;;  %v7527_v62 = vld [vmem:[#allocation10 + $0x440] ss:$16 sps:$4 sm:$0xff]  }
 0x2c2   :  { %5713 = vmatpush2.bf16.msra.mxu1 %v7497_v57  ;;  %v7604_v57 = vld [vmem:[#allocation10 + $0x644] ss:$16 sps:$4 sm:$0xff]  }
 0x2c3   :  { %5714 = vmatprep.subr.bf16.mxu1 %v7505_v58  ;;  %v7532_v58 = vld [vmem:[#allocation10 + $0x424] ss:$16 sps:$4 sm:$0xff]  }
 0x2c4   :  { %5674 = vmatpush2.bf16.msra.mxu0 %v7500_v60  ;;  %v7610_v60 = vld [vmem:[#allocation10 + $0x624] ss:$16 sps:$4 sm:$0xff]  }
 0x2c5   :  { %5675 = vmatprep.subr.bf16.mxu0 %v7508_v2  ;;  %v7535_v2 = vld [vmem:[#allocation10 + $0x404] ss:$16 sps:$4 sm:$0xff]  }
 0x2c6   :  { %5715 = vmatpush2.bf16.msra.mxu1 %v7503_v63  ;;  %v7530_v63 = vld [vmem:[#allocation10 + $0x420] ss:$16 sps:$4 sm:$0xff]  }
 0x2c7   :  { %5716 = vmatprep.subr.bf16.mxu1 %v7511_v3  ;;  %v7608_v3 = vld [vmem:[#allocation10 + $0x620] ss:$16 sps:$4 sm:$0xff]  }
 0x2c8   :  { %5676 = vmatpush2.bf16.msra.mxu0 %v7506_v34  ;;  %v7533_v34 = vld [vmem:[#allocation10 + $0x400] ss:$16 sps:$4 sm:$0xff]  }
 0x2c9   :  { %5727 = vmatprep.subr.bf16.mxu0 %v7514_v8  ;;  %v7614_v8 = vld [vmem:[#allocation10 + $0x600] ss:$16 sps:$4 sm:$0xff]  }
 0x2ca   :  { %5717 = vmatpush2.bf16.msra.mxu1 %v7509_v50  ;;  %v7538_v50 = vld [vmem:[#allocation10 + $0x5e4] ss:$16 sps:$4 sm:$0xff]  }
 0x2cb   :  { %5768 = vmatprep.subr.bf16.mxu1 %v7574_v38  ;;  %v8427_v52 = vpop.f32.mrf.mxu0  ;;  %5678 = vmatmul.mubr.bf16.vlgmr.msra.gmra.mxu0 %v8419_v15  ;;  %v7622_v38 = vld [vmem:[#allocation10 + $0x7e4] ss:$16 sps:$4 sm:$0xff]  }
 0x2cc   :  { %5728 = vmatpush1.bf16.msra.mxu0 %v7512_v26  ;;  %v7541_v26 = vld [vmem:[#allocation10 + $0x5c4] ss:$16 sps:$4 sm:$0xff]  }
 0x2cd   :  { %v8431_v18 = vpop.f32.mrf.mxu1  ;;  %5719 = vmatmul.mubr.bf16.vlgmr.msra.gmra.mxu1 %v8425_v14  ;;  %v3790_v12 = vpop.f32.mrf.mxu0  ;;  %5729 = vmatprep.subr.bf16.mxu0 %v7517_v1  ;;  %v7628_v1 = vld [vmem:[#allocation10 + $0x7c4] ss:$16 sps:$4 sm:$0xff]  }
 0x2ce   :  { %5769 = vmatpush1.bf16.msra.mxu1 %v7572_v13  ;;  %v3791_v21 = vadd.f32 %v3790_v12, %v3750_v22  ;;  %v7539_v13 = vld [vmem:[#allocation10 + $0x5c0] ss:$16 sps:$4 sm:$0xff]  }
 0x2cf   :  { %v3831_v24 = vpop.f32.mrf.mxu1  ;;  %5770 = vmatprep.subr.bf16.mxu1 %v7580_v16  ;;  %v3792_v61 = vpop.f32.mrf.mxu0  ;;  %v7544_v16 = vld [vmem:[#allocation10 + $0x5a4] ss:$16 sps:$4 sm:$0xff]   ;;  %v7626_v22 = vld [vmem:[#allocation10 + $0x7c0] ss:$16 sps:$4 sm:$0xff]  }
 0x2d0   :  { %v3832_v25 = vadd.f32 %v3831_v24, %v3791_v21  ;;  %5730 = vmatpush1.bf16.msra.mxu0 %v7515_v19  ;;  %v7634_v19 = vld [vmem:[#allocation10 + $0x7a4] ss:$16 sps:$4 sm:$0xff]   ;;  %v7542_v12 = vld [vmem:[#allocation10 + $0x5a0] ss:$16 sps:$4 sm:$0xff]   ;;  %v3789_v61 = vadd.f32 %v8427_v52, %v8409_v56 }
 0x2d1   :  { %v3833_v27 = vpop.f32.mrf.mxu1  ;;  %v3793_v17 = vpop.f32.mrf.mxu0  ;;  %5731 = vmatprep.subr.bf16.mxu0 %v7520_v5  ;;  %v7547_v5 = vld [vmem:[#allocation10 + $0x584] ss:$16 sps:$4 sm:$0xff]   ;;  %v7545_v24 = vld [vmem:[#allocation10 + $0x580] ss:$16 sps:$4 sm:$0xff]  }
 0x2d2   :  { %5771 = vmatpush1.bf16.msra.mxu1 %v7578_v20  ;;  %vm4005_vm4 = vcmp.gt.f32.partialorder %v3832_v25, 0.0  ;;  %v4013_v33 = vmul.f32 0.2, %v3832_v25  ;;  %v7632_v20 = vld [vmem:[#allocation10 + $0x7a0] ss:$16 sps:$4 sm:$0xff]  }
 0x2d3   :  { %v3834_v7 = vpop.f32.mrf.mxu1  ;;  %5772 = vmatprep.subr.bf16.mxu1 %v7586_v48  ;;  %v7640_v21 = vld [vmem:[#allocation10 + $0x784] ss:$16 sps:$4 sm:$0xff]   ;;  %v7650_v56 = vld [vmem:[#allocation10 + $0x740] ss:$16 sps:$4 sm:$0xff]  }
 0x2d4   :  { %v4021_v39 = vsel %vm4005_vm4, %v3832_v25, %v4013_v33  ;;  %5732 = vmatpush1.bf16.msra.mxu0 %v7518_v28  ;;  %v7550_v48 = vld [vmem:[#allocation10 + $0x564] ss:$16 sps:$4 sm:$0xff]   ;;  %v7638_v25 = vld [vmem:[#allocation10 + $0x780] ss:$16 sps:$4 sm:$0xff]  }
 0x2d5   :  { %5733 = vmatprep.subr.bf16.mxu0 %v7523_v29  ;;  %v4076_v40 = vmul.f32 %v4061_v31, %v4021_v39  ;;  %v7646_v27 = vld [vmem:[#allocation10 + $0x764] ss:$16 sps:$4 sm:$0xff]   ;;  %v7548_v28 = vld [vmem:[#allocation10 + $0x560] ss:$16 sps:$4 sm:$0xff]   ;;  %v3830_v29 = vadd.f32 %v8431_v18, %v3789_v61  ;;  %v7611_v61 = vld [vmem:[#allocation10 + $0x1a8] ss:$16 sps:$4 sm:$0xff]  }
 0x2d6   :  { %5773 = vmatpush1.bf16.msra.mxu1 %v7584_v32  ;;  %v7553_v17 = vld [vmem:[#allocation10 + $0x544] ss:$16 sps:$4 sm:$0xff]   ;;  %v7644_v31 = vld [vmem:[#allocation10 + $0x760] ss:$16 sps:$4 sm:$0xff]  }
 0x2d7   :  { %5774 = vmatprep.subr.bf16.mxu1 %v7592_v9  ;;  %v8440_v46 = vpack.c.bf16 %v4076_v40, %v4076_v40  ;;  %v7652_v32 = vld [vmem:[#allocation10 + $0x744] ss:$16 sps:$4 sm:$0xff]   ;;  %v7551_v33 = vld [vmem:[#allocation10 + $0x540] ss:$16 sps:$4 sm:$0xff]   ;;  %v4012_v9 = vmul.f32 0.2, %v3830_v29 }
 0x2d8   :  { %5734 = vmatpush1.bf16.msra.mxu0 %v7521_v41  ;;  %v7556_v7 = vld [vmem:[#allocation10 + $0x524] ss:$16 sps:$4 sm:$0xff]   ;;  %vm4004_vm5 = vcmp.gt.f32.partialorder %v3830_v29, 0.0  ;;  %v7554_v39 = vld [vmem:[#allocation10 + $0x520] ss:$16 sps:$4 sm:$0xff]  }
 0x2d9   :  { %5759 = vmatprep.mubr.bf16.mxu0 %v8440_v46  ;;  %5735 = vmatprep.subr.bf16.mxu0 %v7526_v42  ;;  %v7658_v52 = vld [vmem:[#allocation10 + $0x724] ss:$16 sps:$4 sm:$0xff]   ;;  %v4020_v40 = vsel %vm4004_vm5, %v3830_v29, %v4012_v9  ;;  %v7656_v18 = vld [vmem:[#allocation10 + $0x720] ss:$16 sps:$4 sm:$0xff]   ;;  %v7631_v29 = vld [vmem:[#allocation10 + $0x14c] ss:$16 sps:$4 sm:$0xff]  }
 0x2da   :  { %5775 = vmatpush1.bf16.msra.mxu1 %v7590_v0  ;;  %v7559_v41 = vld [vmem:[#allocation10 + $0x504] ss:$16 sps:$4 sm:$0xff]   ;;  %v7557_v0 = vld [vmem:[#allocation10 + $0x500] ss:$16 sps:$4 sm:$0xff]   ;;  %v7635_v9 = vld [vmem:[#allocation10 + $0x128] ss:$16 sps:$4 sm:$0xff]  }
 0x2db   :  { %5776 = vmatprep.subr.bf16.mxu1 %v7598_v6  ;;  %v7664_v42 = vld [vmem:[#allocation10 + $0x704] ss:$16 sps:$4 sm:$0xff]   ;;  %v4075_v6 = vmul.f32 %v8436_v47, %v4020_v40  ;;  %v7563_v47 = vld [vmem:[#allocation10 + $0xc8] ss:$16 sps:$4 sm:$0xff]   ;;  %v7649_v40 = vld [vmem:[#allocation10 + $0x4ec] ss:$16 sps:$4 sm:$0xff]  }
 0x2dc   :  { %5736 = vmatpush1.bf16.msra.mxu0 %v7524_v51  ;;  %v7562_v51 = vld [vmem:[#allocation10 + $0xec] ss:$16 sps:$4 sm:$0xff]  }
 0x2dd   :  { %5737 = vmatprep.subr.bf16.mxu0 %v7529_v53  ;;  %v7662_v53 = vld [vmem:[#allocation10 + $0x700] ss:$16 sps:$4 sm:$0xff]  }
 0x2de   :  { %5777 = vmatpush1.bf16.msra.mxu1 %v7596_v55  ;;  %v7670_v55 = vld [vmem:[#allocation10 + $0x2ec] ss:$16 sps:$4 sm:$0xff]  }
 0x2df   :  { %5778 = vmatprep.subr.bf16.mxu1 %v7604_v57  ;;  %v7560_v57 = vld [vmem:[#allocation10 + $0xe8] ss:$16 sps:$4 sm:$0xff]  }
 0x2e0   :  { %5738 = vmatpush1.bf16.msra.mxu0 %v7527_v62  ;;  %v8447_v62 = vpack.c.bf16 %v4075_v6, %v4075_v6  ;;  %v4046_v6 = vcombine.high %v8421_v11, %v8421_v11  ;;  %v7661_v11 = vld [vmem:[#allocation10 + $0x4ac] ss:$16 sps:$4 sm:$0xff]  }
 0x2e1   :  { %5739 = vmatprep.subr.bf16.mxu0 %v7532_v58  ;;  %v7565_v58 = vld [vmem:[#allocation10 + $0xcc] ss:$16 sps:$4 sm:$0xff]  }
 0x2e2   :  { %5779 = vmatpush1.bf16.msra.mxu1 %v7602_v59 }
 0x2e3   :  { %5780 = vmatprep.subr.bf16.mxu1 %v7610_v60 }
 0x2e4   :  { %5740 = vmatpush1.bf16.msra.mxu0 %v7530_v63 }
 0x2e5   :  { %5741 = vmatprep.subr.bf16.mxu0 %v7535_v2  ;;  %v7568_v2 = vld [vmem:[#allocation10 + $0xac] ss:$16 sps:$4 sm:$0xff]  }
 0x2e6   :  { %5781 = vmatpush1.bf16.msra.mxu1 %v7608_v3 }
 0x2e7   :  { %5782 = vmatprep.subr.bf16.mxu1 %v7616_v4 }
 0x2e8   :  { %5742 = vmatpush1.bf16.msra.mxu0 %v7533_v34 }
 0x2e9   :  { %5743 = vmatprep.subr.bf16.mxu0 %v7538_v50  ;;  %v7566_v50 = vld [vmem:[#allocation10 + $0xa8] ss:$16 sps:$4 sm:$0xff]  }
 0x2ea   :  { %5783 = vmatpush1.bf16.msra.mxu1 %v7614_v8 }
 0x2eb   :  { %5784 = vmatprep.subr.bf16.mxu1 %v7622_v38  ;;  %v7571_v38 = vld [vmem:[#allocation10 + $0x8c] ss:$16 sps:$4 sm:$0xff]  }
 0x2ec   :  { %5744 = vmatpush2.bf16.msra.mxu0 %v7536_v23 }
 0x2ed   :  { %5745 = vmatprep.subr.bf16.mxu0 %v7541_v26  ;;  %v7569_v26 = vld [vmem:[#allocation10 + $0x88] ss:$16 sps:$4 sm:$0xff]  }
 0x2ee   :  { %5785 = vmatpush2.bf16.msra.mxu1 %v7620_v10  ;;  %v7577_v10 = vld [vmem:[#allocation10 + $0x6c] ss:$16 sps:$4 sm:$0xff]  }
 0x2ef   :  { %5786 = vmatprep.subr.bf16.mxu1 %v7628_v1  ;;  %v7583_v1 = vld [vmem:[#allocation10 + $0x4c] ss:$16 sps:$4 sm:$0xff]  }
 0x2f0   :  { %5746 = vmatpush2.bf16.msra.mxu0 %v7539_v13  ;;  %v7581_v13 = vld [vmem:[#allocation10 + $0x48] ss:$16 sps:$4 sm:$0xff]  }
 0x2f1   :  { %5747 = vmatprep.subr.bf16.mxu0 %v7544_v16  ;;  %v7589_v16 = vld [vmem:[#allocation10 + $0x2c] ss:$16 sps:$4 sm:$0xff]  }
 0x2f2   :  { %5787 = vmatpush2.bf16.msra.mxu1 %v7626_v22  ;;  %v7587_v22 = vld [vmem:[#allocation10 + $0x28] ss:$16 sps:$4 sm:$0xff]  }
 0x2f3   :  { %5788 = vmatprep.subr.bf16.mxu1 %v7634_v19  ;;  %v7595_v19 = vld [vmem:[#allocation10 + $0xc] ss:$16 sps:$4 sm:$0xff]  }
 0x2f4   :  { %5748 = vmatpush2.bf16.msra.mxu0 %v7542_v12  ;;  %v7593_v12 = vld [vmem:[#allocation10 + $0x8] ss:$16 sps:$4 sm:$0xff]  }
 0x2f5   :  { %5749 = vmatprep.subr.bf16.mxu0 %v7547_v5  ;;  %v7601_v5 = vld [vmem:[#allocation10 + $0x1ec] ss:$16 sps:$4 sm:$0xff]  }
 0x2f6   :  { %5789 = vmatpush2.bf16.msra.mxu1 %v7632_v20  ;;  %v7599_v20 = vld [vmem:[#allocation10 + $0x1e8] ss:$16 sps:$4 sm:$0xff]  }
 0x2f7   :  { %5790 = vmatprep.subr.bf16.mxu1 %v7640_v21  ;;  %v7607_v21 = vld [vmem:[#allocation10 + $0x1cc] ss:$16 sps:$4 sm:$0xff]  }
 0x2f8   :  { %5750 = vmatpush2.bf16.msra.mxu0 %v7545_v24  ;;  %v7605_v24 = vld [vmem:[#allocation10 + $0x1c8] ss:$16 sps:$4 sm:$0xff]  }
 0x2f9   :  { %5751 = vmatprep.subr.bf16.mxu0 %v7550_v48  ;;  %v7613_v48 = vld [vmem:[#allocation10 + $0x1ac] ss:$16 sps:$4 sm:$0xff]  }
 0x2fa   :  { %5791 = vmatpush2.bf16.msra.mxu1 %v7638_v25  ;;  %v7619_v25 = vld [vmem:[#allocation10 + $0x18c] ss:$16 sps:$4 sm:$0xff]  }
 0x2fb   :  { %5792 = vmatprep.subr.bf16.mxu1 %v7646_v27  ;;  %v7617_v27 = vld [vmem:[#allocation10 + $0x188] ss:$16 sps:$4 sm:$0xff]  }
 0x2fc   :  { %5752 = vmatpush2.bf16.msra.mxu0 %v7548_v28  ;;  %v7625_v28 = vld [vmem:[#allocation10 + $0x16c] ss:$16 sps:$4 sm:$0xff]  }
 0x2fd   :  { %5753 = vmatprep.subr.bf16.mxu0 %v7553_v17  ;;  %v7623_v17 = vld [vmem:[#allocation10 + $0x168] ss:$16 sps:$4 sm:$0xff]  }
 0x2fe   :  { %5793 = vmatpush2.bf16.msra.mxu1 %v7644_v31  ;;  %v7629_v31 = vld [vmem:[#allocation10 + $0x148] ss:$16 sps:$4 sm:$0xff]  }
 0x2ff   :  { %5794 = vmatprep.subr.bf16.mxu1 %v7652_v32  ;;  %v7637_v32 = vld [vmem:[#allocation10 + $0x12c] ss:$16 sps:$4 sm:$0xff]  }
 0x300   :  { %5754 = vmatpush2.bf16.msra.mxu0 %v7551_v33  ;;  %v770_v33 = vsub.s32 6, %v8253_v45 }
 0x301   :  { %5755 = vmatprep.subr.bf16.mxu0 %v7556_v7  ;;  %v774_v7 = vsub.s32 7, %v8253_v45 }
 0x302   :  { %5795 = vmatpush2.bf16.msra.mxu1 %v7650_v56  ;;  %v7643_v56 = vld [vmem:[#allocation10 + $0x10c] ss:$16 sps:$4 sm:$0xff]  }
 0x303   :  { %5796 = vmatprep.subr.bf16.mxu1 %v7658_v52  ;;  %v771_v52 = vrot.slane %v8397_v36, %v770_v33  ;;  %v7686_v33 = vld [vmem:[#allocation10 + $0x288] ss:$16 sps:$4 sm:$0xff]  }
 0x304   :  { %5756 = vmatpush2.bf16.msra.mxu0 %v7554_v39  ;;  %v775_v39 = vrot.slane %v8397_v36, %v774_v7  ;;  %v7694_v7 = vld [vmem:[#allocation10 + $0x26c] ss:$16 sps:$4 sm:$0xff]  }
 0x305   :  { %5757 = vmatprep.subr.bf16.mxu0 %v7559_v41  ;;  %v7641_v41 = vld [vmem:[#allocation10 + $0x108] ss:$16 sps:$4 sm:$0xff]  }
 0x306   :  { %5797 = vmatpush2.bf16.msra.mxu1 %v7656_v18 }
 0x307   :  { %5798 = vmatprep.subr.bf16.mxu1 %v7664_v42 }
 0x308   :  { %5758 = vmatpush2.bf16.msra.mxu0 %v7557_v0  ;;  %v7647_v0 = vld [vmem:[#allocation10 + $0x4e8] ss:$16 sps:$4 sm:$0xff]  }
 0x309   :  { %5809 = vmatprep.subr.bf16.mxu0 %v7562_v51  ;;  %v7655_v51 = vld [vmem:[#allocation10 + $0x4cc] ss:$16 sps:$4 sm:$0xff]  }
 0x30a   :  { %5799 = vmatpush2.bf16.msra.mxu1 %v7662_v53 }
 0x30b   :  { %v8449_v59 = vpop.f32.mrf.mxu0  ;;  %5760 = vmatmul.mubr.bf16.vlgmr.msra.gmra.mxu0 %v8447_v62  ;;  %5850 = vmatprep.subr.bf16.mxu1 %v7670_v55 }
 0x30c   :  { %5810 = vmatpush1.bf16.msra.mxu0 %v7560_v57  ;;  %5841 = vmatprep.mubr.bf16.mxu0 %v8401_v44  ;;  %v7575_v44 = vld [vmem:[#allocation10 + $0x68] ss:$16 sps:$4 sm:$0xff]   ;;  %v3871_v18 = vadd.f32 %v8449_v59, %v771_v52 }
 0x30d   :  { %v8452_v60 = vpop.f32.mrf.mxu1  ;;  %v8455_v63 = vpop.f32.mrf.mxu0  ;;  %5811 = vmatprep.subr.bf16.mxu0 %v7565_v58  ;;  %v7653_v59 = vld [vmem:[#allocation10 + $0x4c8] ss:$16 sps:$4 sm:$0xff]  }
 0x30e   :  { %v3873_v42 = vadd.f32 %v8455_v63, %v775_v39  ;;  %v3912_v53 = vadd.f32 %v8452_v60, %v3871_v18  ;;  %v7695_v52 = vld [vmem:[#allocation10 + $0x5e8] ss:$16 sps:$4 sm:$0xff]   ;;  %v7700_v39 = vld [vmem:[#allocation10 + $0x24c] ss:$16 sps:$4 sm:$0xff]  }
 0x30f   :  { %v8457_v3 = vpop.f32.mrf.mxu1  ;;  %v3874_v4 = vpop.f32.mrf.mxu0  ;;  %v7701_v18 = vld [vmem:[#allocation10 + $0x5c8] ss:$16 sps:$4 sm:$0xff]  }
 0x310   :  { %5812 = vmatpush1.bf16.msra.mxu0 %v7563_v47  ;;  %v3914_v36 = vadd.f32 %v8457_v3, %v3873_v42  ;;  %v4060_v47 = vrot.slane %v4046_v6, %v8256_v54  ;;  %v7659_v3 = vld [vmem:[#allocation10 + $0x4a8] ss:$16 sps:$4 sm:$0xff]   ;;  %v7706_v42 = vld [vmem:[#allocation10 + $0x22c] ss:$16 sps:$4 sm:$0xff]  }
 0x311   :  { %v3915_v34 = vpop.f32.mrf.mxu1  ;;  %v3875_v8 = vpop.f32.mrf.mxu0  ;;  %5813 = vmatprep.subr.bf16.mxu0 %v7568_v2  ;;  %v7704_v6 = vld [vmem:[#allocation10 + $0x228] ss:$16 sps:$4 sm:$0xff]  }
 0x313   :  { %v3916_v23 = vpop.f32.mrf.mxu1 }
 0x314   :  { %5814 = vmatpush1.bf16.msra.mxu0 %v7566_v50  ;;  %v7667_v23 = vld [vmem:[#allocation10 + $0x48c] ss:$16 sps:$4 sm:$0xff]  }
 0x315   :  { %5815 = vmatprep.subr.bf16.mxu0 %v7571_v38 }
 0x318   :  { %5816 = vmatpush1.bf16.msra.mxu0 %v7569_v26 }
 0x319   :  { %5817 = vmatprep.subr.bf16.mxu0 %v7577_v10 }
 0x31c   :  { %5818 = vmatpush1.bf16.msra.mxu0 %v7575_v44 }
 0x31d   :  { %5819 = vmatprep.subr.bf16.mxu0 %v7583_v1 }
 0x320   :  { %5820 = vmatpush1.bf16.msra.mxu0 %v7581_v13 }
 0x321   :  { %5821 = vmatprep.subr.bf16.mxu0 %v7589_v16  ;;  %v7665_v16 = vld [vmem:[#allocation10 + $0x488] ss:$16 sps:$4 sm:$0xff]  }
 0x324   :  { %5822 = vmatpush1.bf16.msra.mxu0 %v7587_v22 }
 0x325   :  { %5823 = vmatprep.subr.bf16.mxu0 %v7595_v19  ;;  %v7673_v19 = vld [vmem:[#allocation10 + $0x46c] ss:$16 sps:$4 sm:$0xff]  }
 0x328   :  { %5824 = vmatpush1.bf16.msra.mxu0 %v7593_v12 }
 0x329   :  { %5825 = vmatprep.subr.bf16.mxu0 %v7601_v5  ;;  %v7668_v5 = vld [vmem:[#allocation10 + $0x2e8] ss:$16 sps:$4 sm:$0xff]  }
 0x32c   :  { %5826 = vmatpush2.bf16.msra.mxu0 %v7599_v20 }
 0x32d   :  { %5827 = vmatprep.subr.bf16.mxu0 %v7607_v21  ;;  %v7671_v21 = vld [vmem:[#allocation10 + $0x468] ss:$16 sps:$4 sm:$0xff]  }
 0x330   :  { %5828 = vmatpush2.bf16.msra.mxu0 %v7605_v24  ;;  %v7676_v24 = vld [vmem:[#allocation10 + $0x2cc] ss:$16 sps:$4 sm:$0xff]  }
 0x331   :  { %5829 = vmatprep.subr.bf16.mxu0 %v7613_v48  ;;  %v7679_v48 = vld [vmem:[#allocation10 + $0x44c] ss:$16 sps:$4 sm:$0xff]  }
 0x334   :  { %5830 = vmatpush2.bf16.msra.mxu0 %v7611_v61  ;;  %v7674_v61 = vld [vmem:[#allocation10 + $0x2c8] ss:$16 sps:$4 sm:$0xff]  }
 0x335   :  { %5831 = vmatprep.subr.bf16.mxu0 %v7619_v25  ;;  %v7677_v25 = vld [vmem:[#allocation10 + $0x448] ss:$16 sps:$4 sm:$0xff]  }
 0x338   :  { %5832 = vmatpush2.bf16.msra.mxu0 %v7617_v27  ;;  %v7682_v27 = vld [vmem:[#allocation10 + $0x2ac] ss:$16 sps:$4 sm:$0xff]  }
 0x339   :  { %5833 = vmatprep.subr.bf16.mxu0 %v7625_v28  ;;  %v7685_v28 = vld [vmem:[#allocation10 + $0x42c] ss:$16 sps:$4 sm:$0xff]  }
 0x33c   :  { %5834 = vmatpush2.bf16.msra.mxu0 %v7623_v17  ;;  %v7680_v17 = vld [vmem:[#allocation10 + $0x2a8] ss:$16 sps:$4 sm:$0xff]  }
 0x33d   :  { %5835 = vmatprep.subr.bf16.mxu0 %v7631_v29  ;;  %v7683_v29 = vld [vmem:[#allocation10 + $0x428] ss:$16 sps:$4 sm:$0xff]  }
 0x340   :  { %5836 = vmatpush2.bf16.msra.mxu0 %v7629_v31  ;;  %v7688_v31 = vld [vmem:[#allocation10 + $0x28c] ss:$16 sps:$4 sm:$0xff]  }
 0x341   :  { %5837 = vmatprep.subr.bf16.mxu0 %v7637_v32  ;;  %v7691_v32 = vld [vmem:[#allocation10 + $0x40c] ss:$16 sps:$4 sm:$0xff]  }
 0x344   :  { %5838 = vmatpush2.bf16.msra.mxu0 %v7635_v9  ;;  %v7697_v9 = vld [vmem:[#allocation10 + $0x5ec] ss:$16 sps:$4 sm:$0xff]  }
 0x345   :  { %5839 = vmatprep.subr.bf16.mxu0 %v7643_v56  ;;  %v7692_v56 = vld [vmem:[#allocation10 + $0x268] ss:$16 sps:$4 sm:$0xff]  }
 0x348   :  { %5840 = vmatpush2.bf16.msra.mxu0 %v7641_v41  ;;  %v7703_v41 = vld [vmem:[#allocation10 + $0x5cc] ss:$16 sps:$4 sm:$0xff]  }
 0x349   :  { %5891 = vmatprep.subr.bf16.mxu0 %v7649_v40  ;;  %v7698_v40 = vld [vmem:[#allocation10 + $0x248] ss:$16 sps:$4 sm:$0xff]  }
 0x34b   :  { %v3952_v55 = vpop.f32.mrf.mxu0  ;;  %5842 = vmatmul.mubr.bf16.vlgmr.msra.gmra.mxu0 %v8419_v15 }
 0x34c   :  { %v3953_v57 = vadd.f32 %v3952_v55, %v3912_v53  ;;  %5892 = vmatpush1.bf16.msra.mxu0 %v7647_v0  ;;  %5923 = vmatprep.mubr.bf16.mxu0 %v8440_v46  ;;  %v4062_v46 = vcombine.high %v4060_v47, %v4060_v47  ;;  %v7709_v0 = vld [vmem:[#allocation10 + $0x5ac] ss:$16 sps:$4 sm:$0xff]  }
 0x34d   :  { %v3993_v58 = vpop.f32.mrf.mxu1  ;;  %v3954_v63 = vpop.f32.mrf.mxu0  ;;  %5893 = vmatprep.subr.bf16.mxu0 %v7655_v51  ;;  %v7707_v51 = vld [vmem:[#allocation10 + $0x5a8] ss:$16 sps:$4 sm:$0xff]   ;;  %v7712_v53 = vld [vmem:[#allocation10 + $0x20c] ss:$16 sps:$4 sm:$0xff]  }
 0x34e   :  { %v3994_v2 = vadd.f32 %v3993_v58, %v3953_v57  ;;  %v3955_v4 = vadd.f32 %v3954_v63, %v3914_v36  ;;  %v7715_v55 = vld [vmem:[#allocation10 + $0x58c] ss:$16 sps:$4 sm:$0xff]   ;;  %v7710_v36 = vld [vmem:[#allocation10 + $0x208] ss:$16 sps:$4 sm:$0xff]  }
 0x34f   :  { %v3995_v34 = vpop.f32.mrf.mxu1  ;;  %v3956_v60 = vpop.f32.mrf.mxu0  ;;  %v7713_v57 = vld [vmem:[#allocation10 + $0x588] ss:$16 sps:$4 sm:$0xff]   ;;  %v7718_v58 = vld [vmem:[#allocation10 + $0x3ec] ss:$16 sps:$4 sm:$0xff]  }
 0x350   :  { %vm4006_vm6 = vcmp.gt.f32.partialorder %v3994_v2, 0.0  ;;  %v4014_v50 = vmul.f32 0.2, %v3994_v2  ;;  %v3996_v15 = vadd.f32 %v3995_v34, %v3955_v4  ;;  %5894 = vmatpush1.bf16.msra.mxu0 %v7653_v59  ;;  %v7721_v59 = vld [vmem:[#allocation10 + $0x56c] ss:$16 sps:$4 sm:$0xff]  }
 0x351   :  { %v3997_v8 = vpop.f32.mrf.mxu1  ;;  %v3957_v38 = vpop.f32.mrf.mxu0  ;;  %5895 = vmatprep.subr.bf16.mxu0 %v7661_v11  ;;  %v7719_v63 = vld [vmem:[#allocation10 + $0x568] ss:$16 sps:$4 sm:$0xff]   ;;  %v7724_v11 = vld [vmem:[#allocation10 + $0x3cc] ss:$16 sps:$4 sm:$0xff]  }
 0x352   :  { %v4022_v26 = vsel %vm4006_vm6, %v3994_v2, %v4014_v50  ;;  %vm4007_vm7 = vcmp.gt.f32.partialorder %v3996_v15, 0.0  ;;  %v4015_v10 = vmul.f32 0.2, %v3996_v15  ;;  %v7727_v2 = vld [vmem:[#allocation10 + $0x54c] ss:$16 sps:$4 sm:$0xff]  }
 0x353   :  { %v3998_v44 = vpop.f32.mrf.mxu1  ;;  %v4077_v1 = vmul.f32 %v4060_v47, %v4022_v26  ;;  %v7716_v47 = vld [vmem:[#allocation10 + $0x3e8] ss:$16 sps:$4 sm:$0xff]   ;;  %v7730_v60 = vld [vmem:[#allocation10 + $0x3ac] ss:$16 sps:$4 sm:$0xff]  }
 0x354   :  { %v4023_v13 = vsel %vm4007_vm7, %v3996_v15, %v4015_v10  ;;  %5896 = vmatpush1.bf16.msra.mxu0 %v7659_v3  ;;  %v7722_v4 = vld [vmem:[#allocation10 + $0x3c8] ss:$16 sps:$4 sm:$0xff]   ;;  %v7733_v50 = vld [vmem:[#allocation10 + $0x52c] ss:$16 sps:$4 sm:$0xff]   ;;  %v8479_v10 = vld [vmem:[#allocation11] sm:$0xf] }
 0x355   :  { %5897 = vmatprep.subr.bf16.mxu0 %v7667_v23  ;;  %v4078_v22 = vmul.f32 %v4062_v46, %v4023_v13  ;;  %v8474_v20 = vpack.c.bf16 %v4077_v1, %v4077_v1  ;;  %v7725_v34 = vld [vmem:[#allocation10 + $0x548] ss:$16 sps:$4 sm:$0xff]   ;;  %v7736_v3 = vld [vmem:[#allocation10 + $0x38c] ss:$16 sps:$4 sm:$0xff]   ;;  %v4348_v13 = vrot.slane %v8479_v10, %v8317_v37 }
 0x356   :  { %v7728_v15 = vld [vmem:[#allocation10 + $0x3a8] ss:$16 sps:$4 sm:$0xff]   ;;  %v7739_v38 = vld [vmem:[#allocation10 + $0x50c] ss:$16 sps:$4 sm:$0xff]  }
 0x357   :  { %v8472_v12 = vpack.c.bf16 %v4078_v22, %v4078_v22  ;;  %v7731_v8 = vld [vmem:[#allocation10 + $0x528] ss:$16 sps:$4 sm:$0xff]   ;;  %v7742_v26 = vld [vmem:[#allocation10 + $0x36c] ss:$16 sps:$4 sm:$0xff]  }
 0x358   :  { %5898 = vmatpush1.bf16.msra.mxu0 %v7665_v16  ;;  %v7734_v23 = vld [vmem:[#allocation10 + $0x388] ss:$16 sps:$4 sm:$0xff]   ;;  %v7802_v44 = vld [vmem:[#allocation14 + $0x74] ss:$8 sps:$4 sm:$0xff]  }
 0x359   :  { %5800 = vmatprep.mubr.bf16.mxu1 %v8472_v12  ;;  %5899 = vmatprep.subr.bf16.mxu0 %v7673_v19  ;;  %v7737_v46 = vld [vmem:[#allocation10 + $0x508] ss:$16 sps:$4 sm:$0xff]   ;;  %v7745_v16 = vld [vmem:[#allocation10 + $0x34c] ss:$16 sps:$4 sm:$0xff]  }
 0x35a   :  { %5801 = vmatmul.mubr.bf16.vlgmr.msra.gmra.mxu1 %v8474_v20  ;;  %v7740_v1 = vld [vmem:[#allocation10 + $0x368] ss:$16 sps:$4 sm:$0xff]   ;;  %v7805_v19 = vld [vmem:[#allocation14 + $0x64] ss:$8 sps:$4 sm:$0xff]  }
 0x35b   :  { %5851 = vmatpush1.bf16.msra.mxu1 %v7668_v5  ;;  %5882 = vmatprep.mubr.bf16.mxu1 %v8404_v49  ;;  %v7689_v49 = vld [vmem:[#allocation10 + $0x408] ss:$16 sps:$4 sm:$0xff]   ;;  %v4352_v5 = vrot.slane %v8479_v10, %v8322_v43 }
 0x35c   :  { %5900 = vmatpush1.bf16.msra.mxu0 %v7671_v21  ;;  %5852 = vmatprep.subr.bf16.mxu1 %v7676_v24  ;;  %v7800_v22 = vld [vmem:[#allocation14 + $0x70] ss:$8 sps:$4 sm:$0xff]  }
 0x35d   :  { %5901 = vmatprep.subr.bf16.mxu0 %v7679_v48  ;;  %v7743_v24 = vld [vmem:[#allocation10 + $0x348] ss:$16 sps:$4 sm:$0xff]  }
 0x35f   :  { %5853 = vmatpush1.bf16.msra.mxu1 %v7674_v61 }
 0x360   :  { %5902 = vmatpush1.bf16.msra.mxu0 %v7677_v25  ;;  %5854 = vmatprep.subr.bf16.mxu1 %v7682_v27  ;;  %v7748_v25 = vld [vmem:[#allocation10 + $0x32c] ss:$16 sps:$4 sm:$0xff]   ;;  %v7803_v27 = vld [vmem:[#allocation14 + $0x60] ss:$8 sps:$4 sm:$0xff]  }
 0x361   :  { %5903 = vmatprep.subr.bf16.mxu0 %v7685_v28 }
 0x363   :  { %5855 = vmatpush1.bf16.msra.mxu1 %v7680_v17  ;;  %v7808_v17 = vld [vmem:[#allocation14 + $0x54] ss:$8 sps:$4 sm:$0xff]  }
 0x364   :  { %5904 = vmatpush1.bf16.msra.mxu0 %v7683_v29  ;;  %5856 = vmatprep.subr.bf16.mxu1 %v7688_v31 }
 0x365   :  { %5905 = vmatprep.subr.bf16.mxu0 %v7691_v32 }
 0x367   :  { %5857 = vmatpush1.bf16.msra.mxu1 %v7686_v33 }
 0x368   :  { %5906 = vmatpush1.bf16.msra.mxu0 %v7689_v49  ;;  %5858 = vmatprep.subr.bf16.mxu1 %v7694_v7  ;;  %v7746_v49 = vld [vmem:[#allocation10 + $0x328] ss:$16 sps:$4 sm:$0xff]  }
 0x369   :  { %5907 = vmatprep.subr.bf16.mxu0 %v7697_v9  ;;  %v7751_v9 = vld [vmem:[#allocation10 + $0x30c] ss:$16 sps:$4 sm:$0xff]  }
 0x36b   :  { %5859 = vmatpush1.bf16.msra.mxu1 %v7692_v56  ;;  %v7806_v56 = vld [vmem:[#allocation14 + $0x50] ss:$8 sps:$4 sm:$0xff]  }
 0x36c   :  { %5908 = vmatpush2.bf16.msra.mxu0 %v7695_v52  ;;  %5860 = vmatprep.subr.bf16.mxu1 %v7700_v39  ;;  %v7811_v39 = vld [vmem:[#allocation14 + $0x44] ss:$8 sps:$4 sm:$0xff]  }
 0x36d   :  { %5909 = vmatprep.subr.bf16.mxu0 %v7703_v41 }
 0x36f   :  { %5861 = vmatpush1.bf16.msra.mxu1 %v7698_v40  ;;  %v7749_v40 = vld [vmem:[#allocation10 + $0x308] ss:$16 sps:$4 sm:$0xff]  }
 0x370   :  { %5910 = vmatpush2.bf16.msra.mxu0 %v7701_v18  ;;  %5862 = vmatprep.subr.bf16.mxu1 %v7706_v42  ;;  %v7754_v18 = vld [vmem:[#allocation10 + $0x6ec] ss:$16 sps:$4 sm:$0xff]   ;;  %v7809_v42 = vld [vmem:[#allocation14 + $0x40] ss:$8 sps:$4 sm:$0xff]  }
 0x371   :  { %5911 = vmatprep.subr.bf16.mxu0 %v7709_v0  ;;  %v7814_v0 = vld [vmem:[#allocation14 + $0x34] ss:$8 sps:$4 sm:$0xff]  }
 0x373   :  { %5863 = vmatpush1.bf16.msra.mxu1 %v7704_v6  ;;  %v7752_v6 = vld [vmem:[#allocation10 + $0x6e8] ss:$16 sps:$4 sm:$0xff]  }
 0x374   :  { %5912 = vmatpush2.bf16.msra.mxu0 %v7707_v51  ;;  %5864 = vmatprep.subr.bf16.mxu1 %v7712_v53  ;;  %v7757_v51 = vld [vmem:[#allocation10 + $0x6cc] ss:$16 sps:$4 sm:$0xff]   ;;  %v7812_v53 = vld [vmem:[#allocation14 + $0x30] ss:$8 sps:$4 sm:$0xff]  }
 0x375   :  { %5913 = vmatprep.subr.bf16.mxu0 %v7715_v55  ;;  %v7817_v55 = vld [vmem:[#allocation14 + $0x24] ss:$8 sps:$4 sm:$0xff]  }
 0x377   :  { %5865 = vmatpush1.bf16.msra.mxu1 %v7710_v36  ;;  %v7755_v36 = vld [vmem:[#allocation10 + $0x6c8] ss:$16 sps:$4 sm:$0xff]  }
 0x378   :  { %5914 = vmatpush2.bf16.msra.mxu0 %v7713_v57  ;;  %5866 = vmatprep.subr.bf16.mxu1 %v7718_v58  ;;  %v7760_v57 = vld [vmem:[#allocation10 + $0x6ac] ss:$16 sps:$4 sm:$0xff]   ;;  %v7815_v58 = vld [vmem:[#allocation14 + $0x20] ss:$8 sps:$4 sm:$0xff]  }
 0x379   :  { %5915 = vmatprep.subr.bf16.mxu0 %v7721_v59  ;;  %v7820_v59 = vld [vmem:[#allocation14 + $0x14] ss:$8 sps:$4 sm:$0xff]  }
 0x37b   :  { %5867 = vmatpush2.bf16.msra.mxu1 %v7716_v47  ;;  %v7758_v47 = vld [vmem:[#allocation10 + $0x6a8] ss:$16 sps:$4 sm:$0xff]  }
 0x37c   :  { %5916 = vmatpush2.bf16.msra.mxu0 %v7719_v63  ;;  %5868 = vmatprep.subr.bf16.mxu1 %v7724_v11  ;;  %v7763_v63 = vld [vmem:[#allocation10 + $0x68c] ss:$16 sps:$4 sm:$0xff]   ;;  %v7818_v11 = vld [vmem:[#allocation14 + $0x10] ss:$8 sps:$4 sm:$0xff]  }
 0x37d   :  { %5917 = vmatprep.subr.bf16.mxu0 %v7727_v2  ;;  %v7823_v2 = vld [vmem:[#allocation14 + $0x4] ss:$8 sps:$4 sm:$0xff]  }
 0x37f   :  { %5869 = vmatpush2.bf16.msra.mxu1 %v7722_v4  ;;  %v7766_v4 = vld [vmem:[#allocation10 + $0x66c] ss:$16 sps:$4 sm:$0xff]  }
 0x380   :  { %5918 = vmatpush2.bf16.msra.mxu0 %v7725_v34  ;;  %5870 = vmatprep.subr.bf16.mxu1 %v7730_v60  ;;  %v7826_v34 = vld [vmem:[#allocation14 + $0xf4] ss:$8 sps:$4 sm:$0xff]   ;;  %v7764_v60 = vld [vmem:[#allocation10 + $0x668] ss:$16 sps:$4 sm:$0xff]  }
 0x381   :  { %5919 = vmatprep.subr.bf16.mxu0 %v7733_v50  ;;  %v7769_v50 = vld [vmem:[#allocation10 + $0x64c] ss:$16 sps:$4 sm:$0xff]  }
 0x383   :  { %5871 = vmatpush2.bf16.msra.mxu1 %v7728_v15  ;;  %v7824_v15 = vld [vmem:[#allocation14 + $0xf0] ss:$8 sps:$4 sm:$0xff]  }
 0x384   :  { %5920 = vmatpush2.bf16.msra.mxu0 %v7731_v8  ;;  %5872 = vmatprep.subr.bf16.mxu1 %v7736_v3  ;;  %v7829_v8 = vld [vmem:[#allocation14 + $0xe4] ss:$8 sps:$4 sm:$0xff]   ;;  %v7767_v3 = vld [vmem:[#allocation10 + $0x648] ss:$16 sps:$4 sm:$0xff]  }
 0x385   :  { %5921 = vmatprep.subr.bf16.mxu0 %v7739_v38  ;;  %v7772_v38 = vld [vmem:[#allocation10 + $0x62c] ss:$16 sps:$4 sm:$0xff]  }
 0x387   :  { %5873 = vmatpush2.bf16.msra.mxu1 %v7734_v23  ;;  %v7827_v23 = vld [vmem:[#allocation14 + $0xe0] ss:$8 sps:$4 sm:$0xff]  }
 0x388   :  { %5922 = vmatpush2.bf16.msra.mxu0 %v7737_v46  ;;  %5874 = vmatprep.subr.bf16.mxu1 %v7742_v26  ;;  %v7832_v46 = vld [vmem:[#allocation14 + $0xd4] ss:$8 sps:$4 sm:$0xff]   ;;  %v7770_v26 = vld [vmem:[#allocation10 + $0x628] ss:$16 sps:$4 sm:$0xff]  }
 0x389   :  { %6413 = vmatprep.subr.bf16.mxu0 %v7802_v44  ;;  %v7775_v44 = vld [vmem:[#allocation10 + $0x60c] ss:$16 sps:$4 sm:$0xff]  }
 0x38b   :  { %5875 = vmatpush2.bf16.msra.mxu1 %v7740_v1  ;;  %v5679_v21 = vpop.f32.mrf.mxu0  ;;  %5924 = vmatmul.mubr.bf16.vlgmr.msra.gmra.mxu0 %v8447_v62  ;;  %v7830_v1 = vld [vmem:[#allocation14 + $0xd0] ss:$8 sps:$4 sm:$0xff]  }
 0x38c   :  { %v5680_v48 = vadd.f32 %v5679_v21, %v4348_v13  ;;  %5876 = vmatprep.subr.bf16.mxu1 %v7745_v16  ;;  %6414 = vmatpush1.bf16.msra.mxu0 %v7800_v22  ;;  %v7835_v13 = vld [vmem:[#allocation14 + $0xc4] ss:$8 sps:$4 sm:$0xff]   ;;  %v7773_v16 = vld [vmem:[#allocation10 + $0x608] ss:$16 sps:$4 sm:$0xff]  }
 0x38d   :  { %v5720_v61 = vpop.f32.mrf.mxu1  ;;  %v5681_v28 = vpop.f32.mrf.mxu0  ;;  %6415 = vmatprep.subr.bf16.mxu0 %v7805_v19  ;;  %v7778_v22 = vld [vmem:[#allocation10 + $0x7ec] ss:$16 sps:$4 sm:$0xff]   ;;  %v7833_v19 = vld [vmem:[#allocation14 + $0xc0] ss:$8 sps:$4 sm:$0xff]  }
 0x38e   :  { %v8486_v29 = vadd.f32 %v5720_v61, %v5680_v48  ;;  %v5682_v31 = vadd.f32 %v5681_v28, %v4352_v5  ;;  %v7838_v5 = vld [vmem:[#allocation14 + $0xb4] ss:$8 sps:$4 sm:$0xff]   ;;  %v7776_v21 = vld [vmem:[#allocation10 + $0x7e8] ss:$16 sps:$4 sm:$0xff]   ;;  %v7841_v61 = vld [vmem:[#allocation14 + $0xa4] ss:$8 sps:$4 sm:$0xff]  }
 0x38f   :  { %v5722_v32 = vpop.f32.mrf.mxu1  ;;  %5877 = vmatpush2.bf16.msra.mxu1 %v7743_v24  ;;  %v5683_v33 = vpop.f32.mrf.mxu0  ;;  %v7781_v24 = vld [vmem:[#allocation10 + $0x7cc] ss:$16 sps:$4 sm:$0xff]   ;;  %v7836_v48 = vld [vmem:[#allocation14 + $0xb0] ss:$8 sps:$4 sm:$0xff]   ;;  %v7839_v28 = vld [vmem:[#allocation14 + $0xa0] ss:$8 sps:$4 sm:$0xff]  }
 0x390   :  { %v8488_v7 = vadd.f32 %v5722_v32, %v5682_v31  ;;  %5878 = vmatprep.subr.bf16.mxu1 %v7748_v25  ;;  %6416 = vmatpush1.bf16.msra.mxu0 %v7803_v27  ;;  %v7779_v25 = vld [vmem:[#allocation10 + $0x7c8] ss:$16 sps:$4 sm:$0xff]   ;;  %v7784_v27 = vld [vmem:[#allocation10 + $0x7ac] ss:$16 sps:$4 sm:$0xff]  }
 0x391   :  { %v5724_v62 = vpop.f32.mrf.mxu1  ;;  %v5684_v52 = vpop.f32.mrf.mxu0  ;;  %6417 = vmatprep.subr.bf16.mxu0 %v7808_v17  ;;  %v7844_v17 = vld [vmem:[#allocation14 + $0x94] ss:$8 sps:$4 sm:$0xff]   ;;  %v7782_v31 = vld [vmem:[#allocation10 + $0x7a8] ss:$16 sps:$4 sm:$0xff]  }
 0x392   :  { %v7787_v32 = vld [vmem:[#allocation10 + $0x78c] ss:$16 sps:$4 sm:$0xff]   ;;  %v7842_v33 = vld [vmem:[#allocation14 + $0x90] ss:$8 sps:$4 sm:$0xff]  }
 0x393   :  { %v5725_v41 = vpop.f32.mrf.mxu1  ;;  %5879 = vmatpush2.bf16.msra.mxu1 %v7746_v49  ;;  %v7847_v49 = vld [vmem:[#allocation14 + $0x84] ss:$8 sps:$4 sm:$0xff]   ;;  %v7785_v62 = vld [vmem:[#allocation10 + $0x788] ss:$16 sps:$4 sm:$0xff]  }
 0x394   :  { %5880 = vmatprep.subr.bf16.mxu1 %v7751_v9  ;;  %6418 = vmatpush1.bf16.msra.mxu0 %v7806_v56  ;;  %v7790_v9 = vld [vmem:[#allocation10 + $0x76c] ss:$16 sps:$4 sm:$0xff]   ;;  %v7845_v56 = vld [vmem:[#allocation14 + $0x80] ss:$8 sps:$4 sm:$0xff]  }
 0x395   :  { %6419 = vmatprep.subr.bf16.mxu0 %v7811_v39  ;;  %v7788_v52 = vld [vmem:[#allocation10 + $0x768] ss:$16 sps:$4 sm:$0xff]   ;;  %v7793_v39 = vld [vmem:[#allocation10 + $0x74c] ss:$16 sps:$4 sm:$0xff]  }
 0x397   :  { %5881 = vmatpush2.bf16.msra.mxu1 %v7749_v40  ;;  %v7791_v40 = vld [vmem:[#allocation10 + $0x748] ss:$16 sps:$4 sm:$0xff]  }
 0x398   :  { %5932 = vmatprep.subr.bf16.mxu1 %v7754_v18  ;;  %6420 = vmatpush1.bf16.msra.mxu0 %v7809_v42  ;;  %v7796_v42 = vld [vmem:[#allocation10 + $0x72c] ss:$16 sps:$4 sm:$0xff]  }
 0x399   :  { %6421 = vmatprep.subr.bf16.mxu0 %v7814_v0 }
 0x39a   :  { %5883 = vmatmul.mubr.bf16.vlgmr.msra.gmra.mxu1 %v8425_v14  ;;  %v7761_v14 = vld [vmem:[#allocation10 + $0x688] ss:$16 sps:$4 sm:$0xff]  }
 0x39b   :  { %5933 = vmatpush1.bf16.msra.mxu1 %v7752_v6  ;;  %5964 = vmatprep.mubr.bf16.mxu1 %v8472_v12  ;;  %v7821_v12 = vld [vmem:[#allocation14] ss:$8 sps:$4 sm:$0xff]  }
 0x39c   :  { %5934 = vmatprep.subr.bf16.mxu1 %v7757_v51  ;;  %6422 = vmatpush1.bf16.msra.mxu0 %v7812_v53  ;;  %v7794_v53 = vld [vmem:[#allocation10 + $0x728] ss:$16 sps:$4 sm:$0xff]  }
 0x39d   :  { %6423 = vmatprep.subr.bf16.mxu0 %v7817_v55  ;;  %v7799_v55 = vld [vmem:[#allocation10 + $0x70c] ss:$16 sps:$4 sm:$0xff]  }
 0x39f   :  { %5935 = vmatpush1.bf16.msra.mxu1 %v7755_v36 }
 0x3a0   :  { %5936 = vmatprep.subr.bf16.mxu1 %v7760_v57  ;;  %6424 = vmatpush1.bf16.msra.mxu0 %v7815_v58  ;;  %v7797_v57 = vld [vmem:[#allocation10 + $0x708] ss:$16 sps:$4 sm:$0xff]   ;;  %v7850_v58 = vld [vmem:[#allocation14 + $0x174] ss:$8 sps:$4 sm:$0xff]  }
 0x3a1   :  { %6425 = vmatprep.subr.bf16.mxu0 %v7820_v59  ;;  %v7853_v59 = vld [vmem:[#allocation14 + $0x164] ss:$8 sps:$4 sm:$0xff]  }
 0x3a3   :  { %5937 = vmatpush1.bf16.msra.mxu1 %v7758_v47  ;;  %v7851_v47 = vld [vmem:[#allocation14 + $0x160] ss:$8 sps:$4 sm:$0xff]  }
 0x3a4   :  { %5938 = vmatprep.subr.bf16.mxu1 %v7763_v63  ;;  %6426 = vmatpush1.bf16.msra.mxu0 %v7818_v11  ;;  %v7854_v63 = vld [vmem:[#allocation14 + $0x150] ss:$8 sps:$4 sm:$0xff]   ;;  %v7859_v11 = vld [vmem:[#allocation14 + $0x144] ss:$8 sps:$4 sm:$0xff]  }
 0x3a5   :  { %6427 = vmatprep.subr.bf16.mxu0 %v7823_v2  ;;  %v7857_v2 = vld [vmem:[#allocation14 + $0x140] ss:$8 sps:$4 sm:$0xff]  }
 0x3a7   :  { %5939 = vmatpush1.bf16.msra.mxu1 %v7761_v14  ;;  %v7862_v14 = vld [vmem:[#allocation14 + $0x134] ss:$8 sps:$4 sm:$0xff]  }
 0x3a8   :  { %5940 = vmatprep.subr.bf16.mxu1 %v7766_v4  ;;  %6428 = vmatpush1.bf16.msra.mxu0 %v7821_v12  ;;  %v7860_v4 = vld [vmem:[#allocation14 + $0x130] ss:$8 sps:$4 sm:$0xff]   ;;  %v7863_v12 = vld [vmem:[#allocation14 + $0x120] ss:$8 sps:$4 sm:$0xff]  }
 0x3a9   :  { %6429 = vmatprep.subr.bf16.mxu0 %v7826_v34  ;;  %v7868_v34 = vld [vmem:[#allocation14 + $0x114] ss:$8 sps:$4 sm:$0xff]  }
 0x3ab   :  { %5941 = vmatpush1.bf16.msra.mxu1 %v7764_v60  ;;  %v7866_v60 = vld [vmem:[#allocation14 + $0x110] ss:$8 sps:$4 sm:$0xff]  }
 0x3ac   :  { %5942 = vmatprep.subr.bf16.mxu1 %v7769_v50  ;;  %6430 = vmatpush2.bf16.msra.mxu0 %v7824_v15  ;;  %v7871_v50 = vld [vmem:[#allocation14 + $0x104] ss:$8 sps:$4 sm:$0xff]   ;;  %v7869_v15 = vld [vmem:[#allocation14 + $0x100] ss:$8 sps:$4 sm:$0xff]  }
 0x3ad   :  { %6431 = vmatprep.subr.bf16.mxu0 %v7829_v8  ;;  %v7874_v8 = vld [vmem:[#allocation14 + $0x1f4] ss:$8 sps:$4 sm:$0xff]  }
 0x3af   :  { %5943 = vmatpush1.bf16.msra.mxu1 %v7767_v3  ;;  %v7872_v3 = vld [vmem:[#allocation14 + $0x1f0] ss:$8 sps:$4 sm:$0xff]  }
 0x3b0   :  { %5944 = vmatprep.subr.bf16.mxu1 %v7772_v38  ;;  %6432 = vmatpush2.bf16.msra.mxu0 %v7827_v23  ;;  %v7877_v38 = vld [vmem:[#allocation14 + $0x1e4] ss:$8 sps:$4 sm:$0xff]   ;;  %v7875_v23 = vld [vmem:[#allocation14 + $0x1e0] ss:$8 sps:$4 sm:$0xff]  }
 0x3b1   :  { %6433 = vmatprep.subr.bf16.mxu0 %v7832_v46  ;;  %v7880_v46 = vld [vmem:[#allocation14 + $0x1d4] ss:$8 sps:$4 sm:$0xff]  }
 0x3b3   :  { %5945 = vmatpush1.bf16.msra.mxu1 %v7770_v26  ;;  %v7878_v26 = vld [vmem:[#allocation14 + $0x1d0] ss:$8 sps:$4 sm:$0xff]  }
 0x3b4   :  { %5946 = vmatprep.subr.bf16.mxu1 %v7775_v44  ;;  %6434 = vmatpush2.bf16.msra.mxu0 %v7830_v1  ;;  %v7883_v44 = vld [vmem:[#allocation14 + $0x1c4] ss:$8 sps:$4 sm:$0xff]  }
 0x3b5   :  { %6435 = vmatprep.subr.bf16.mxu0 %v7835_v13  ;;  %v7881_v13 = vld [vmem:[#allocation14 + $0x1c0] ss:$8 sps:$4 sm:$0xff]  }
 0x3b7   :  { %5947 = vmatpush1.bf16.msra.mxu1 %v7773_v16  ;;  %v7886_v16 = vld [vmem:[#allocation14 + $0x1b4] ss:$8 sps:$4 sm:$0xff]  }
 0x3b8   :  { %5948 = vmatprep.subr.bf16.mxu1 %v7778_v22  ;;  %6436 = vmatpush2.bf16.msra.mxu0 %v7833_v19 }
 0x3b9   :  { %6437 = vmatprep.subr.bf16.mxu0 %v7838_v5  ;;  %v7884_v5 = vld [vmem:[#allocation14 + $0x1b0] ss:$8 sps:$4 sm:$0xff]  }
 0x3bb   :  { %5949 = vmatpush2.bf16.msra.mxu1 %v7776_v21 }
 0x3bc   :  { %5950 = vmatprep.subr.bf16.mxu1 %v7781_v24  ;;  %6438 = vmatpush2.bf16.msra.mxu0 %v7836_v48  ;;  %v5985_v24 = vld [vmem:[#allocation13] sm:$0xf] }
 0x3bd   :  { %6439 = vmatprep.subr.bf16.mxu0 %v7841_v61  ;;  %v5986_v48 = vunpack.c.l.bf16 %v5985_v24  ;;  %v6081_v24 = vld [vmem:[#allocation16] sm:$0x3] }
 0x3bf   :  { %5951 = vmatpush2.bf16.msra.mxu1 %v7779_v25  ;;  %v5995_v25 = vrot.slane %v5986_v48, %v8256_v54 }
 0x3c0   :  { %5952 = vmatprep.subr.bf16.mxu1 %v7784_v27  ;;  %6440 = vmatpush2.bf16.msra.mxu0 %v7839_v28  ;;  %v7889_v27 = vld [vmem:[#allocation14 + $0x1a4] ss:$8 sps:$4 sm:$0xff]  }
 0x3c1   :  { %6441 = vmatprep.subr.bf16.mxu0 %v7844_v17  ;;  %v7887_v17 = vld [vmem:[#allocation14 + $0x1a0] ss:$8 sps:$4 sm:$0xff]  }
 0x3c3   :  { %5953 = vmatpush2.bf16.msra.mxu1 %v7782_v31 }
 0x3c4   :  { %5954 = vmatprep.subr.bf16.mxu1 %v7787_v32  ;;  %6442 = vmatpush2.bf16.msra.mxu0 %v7842_v33 }
 0x3c5   :  { %6443 = vmatprep.subr.bf16.mxu0 %v7847_v49 }
 0x3c7   :  { %5955 = vmatpush2.bf16.msra.mxu1 %v7785_v62  ;;  %v6003_v62 = vcombine.high %v5995_v25, %v5995_v25 }
 0x3c8   :  { %5956 = vmatprep.subr.bf16.mxu1 %v7790_v9  ;;  %6444 = vmatpush2.bf16.msra.mxu0 %v7845_v56  ;;  %v7892_v9 = vld [vmem:[#allocation14 + $0x194] ss:$8 sps:$4 sm:$0xff]  }
 0x3cb   :  { %5957 = vmatpush2.bf16.msra.mxu1 %v7788_v52  ;;  %v5761_v41 = vpop.f32.mrf.mxu0 }
 0x3cc   :  { %v8493_v18 = vadd.f32 %v5761_v41, %v8486_v29  ;;  %5958 = vmatprep.subr.bf16.mxu1 %v7793_v39  ;;  %v7848_v29 = vld [vmem:[#allocation14 + $0x170] ss:$8 sps:$4 sm:$0xff]  }
 0x3cd   :  { %v5763_v0 = vpop.f32.mrf.mxu0  ;;  %v7890_v39 = vld [vmem:[#allocation14 + $0x190] ss:$8 sps:$4 sm:$0xff]  }
 0x3ce   :  { %v8496_v6 = vadd.f32 %v5763_v0, %v8488_v7  ;;  %v7856_v7 = vld [vmem:[#allocation14 + $0x154] ss:$8 sps:$4 sm:$0xff]   ;;  %v7893_v0 = vld [vmem:[#allocation14 + $0x180] ss:$8 sps:$4 sm:$0xff]  }
 0x3cf   :  { %5959 = vmatpush2.bf16.msra.mxu1 %v7791_v40  ;;  %v5765_v51 = vpop.f32.mrf.mxu0 }
 0x3d0   :  { %5960 = vmatprep.subr.bf16.mxu1 %v7796_v42  ;;  %v7895_v51 = vld [vmem:[#allocation14 + $0x184] ss:$8 sps:$4 sm:$0xff]  }
 0x3d1   :  { %v5766_v36 = vpop.f32.mrf.mxu0 }
 0x3d3   :  { %5961 = vmatpush2.bf16.msra.mxu1 %v7794_v53 }
 0x3d4   :  { %5962 = vmatprep.subr.bf16.mxu1 %v7799_v55 }
 0x3d7   :  { %5963 = vmatpush2.bf16.msra.mxu1 %v7797_v57 }
 0x3d8   :  { %6454 = vmatprep.subr.bf16.mxu1 %v7850_v58  ;;  %v4356_v58 = vrot.slane %v8479_v10, %v754_v30 }
 0x3da   :  { %5965 = vmatmul.mubr.bf16.vlgmr.msra.gmra.mxu1 %v8474_v20  ;;  %v7865_v20 = vld [vmem:[#allocation14 + $0x124] ss:$8 sps:$4 sm:$0xff]  }
 0x3db   :  { %6455 = vmatpush1.bf16.msra.mxu1 %v7848_v29 }
 0x3dc   :  { %6456 = vmatprep.subr.bf16.mxu1 %v7853_v59  ;;  %v4360_v59 = vrot.slane %v8479_v10, %v758_v35 }
 0x3df   :  { %6457 = vmatpush1.bf16.msra.mxu1 %v7851_v47 }
 0x3e0   :  { %6458 = vmatprep.subr.bf16.mxu1 %v7856_v7 }
 0x3e3   :  { %6459 = vmatpush1.bf16.msra.mxu1 %v7854_v63 }
 0x3e4   :  { %6460 = vmatprep.subr.bf16.mxu1 %v7859_v11 }
 0x3e7   :  { %6461 = vmatpush1.bf16.msra.mxu1 %v7857_v2 }
 0x3e8   :  { %6462 = vmatprep.subr.bf16.mxu1 %v7862_v14 }
 0x3eb   :  { %6463 = vmatpush1.bf16.msra.mxu1 %v7860_v4 }
 0x3ec   :  { %6464 = vmatprep.subr.bf16.mxu1 %v7865_v20 }
 0x3ef   :  { %6465 = vmatpush1.bf16.msra.mxu1 %v7863_v12 }
 0x3f0   :  { %6466 = vmatprep.subr.bf16.mxu1 %v7868_v34 }
 0x3f3   :  { %6467 = vmatpush1.bf16.msra.mxu1 %v7866_v60  ;;  %v5988_v60 = vcombine.high %v5986_v48, %v5986_v48  ;;  %v6501_v48 = vld [vmem:[#allocation17] sm:$0x3] }
 0x3f4   :  { %6468 = vmatprep.subr.bf16.mxu1 %v7871_v50 }
 0x3f7   :  { %6469 = vmatpush1.bf16.msra.mxu1 %v7869_v15  ;;  %v6002_v15 = vrot.slane %v5988_v60, %v8256_v54 }
 0x3f8   :  { %6470 = vmatprep.subr.bf16.mxu1 %v7874_v8 }
 0x3f9   :  { %v6004_v10 = vcombine.high %v6002_v15, %v6002_v15 }
 0x3fb   :  { %6471 = vmatpush2.bf16.msra.mxu1 %v7872_v3 }
 0x3fc   :  { %6472 = vmatprep.subr.bf16.mxu1 %v7877_v38 }
 0x3ff   :  { %6473 = vmatpush2.bf16.msra.mxu1 %v7875_v23 }
 0x400   :  { %6474 = vmatprep.subr.bf16.mxu1 %v7880_v46 }
 0x403   :  { %6475 = vmatpush2.bf16.msra.mxu1 %v7878_v26 }
 0x404   :  { %6476 = vmatprep.subr.bf16.mxu1 %v7883_v44 }
 0x407   :  { %6477 = vmatpush2.bf16.msra.mxu1 %v7881_v13 }
 0x408   :  { %6478 = vmatprep.subr.bf16.mxu1 %v7886_v16 }
 0x40b   :  { %v5843_v1 = vpop.f32.mrf.mxu0  ;;  %6479 = vmatpush2.bf16.msra.mxu1 %v7884_v5 }
 0x40c   :  { %6480 = vmatprep.subr.bf16.mxu1 %v7889_v27  ;;  %v5844_v47 = vadd.f32 %v5843_v1, %v4356_v58  ;;  %v6090_v27 = vrot.slane %v6081_v24, %v8322_v43  ;;  %v7394_v58 = vld [vmem:[#allocation2] ss:$0 sm:$0xff] }
 0x40d   :  { %v5845_v22 = vpop.f32.mrf.mxu0 }
 0x40e   :  { %v5846_v63 = vadd.f32 %v5845_v22, %v4360_v59 }
 0x40f   :  { %v5847_v19 = vpop.f32.mrf.mxu0  ;;  %6481 = vmatpush2.bf16.msra.mxu1 %v7887_v17 }
 0x410   :  { %6482 = vmatprep.subr.bf16.mxu1 %v7892_v9 }
 0x411   :  { %v5848_v21 = vpop.f32.mrf.mxu0 }
 0x413   :  { %6483 = vmatpush2.bf16.msra.mxu1 %v7890_v39 }
 0x414   :  { %6484 = vmatprep.subr.bf16.mxu1 %v7895_v51 }
 0x417   :  { %6485 = vmatpush2.bf16.msra.mxu1 %v7893_v0 }
 0x41a   :  { %v5802_v61 = vpop.f32.mrf.mxu1 }
 0x41b   :  { %v5803_v28 = vadd.f32 %v5802_v61, %v8493_v18  ;;  %v6086_v61 = vrot.slane %v6081_v24, %v8317_v37 }
 0x41c   :  { %v5804_v31 = vpop.f32.mrf.mxu1 }
 0x41d   :  { %vm5973_vm8 = vcmp.gt.f32.partialorder %v5803_v28, 0.0  ;;  %v5977_v32 = vmul.f32 0.2, %v5803_v28  ;;  %v5805_v33 = vadd.f32 %v5804_v31, %v8496_v6 }
 0x41e   :  { %v5806_v49 = vpop.f32.mrf.mxu1 }
 0x41f   :  { %v5981_v56 = vsel %vm5973_vm8, %v5803_v28, %v5977_v32  ;;  %vm5974_vm9 = vcmp.gt.f32.partialorder %v5805_v33, 0.0  ;;  %v5978_v52 = vmul.f32 0.2, %v5805_v33  ;;  %v6516_v49 = vld [vmem:[#allocation19] sm:$0x3] }
 0x420   :  { %v5807_v41 = vpop.f32.mrf.mxu1  ;;  %v6009_v40 = vmul.f32 %v5995_v25, %v5981_v56  ;;  %v6502_v25 = vunpack.c.l.bf16 %v6501_v48  ;;  %v6525_v51 = vrot.slane %v6516_v49, %v8322_v43 }
 0x421   :  { %v5982_v42 = vsel %vm5974_vm9, %v5805_v33, %v5978_v52  ;;  %v6521_v41 = vrot.slane %v6516_v49, %v8317_v37 }
 0x422   :  { %v6010_v18 = vmul.f32 %v6003_v62, %v5982_v42  ;;  %v6013_v55 = vpack.c.bf16 %v6009_v40, %v6009_v40  ;;  %v6510_v31 = vrot.slane %v6502_v25, %v8256_v54 }
 0x424   :  { %v6014_v53 = vpack.c.bf16 %v6010_v18, %v6010_v18  ;;  %v6511_v39 = vcombine.high %v6510_v31, %v6510_v31 }
 0x426   :  { %6445 = vmatprep.mubr.bf16.mxu0 %v6014_v53 }
 0x427   :  { %6446 = vmatmul.mubr.bf16.vlgmr.msra.gmra.mxu0 %v6013_v55 }
 0x44b   :  { %v5925_v6 = vpop.f32.mrf.mxu0 }
 0x44d   :  { %v5927_v36 = vpop.f32.mrf.mxu0 }
 0x44f   :  { %v5929_v57 = vpop.f32.mrf.mxu0 }
 0x451   :  { %v5930_v29 = vpop.f32.mrf.mxu0 }
 0x45a   :  { %v5884_v7 = vpop.f32.mrf.mxu1 }
 0x45b   :  { %v5885_v11 = vadd.f32 %v5884_v7, %v5844_v47 }
 0x45c   :  { %v5886_v2 = vpop.f32.mrf.mxu1 }
 0x45d   :  { %v5887_v14 = vadd.f32 %v5886_v2, %v5846_v63  ;;  %v5926_v4 = vadd.f32 %v5925_v6, %v5885_v11 }
 0x45e   :  { %v5888_v20 = vpop.f32.mrf.mxu1 }
 0x45f   :  { %v5928_v12 = vadd.f32 %v5927_v36, %v5887_v14 }
 0x460   :  { %v5889_v34 = vpop.f32.mrf.mxu1 }
 0x49a   :  { %v5966_v50 = vpop.f32.mrf.mxu1 }
 0x49b   :  { %v5967_v8 = vadd.f32 %v5966_v50, %v5926_v4 }
 0x49c   :  { %v5968_v30 = vpop.f32.mrf.mxu1 }
 0x49d   :  { %vm5975_vm10 = vcmp.gt.f32.partialorder %v5967_v8, 0.0  ;;  %v5979_v45 = vmul.f32 0.2, %v5967_v8  ;;  %v5969_v3 = vadd.f32 %v5968_v30, %v5928_v12 }
 0x49e   :  { %v5970_v35 = vpop.f32.mrf.mxu1 }
 0x49f   :  { %v5983_v38 = vsel %vm5975_vm10, %v5967_v8, %v5979_v45  ;;  %vm5976_vm11 = vcmp.gt.f32.partialorder %v5969_v3, 0.0  ;;  %v5980_v23 = vmul.f32 0.2, %v5969_v3 }
 0x4a0   :  { %v5971_v46 = vpop.f32.mrf.mxu1  ;;  %v6011_v26 = vmul.f32 %v6002_v15, %v5983_v38 }
 0x4a1   :  { %v5984_v44 = vsel %vm5976_vm11, %v5969_v3, %v5980_v23 }
 0x4a2   :  { %v6012_v1 = vmul.f32 %v6004_v10, %v5984_v44  ;;  %v6015_v16 = vpack.c.bf16 %v6011_v26, %v6011_v26 }
 0x4a4   :  { %v6016_v13 = vpack.c.bf16 %v6012_v1, %v6012_v1 }
 0x4a6   :  { %6486 = vmatprep.mubr.bf16.mxu1 %v6016_v13 }
 0x4a7   :  { %6487 = vmatmul.mubr.bf16.vlgmr.msra.gmra.mxu1 %v6015_v16 }
 0x4e7   :  { %v6447_v22 = vpop.f32.mrf.mxu0 }
 0x4e8   :  { %v6448_v28 = vadd.f32 %v6447_v22, %v6086_v61 }
 0x4e9   :  { %v6449_v19 = vpop.f32.mrf.mxu0 }
 0x4ea   :  { %v6450_v32 = vadd.f32 %v6449_v19, %v6090_v27 }
 0x4eb   :  { %v6451_v5 = vpop.f32.mrf.mxu0 }
 0x4ed   :  { %v6452_v21 = vpop.f32.mrf.mxu0 }
 0x567   :  { %v6488_v17 = vpop.f32.mrf.mxu1 }
 0x568   :  { %v6489_v33 = vadd.f32 %v6488_v17, %v6448_v28 }
 0x569   :  { %v6490_v62 = vpop.f32.mrf.mxu1 }
 0x56a   :  { %vm6495_vm12 = vcmp.gt.f32.partialorder %v6489_v33, 0.0  ;;  %v6497_v9 = vmul.f32 0.2, %v6489_v33  ;;  %v6491_v56 = vadd.f32 %v6490_v62, %v6450_v32 }
 0x56b   :  { %v6492_v52 = vpop.f32.mrf.mxu1 }
 0x56c   :  { %v6499_v40 = vsel %vm6495_vm12, %v6489_v33, %v6497_v9  ;;  %vm6496_vm13 = vcmp.gt.f32.partialorder %v6491_v56, 0.0  ;;  %v6498_v42 = vmul.f32 0.2, %v6491_v56 }
 0x56d   :  { %v6493_v18 = vpop.f32.mrf.mxu1  ;;  %v6514_v0 = vmul.f32 %v6510_v31, %v6499_v40 }
 0x56e   :  { %v6500_v53 = vsel %vm6496_vm13, %v6491_v56, %v6498_v42 }
 0x56f   :  { %v6515_v54 = vmul.f32 %v6511_v39, %v6500_v53  ;;  %v6528_v55 = vmul.f32 %v6521_v41, %v6514_v0 }
 0x571   :  { %v6529_v6 = vmul.f32 %v6525_v51, %v6515_v54  ;;  %v6531_v36 = vsel %vm6530_vm14, %v6528_v55, 0.0 }
 0x573   :  { %v6532_v57 = vsel %vm6530_vm14, %v6529_v6, 0.0 }
 0x574   :  { %v6533_v29 = vadd.f32 %v6532_v57, %v6531_v36 }
 0x576   :  { %6534 = vadd.xlane.f32.xlu0 %v6533_v29 }
 0x5ff   :  { %v6535_v59 = vpop.xlane.xlu0 %6534 }
 0x600   :  { %v6543_v47 = vadd.f32 %v7394_v58, %v6535_v59 }
 0x602   :  { %v7395_v37 = vmul.f32 -1.442695, %v6543_v47 }
 0x604   :  { %7896 = vpow2.f32 %v7395_v37 }
 0x611   :  { %v7897_v7 = vpop.eup %7896 }
 0x612   :  { %v6547_v63 = vadd.f32 1.0, %v7897_v7 }
 0x614   :  { %7898 = vrcp.f32 %v6547_v63 }
 0x621   :  { %v7899_v11 = vpop.eup %7898 }
 0x622   :  { %6551 = vst.msk [vmem:[%s8529_s12] sm:$0x3] %vm6550_vm15, %v7899_v11 }
 0x623   :  { %6556 = vsyncpa [#allocation4], 1 }
 0x624   :  { %6557 = vsyncpa [#allocation6], 1 }
 0x625   :  { %6558 = vsyncpa [#allocation9], 1 }
 0x626   :  { %6559 = vsyncpa [#allocation12], 1 }
 0x627   :  { %6560 = vsyncpa [#allocation15], 1 }
 0x628   :  { %6561 = vsyncpa [#allocation18], 1 }

</bundles_post_ra>
